<compile_context>
chip_gen: v7x
topology: tpu7x:2x2x1
jax: 0.10.0
libtpu: 0.0.40
codegen_flags: <defaults>
</compile_context>

<pallas_src>
import math
import functools

import jax
import jax.numpy as jnp
from jax.experimental import pallas as pl
from jax.experimental.pallas import tpu as pltpu


# ----------------------------------------------------------------------------
# Pallas tiled matmul + bias (+ GELU) kernel
# ----------------------------------------------------------------------------
_FLOP_BYPASS = 8_000_000  # 2*M*N*K below this -> plain XLA dot (fusion-friendly)


def _round_up(x, m):
    return ((x + m - 1) // m) * m


def _use_pallas(M, N, K):
    return (M >= 128) and (2 * M * N * K >= _FLOP_BYPASS)


def _pick_tm(M):
    # Largest 128-aligned tile that still yields >= 2 M tiles (ragged last
    # block is fine: stores are masked).  Keeps both v7x TensorCores busy.
    for tm in (512, 384, 256, 128):
        if M > tm:
            return tm
    return 128


def _gelu_tanh(x):
    # tanh-form GELU: 1 EUP tanh + a handful of VALU ops (vs ~17-op erf poly).
    c = 0.7978845608028654  # sqrt(2/pi)
    return 0.5 * x * (1.0 + jnp.tanh(c * (x + 0.044715 * x * x * x)))


def _mm_kernel(a_ref, b_ref, bias_ref, o_ref, *, act):
    acc = jnp.dot(a_ref[...], b_ref[...], preferred_element_type=jnp.float32)
    acc = acc + bias_ref[...]
    if act:
        acc = _gelu_tanh(acc)
    n = o_ref.shape[-1]            # for Cout<128 store the unpadded width
    o_ref[...] = acc[:, :n].astype(o_ref.dtype)


def matmul_bias_act(a, w, bias, act):
    """a: (M,K), w: (K,N) f32, bias: (N,) f32 -> (M,N) f32 [+ fused GELU]."""
    M, K = a.shape
    _, N = w.shape

    if not _use_pallas(M, N, K):
        # Tiny matmuls (pooled 1x1 convs, low-res layers, Cout=3 heads):
        # plain XLA dot so they fuse with neighbouring elementwise ops.
        out = a.astype(jnp.float32) @ w + bias[None, :]
        return jax.nn.gelu(out, approximate=True) if act else out

    tm = _pick_tm(M)
    Np = _round_up(N, 128)
    if Np <= 256:
        tn = Np
    elif Np % 256 == 0:
        tn = 256
    else:
        tn = 128

    # bf16 operands, f32 MXU accumulation.  Weight pad/cast is constant-folded
    # by XLA since weights are compile-time constants (closed over by jit).
    a_bf = a if a.dtype == jnp.bfloat16 else a.astype(jnp.bfloat16)
    w_bf = jnp.pad(w, ((0, 0), (0, Np - N))).astype(jnp.bfloat16)
    bias_p = jnp.pad(bias, (0, Np - N)).reshape(1, Np)

    # For N < 128 write the unpadded (tm, N) block (legal: block dim equals the
    # full array dim) -> no padded buffer + slice copy afterwards.
    out_block_n = tn if N >= 128 else N

    out = pl.pallas_call(
        functools.partial(_mm_kernel, act=act),
        out_shape=jax.ShapeDtypeStruct((M, N), jnp.float32),
        grid_spec=pltpu.PrefetchScalarGridSpec(
            num_scalar_prefetch=0,
            grid=(pl.cdiv(M, tm), Np // tn),
            in_specs=[
                pl.BlockSpec((tm, K), lambda i, j: (i, 0)),   # full-K block
                pl.BlockSpec((K, tn), lambda i, j: (0, j)),
                pl.BlockSpec((1, tn), lambda i, j: (0, j)),
            ],
            out_specs=pl.BlockSpec((tm, out_block_n), lambda i, j: (i, j)),
        ),
        compiler_params=pltpu.CompilerParams(
            dimension_semantics=("parallel", "parallel"),
            vmem_limit_bytes=32 * 1024 * 1024),
    )(a_bf, w_bf, bias_p)
    return out


# ----------------------------------------------------------------------------
# Conv primitives (NHWC, im2col + Pallas matmul)
# ----------------------------------------------------------------------------
def conv2d(x, wmat, bias, k, stride=1, padding=0, act=False):
    """x: (B,H,W,Cin); wmat: (k*k*Cin, Cout) pre-laid-out at init."""
    B, H, W, Cin = x.shape
    Cout = wmat.shape[1]
    if k == 1 and stride == 1 and padding == 0:
        A = x.reshape(B * H * W, Cin)
        out = matmul_bias_act(A, wmat, bias, act)
        return out.reshape(B, H, W, Cout)
    Ho = (H + 2 * padding - k) // stride + 1
    Wo = (W + 2 * padding - k) // stride + 1
    # Build the im2col buffer directly in bf16 when the Pallas path will be
    # taken: the shifted-slice concat then writes half the HBM bytes and the
    # kernel consumes it without a second cast pass.
    if _use_pallas(B * Ho * Wo, Cout, k * k * Cin):
        x = x.astype(jnp.bfloat16)
    xp = jnp.pad(x, ((0, 0), (padding, padding), (padding, padding), (0, 0)))
    cols = [xp[:, i:i + stride * Ho:stride, j:j + stride * Wo:stride, :]
            for i in range(k) for j in range(k)]
    A = jnp.concatenate(cols, axis=-1).reshape(B * Ho * Wo, k * k * Cin)
    out = matmul_bias_act(A, wmat, bias, act)
    return out.reshape(B, Ho, Wo, Cout)


def make_deconv_matrix(w):
    """PyTorch ConvTranspose2d weight (Cin,Cout,4,4), stride=2, padding=1 ->
    sub-pixel 2x2-conv matrix of shape (4*Cin, 4*Cout) (parity-major cols)."""
    parity_mats = []
    for a in range(2):
        for b in range(2):
            taps = [w[:, :, (3 - a) - 2 * u, (3 - b) - 2 * v]
                    for u in range(2) for v in range(2)]       # each (Cin,Cout)
            parity_mats.append(jnp.concatenate(taps, axis=0))  # (4*Cin, Cout)
    return jnp.concatenate(parity_mats, axis=1)                # (4*Cin, 4*Cout)


def conv_transpose2d_fwd(x, wmat, bias4, cout, act):
    """ConvTranspose2d(k=4, stride=2, padding=1) as a sub-pixel conv."""
    B, H, W, Cin = x.shape
    if _use_pallas(B * (H + 1) * (W + 1), 4 * cout, 4 * Cin):
        x = x.astype(jnp.bfloat16)
    xp = jnp.pad(x, ((0, 0), (1, 1), (1, 1), (0, 0)))
    cols = [xp[:, u:u + H + 1, v:v + W + 1, :] for u in range(2) for v in range(2)]
    A = jnp.concatenate(cols, axis=-1).reshape(B * (H + 1) * (W + 1), 4 * Cin)
    O = matmul_bias_act(A, wmat, bias4, act).reshape(B, H + 1, W + 1, 4, cout)
    parts = [[O[:, a:a + H, b:b + W, 2 * a + b, :] for b in range(2)]
             for a in range(2)]
    out = jnp.stack([jnp.stack(r, axis=0) for r in parts], axis=0)  # (2,2,B,H,W,C)
    out = out.transpose(2, 3, 0, 4, 1, 5).reshape(B, 2 * H, 2 * W, cout)
    return out


def depthwise_down(x, w, b):
    """nn.Conv2d(C, C, kernel_size=2, stride=2, groups=C); x NHWC, w (C,1,2,2)."""
    out = sum(x[:, a::2, c::2, :] * w[:, 0, a, c][None, None, None, :]
              for a in range(2) for c in range(2))
    return out + b[None, None, None, :]


# ----------------------------------------------------------------------------
# AvgPool2d(base_size=210) box-filter (fast_imp=False path), NHWC
# ----------------------------------------------------------------------------
def avgpool210(x):
    n, h, w, c = x.shape
    k1 = min(h, h * 210 // 256)
    k2 = min(w, w * 210 // 256)
    s = jnp.cumsum(jnp.cumsum(x, axis=2), axis=1)
    s = jnp.pad(s, ((0, 0), (1, 0), (1, 0), (0, 0)))
    s1 = s[:, :-k1, :-k2, :]
    s2 = s[:, :-k1, k2:, :]
    s3 = s[:, k1:, :-k2, :]
    s4 = s[:, k1:, k2:, :]
    out = (s4 + s1 - s2 - s3) / (k1 * k2)
    _h, _w = out.shape[1], out.shape[2]
    pleft, pright = (w - _w) // 2, (w - _w + 1) // 2
    ptop, pbot = (h - _h) // 2, (h - _h + 1) // 2
    return jnp.pad(out, ((0, 0), (ptop, pbot), (pleft, pright), (0, 0)),
                   mode='edge')


# ----------------------------------------------------------------------------
# Parameter init (deterministic, synthetic) + module forwards (NHWC)
# ----------------------------------------------------------------------------
class PInit:
    def __init__(self, key):
        self.key = key
        self.i = 0

    def _next(self):
        self.i += 1
        return jax.random.fold_in(self.key, self.i)

    def normal(self, shape, fan_in):
        scale = 1.0 / math.sqrt(float(fan_in))
        return (scale * jax.random.normal(self._next(), shape)).astype(jnp.float32)


def _conv_matrix(w):
    """(Cout, Cin, kh, kw) -> (kh*kw*Cin, Cout) matching (i, j, ci) patch order."""
    cout, cin, kh, kw = w.shape
    return jnp.transpose(w, (2, 3, 1, 0)).reshape(kh * kw * cin, cout)


def init_basic_conv(pi, cin, cout, k, stride, relu, transpose=False):
    if transpose:
        w = pi.normal((cin, cout, k, k), cin * k * k)
        b = jnp.zeros((cout,), jnp.float32)
        return dict(transpose=True, wmat=make_deconv_matrix(w),
                    b4=jnp.tile(b, 4), cout=cout, k=k, stride=stride, relu=relu)
    w = pi.normal((cout, cin, k, k), cin * k * k)
    return dict(transpose=False, wmat=_conv_matrix(w),
                b=jnp.zeros((cout,), jnp.float32),
                cout=cout, k=k, stride=stride, relu=relu)


def basic_conv_fwd(p, x):
    if p['transpose']:
        return conv_transpose2d_fwd(x, p['wmat'], p['b4'], p['cout'], p['relu'])
    return conv2d(x, p['wmat'], p['b'], p['k'], p['stride'], p['k'] // 2, p['relu'])


def init_gap(pi, c):
    return dict(fscale_d=jnp.zeros((c,), jnp.float32),
                fscale_h=jnp.zeros((c,), jnp.float32))


def gap_fwd(p, x):
    x_d = avgpool210(x)
    x_h = (x - x_d) * (p['fscale_h'][None, None, None, :] + 1.0)
    return x_d * p['fscale_d'][None, None, None, :] + x_h


def init_patch_ap(pi, c, ps):
    # h / l parameters stored in (p1, p2, c) order (channels minor) to match
    # the lane-dense internal layout below; values are zeros so this is
    # numerically identical to the PyTorch (c, p1, p2) ordering.
    ch = c * ps * ps
    return dict(h=jnp.zeros((ch,), jnp.float32),
                l=jnp.zeros((ch,), jnp.float32), ps=ps)


def patch_ap_fwd(p, x):
    ps = p['ps']
    b, H, W, c = x.shape
    w1, w2 = H // ps, W // ps
    # Channels stay on the lane axis (dense) through the pooled intermediate.
    px = x.reshape(b, ps, w1, ps, w2, c)
    px = px.transpose(0, 2, 4, 1, 3, 5)                  # (b, w1, w2, p1, p2, c)
    px = px.reshape(b, w1, w2, ps * ps * c)
    low = avgpool210(px)
    high = (px - low) * p['h'][None, None, None, :]
    out = high + low * p['l'][None, None, None, :]
    out = out.reshape(b, w1, w2, ps, ps, c).transpose(0, 3, 1, 4, 2, 5)
    return out.reshape(b, H, W, c)


def init_sfconv(pi, feats, r=2, L=32):
    d = max(feats // r, L)
    fc = pi.normal((d, feats, 1, 1), feats)
    fcs0 = pi.normal((feats, d, 1, 1), d)
    fcs1 = pi.normal((feats, d, 1, 1), d)
    out = pi.normal((feats, feats, 1, 1), feats)
    return dict(
        fc_w=fc.reshape(d, feats).T, fc_b=jnp.zeros((d,), jnp.float32),
        # fcs0 / fcs1 fused into one matmul along N: [high_att | low_att]
        fcs_w=jnp.concatenate([fcs0.reshape(feats, d).T,
                               fcs1.reshape(feats, d).T], axis=1),
        fcs_b=jnp.zeros((2 * feats,), jnp.float32),
        out_w=out.reshape(feats, feats).T,
        out_b=jnp.zeros((feats,), jnp.float32))


def sfconv_fwd(p, low, high):
    C = low.shape[-1]
    emerge = avgpool210(low + high)
    fea_z = conv2d(emerge, p['fc_w'], p['fc_b'], k=1)
    att = conv2d(fea_z, p['fcs_w'], p['fcs_b'], k=1)      # (B,H,W,2C)
    att = jax.nn.softmax(att, axis=-1)                    # softmax over 2C channels
    fea = high * att[..., :C] + low * att[..., C:]
    return conv2d(fea, p['out_w'], p['out_b'], k=1)


def init_dynfilter(pi, c, k):
    w = pi.normal((8 * k * k, c, 1, 1), c)
    return dict(conv_w=w.reshape(8 * k * k, c).T, k=k,
                lamb_l=jnp.zeros((c,), jnp.float32),      # unused in forward (as in PyTorch)
                lamb_h=jnp.zeros((c,), jnp.float32),
                modulate=init_sfconv(pi, c))


def dynfilter_fwd(p, x):
    k = p['k']
    group = 8
    B, H, W, C = x.shape
    lf = jnp.mean(x, axis=(1, 2))                         # AdaptiveAvgPool2d((1,1))
    lf = lf @ p['conv_w']                                 # tiny M=B -> plain dot
    # TODO(synk): BatchNorm2d branch only runs in PyTorch when B > 1; demo uses B=1 so it is skipped.
    filt = jax.nn.softmax(lf.reshape(B, group, k * k), axis=-1)
    filt = jnp.repeat(filt, C // group, axis=1)           # (B, C, k*k)
    pad = k // 2
    xp = jnp.pad(x, ((0, 0), (pad, pad), (pad, pad), (0, 0)), mode='reflect')
    # The dynamic filter is spatially constant -> k*k shifted FMAs, no unfold.
    low_part = jnp.zeros_like(x)
    t = 0
    for i in range(k):
        for j in range(k):
            low_part = low_part + xp[:, i:i + H, j:j + W, :] * \
                filt[:, :, t][:, None, None, :]
            t += 1
    out_high = x - low_part
    return sfconv_fwd(p['modulate'], low_part, out_high)


def init_resblock(pi, c, filt=False):
    p = dict(conv1=init_basic_conv(pi, c, c, 3, 1, True),
             conv2=init_basic_conv(pi, c, c, 3, 1, False),
             filt=filt,
             localap=init_patch_ap(pi, c // 2, 2),
             global_ap=init_gap(pi, c // 2))
    if filt:
        p['dyna'] = init_dynfilter(pi, c // 2, 3)
        p['dyna2'] = init_dynfilter(pi, c // 2, 5)
    return p


def resblock_fwd(p, x):
    out = basic_conv_fwd(p['conv1'], x)
    C = out.shape[-1]
    if p['filt']:
        k3, k5 = out[..., :C // 2], out[..., C // 2:]
        out = jnp.concatenate([dynfilter_fwd(p['dyna'], k3),
                               dynfilter_fwd(p['dyna2'], k5)], axis=-1)
    non_local, local = out[..., :C // 2], out[..., C // 2:]
    non_local = gap_fwd(p['global_ap'], non_local)
    local = patch_ap_fwd(p['localap'], local)
    out = jnp.concatenate([non_local, local], axis=-1)
    out = basic_conv_fwd(p['conv2'], out)
    return out + x


def init_resblock_seq(pi, c, num_res):
    return [init_resblock(pi, c, False) for _ in range(num_res - 1)] + \
           [init_resblock(pi, c, True)]


def resblock_seq_fwd(plist, x):
    for p in plist:
        x = resblock_fwd(p, x)
    return x


def init_unet(pi, c, num_res):
    conv_w = pi.normal((c, 2 * c, 1, 1), 2 * c)
    return dict(layers=init_resblock_seq(pi, c, num_res),
                down_w=pi.normal((c, 1, 2, 2), 4),
                down_b=jnp.zeros((c,), jnp.float32),
                conv_w=conv_w.reshape(c, 2 * c).T,
                conv_b=jnp.zeros((c,), jnp.float32),
                num_res=num_res)


def unet_fwd(p, x):
    res = x
    num_res = p['num_res']
    skip = None
    for i, lp in enumerate(p['layers']):
        if i == num_res // 4:
            skip = x
            x = depthwise_down(x, p['down_w'], p['down_b'])
        if i == num_res - num_res // 4:
            x = jax.image.resize(
                x, (x.shape[0], res.shape[1], res.shape[2], x.shape[3]),
                method='bilinear')
            x = conv2d(jnp.concatenate([x, skip], axis=-1),
                       p['conv_w'], p['conv_b'], k=1)
        x = resblock_fwd(lp, x)
    return x + res


def init_scm(pi, cin, cout):
    return dict(c1=init_basic_conv(pi, cin, cout // 4, 3, 1, True),
                c2=init_basic_conv(pi, cout // 4, cout // 2, 1, 1, True),
                c3=init_basic_conv(pi, cout // 2, cout // 2, 3, 1, True),
                c4=init_basic_conv(pi, cout // 2, cout, 1, 1, False),
                in_w=jnp.ones((cout,), jnp.float32),
                in_b=jnp.zeros((cout,), jnp.float32))


def scm_fwd(p, x):
    x = basic_conv_fwd(p['c1'], x)
    x = basic_conv_fwd(p['c2'], x)
    x = basic_conv_fwd(p['c3'], x)
    x = basic_conv_fwd(p['c4'], x)
    mean = jnp.mean(x, axis=(1, 2), keepdims=True)
    var = jnp.var(x, axis=(1, 2), keepdims=True)
    x = (x - mean) / jnp.sqrt(var + 1e-5)
    return x * p['in_w'][None, None, None, :] + p['in_b'][None, None, None, :]


def init_fsnet(pi, in_channels=3, num_res=4, base=32):
    return dict(
        enc=[init_unet(pi, base, num_res),
             init_resblock_seq(pi, base * 2, num_res),
             init_resblock_seq(pi, base * 4, num_res)],
        feat=[init_basic_conv(pi, in_channels, base, 3, 1, True),
              init_basic_conv(pi, base, base * 2, 3, 2, True),
              init_basic_conv(pi, base * 2, base * 4, 3, 2, True),
              init_basic_conv(pi, base * 4, base * 2, 4, 2, True, transpose=True),
              init_basic_conv(pi, base * 2, base, 4, 2, True, transpose=True),
              init_basic_conv(pi, base, in_channels, 3, 1, False)],
        dec=[init_resblock_seq(pi, base * 4, num_res),
             init_resblock_seq(pi, base * 2, num_res),
             init_unet(pi, base, num_res)],
        convs=[init_basic_conv(pi, base * 4, base * 2, 1, 1, True),
               init_basic_conv(pi, base * 2, base, 1, 1, True)],
        convs_out=[init_basic_conv(pi, base * 4, in_channels, 3, 1, False),
                   init_basic_conv(pi, base * 2, in_channels, 3, 1, False)],
        fam1=init_basic_conv(pi, base * 8, base * 4, 3, 1, False),
        scm1=init_scm(pi, in_channels, base * 4),
        fam2=init_basic_conv(pi, base * 4, base * 2, 3, 1, False),
        scm2=init_scm(pi, in_channels, base * 2),
    )


def fsnet_fwd(p, x_nchw):
    # NCHW at the boundary (PyTorch convention); NHWC internally.
    x = jnp.transpose(x_nchw, (0, 2, 3, 1))
    # F.interpolate(scale_factor=0.5) default mode='nearest' -> stride-2 pick
    x_2 = x[:, ::2, ::2, :]
    x_4 = x_2[:, ::2, ::2, :]
    z2 = scm_fwd(p['scm2'], x_2)
    z4 = scm_fwd(p['scm1'], x_4)

    x_ = basic_conv_fwd(p['feat'][0], x)
    res1 = unet_fwd(p['enc'][0], x_)                       # EBlock1 (Unet)
    z = basic_conv_fwd(p['feat'][1], res1)
    z = basic_conv_fwd(p['fam2'], jnp.concatenate([z, z2], axis=-1))
    res2 = resblock_seq_fwd(p['enc'][1], z)                # EBlock
    z = basic_conv_fwd(p['feat'][2], res2)
    z = basic_conv_fwd(p['fam1'], jnp.concatenate([z, z4], axis=-1))
    z = resblock_seq_fwd(p['enc'][2], z)                   # EBlock

    z = resblock_seq_fwd(p['dec'][0], z)                   # DBlock
    z_ = basic_conv_fwd(p['convs_out'][0], z)
    z = basic_conv_fwd(p['feat'][3], z)
    _out1 = z_ + x_4
    z = jnp.concatenate([z, res2], axis=-1)
    z = basic_conv_fwd(p['convs'][0], z)

    z = resblock_seq_fwd(p['dec'][1], z)                   # DBlock
    z_ = basic_conv_fwd(p['convs_out'][1], z)
    z = basic_conv_fwd(p['feat'][4], z)
    _out2 = z_ + x_2
    z = jnp.concatenate([z, res1], axis=-1)
    z = basic_conv_fwd(p['convs'][1], z)

    z = unet_fwd(p['dec'][2], z)                           # DBlock1 (Unet)
    z = basic_conv_fwd(p['feat'][5], z)
    out = z + x                                            # outputs[-1]
    return jnp.transpose(out, (0, 3, 1, 2))


if __name__ == "__main__":
    key = jax.random.PRNGKey(0)
    pi = PInit(key)
    # Small but structurally valid config: num_res=4 (the internal Unet skip
    # path needs num_res >= 4), base_channel=32 as in the module, 32x32 input.
    params = init_fsnet(pi, in_channels=3, num_res=4, base=32)

    x = jax.random.normal(jax.random.fold_in(key, 12345), (1, 3, 32, 32),
                          dtype=jnp.float32)

    # jit the whole forward; params are closed over so all static ints/bools in
    # the param tree stay Python-level and weight relayouts are folded at
    # compile time.
    fwd = jax.jit(functools.partial(fsnet_fwd, params))
    out = jax.block_until_ready(fwd(x))
    assert out.shape == (1, 3, 32, 32), out.shape
    assert bool(jnp.all(jnp.isfinite(out)))
    print("KERNEL_OK")
</pallas_src>

<mosaic_0001>
module attributes {stable_mosaic.version = 11 : i64} {
  func.func @_mm_kernel(%arg0: i32, %arg1: i32, %arg2: memref<512x288xbf16, #tpu.memory_space<vmem>>, %arg3: memref<288x128xbf16, #tpu.memory_space<vmem>>, %arg4: memref<1x128xf32, #tpu.memory_space<vmem>>, %arg5: memref<512x32xf32, #tpu.memory_space<vmem>>) attributes {dimension_semantics = [#tpu.dimension_semantics<parallel>, #tpu.dimension_semantics<parallel>], iteration_bounds = array<i64: 2, 1>, scalar_prefetch = 0 : i64, scratch_operands = 0 : i64, tpu.core_type = #tpu.core_type<tc>, window_params = [{transform_indices = @transform_0, window_bounds = array<i64: 512, 288>}, {transform_indices = @transform_1, window_bounds = array<i64: 288, 128>}, {transform_indices = @transform_2, window_bounds = array<i64: 1, 128>}, {transform_indices = @transform_3, window_bounds = array<i64: 512, 32>}]} {
    %c0 = arith.constant 0 : index
    %c0_0 = arith.constant 0 : index
    %0 = vector.load %arg2[%c0, %c0_0] : memref<512x288xbf16, #tpu.memory_space<vmem>>, vector<512x288xbf16>
    %c0_1 = arith.constant 0 : index
    %c0_2 = arith.constant 0 : index
    %1 = vector.load %arg3[%c0_1, %c0_2] : memref<288x128xbf16, #tpu.memory_space<vmem>>, vector<288x128xbf16>
    %cst = arith.constant dense<0.000000e+00> : vector<512x128xf32>
    %2 = tpu.matmul %0, %1, %cst {dimension_numbers = #tpu.dot_dimension_numbers<[1], [0], [0], [1], [0, 0, 1, 1], [], []>} : vector<512x288xbf16>, vector<288x128xbf16>, vector<512x128xf32> -> vector<512x128xf32>
    %c0_3 = arith.constant 0 : index
    %c0_4 = arith.constant 0 : index
    %3 = vector.load %arg4[%c0_3, %c0_4] : memref<1x128xf32, #tpu.memory_space<vmem>>, vector<1x128xf32>
    %4 = vector.broadcast %3 : vector<1x128xf32> to vector<512x128xf32>
    %5 = arith.addf %2, %4 : vector<512x128xf32>
    %cst_5 = arith.constant 5.000000e-01 : f32
    %6 = vector.broadcast %cst_5 : f32 to vector<512x128xf32>
    %7 = arith.mulf %6, %5 : vector<512x128xf32>
    %cst_6 = arith.constant 4.471500e-02 : f32
    %8 = vector.broadcast %cst_6 : f32 to vector<512x128xf32>
    %9 = arith.mulf %8, %5 : vector<512x128xf32>
    %10 = arith.mulf %9, %5 : vector<512x128xf32>
    %11 = arith.mulf %10, %5 : vector<512x128xf32>
    %12 = arith.addf %5, %11 : vector<512x128xf32>
    %cst_7 = arith.constant 0.797884583 : f32
    %13 = vector.broadcast %cst_7 : f32 to vector<512x128xf32>
    %14 = arith.mulf %13, %12 : vector<512x128xf32>
    %15 = math.tanh %14 : vector<512x128xf32>
    %cst_8 = arith.constant 1.000000e+00 : f32
    %16 = vector.broadcast %cst_8 : f32 to vector<512x128xf32>
    %17 = arith.addf %16, %15 : vector<512x128xf32>
    %18 = arith.mulf %7, %17 : vector<512x128xf32>
    %19 = vector.extract_strided_slice %18 {offsets = [0, 0], sizes = [512, 32], strides = [1, 1]} : vector<512x128xf32> to vector<512x32xf32>
    %c0_9 = arith.constant 0 : index
    %c0_10 = arith.constant 0 : index
    %20 = vector.load %arg5[%c0_9, %c0_10] : memref<512x32xf32, #tpu.memory_space<vmem>>, vector<512x32xf32>
    tpu.vector_store %arg5[%c0_9, %c0_10], %19 {strides = array<i32>} : memref<512x32xf32, #tpu.memory_space<vmem>>, vector<512x32xf32>,
    return
  }
  func.func @transform_0(%arg0: i32, %arg1: i32) -> (i32, i32) {
    %c0_i32 = arith.constant 0 : i32
    %c0_i32_0 = arith.constant 0 : i32
    return %arg0, %c0_i32 : i32, i32
  }
  func.func @transform_1(%arg0: i32, %arg1: i32) -> (i32, i32) {
    %c0_i32 = arith.constant 0 : i32
    %c0_i32_0 = arith.constant 0 : i32
    return %c0_i32, %arg1 : i32, i32
  }
  func.func @transform_2(%arg0: i32, %arg1: i32) -> (i32, i32) {
    %c0_i32 = arith.constant 0 : i32
    %c0_i32_0 = arith.constant 0 : i32
    return %c0_i32, %arg1 : i32, i32
  }
  func.func @transform_3(%arg0: i32, %arg1: i32) -> (i32, i32) {
    %c0_i32 = arith.constant 0 : i32
    return %arg0, %arg1 : i32, i32
  }
}

module attributes {stable_mosaic.version = 11 : i64} {
  func.func @_mm_kernel(%arg0: i32, %arg1: i32, %arg2: memref<512x288xbf16, #tpu.memory_space<vmem>>, %arg3: memref<288x128xbf16, #tpu.memory_space<vmem>>, %arg4: memref<1x128xf32, #tpu.memory_space<vmem>>, %arg5: memref<512x32xf32, #tpu.memory_space<vmem>>) attributes {dimension_semantics = [#tpu.dimension_semantics<parallel>, #tpu.dimension_semantics<parallel>], iteration_bounds = array<i64: 2, 1>, scalar_prefetch = 0 : i64, scratch_operands = 0 : i64, tpu.core_type = #tpu.core_type<tc>, window_params = [{transform_indices = @transform_0, window_bounds = array<i64: 512, 288>}, {transform_indices = @transform_1, window_bounds = array<i64: 288, 128>}, {transform_indices = @transform_2, window_bounds = array<i64: 1, 128>}, {transform_indices = @transform_3, window_bounds = array<i64: 512, 32>}]} {
    %c0 = arith.constant 0 : index
    %c0_0 = arith.constant 0 : index
    %0 = vector.load %arg2[%c0, %c0_0] : memref<512x288xbf16, #tpu.memory_space<vmem>>, vector<512x288xbf16>
    %c0_1 = arith.constant 0 : index
    %c0_2 = arith.constant 0 : index
    %1 = vector.load %arg3[%c0_1, %c0_2] : memref<288x128xbf16, #tpu.memory_space<vmem>>, vector<288x128xbf16>
    %cst = arith.constant dense<0.000000e+00> : vector<512x128xf32>
    %2 = tpu.matmul %0, %1, %cst {dimension_numbers = #tpu.dot_dimension_numbers<[1], [0], [0], [1], [0, 0, 1, 1], [], []>} : vector<512x288xbf16>, vector<288x128xbf16>, vector<512x128xf32> -> vector<512x128xf32>
    %c0_3 = arith.constant 0 : index
    %c0_4 = arith.constant 0 : index
    %3 = vector.load %arg4[%c0_3, %c0_4] : memref<1x128xf32, #tpu.memory_space<vmem>>, vector<1x128xf32>
    %4 = vector.broadcast %3 : vector<1x128xf32> to vector<512x128xf32>
    %5 = arith.addf %2, %4 : vector<512x128xf32>
    %6 = vector.extract_strided_slice %5 {offsets = [0, 0], sizes = [512, 32], strides = [1, 1]} : vector<512x128xf32> to vector<512x32xf32>
    %c0_5 = arith.constant 0 : index
    %c0_6 = arith.constant 0 : index
    %7 = vector.load %arg5[%c0_5, %c0_6] : memref<512x32xf32, #tpu.memory_space<vmem>>, vector<512x32xf32>
    tpu.vector_store %arg5[%c0_5, %c0_6], %6 {strides = array<i32>} : memref<512x32xf32, #tpu.memory_space<vmem>>, vector<512x32xf32>,
    return
  }
  func.func @transform_0(%arg0: i32, %arg1: i32) -> (i32, i32) {
    %c0_i32 = arith.constant 0 : i32
    %c0_i32_0 = arith.constant 0 : i32
    return %arg0, %c0_i32 : i32, i32
  }
  func.func @transform_1(%arg0: i32, %arg1: i32) -> (i32, i32) {
    %c0_i32 = arith.constant 0 : i32
    %c0_i32_0 = arith.constant 0 : i32
    return %c0_i32, %arg1 : i32, i32
  }
  func.func @transform_2(%arg0: i32, %arg1: i32) -> (i32, i32) {
    %c0_i32 = arith.constant 0 : i32
    %c0_i32_0 = arith.constant 0 : i32
    return %c0_i32, %arg1 : i32, i32
  }
  func.func @transform_3(%arg0: i32, %arg1: i32) -> (i32, i32) {
    %c0_i32 = arith.constant 0 : i32
    return %arg0, %arg1 : i32, i32
  }
}

module attributes {stable_mosaic.version = 11 : i64} {
  func.func @_mm_kernel(%arg0: i32, %arg1: i32, %arg2: memref<128x288xbf16, #tpu.memory_space<vmem>>, %arg3: memref<288x128xbf16, #tpu.memory_space<vmem>>, %arg4: memref<1x128xf32, #tpu.memory_space<vmem>>, %arg5: memref<128x64xf32, #tpu.memory_space<vmem>>) attributes {dimension_semantics = [#tpu.dimension_semantics<parallel>, #tpu.dimension_semantics<parallel>], iteration_bounds = array<i64: 2, 1>, scalar_prefetch = 0 : i64, scratch_operands = 0 : i64, tpu.core_type = #tpu.core_type<tc>, window_params = [{transform_indices = @transform_0, window_bounds = array<i64: 128, 288>}, {transform_indices = @transform_1, window_bounds = array<i64: 288, 128>}, {transform_indices = @transform_2, window_bounds = array<i64: 1, 128>}, {transform_indices = @transform_3, window_bounds = array<i64: 128, 64>}]} {
    %c0 = arith.constant 0 : index
    %c0_0 = arith.constant 0 : index
    %0 = vector.load %arg2[%c0, %c0_0] : memref<128x288xbf16, #tpu.memory_space<vmem>>, vector<128x288xbf16>
    %c0_1 = arith.constant 0 : index
    %c0_2 = arith.constant 0 : index
    %1 = vector.load %arg3[%c0_1, %c0_2] : memref<288x128xbf16, #tpu.memory_space<vmem>>, vector<288x128xbf16>
    %cst = arith.constant dense<0.000000e+00> : vector<128x128xf32>
    %2 = tpu.matmul %0, %1, %cst {dimension_numbers = #tpu.dot_dimension_numbers<[1], [0], [0], [1], [0, 0, 1, 1], [], []>} : vector<128x288xbf16>, vector<288x128xbf16>, vector<128x128xf32> -> vector<128x128xf32>
    %c0_3 = arith.constant 0 : index
    %c0_4 = arith.constant 0 : index
    %3 = vector.load %arg4[%c0_3, %c0_4] : memref<1x128xf32, #tpu.memory_space<vmem>>, vector<1x128xf32>
    %4 = vector.broadcast %3 : vector<1x128xf32> to vector<128x128xf32>
    %5 = arith.addf %2, %4 : vector<128x128xf32>
    %cst_5 = arith.constant 5.000000e-01 : f32
    %6 = vector.broadcast %cst_5 : f32 to vector<128x128xf32>
    %7 = arith.mulf %6, %5 : vector<128x128xf32>
    %cst_6 = arith.constant 4.471500e-02 : f32
    %8 = vector.broadcast %cst_6 : f32 to vector<128x128xf32>
    %9 = arith.mulf %8, %5 : vector<128x128xf32>
    %10 = arith.mulf %9, %5 : vector<128x128xf32>
    %11 = arith.mulf %10, %5 : vector<128x128xf32>
    %12 = arith.addf %5, %11 : vector<128x128xf32>
    %cst_7 = arith.constant 0.797884583 : f32
    %13 = vector.broadcast %cst_7 : f32 to vector<128x128xf32>
    %14 = arith.mulf %13, %12 : vector<128x128xf32>
    %15 = math.tanh %14 : vector<128x128xf32>
    %cst_8 = arith.constant 1.000000e+00 : f32
    %16 = vector.broadcast %cst_8 : f32 to vector<128x128xf32>
    %17 = arith.addf %16, %15 : vector<128x128xf32>
    %18 = arith.mulf %7, %17 : vector<128x128xf32>
    %19 = vector.extract_strided_slice %18 {offsets = [0, 0], sizes = [128, 64], strides = [1, 1]} : vector<128x128xf32> to vector<128x64xf32>
    %c0_9 = arith.constant 0 : index
    %c0_10 = arith.constant 0 : index
    %20 = vector.load %arg5[%c0_9, %c0_10] : memref<128x64xf32, #tpu.memory_space<vmem>>, vector<128x64xf32>
    tpu.vector_store %arg5[%c0_9, %c0_10], %19 {strides = array<i32>} : memref<128x64xf32, #tpu.memory_space<vmem>>, vector<128x64xf32>,
    return
  }
  func.func @transform_0(%arg0: i32, %arg1: i32) -> (i32, i32) {
    %c0_i32 = arith.constant 0 : i32
    %c0_i32_0 = arith.constant 0 : i32
    return %arg0, %c0_i32 : i32, i32
  }
  func.func @transform_1(%arg0: i32, %arg1: i32) -> (i32, i32) {
    %c0_i32 = arith.constant 0 : i32
    %c0_i32_0 = arith.constant 0 : i32
    return %c0_i32, %arg1 : i32, i32
  }
  func.func @transform_2(%arg0: i32, %arg1: i32) -> (i32, i32) {
    %c0_i32 = arith.constant 0 : i32
    %c0_i32_0 = arith.constant 0 : i32
    return %c0_i32, %arg1 : i32, i32
  }
  func.func @transform_3(%arg0: i32, %arg1: i32) -> (i32, i32) {
    %c0_i32 = arith.constant 0 : i32
    return %arg0, %arg1 : i32, i32
  }
}

module attributes {stable_mosaic.version = 11 : i64} {
  func.func @_mm_kernel(%arg0: i32, %arg1: i32, %arg2: memref<128x1152xbf16, #tpu.memory_space<vmem>>, %arg3: memref<1152x128xbf16, #tpu.memory_space<vmem>>, %arg4: memref<1x128xf32, #tpu.memory_space<vmem>>, %arg5: memref<128x64xf32, #tpu.memory_space<vmem>>) attributes {dimension_semantics = [#tpu.dimension_semantics<parallel>, #tpu.dimension_semantics<parallel>], iteration_bounds = array<i64: 2, 1>, scalar_prefetch = 0 : i64, scratch_operands = 0 : i64, tpu.core_type = #tpu.core_type<tc>, window_params = [{transform_indices = @transform_0, window_bounds = array<i64: 128, 1152>}, {transform_indices = @transform_1, window_bounds = array<i64: 1152, 128>}, {transform_indices = @transform_2, window_bounds = array<i64: 1, 128>}, {transform_indices = @transform_3, window_bounds = array<i64: 128, 64>}]} {
    %c0 = arith.constant 0 : index
    %c0_0 = arith.constant 0 : index
    %0 = vector.load %arg2[%c0, %c0_0] : memref<128x1152xbf16, #tpu.memory_space<vmem>>, vector<128x1152xbf16>
    %c0_1 = arith.constant 0 : index
    %c0_2 = arith.constant 0 : index
    %1 = vector.load %arg3[%c0_1, %c0_2] : memref<1152x128xbf16, #tpu.memory_space<vmem>>, vector<1152x128xbf16>
    %cst = arith.constant dense<0.000000e+00> : vector<128x128xf32>
    %2 = tpu.matmul %0, %1, %cst {dimension_numbers = #tpu.dot_dimension_numbers<[1], [0], [0], [1], [0, 0, 1, 1], [], []>} : vector<128x1152xbf16>, vector<1152x128xbf16>, vector<128x128xf32> -> vector<128x128xf32>
    %c0_3 = arith.constant 0 : index
    %c0_4 = arith.constant 0 : index
    %3 = vector.load %arg4[%c0_3, %c0_4] : memref<1x128xf32, #tpu.memory_space<vmem>>, vector<1x128xf32>
    %4 = vector.broadcast %3 : vector<1x128xf32> to vector<128x128xf32>
    %5 = arith.addf %2, %4 : vector<128x128xf32>
    %6 = vector.extract_strided_slice %5 {offsets = [0, 0], sizes = [128, 64], strides = [1, 1]} : vector<128x128xf32> to vector<128x64xf32>
    %c0_5 = arith.constant 0 : index
    %c0_6 = arith.constant 0 : index
    %7 = vector.load %arg5[%c0_5, %c0_6] : memref<128x64xf32, #tpu.memory_space<vmem>>, vector<128x64xf32>
    tpu.vector_store %arg5[%c0_5, %c0_6], %6 {strides = array<i32>} : memref<128x64xf32, #tpu.memory_space<vmem>>, vector<128x64xf32>,
    return
  }
  func.func @transform_0(%arg0: i32, %arg1: i32) -> (i32, i32) {
    %c0_i32 = arith.constant 0 : i32
    %c0_i32_0 = arith.constant 0 : i32
    return %arg0, %c0_i32 : i32, i32
  }
  func.func @transform_1(%arg0: i32, %arg1: i32) -> (i32, i32) {
    %c0_i32 = arith.constant 0 : i32
    %c0_i32_0 = arith.constant 0 : i32
    return %c0_i32, %arg1 : i32, i32
  }
  func.func @transform_2(%arg0: i32, %arg1: i32) -> (i32, i32) {
    %c0_i32 = arith.constant 0 : i32
    %c0_i32_0 = arith.constant 0 : i32
    return %c0_i32, %arg1 : i32, i32
  }
  func.func @transform_3(%arg0: i32, %arg1: i32) -> (i32, i32) {
    %c0_i32 = arith.constant 0 : i32
    return %arg0, %arg1 : i32, i32
  }
}

module attributes {stable_mosaic.version = 11 : i64} {
  func.func @_mm_kernel(%arg0: i32, %arg1: i32, %arg2: memref<128x576xbf16, #tpu.memory_space<vmem>>, %arg3: memref<576x128xbf16, #tpu.memory_space<vmem>>, %arg4: memref<1x128xf32, #tpu.memory_space<vmem>>, %arg5: memref<128x64xf32, #tpu.memory_space<vmem>>) attributes {dimension_semantics = [#tpu.dimension_semantics<parallel>, #tpu.dimension_semantics<parallel>], iteration_bounds = array<i64: 2, 1>, scalar_prefetch = 0 : i64, scratch_operands = 0 : i64, tpu.core_type = #tpu.core_type<tc>, window_params = [{transform_indices = @transform_0, window_bounds = array<i64: 128, 576>}, {transform_indices = @transform_1, window_bounds = array<i64: 576, 128>}, {transform_indices = @transform_2, window_bounds = array<i64: 1, 128>}, {transform_indices = @transform_3, window_bounds = array<i64: 128, 64>}]} {
    %c0 = arith.constant 0 : index
    %c0_0 = arith.constant 0 : index
    %0 = vector.load %arg2[%c0, %c0_0] : memref<128x576xbf16, #tpu.memory_space<vmem>>, vector<128x576xbf16>
    %c0_1 = arith.constant 0 : index
    %c0_2 = arith.constant 0 : index
    %1 = vector.load %arg3[%c0_1, %c0_2] : memref<576x128xbf16, #tpu.memory_space<vmem>>, vector<576x128xbf16>
    %cst = arith.constant dense<0.000000e+00> : vector<128x128xf32>
    %2 = tpu.matmul %0, %1, %cst {dimension_numbers = #tpu.dot_dimension_numbers<[1], [0], [0], [1], [0, 0, 1, 1], [], []>} : vector<128x576xbf16>, vector<576x128xbf16>, vector<128x128xf32> -> vector<128x128xf32>
    %c0_3 = arith.constant 0 : index
    %c0_4 = arith.constant 0 : index
    %3 = vector.load %arg4[%c0_3, %c0_4] : memref<1x128xf32, #tpu.memory_space<vmem>>, vector<1x128xf32>
    %4 = vector.broadcast %3 : vector<1x128xf32> to vector<128x128xf32>
    %5 = arith.addf %2, %4 : vector<128x128xf32>
    %cst_5 = arith.constant 5.000000e-01 : f32
    %6 = vector.broadcast %cst_5 : f32 to vector<128x128xf32>
    %7 = arith.mulf %6, %5 : vector<128x128xf32>
    %cst_6 = arith.constant 4.471500e-02 : f32
    %8 = vector.broadcast %cst_6 : f32 to vector<128x128xf32>
    %9 = arith.mulf %8, %5 : vector<128x128xf32>
    %10 = arith.mulf %9, %5 : vector<128x128xf32>
    %11 = arith.mulf %10, %5 : vector<128x128xf32>
    %12 = arith.addf %5, %11 : vector<128x128xf32>
    %cst_7 = arith.constant 0.797884583 : f32
    %13 = vector.broadcast %cst_7 : f32 to vector<128x128xf32>
    %14 = arith.mulf %13, %12 : vector<128x128xf32>
    %15 = math.tanh %14 : vector<128x128xf32>
    %cst_8 = arith.constant 1.000000e+00 : f32
    %16 = vector.broadcast %cst_8 : f32 to vector<128x128xf32>
    %17 = arith.addf %16, %15 : vector<128x128xf32>
    %18 = arith.mulf %7, %17 : vector<128x128xf32>
    %19 = vector.extract_strided_slice %18 {offsets = [0, 0], sizes = [128, 64], strides = [1, 1]} : vector<128x128xf32> to vector<128x64xf32>
    %c0_9 = arith.constant 0 : index
    %c0_10 = arith.constant 0 : index
    %20 = vector.load %arg5[%c0_9, %c0_10] : memref<128x64xf32, #tpu.memory_space<vmem>>, vector<128x64xf32>
    tpu.vector_store %arg5[%c0_9, %c0_10], %19 {strides = array<i32>} : memref<128x64xf32, #tpu.memory_space<vmem>>, vector<128x64xf32>,
    return
  }
  func.func @transform_0(%arg0: i32, %arg1: i32) -> (i32, i32) {
    %c0_i32 = arith.constant 0 : i32
    %c0_i32_0 = arith.constant 0 : i32
    return %arg0, %c0_i32 : i32, i32
  }
  func.func @transform_1(%arg0: i32, %arg1: i32) -> (i32, i32) {
    %c0_i32 = arith.constant 0 : i32
    %c0_i32_0 = arith.constant 0 : i32
    return %c0_i32, %arg1 : i32, i32
  }
  func.func @transform_2(%arg0: i32, %arg1: i32) -> (i32, i32) {
    %c0_i32 = arith.constant 0 : i32
    %c0_i32_0 = arith.constant 0 : i32
    return %c0_i32, %arg1 : i32, i32
  }
  func.func @transform_3(%arg0: i32, %arg1: i32) -> (i32, i32) {
    %c0_i32 = arith.constant 0 : i32
    return %arg0, %arg1 : i32, i32
  }
}

module attributes {stable_mosaic.version = 11 : i64} {
  func.func @_mm_kernel(%arg0: i32, %arg1: i32, %arg2: memref<128x576xbf16, #tpu.memory_space<vmem>>, %arg3: memref<576x128xbf16, #tpu.memory_space<vmem>>, %arg4: memref<1x128xf32, #tpu.memory_space<vmem>>, %arg5: memref<128x64xf32, #tpu.memory_space<vmem>>) attributes {dimension_semantics = [#tpu.dimension_semantics<parallel>, #tpu.dimension_semantics<parallel>], iteration_bounds = array<i64: 2, 1>, scalar_prefetch = 0 : i64, scratch_operands = 0 : i64, tpu.core_type = #tpu.core_type<tc>, window_params = [{transform_indices = @transform_0, window_bounds = array<i64: 128, 576>}, {transform_indices = @transform_1, window_bounds = array<i64: 576, 128>}, {transform_indices = @transform_2, window_bounds = array<i64: 1, 128>}, {transform_indices = @transform_3, window_bounds = array<i64: 128, 64>}]} {
    %c0 = arith.constant 0 : index
    %c0_0 = arith.constant 0 : index
    %0 = vector.load %arg2[%c0, %c0_0] : memref<128x576xbf16, #tpu.memory_space<vmem>>, vector<128x576xbf16>
    %c0_1 = arith.constant 0 : index
    %c0_2 = arith.constant 0 : index
    %1 = vector.load %arg3[%c0_1, %c0_2] : memref<576x128xbf16, #tpu.memory_space<vmem>>, vector<576x128xbf16>
    %cst = arith.constant dense<0.000000e+00> : vector<128x128xf32>
    %2 = tpu.matmul %0, %1, %cst {dimension_numbers = #tpu.dot_dimension_numbers<[1], [0], [0], [1], [0, 0, 1, 1], [], []>} : vector<128x576xbf16>, vector<576x128xbf16>, vector<128x128xf32> -> vector<128x128xf32>
    %c0_3 = arith.constant 0 : index
    %c0_4 = arith.constant 0 : index
    %3 = vector.load %arg4[%c0_3, %c0_4] : memref<1x128xf32, #tpu.memory_space<vmem>>, vector<1x128xf32>
    %4 = vector.broadcast %3 : vector<1x128xf32> to vector<128x128xf32>
    %5 = arith.addf %2, %4 : vector<128x128xf32>
    %6 = vector.extract_strided_slice %5 {offsets = [0, 0], sizes = [128, 64], strides = [1, 1]} : vector<128x128xf32> to vector<128x64xf32>
    %c0_5 = arith.constant 0 : index
    %c0_6 = arith.constant 0 : index
    %7 = vector.load %arg5[%c0_5, %c0_6] : memref<128x64xf32, #tpu.memory_space<vmem>>, vector<128x64xf32>
    tpu.vector_store %arg5[%c0_5, %c0_6], %6 {strides = array<i32>} : memref<128x64xf32, #tpu.memory_space<vmem>>, vector<128x64xf32>,
    return
  }
  func.func @transform_0(%arg0: i32, %arg1: i32) -> (i32, i32) {
    %c0_i32 = arith.constant 0 : i32
    %c0_i32_0 = arith.constant 0 : i32
    return %arg0, %c0_i32 : i32, i32
  }
  func.func @transform_1(%arg0: i32, %arg1: i32) -> (i32, i32) {
    %c0_i32 = arith.constant 0 : i32
    %c0_i32_0 = arith.constant 0 : i32
    return %c0_i32, %arg1 : i32, i32
  }
  func.func @transform_2(%arg0: i32, %arg1: i32) -> (i32, i32) {
    %c0_i32 = arith.constant 0 : i32
    %c0_i32_0 = arith.constant 0 : i32
    return %c0_i32, %arg1 : i32, i32
  }
  func.func @transform_3(%arg0: i32, %arg1: i32) -> (i32, i32) {
    %c0_i32 = arith.constant 0 : i32
    return %arg0, %arg1 : i32, i32
  }
}

module attributes {stable_mosaic.version = 11 : i64} {
  func.func @_mm_kernel(%arg0: i32, %arg1: i32, %arg2: memref<256x256xbf16, #tpu.memory_space<vmem>>, %arg3: memref<256x128xbf16, #tpu.memory_space<vmem>>, %arg4: memref<1x128xf32, #tpu.memory_space<vmem>>, %arg5: memref<256x128xf32, #tpu.memory_space<vmem>>) attributes {dimension_semantics = [#tpu.dimension_semantics<parallel>, #tpu.dimension_semantics<parallel>], iteration_bounds = array<i64: 2, 1>, scalar_prefetch = 0 : i64, scratch_operands = 0 : i64, tpu.core_type = #tpu.core_type<tc>, window_params = [{transform_indices = @transform_0, window_bounds = array<i64: 256, 256>}, {transform_indices = @transform_1, window_bounds = array<i64: 256, 128>}, {transform_indices = @transform_2, window_bounds = array<i64: 1, 128>}, {transform_indices = @transform_3, window_bounds = array<i64: 256, 128>}]} {
    %c0 = arith.constant 0 : index
    %c0_0 = arith.constant 0 : index
    %0 = vector.load %arg2[%c0, %c0_0] : memref<256x256xbf16, #tpu.memory_space<vmem>>, vector<256x256xbf16>
    %c0_1 = arith.constant 0 : index
    %c0_2 = arith.constant 0 : index
    %1 = vector.load %arg3[%c0_1, %c0_2] : memref<256x128xbf16, #tpu.memory_space<vmem>>, vector<256x128xbf16>
    %cst = arith.constant dense<0.000000e+00> : vector<256x128xf32>
    %2 = tpu.matmul %0, %1, %cst {dimension_numbers = #tpu.dot_dimension_numbers<[1], [0], [0], [1], [0, 0, 1, 1], [], []>} : vector<256x256xbf16>, vector<256x128xbf16>, vector<256x128xf32> -> vector<256x128xf32>
    %c0_3 = arith.constant 0 : index
    %c0_4 = arith.constant 0 : index
    %3 = vector.load %arg4[%c0_3, %c0_4] : memref<1x128xf32, #tpu.memory_space<vmem>>, vector<1x128xf32>
    %4 = vector.broadcast %3 : vector<1x128xf32> to vector<256x128xf32>
    %5 = arith.addf %2, %4 : vector<256x128xf32>
    %cst_5 = arith.constant 5.000000e-01 : f32
    %6 = vector.broadcast %cst_5 : f32 to vector<256x128xf32>
    %7 = arith.mulf %6, %5 : vector<256x128xf32>
    %cst_6 = arith.constant 4.471500e-02 : f32
    %8 = vector.broadcast %cst_6 : f32 to vector<256x128xf32>
    %9 = arith.mulf %8, %5 : vector<256x128xf32>
    %10 = arith.mulf %9, %5 : vector<256x128xf32>
    %11 = arith.mulf %10, %5 : vector<256x128xf32>
    %12 = arith.addf %5, %11 : vector<256x128xf32>
    %cst_7 = arith.constant 0.797884583 : f32
    %13 = vector.broadcast %cst_7 : f32 to vector<256x128xf32>
    %14 = arith.mulf %13, %12 : vector<256x128xf32>
    %15 = math.tanh %14 : vector<256x128xf32>
    %cst_8 = arith.constant 1.000000e+00 : f32
    %16 = vector.broadcast %cst_8 : f32 to vector<256x128xf32>
    %17 = arith.addf %16, %15 : vector<256x128xf32>
    %18 = arith.mulf %7, %17 : vector<256x128xf32>
    %c0_9 = arith.constant 0 : index
    %c0_10 = arith.constant 0 : index
    %19 = vector.load %arg5[%c0_9, %c0_10] : memref<256x128xf32, #tpu.memory_space<vmem>>, vector<256x128xf32>
    tpu.vector_store %arg5[%c0_9, %c0_10], %18 {strides = array<i32>} : memref<256x128xf32, #tpu.memory_space<vmem>>, vector<256x128xf32>,
    return
  }
  func.func @transform_0(%arg0: i32, %arg1: i32) -> (i32, i32) {
    %c0_i32 = arith.constant 0 : i32
    %c0_i32_0 = arith.constant 0 : i32
    return %arg0, %c0_i32 : i32, i32
  }
  func.func @transform_1(%arg0: i32, %arg1: i32) -> (i32, i32) {
    %c0_i32 = arith.constant 0 : i32
    %c0_i32_0 = arith.constant 0 : i32
    return %c0_i32, %arg1 : i32, i32
  }
  func.func @transform_2(%arg0: i32, %arg1: i32) -> (i32, i32) {
    %c0_i32 = arith.constant 0 : i32
    %c0_i32_0 = arith.constant 0 : i32
    return %c0_i32, %arg1 : i32, i32
  }
  func.func @transform_3(%arg0: i32, %arg1: i32) -> (i32, i32) {
    %c0_i32 = arith.constant 0 : i32
    return %arg0, %arg1 : i32, i32
  }
}

</mosaic_0001>

<bundles_post_ra>
// kernel: fsnet_fwd.27
= control target key start
LH: loop header
LB: loop body
LE: loop exit
PB: predicated region body
PF: predicated region fallthrough
CT: control target
= control target key end

     0   :  { %s3045_s12 = smov 0   ;;  %s3047_s13 = smov 0   ;;  %s4261_s0 = inlined_call_operand.vmem [shape: bf16[1024,288], index: 0, kind: input, shape index: {}]   ;;  %s4262_s1 = inlined_call_operand.vmem [shape: bf16[288,128], index: 1, kind: input, shape index: {}]   ;;  %s4263_s2 = inlined_call_operand.vmem [shape: f32[1,128], index: 2, kind: input, shape index: {}]   ;;  %s4264_s3 = inlined_call_operand.vmem [shape: f32[1024,32], index: 3, kind: output, shape index: {}]  }
   0x1   :  { %s3049_s14 = smov 0  }
   0x2 LB: > { %s25_s15 = sadd.s32 1, %s3018_s13  ;;  %p2411_p0 = scmp.ge.s32.totalorder %s3022_s14, 1  ;;  %s3022_s14 = sphi %s3049_s14, %s13_s14   ;;  %s3018_s13 = sphi %s3047_s13, %s4266_s13   ;;  %s3014_s12 = sphi %s3045_s12, %s4265_s12  }
   0x3   : > { %p27_p1 = scmp.ge.s32.totalorder %s25_s15, 2  ;;  %p170_p2 = scmp.lt.s32.totalorder %s3022_s14, 3 }
   0x5   : > { %s4268_s15 = smov (%p27_p1, %s25_s15), 0  ;;  %p171_p3 = pnand %p2411_p0, %p170_p2 }
   0x6   : > { %v2725_v0 = vld [vmem:[%s4262_s1] sm:$0xff] (!%p171_p3)   ;;  %v3024_v1 = vmov (!%p171_p3), 0   ;;  %s2412_s18 = sshll.u32 (!%p171_p3), %s3014_s12, 6  ;;  %v2726_v2 = vld [vmem:[%s4262_s1 + $0x8] sm:$0xff] (!%p171_p3)   ;;  %v2727_v3 = vld [vmem:[%s4262_s1 + $0x10] sm:$0xff] (!%p171_p3)   ;;  %vm988_vm0 = vcmask (!%p171_p3), 261120  }
   0x7   : > { %174 = sbr.rel (%p171_p3) target bundleno = 535 (0x217), region = 32  ;;  %1085 = vmatprep.subr.bf16.mxu0 (!%p171_p3), %v3024_v1  ;;  %2667 = vmatprep.subr.bf16.mxu1 (!%p171_p3), %v3024_v1  ;;  %p206_p4 = scmp.lt.s32.totalorder (!%p171_p3), %s2412_s18, 127  ;;  %v2728_v4 = vld [vmem:[%s4262_s1 + $0x18] sm:$0xff] (!%p171_p3)   ;;  %v2729_v5 = vld [vmem:[%s4262_s1 + $0x20] sm:$0xff] (!%p171_p3)   ;;  %v2730_v7 = vld [vmem:[%s4262_s1 + $0x28] sm:$0xff] (!%p171_p3)  }
   0x8   : > { %1086 = vmatpush1.bf16.msra.mxu0 (!%p171_p3), %v2725_v0  ;;  %2683 = vmatpush1.bf16.msra.mxu1 (!%p171_p3), %v2725_v0  ;;  %v2731_v9 = vld [vmem:[%s4262_s1 + $0x30] sm:$0xff] (!%p171_p3)   ;;  %v2732_v10 = vld [vmem:[%s4262_s1 + $0x38] sm:$0xff] (!%p171_p3)   ;;  %v2733_v11 = vld [vmem:[%s4262_s1 + $0x40] sm:$0xff] (!%p171_p3)  }
   0x9   : > { %1087 = vmatprep.subr.bf16.mxu0 (!%p171_p3), %v3024_v1  ;;  %2668 = vmatprep.subr.bf16.mxu1 (!%p171_p3), %v3024_v1  ;;  %v2734_v12 = vld [vmem:[%s4262_s1 + $0x48] sm:$0xff] (!%p171_p3)   ;;  %v2735_v13 = vld [vmem:[%s4262_s1 + $0x50] sm:$0xff] (!%p171_p3)   ;;  %v2736_v14 = vld [vmem:[%s4262_s1 + $0x58] sm:$0xff] (!%p171_p3)  }
   0xa   : > { %v2737_v15 = vld [vmem:[%s4262_s1 + $0x60] sm:$0xff] (!%p171_p3)   ;;  %v2738_v16 = vld [vmem:[%s4262_s1 + $0x68] sm:$0xff] (!%p171_p3)   ;;  %v2739_v17 = vld [vmem:[%s4262_s1 + $0x70] sm:$0xff] (!%p171_p3)  }
   0xb   : > { %v2740_v18 = vld [vmem:[%s4262_s1 + $0x78] sm:$0xff] (!%p171_p3)   ;;  %v2747_v19 = vld [vmem:[%s4262_s1 + $0x80] sm:$0xff] (!%p171_p3)   ;;  %v2772_v24 = vld [vmem:[%s4262_s1 + $0x88] sm:$0xff] (!%p171_p3)  }
   0xc   : > { %1088 = vmatpush1.bf16.msra.mxu0 (!%p171_p3), %v2726_v2  ;;  %2684 = vmatpush1.bf16.msra.mxu1 (!%p171_p3), %v2726_v2 }
   0xd   : > { %1089 = vmatprep.subr.bf16.mxu0 (!%p171_p3), %v3024_v1  ;;  %2669 = vmatprep.subr.bf16.mxu1 (!%p171_p3), %v3024_v1 }
   0xe   : > { %s4270_s18 = smov (!%p206_p4, %s2412_s18), 127 }
   0xf   : > { %s2699_s25 = smul.u32 12, %s4270_s18  ;;  %s2415_s9 = sshll.u32 %s4270_s18, 3 }
  0x10   : > { %1090 = vmatpush1.bf16.msra.mxu0 %v2727_v3  ;;  %2685 = vmatpush1.bf16.msra.mxu1 %v2727_v3  ;;  %s3464_s11 = scalar_lea.vmem %s4264_s3, %s2415_s9 }
  0x11   : > { %1091 = vmatprep.subr.bf16.mxu0 %v3024_v1  ;;  %2670 = vmatprep.subr.bf16.mxu1 %v3024_v1  ;;  %s3092_s30 = scalar_lea.vmem %s4261_s0, %s2699_s25 }
  0x12   : > { %v2743_v6 = vld [vmem:[%s3092_s30 + $0x4] ss:$12 sps:$4 sm:$0xff]   ;;  %v2741_v20 = vld [vmem:[%s3092_s30] ss:$12 sps:$4 sm:$0xff]   ;;  %v2748_v22 = vld [vmem:[%s3092_s30 + $0x1c] ss:$12 sps:$4 sm:$0xff]  }
  0x13   : > { %v2746_v8 = vld [vmem:[%s3092_s30 + $0x244] ss:$12 sps:$4 sm:$0xff]   ;;  %1117 = vmatprep.mubr.bf16.mxu0 %v2743_v6  ;;  %v2744_v21 = vld [vmem:[%s3092_s30 + $0x240] ss:$12 sps:$4 sm:$0xff]   ;;  %v2750_v23 = vld [vmem:[%s3092_s30 + $0x25c] ss:$12 sps:$4 sm:$0xff]  }
  0x14   : > { %1092 = vmatpush1.bf16.msra.mxu0 %v2728_v4  ;;  %2686 = vmatpush1.bf16.msra.mxu1 %v2728_v4  ;;  %v2752_v25 = vld [vmem:[%s3092_s30 + $0x18] ss:$12 sps:$4 sm:$0xff]   ;;  %v2754_v27 = vld [vmem:[%s3092_s30 + $0x34] ss:$12 sps:$4 sm:$0xff]   ;;  %v2758_v29 = vld [vmem:[%s3092_s30 + $0x30] ss:$12 sps:$4 sm:$0xff]  }
  0x15   : > { %1093 = vmatprep.subr.bf16.mxu0 %v3024_v1  ;;  %2671 = vmatprep.subr.bf16.mxu1 %v3024_v1  ;;  %v2753_v26 = vld [vmem:[%s3092_s30 + $0x258] ss:$12 sps:$4 sm:$0xff]   ;;  %v2756_v28 = vld [vmem:[%s3092_s30 + $0x274] ss:$12 sps:$4 sm:$0xff]   ;;  %v2759_v30 = vld [vmem:[%s3092_s30 + $0x270] ss:$12 sps:$4 sm:$0xff]  }
  0x16   : > { %1309 = vmatprep.mubr.bf16.mxu1 %v2746_v8  ;;  %v2760_v31 = vld [vmem:[%s3092_s30 + $0x4c] ss:$12 sps:$4 sm:$0xff]   ;;  %v2764_v33 = vld [vmem:[%s3092_s30 + $0x48] ss:$12 sps:$4 sm:$0xff]   ;;  %v2766_v35 = vld [vmem:[%s3092_s30 + $0x64] ss:$12 sps:$4 sm:$0xff]  }
  0x17   : > { %v2762_v32 = vld [vmem:[%s3092_s30 + $0x28c] ss:$12 sps:$4 sm:$0xff]   ;;  %v2765_v34 = vld [vmem:[%s3092_s30 + $0x288] ss:$12 sps:$4 sm:$0xff]   ;;  %v2768_v36 = vld [vmem:[%s3092_s30 + $0x2a4] ss:$12 sps:$4 sm:$0xff]  }
  0x18   : > { %1094 = vmatpush1.bf16.msra.mxu0 %v2729_v5  ;;  %2687 = vmatpush1.bf16.msra.mxu1 %v2729_v5  ;;  %v2770_v37 = vld [vmem:[%s3092_s30 + $0x60] ss:$12 sps:$4 sm:$0xff]   ;;  %v2773_v39 = vld [vmem:[%s3092_s30 + $0x7c] ss:$12 sps:$4 sm:$0xff]   ;;  %v2777_v41 = vld [vmem:[%s3092_s30 + $0x78] ss:$12 sps:$4 sm:$0xff]  }
  0x19   : > { %1095 = vmatprep.subr.bf16.mxu0 %v3024_v1  ;;  %2672 = vmatprep.subr.bf16.mxu1 %v3024_v1  ;;  %v2771_v38 = vld [vmem:[%s3092_s30 + $0x2a0] ss:$12 sps:$4 sm:$0xff]   ;;  %v2775_v40 = vld [vmem:[%s3092_s30 + $0x2bc] ss:$12 sps:$4 sm:$0xff]   ;;  %v2778_v42 = vld [vmem:[%s3092_s30 + $0x2b8] ss:$12 sps:$4 sm:$0xff]  }
  0x1a   : > { %v2779_v43 = vld [vmem:[%s3092_s30 + $0x94] ss:$12 sps:$4 sm:$0xff]   ;;  %v2783_v45 = vld [vmem:[%s3092_s30 + $0x90] ss:$12 sps:$4 sm:$0xff]   ;;  %v2785_v47 = vld [vmem:[%s3092_s30 + $0xac] ss:$12 sps:$4 sm:$0xff]  }
  0x1b   : > { %v2781_v44 = vld [vmem:[%s3092_s30 + $0x2d4] ss:$12 sps:$4 sm:$0xff]   ;;  %v2784_v46 = vld [vmem:[%s3092_s30 + $0x2d0] ss:$12 sps:$4 sm:$0xff]   ;;  %v2787_v48 = vld [vmem:[%s3092_s30 + $0x2ec] ss:$12 sps:$4 sm:$0xff]  }
  0x1c   : > { %1096 = vmatpush1.bf16.msra.mxu0 %v2730_v7  ;;  %2688 = vmatpush1.bf16.msra.mxu1 %v2730_v7  ;;  %v2789_v49 = vld [vmem:[%s3092_s30 + $0xa8] ss:$12 sps:$4 sm:$0xff]   ;;  %v2791_v51 = vld [vmem:[%s3092_s30 + $0xc4] ss:$12 sps:$4 sm:$0xff]   ;;  %v2794_v53 = vld [vmem:[%s3092_s30 + $0xc0] ss:$12 sps:$4 sm:$0xff]  }
  0x1d   : > { %1097 = vmatprep.subr.bf16.mxu0 %v3024_v1  ;;  %2673 = vmatprep.subr.bf16.mxu1 %v3024_v1  ;;  %v2790_v50 = vld [vmem:[%s3092_s30 + $0x2e8] ss:$12 sps:$4 sm:$0xff]   ;;  %v2795_v54 = vld [vmem:[%s3092_s30 + $0x20] ss:$12 sps:$4 sm:$0xff]   ;;  %v2798_v56 = vld [vmem:[%s3092_s30 + $0x38] ss:$12 sps:$4 sm:$0xff]  }
  0x1e   : > { %v2793_v52 = vld [vmem:[%s3092_s30 + $0x8] ss:$12 sps:$4 sm:$0xff]   ;;  %v2799_v57 = vld [vmem:[%s3092_s30 + $0xd8] ss:$12 sps:$4 sm:$0xff]   ;;  %v2800_v58 = vld [vmem:[%s3092_s30 + $0x50] ss:$12 sps:$4 sm:$0xff]  }
  0x1f   : > { %v2796_v55 = vld [vmem:[%s3092_s30 + $0xdc] ss:$12 sps:$4 sm:$0xff]   ;;  %v2801_v59 = vld [vmem:[%s3092_s30 + $0xf4] ss:$12 sps:$4 sm:$0xff]   ;;  %v2806_v63 = vld [vmem:[%s3092_s30 + $0x10c] ss:$12 sps:$4 sm:$0xff]  }
  0x20   : > { %1098 = vmatpush1.bf16.msra.mxu0 %v2731_v9  ;;  %2689 = vmatpush1.bf16.msra.mxu1 %v2731_v9  ;;  %v2803_v60 = vld [vmem:[%s3092_s30 + $0x68] ss:$12 sps:$4 sm:$0xff]   ;;  %v2804_v61 = vld [vmem:[%s3092_s30 + $0xf0] ss:$12 sps:$4 sm:$0xff]   ;;  %v2805_v62 = vld [vmem:[%s3092_s30 + $0x80] ss:$12 sps:$4 sm:$0xff]  }
  0x21   : > { %1099 = vmatprep.subr.bf16.mxu0 %v3024_v1  ;;  %2674 = vmatprep.subr.bf16.mxu1 %v3024_v1  ;;  %v2808_v0 = vld [vmem:[%s3092_s30 + $0x98] ss:$12 sps:$4 sm:$0xff]   ;;  %v2810_v2 = vld [vmem:[%s3092_s30 + $0xb0] ss:$12 sps:$4 sm:$0xff]   ;;  %v2813_v4 = vld [vmem:[%s3092_s30 + $0xc8] ss:$12 sps:$4 sm:$0xff]  }
  0x22   : > { %v2811_v3 = vld [vmem:[%s3092_s30 + $0x124] ss:$12 sps:$4 sm:$0xff]   ;;  %v2814_v5 = vld [vmem:[%s3092_s30 + $0x120] ss:$12 sps:$4 sm:$0xff]   ;;  %v2816_v7 = vld [vmem:[%s3092_s30 + $0x13c] ss:$12 sps:$4 sm:$0xff]  }
  0x23   : > { %v2815_v6 = vld [vmem:[%s3092_s30 + $0xe0] ss:$12 sps:$4 sm:$0xff]   ;;  %v2818_v8 = vld [vmem:[%s3092_s30 + $0xf8] ss:$12 sps:$4 sm:$0xff]  }
  0x24   : > { %1100 = vmatpush1.bf16.msra.mxu0 %v2732_v10  ;;  %2690 = vmatpush1.bf16.msra.mxu1 %v2732_v10  ;;  %v2819_v9 = vld [vmem:[%s3092_s30 + $0x138] ss:$12 sps:$4 sm:$0xff]   ;;  %v2820_v10 = vld [vmem:[%s3092_s30 + $0x110] ss:$12 sps:$4 sm:$0xff]  }
  0x25   : > { %1101 = vmatprep.subr.bf16.mxu0 %v3024_v1  ;;  %2675 = vmatprep.subr.bf16.mxu1 %v3024_v1 }
  0x28   : > { %1102 = vmatpush1.bf16.msra.mxu0 %v2733_v11  ;;  %2691 = vmatpush1.bf16.msra.mxu1 %v2733_v11  ;;  %v2821_v11 = vld [vmem:[%s3092_s30 + $0x154] ss:$12 sps:$4 sm:$0xff]  }
  0x29   : > { %1103 = vmatprep.subr.bf16.mxu0 %v3024_v1  ;;  %2676 = vmatprep.subr.bf16.mxu1 %v3024_v1 }
  0x2c   : > { %1104 = vmatpush1.bf16.msra.mxu0 %v2734_v12  ;;  %2692 = vmatpush1.bf16.msra.mxu1 %v2734_v12  ;;  %v2823_v12 = vld [vmem:[%s3092_s30 + $0x128] ss:$12 sps:$4 sm:$0xff]  }
  0x2d   : > { %1105 = vmatprep.subr.bf16.mxu0 %v3024_v1  ;;  %2677 = vmatprep.subr.bf16.mxu1 %v3024_v1 }
  0x30   : > { %1106 = vmatpush1.bf16.msra.mxu0 %v2735_v13  ;;  %2693 = vmatpush1.bf16.msra.mxu1 %v2735_v13  ;;  %v2824_v13 = vld [vmem:[%s3092_s30 + $0x150] ss:$12 sps:$4 sm:$0xff]  }
  0x31   : > { %1107 = vmatprep.subr.bf16.mxu0 %v3024_v1  ;;  %2678 = vmatprep.subr.bf16.mxu1 %v3024_v1 }
  0x34   : > { %1108 = vmatpush1.bf16.msra.mxu0 %v2736_v14  ;;  %2694 = vmatpush1.bf16.msra.mxu1 %v2736_v14  ;;  %v2825_v14 = vld [vmem:[%s3092_s30 + $0x140] ss:$12 sps:$4 sm:$0xff]  }
  0x35   : > { %1109 = vmatprep.subr.bf16.mxu0 %v3024_v1  ;;  %2679 = vmatprep.subr.bf16.mxu1 %v3024_v1 }
  0x38   : > { %1110 = vmatpush1.bf16.msra.mxu0 %v2737_v15  ;;  %2695 = vmatpush1.bf16.msra.mxu1 %v2737_v15  ;;  %v2826_v15 = vld [vmem:[%s3092_s30 + $0x16c] ss:$12 sps:$4 sm:$0xff]  }
  0x39   : > { %1111 = vmatprep.subr.bf16.mxu0 %v3024_v1  ;;  %2680 = vmatprep.subr.bf16.mxu1 %v3024_v1 }
  0x3c   : > { %1112 = vmatpush1.bf16.msra.mxu0 %v2738_v16  ;;  %2696 = vmatpush1.bf16.msra.mxu1 %v2738_v16  ;;  %v2828_v16 = vld [vmem:[%s3092_s30 + $0x158] ss:$12 sps:$4 sm:$0xff]  }
  0x3d   : > { %1113 = vmatprep.subr.bf16.mxu0 %v3024_v1  ;;  %2681 = vmatprep.subr.bf16.mxu1 %v3024_v1 }
  0x40   : > { %1114 = vmatpush1.bf16.msra.mxu0 %v2739_v17  ;;  %2697 = vmatpush1.bf16.msra.mxu1 %v2739_v17  ;;  %v2829_v17 = vld [vmem:[%s3092_s30 + $0x168] ss:$12 sps:$4 sm:$0xff]  }
  0x41   : > { %1115 = vmatprep.subr.bf16.mxu0 %v3024_v1  ;;  %2682 = vmatprep.subr.bf16.mxu1 %v3024_v1  ;;  %v2809_v1 = vld [vmem:[%s3092_s30 + $0x108] ss:$12 sps:$4 sm:$0xff]  }
  0x44   : > { %1116 = vmatpush1.bf16.msra.mxu0 %v2740_v18  ;;  %2698 = vmatpush1.bf16.msra.mxu1 %v2740_v18  ;;  %v2830_v18 = vld [vmem:[%s3092_s30 + $0x170] ss:$12 sps:$4 sm:$0xff]  }
  0x45   : > { %2599 = vmatprep.subr.bf16.mxu1 %v2747_v19 }
  0x47   : > { %1118 = vmatmul.mubr.bf16.vlgmr.msra.gmra.mrb[0].mxu0 %v2741_v20  ;;  %1310 = vmatmul.mubr.bf16.vlgmr.msra.gmra.mrb[0].mxu1 %v2744_v21  ;;  %v2833_v20 = vld [vmem:[%s3092_s30 + $0x188] ss:$12 sps:$4 sm:$0xff]   ;;  %v2834_v21 = vld [vmem:[%s3092_s30 + $0x180] ss:$12 sps:$4 sm:$0xff]  }
  0x48   : > { %2600 = vmatpush3.bf16.msra.mxu1 %v2747_v19  ;;  %1125 = vmatprep.mubr.bf16.mxu0 %v2748_v22  ;;  %v2831_v19 = vld [vmem:[%s3092_s30 + $0x184] ss:$12 sps:$4 sm:$0xff]   ;;  %v2835_v22 = vld [vmem:[%s3092_s30 + $0x1a0] ss:$12 sps:$4 sm:$0xff]  }
  0x49   : > { %1317 = vmatprep.mubr.bf16.mxu1 %v2750_v23  ;;  %2601 = vmatprep.subr.bf16.mxu1 %v2772_v24  ;;  %v2836_v23 = vld [vmem:[%s3092_s30 + $0x19c] ss:$12 sps:$4 sm:$0xff]  }
  0x4c   : > { %2602 = vmatpush3.bf16.msra.mxu1 %v2772_v24  ;;  %v2838_v24 = vld [vmem:[%s3092_s30 + $0x1b8] ss:$12 sps:$4 sm:$0xff]  }
  0x4f   : > { %1126 = vmatmul.mubr.bf16.gmra.mrb[4].mxu0 %v2752_v25  ;;  %1318 = vmatmul.mubr.bf16.gmra.mrb[4].mxu1 %v2753_v26  ;;  %v2839_v25 = vld [vmem:[%s3092_s30 + $0x198] ss:$12 sps:$4 sm:$0xff]   ;;  %v2840_v26 = vld [vmem:[%s3092_s30 + $0x1d0] ss:$12 sps:$4 sm:$0xff]  }
  0x50   : > { %1133 = vmatprep.mubr.bf16.mxu0 %v2754_v27  ;;  %1325 = vmatprep.mubr.bf16.mxu1 %v2756_v28  ;;  %v2841_v27 = vld [vmem:[%s3092_s30 + $0x1b4] ss:$12 sps:$4 sm:$0xff]  }
  0x51   : > { %v2843_v28 = vld [vmem:[%s3092_s30 + $0x1e8] ss:$12 sps:$4 sm:$0xff]  }
  0x57   : > { %1134 = vmatmul.mubr.bf16.gmra.mrb[8].mxu0 %v2758_v29  ;;  %1326 = vmatmul.mubr.bf16.gmra.mrb[8].mxu1 %v2759_v30  ;;  %v2844_v29 = vld [vmem:[%s3092_s30 + $0x1b0] ss:$12 sps:$4 sm:$0xff]   ;;  %v2845_v30 = vld [vmem:[%s3092_s30 + $0x200] ss:$12 sps:$4 sm:$0xff]  }
  0x58   : > { %1141 = vmatprep.mubr.bf16.mxu0 %v2760_v31  ;;  %1333 = vmatprep.mubr.bf16.mxu1 %v2762_v32  ;;  %v2846_v31 = vld [vmem:[%s3092_s30 + $0x1cc] ss:$12 sps:$4 sm:$0xff]  }
  0x59   : > { %v2848_v32 = vld [vmem:[%s3092_s30 + $0x218] ss:$12 sps:$4 sm:$0xff]  }
  0x5f   : > { %1142 = vmatmul.mubr.bf16.gmra.mrb[12].mxu0 %v2764_v33  ;;  %1334 = vmatmul.mubr.bf16.gmra.mrb[12].mxu1 %v2765_v34  ;;  %v2849_v33 = vld [vmem:[%s3092_s30 + $0x1c8] ss:$12 sps:$4 sm:$0xff]   ;;  %v2850_v34 = vld [vmem:[%s3092_s30 + $0x230] ss:$12 sps:$4 sm:$0xff]  }
  0x60   : > { %1149 = vmatprep.mubr.bf16.mxu0 %v2766_v35  ;;  %1341 = vmatprep.mubr.bf16.mxu1 %v2768_v36  ;;  %v2851_v35 = vld [vmem:[%s3092_s30 + $0x1e4] ss:$12 sps:$4 sm:$0xff]   ;;  %v2853_v36 = vld [vmem:[%s3092_s30 + $0x248] ss:$12 sps:$4 sm:$0xff]  }
  0x67   : > { %1150 = vmatmul.mubr.bf16.gmra.mrb[16].mxu0 %v2770_v37  ;;  %1342 = vmatmul.mubr.bf16.gmra.mrb[16].mxu1 %v2771_v38  ;;  %v2854_v37 = vld [vmem:[%s3092_s30 + $0x1e0] ss:$12 sps:$4 sm:$0xff]  }
  0x68   : > { %1157 = vmatprep.mubr.bf16.mxu0 %v2773_v39  ;;  %1349 = vmatprep.mubr.bf16.mxu1 %v2775_v40  ;;  %v2855_v38 = vld [vmem:[%s3092_s30 + $0x260] ss:$12 sps:$4 sm:$0xff]   ;;  %v2856_v39 = vld [vmem:[%s3092_s30 + $0x1fc] ss:$12 sps:$4 sm:$0xff]   ;;  %v2858_v40 = vld [vmem:[%s3092_s30 + $0x278] ss:$12 sps:$4 sm:$0xff]  }
  0x6f   : > { %1158 = vmatmul.mubr.bf16.gmra.mrb[20].mxu0 %v2777_v41  ;;  %1350 = vmatmul.mubr.bf16.gmra.mrb[20].mxu1 %v2778_v42  ;;  %v2859_v41 = vld [vmem:[%s3092_s30 + $0x1f8] ss:$12 sps:$4 sm:$0xff]   ;;  %v2860_v42 = vld [vmem:[%s3092_s30 + $0x290] ss:$12 sps:$4 sm:$0xff]  }
  0x70   : > { %1165 = vmatprep.mubr.bf16.mxu0 %v2779_v43  ;;  %1357 = vmatprep.mubr.bf16.mxu1 %v2781_v44  ;;  %v2861_v43 = vld [vmem:[%s3092_s30 + $0x214] ss:$12 sps:$4 sm:$0xff]  }
  0x71   : > { %v2863_v44 = vld [vmem:[%s3092_s30 + $0x2a8] ss:$12 sps:$4 sm:$0xff]  }
  0x77   : > { %1166 = vmatmul.mubr.bf16.gmra.mrb[24].mxu0 %v2783_v45  ;;  %1358 = vmatmul.mubr.bf16.gmra.mrb[24].mxu1 %v2784_v46  ;;  %v2864_v45 = vld [vmem:[%s3092_s30 + $0x210] ss:$12 sps:$4 sm:$0xff]   ;;  %v2865_v46 = vld [vmem:[%s3092_s30 + $0x2c0] ss:$12 sps:$4 sm:$0xff]  }
  0x78   : > { %1173 = vmatprep.mubr.bf16.mxu0 %v2785_v47  ;;  %1365 = vmatprep.mubr.bf16.mxu1 %v2787_v48  ;;  %v2866_v47 = vld [vmem:[%s3092_s30 + $0x22c] ss:$12 sps:$4 sm:$0xff]  }
  0x79   : > { %v2868_v48 = vld [vmem:[%s3092_s30 + $0x2d8] ss:$12 sps:$4 sm:$0xff]  }
  0x7f   : > { %1174 = vmatmul.mubr.bf16.gmra.mrb[28].mxu0 %v2789_v49  ;;  %1366 = vmatmul.mubr.bf16.gmra.mrb[28].mxu1 %v2790_v50  ;;  %v2869_v49 = vld [vmem:[%s3092_s30 + $0x228] ss:$12 sps:$4 sm:$0xff]   ;;  %v2870_v50 = vld [vmem:[%s3092_s30 + $0x2f0] ss:$12 sps:$4 sm:$0xff]  }
  0x80   : > { %1181 = vmatprep.mubr.bf16.mxu0 %v2791_v51  ;;  %2603 = vmatprep.mubr.msk.bf16.mxu1 %vm988_vm0, %v2793_v52 }
  0x87   : > { %1182 = vmatmul.mubr.bf16.gmra.mrb[32].mxu0 %v2794_v53  ;;  %2604 = vmatmul.mubr.msk.bf16.vlgmr.msra.gmra.mrb[32].mxu1 %vm988_vm0, %v2795_v54 }
  0x88   : > { %1189 = vmatprep.mubr.bf16.mxu0 %v2796_v55  ;;  %2607 = vmatprep.mubr.msk.bf16.mxu1 %vm988_vm0, %v2798_v56 }
  0x8f   : > { %1190 = vmatmul.mubr.bf16.gmra.mrb[36].mxu0 %v2799_v57  ;;  %2608 = vmatmul.mubr.msk.bf16.gmra.mrb[36].mxu1 %vm988_vm0, %v2800_v58 }
  0x90   : > { %1197 = vmatprep.mubr.bf16.mxu0 %v2801_v59  ;;  %2611 = vmatprep.mubr.msk.bf16.mxu1 %vm988_vm0, %v2803_v60 }
  0x97   : > { %1198 = vmatmul.mubr.bf16.gmra.mrb[40].mxu0 %v2804_v61  ;;  %2612 = vmatmul.mubr.msk.bf16.gmra.mrb[40].mxu1 %vm988_vm0, %v2805_v62 }
  0x98   : > { %1205 = vmatprep.mubr.bf16.mxu0 %v2806_v63  ;;  %2615 = vmatprep.mubr.msk.bf16.mxu1 %vm988_vm0, %v2808_v0 }
  0x9f   : > { %1206 = vmatmul.mubr.bf16.gmra.mrb[44].mxu0 %v2809_v1  ;;  %2616 = vmatmul.mubr.msk.bf16.gmra.mrb[44].mxu1 %vm988_vm0, %v2810_v2 }
  0xa0   : > { %1213 = vmatprep.mubr.bf16.mxu0 %v2811_v3  ;;  %2619 = vmatprep.mubr.msk.bf16.mxu1 %vm988_vm0, %v2813_v4 }
  0xa7   : > { %1214 = vmatmul.mubr.bf16.gmra.mrb[48].mxu0 %v2814_v5  ;;  %2620 = vmatmul.mubr.msk.bf16.gmra.mrb[48].mxu1 %vm988_vm0, %v2815_v6 }
  0xa8   : > { %1221 = vmatprep.mubr.bf16.mxu0 %v2816_v7  ;;  %2623 = vmatprep.mubr.msk.bf16.mxu1 %vm988_vm0, %v2818_v8 }
  0xaf   : > { %1222 = vmatmul.mubr.bf16.gmra.mrb[52].mxu0 %v2819_v9  ;;  %2624 = vmatmul.mubr.msk.bf16.gmra.mrb[52].mxu1 %vm988_vm0, %v2820_v10 }
  0xb0   : > { %1229 = vmatprep.mubr.bf16.mxu0 %v2821_v11  ;;  %2627 = vmatprep.mubr.msk.bf16.mxu1 %vm988_vm0, %v2823_v12 }
  0xb7   : > { %1230 = vmatmul.mubr.bf16.gmra.mrb[56].mxu0 %v2824_v13  ;;  %2628 = vmatmul.mubr.msk.bf16.gmra.mrb[56].mxu1 %vm988_vm0, %v2825_v14 }
  0xb8   : > { %1237 = vmatprep.mubr.bf16.mxu0 %v2826_v15  ;;  %2631 = vmatprep.mubr.msk.bf16.mxu1 %vm988_vm0, %v2828_v16 }
  0xbf   : > { %1238 = vmatmul.mubr.bf16.gmra.mrb[60].mxu0 %v2829_v17  ;;  %2632 = vmatmul.mubr.msk.bf16.gmra.mrb[60].mxu1 %vm988_vm0, %v2830_v18 }
  0xc0   : > { %1245 = vmatprep.mubr.bf16.mxu0 %v2831_v19  ;;  %2635 = vmatprep.mubr.msk.bf16.mxu1 %vm988_vm0, %v2833_v20 }
  0xc7   : > { %1246 = vmatmul.mubr.bf16.gmra.mrb[64].mxu0 %v2834_v21  ;;  %2636 = vmatmul.mubr.msk.bf16.gmra.mrb[64].mxu1 %vm988_vm0, %v2835_v22 }
  0xc8   : > { %1253 = vmatprep.mubr.bf16.mxu0 %v2836_v23  ;;  %2639 = vmatprep.mubr.msk.bf16.mxu1 %vm988_vm0, %v2838_v24 }
  0xcf   : > { %1254 = vmatmul.mubr.bf16.gmra.mrb[68].mxu0 %v2839_v25  ;;  %2640 = vmatmul.mubr.msk.bf16.gmra.mrb[68].mxu1 %vm988_vm0, %v2840_v26 }
  0xd0   : > { %1261 = vmatprep.mubr.bf16.mxu0 %v2841_v27  ;;  %2643 = vmatprep.mubr.msk.bf16.mxu1 %vm988_vm0, %v2843_v28 }
  0xd7   : > { %1262 = vmatmul.mubr.bf16.gmra.mrb[72].mxu0 %v2844_v29  ;;  %2644 = vmatmul.mubr.msk.bf16.gmra.mrb[72].mxu1 %vm988_vm0, %v2845_v30 }
  0xd8   : > { %1269 = vmatprep.mubr.bf16.mxu0 %v2846_v31  ;;  %2647 = vmatprep.mubr.msk.bf16.mxu1 %vm988_vm0, %v2848_v32 }
  0xdf   : > { %1270 = vmatmul.mubr.bf16.gmra.mrb[76].mxu0 %v2849_v33  ;;  %2648 = vmatmul.mubr.msk.bf16.gmra.mrb[76].mxu1 %vm988_vm0, %v2850_v34 }
  0xe0   : > { %1277 = vmatprep.mubr.bf16.mxu0 %v2851_v35  ;;  %2651 = vmatprep.mubr.msk.bf16.mxu1 %vm988_vm0, %v2853_v36 }
  0xe7   : > { %1278 = vmatmul.mubr.bf16.gmra.mrb[80].mxu0 %v2854_v37  ;;  %2652 = vmatmul.mubr.msk.bf16.gmra.mrb[80].mxu1 %vm988_vm0, %v2855_v38 }
  0xe8   : > { %1285 = vmatprep.mubr.bf16.mxu0 %v2856_v39  ;;  %2655 = vmatprep.mubr.msk.bf16.mxu1 %vm988_vm0, %v2858_v40 }
  0xef   : > { %1286 = vmatmul.mubr.bf16.gmra.mrb[84].mxu0 %v2859_v41  ;;  %2656 = vmatmul.mubr.msk.bf16.gmra.mrb[84].mxu1 %vm988_vm0, %v2860_v42 }
  0xf0   : > { %1293 = vmatprep.mubr.bf16.mxu0 %v2861_v43  ;;  %2659 = vmatprep.mubr.msk.bf16.mxu1 %vm988_vm0, %v2863_v44 }
  0xf7   : > { %1294 = vmatmul.mubr.bf16.gmra.mrb[88].mxu0 %v2864_v45  ;;  %2660 = vmatmul.mubr.msk.bf16.gmra.mrb[88].mxu1 %vm988_vm0, %v2865_v46 }
  0xf8   : > { %1301 = vmatprep.mubr.bf16.mxu0 %v2866_v47  ;;  %2663 = vmatprep.mubr.msk.bf16.mxu1 %vm988_vm0, %v2868_v48 }
  0xff   : > { %1302 = vmatmul.mubr.bf16.gmra.mrb[92].mxu0 %v2869_v49  ;;  %2664 = vmatmul.mubr.msk.bf16.gmra.mrb[92].mxu1 %vm988_vm0, %v2870_v50  ;;  %v3302_v49 = vld [vmem:[%s4263_s2] ss:$0 sm:$0xff] }
 0x11a   : > { %v3285_v51 = vpop.f32.mrb[0].mxu0  ;;  %v3287_v52 = vpop.f32.mrb[0].mxu1 }
 0x11b   : > { %v1121_v53 = vpop.f32.mrb[1].mxu0  ;;  %v1313_v54 = vpop.f32.mrb[1].mxu1 }
 0x11c   : > { %v3289_v55 = vpop.f32.mrb[2].mxu0  ;;  %v3291_v56 = vpop.f32.mrb[2].mxu1  ;;  %v1120_v54 = vadd.f32 %v3302_v49, %v3285_v51 }
 0x11d   : > { %v1124_v57 = vpop.f32.mrb[3].mxu0  ;;  %v1316_v58 = vpop.f32.mrb[3].mxu1 }
 0x11e   : > { %v3308_v57 = vadd.f32 %v3302_v49, %v3287_v52  ;;  %v1123_v58 = vadd.f32 %v3302_v49, %v3289_v55 }
 0x122   : > { %v1127_v59 = vpop.f32.mrb[4].mxu0  ;;  %v1319_v60 = vpop.f32.mrb[4].mxu1 }
 0x123   : > { %v1129_v61 = vpop.f32.mrb[5].mxu0  ;;  %v1321_v62 = vpop.f32.mrb[5].mxu1 }
 0x124   : > { %v1130_v63 = vpop.f32.mrb[6].mxu0  ;;  %v1322_v0 = vpop.f32.mrb[6].mxu1  ;;  %v3314_v61 = vadd.f32 %v3302_v49, %v3291_v56  ;;  %v1128_v62 = vadd.f32 %v3302_v49, %v1127_v59 }
 0x125   : > { %v1132_v1 = vpop.f32.mrb[7].mxu0  ;;  %v1324_v2 = vpop.f32.mrb[7].mxu1  ;;  %v3322_v51 = vadd.f32 %v3302_v49, %v1322_v0 }
 0x126   : > { %v3318_v1 = vadd.f32 %v3302_v49, %v1319_v60  ;;  %v1131_v2 = vadd.f32 %v3302_v49, %v1130_v63 }
 0x12a   : > { %v1135_v3 = vpop.f32.mrb[8].mxu0  ;;  %v1327_v4 = vpop.f32.mrb[8].mxu1 }
 0x12b   : > { %v1137_v5 = vpop.f32.mrb[9].mxu0  ;;  %v1329_v6 = vpop.f32.mrb[9].mxu1  ;;  %v1136_v52 = vadd.f32 %v3302_v49, %v1135_v3 }
 0x12c   : > { %v1138_v7 = vpop.f32.mrb[10].mxu0  ;;  %v1330_v8 = vpop.f32.mrb[10].mxu1  ;;  %v3326_v5 = vadd.f32 %v3302_v49, %v1327_v4 }
 0x12d   : > { %v1140_v9 = vpop.f32.mrb[11].mxu0  ;;  %v1332_v10 = vpop.f32.mrb[11].mxu1  ;;  %v3329_v56 = vadd.f32 %v3302_v49, %v1138_v7  ;;  %v3332_v59 = vadd.f32 %v3302_v49, %v1330_v8 }
 0x132   : > { %v1143_v11 = vpop.f32.mrb[12].mxu0  ;;  %v1335_v12 = vpop.f32.mrb[12].mxu1 }
 0x133   : > { %v1145_v13 = vpop.f32.mrb[13].mxu0  ;;  %v1337_v14 = vpop.f32.mrb[13].mxu1  ;;  %v1144_v60 = vadd.f32 %v3302_v49, %v1143_v11  ;;  %v3336_v0 = vadd.f32 %v3302_v49, %v1335_v12 }
 0x134   : > { %v1146_v15 = vpop.f32.mrb[14].mxu0  ;;  %v1338_v16 = vpop.f32.mrb[14].mxu1 }
 0x135   : > { %v1148_v17 = vpop.f32.mrb[15].mxu0  ;;  %v1340_v18 = vpop.f32.mrb[15].mxu1  ;;  %v1147_v3 = vadd.f32 %v3302_v49, %v1146_v15  ;;  %v3340_v4 = vadd.f32 %v3302_v49, %v1338_v16 }
 0x13a   : > { %v1151_v19 = vpop.f32.mrb[16].mxu0  ;;  %v1343_v20 = vpop.f32.mrb[16].mxu1 }
 0x13b   : > { %v1153_v21 = vpop.f32.mrb[17].mxu0  ;;  %v1345_v22 = vpop.f32.mrb[17].mxu1  ;;  %v3345_v8 = vadd.f32 %v3302_v49, %v1151_v19  ;;  %v3348_v11 = vadd.f32 %v3302_v49, %v1343_v20 }
 0x13c   : > { %v1154_v23 = vpop.f32.mrb[18].mxu0  ;;  %v1346_v24 = vpop.f32.mrb[18].mxu1 }
 0x13d   : > { %v1156_v25 = vpop.f32.mrb[19].mxu0  ;;  %v1348_v26 = vpop.f32.mrb[19].mxu1  ;;  %v3353_v15 = vadd.f32 %v3302_v49, %v1154_v23  ;;  %v3356_v16 = vadd.f32 %v3302_v49, %v1346_v24 }
 0x142   : > { %v1159_v27 = vpop.f32.mrb[20].mxu0  ;;  %v1351_v28 = vpop.f32.mrb[20].mxu1 }
 0x143   : > { %v1161_v29 = vpop.f32.mrb[21].mxu0  ;;  %v1353_v30 = vpop.f32.mrb[21].mxu1  ;;  %v3360_v19 = vadd.f32 %v3302_v49, %v1159_v27  ;;  %v3363_v20 = vadd.f32 %v3302_v49, %v1351_v28 }
 0x144   : > { %v1162_v31 = vpop.f32.mrb[22].mxu0  ;;  %v1354_v32 = vpop.f32.mrb[22].mxu1 }
 0x145   : > { %v1164_v33 = vpop.f32.mrb[23].mxu0  ;;  %v1356_v34 = vpop.f32.mrb[23].mxu1  ;;  %v3367_v30 = vadd.f32 %v3302_v49, %v1162_v31  ;;  %v3370_v23 = vadd.f32 %v3302_v49, %v1354_v32 }
 0x14a   : > { %v1167_v35 = vpop.f32.mrb[24].mxu0  ;;  %v1359_v36 = vpop.f32.mrb[24].mxu1 }
 0x14b   : > { %v1169_v37 = vpop.f32.mrb[25].mxu0  ;;  %v1361_v38 = vpop.f32.mrb[25].mxu1  ;;  %v3374_v34 = vadd.f32 %v3302_v49, %v1167_v35  ;;  %v3377_v27 = vadd.f32 %v3302_v49, %v1359_v36 }
 0x14c   : > { %v1170_v39 = vpop.f32.mrb[26].mxu0  ;;  %v3293_v40 = vpop.f32.mrb[26].mxu1 }
 0x14d   : > { %v1172_v41 = vpop.f32.mrb[27].mxu0  ;;  %v1364_v42 = vpop.f32.mrb[27].mxu1  ;;  %v3381_v38 = vadd.f32 %v3302_v49, %v1170_v39 }
 0x152   : > { %v1175_v43 = vpop.f32.mrb[28].mxu0  ;;  %v1367_v44 = vpop.f32.mrb[28].mxu1 }
 0x153   : > { %v1177_v45 = vpop.f32.mrb[29].mxu0  ;;  %v1369_v46 = vpop.f32.mrb[29].mxu1  ;;  %v3384_v31 = vadd.f32 %v3302_v49, %v1175_v43  ;;  %v3388_v35 = vadd.f32 %v3302_v49, %v1367_v44 }
 0x154   : > { %v3295_v47 = vpop.f32.mrb[30].mxu0  ;;  %v3297_v48 = vpop.f32.mrb[30].mxu1 }
 0x155   : > { %v1180_v50 = vpop.f32.mrb[31].mxu0  ;;  %v1372_v53 = vpop.f32.mrb[31].mxu1  ;;  %v3393_v39 = vadd.f32 %v3302_v49, %v3295_v47  ;;  %v3398_v44 = vadd.f32 %v3302_v49, %v3297_v48 }
 0x15a   : > { %v1183_v55 = vpop.f32.mrb[32].mxu0  ;;  %v2605_v6 = vpop.f32.mrb[32].mxu1 }
 0x15b   : > { %v1417_v9 = vadd.f32 %v2605_v6, %v1128_v62  ;;  %v1185_v63 = vpop.f32.mrb[33].mxu0  ;;  %v1408_v10 = vpop.f32.mrb[33].mxu1 }
 0x15c   : > { %v3342_v13 = vadd.f32 %v1408_v10, %v1120_v54  ;;  %v1186_v7 = vpop.f32.mrb[34].mxu0  ;;  %v2606_v14 = vpop.f32.mrb[34].mxu1 }
 0x15d   : > { %v1729_v17 = vmul.f32 0.044715, %v1417_v9  ;;  %v3350_v18 = vadd.f32 %v2606_v14, %v1131_v2  ;;  %v1188_v12 = vpop.f32.mrb[35].mxu0  ;;  %v1411_v21 = vpop.f32.mrb[35].mxu1 }
 0x15e   : > { %v1727_v22 = vmul.f32 0.044715, %v3342_v13  ;;  %v1412_v25 = vadd.f32 %v1411_v21, %v1123_v58 }
 0x15f   : > { %v1793_v26 = vmul.f32 %v1729_v17, %v1417_v9  ;;  %v1730_v29 = vmul.f32 0.044715, %v3350_v18  ;;  %v3402_v17 = vadd.f32 %v3302_v49, %v1183_v55 }
 0x160   : > { %v1791_v24 = vmul.f32 %v1727_v22, %v3342_v13  ;;  %v1728_v33 = vmul.f32 0.044715, %v1412_v25 }
 0x161   : > { %v1857_v28 = vmul.f32 %v1793_v26, %v1417_v9  ;;  %v1794_v37 = vmul.f32 %v1730_v29, %v3350_v18  ;;  %v3404_v26 = vmul.f32 0.5, %v1417_v9 }
 0x162   : > { %v1855_v32 = vmul.f32 %v1791_v24, %v3342_v13  ;;  %v1792_v41 = vmul.f32 %v1728_v33, %v1412_v25  ;;  %v1191_v42 = vpop.f32.mrb[36].mxu0  ;;  %v2609_v45 = vpop.f32.mrb[36].mxu1 }
 0x163   : > { %v1921_v46 = vadd.f32 %v1857_v28, %v1417_v9  ;;  %v1858_v36 = vmul.f32 %v1794_v37, %v3350_v18  ;;  %v1433_v50 = vadd.f32 %v2609_v45, %v1144_v60  ;;  %v1193_v53 = vpop.f32.mrb[37].mxu0  ;;  %v1424_v54 = vpop.f32.mrb[37].mxu1  ;;  %v3407_v28 = vadd.f32 %v3302_v49, %v1186_v7 }
 0x164   : > { %v1919_v43 = vadd.f32 %v1855_v32, %v3342_v13  ;;  %v1856_v58 = vmul.f32 %v1792_v41, %v1412_v25  ;;  %v1425_v62 = vadd.f32 %v1424_v54, %v1136_v52  ;;  %v1194_v2 = vpop.f32.mrb[38].mxu0  ;;  %v2610_v6 = vpop.f32.mrb[38].mxu1  ;;  %v3413_v32 = vmul.f32 0.5, %v3342_v13 }
 0x165   : > { %v1985_v63 = vmul.f32 0.7978846, %v1921_v46  ;;  %v1922_v10 = vadd.f32 %v1858_v36, %v3350_v18  ;;  %v1733_v60 = vmul.f32 0.044715, %v1433_v50  ;;  %v1196_v14 = vpop.f32.mrb[39].mxu0  ;;  %v1427_v22 = vpop.f32.mrb[39].mxu1  ;;  %v1436_v33 = vadd.f32 %v2610_v6, %v1147_v3 }
 0x166   : > { %v1983_v47 = vmul.f32 0.7978846, %v1919_v43  ;;  %v1920_v12 = vadd.f32 %v1856_v58, %v1412_v25  ;;  %v1731_v21 = vmul.f32 0.044715, %v1425_v62  ;;  %v3410_v55 = vadd.f32 %v1427_v22, %v3329_v56 }
 0x167   : > { %2871 = vtanh.f32 %v1985_v63  ;;  %v1986_v52 = vmul.f32 0.7978846, %v1922_v10  ;;  %v1797_v29 = vmul.f32 %v1733_v60, %v1433_v50  ;;  %v1734_v41 = vmul.f32 0.044715, %v1436_v33 }
 0x168   : > { %2873 = vtanh.f32 %v1983_v47  ;;  %v1984_v48 = vmul.f32 0.7978846, %v1920_v12  ;;  %v1795_v24 = vmul.f32 %v1731_v21, %v1425_v62  ;;  %v3418_v36 = vmul.f32 0.5, %v3350_v18 }
 0x169   : > { %2875 = vtanh.f32 %v1986_v52  ;;  %v1861_v37 = vmul.f32 %v1797_v29, %v1433_v50  ;;  %v3420_v3 = vmul.f32 0.5, %v1412_v25  ;;  %v1732_v53 = vmul.f32 0.044715, %v3410_v55 }
 0x16a   : > { %2877 = vtanh.f32 %v1984_v48  ;;  %v1859_v9 = vmul.f32 %v1795_v24, %v1425_v62  ;;  %v3415_v45 = vpop.f32.mrb[40].mxu0  ;;  %v2613_v46 = vpop.f32.mrb[40].mxu1  ;;  %v1798_v58 = vmul.f32 %v1734_v41, %v1436_v33  ;;  %v3432_v25 = vadd.f32 %v3302_v49, %v1191_v42 }
 0x16b   : > { %v1925_v7 = vadd.f32 %v1861_v37, %v1433_v50  ;;  %v1201_v54 = vpop.f32.mrb[41].mxu0  ;;  %v1440_v56 = vpop.f32.mrb[41].mxu1  ;;  %v3424_v13 = vadd.f32 %v2613_v46, %v3360_v19  ;;  %v1796_v60 = vmul.f32 %v1732_v53, %v3410_v55  ;;  %v3438_v19 = vmul.f32 0.5, %v1433_v50 }
 0x16c   : > { %v1923_v43 = vadd.f32 %v1859_v9, %v1425_v62  ;;  %v3427_v6 = vadd.f32 %v1440_v56, %v3345_v8  ;;  %v3429_v63 = vpop.f32.mrb[42].mxu0  ;;  %v2614_v18 = vpop.f32.mrb[42].mxu1  ;;  %v1862_v8 = vmul.f32 %v1798_v58, %v1436_v33  ;;  %v3441_v52 = vmul.f32 0.5, %v1425_v62 }
 0x16d   : > { %v1989_v10 = vmul.f32 0.7978846, %v1925_v7  ;;  %v3436_v14 = vadd.f32 %v2614_v18, %v3367_v30  ;;  %v1204_v47 = vpop.f32.mrb[43].mxu0  ;;  %v1443_v12 = vpop.f32.mrb[43].mxu1  ;;  %v1737_v22 = vmul.f32 0.044715, %v3424_v13  ;;  %v1860_v42 = vmul.f32 %v1796_v60, %v3410_v55 }
 0x16e   : > { %v1987_v21 = vmul.f32 0.7978846, %v1923_v43  ;;  %v1735_v29 = vmul.f32 0.044715, %v3427_v6  ;;  %v3447_v30 = vadd.f32 %v3302_v49, %v1194_v2  ;;  %v1926_v48 = vadd.f32 %v1862_v8, %v1436_v33 }
 0x16f   : > { %2879 = vtanh.f32 %v1989_v10  ;;  %v1801_v50 = vmul.f32 %v1737_v22, %v3424_v13  ;;  %v1924_v37 = vadd.f32 %v1860_v42, %v3410_v55  ;;  %v1738_v62 = vmul.f32 0.044715, %v3436_v14 }
 0x170   : > { %2881 = vtanh.f32 %v1987_v21  ;;  %v1799_v9 = vmul.f32 %v1735_v29, %v3427_v6  ;;  %v3454_v41 = vadd.f32 %v1443_v12, %v3353_v15  ;;  %v3456_v53 = vmul.f32 0.5, %v1436_v33 }
 0x171   : > { %v2872_v24 = vpop.eup %2871  ;;  %v1990_v54 = vmul.f32 0.7978846, %v1926_v48  ;;  %v1865_v2 = vmul.f32 %v1801_v50, %v3424_v13  ;;  %v1988_v10 = vmul.f32 0.7978846, %v1924_v37  ;;  %v1802_v60 = vmul.f32 %v1738_v62, %v3436_v14 }
 0x172   : > { %v2874_v46 = vpop.eup %2873  ;;  %v2113_v7 = vadd.f32 1.0, %v2872_v24  ;;  %v3459_v56 = vpop.f32.mrb[44].mxu0  ;;  %v1863_v15 = vmul.f32 %v1799_v9, %v3427_v6  ;;  %v3478_v62 = vmul.f32 0.5, %v3410_v55 }
 0x173   : > { %v2617_v43 = vpop.f32.mrb[44].mxu1  ;;  %v2876_v58 = vpop.eup %2875  ;;  %v2111_v18 = vadd.f32 1.0, %v2874_v46  ;;  %2883 = vtanh.f32 %v1990_v54  ;;  %v1929_v22 = vadd.f32 %v1865_v2, %v3424_v13  ;;  %v3486_v54 = vadd.f32 %v3302_v49, %v3415_v45 }
 0x174   : > { %v1209_v33 = vpop.f32.mrb[45].mxu0  ;;  %v1456_v47 = vpop.f32.mrb[45].mxu1  ;;  %v2177_v21 = vmul.f32 %v2113_v7, %v3404_v26  ;;  %v2114_v8 = vadd.f32 1.0, %v2876_v58  ;;  %2885 = vtanh.f32 %v1988_v10  ;;  %v1927_v24 = vadd.f32 %v1863_v15, %v3427_v6 }
 0x175   : > { %v2878_v12 = vpop.eup %2877  ;;  %v3470_v42 = vpop.f32.mrb[46].mxu0  ;;  %v2175_v48 = vmul.f32 %v2111_v18, %v3413_v32  ;;  %v1993_v46 = vmul.f32 0.7978846, %v1929_v22  ;;  %v1866_v7 = vmul.f32 %v1802_v60, %v3436_v14  ;;  %v1736_v58 = vmul.f32 0.044715, %v3454_v41 }
 0x176   : > { %v2618_v29 = vpop.f32.mrb[46].mxu1  ;;  %v2112_v50 = vadd.f32 1.0, %v2878_v12  ;;  %v1212_v37 = vpop.f32.mrb[47].mxu0  ;;  %2241 = vst.msk [vmem:[%s3464_s11 + $0x10] sm:$0xff] %vm988_vm0, %v2177_v21  ;;  %v2178_v26 = vmul.f32 %v2114_v8, %v3418_v36  ;;  %v1991_v2 = vmul.f32 0.7978846, %v1927_v24  ;;  %v3493_v36 = vadd.f32 %v2617_v43, %v3384_v31 }
 0x177   : > { %v1459_v9 = vpop.f32.mrb[47].mxu1  ;;  %2239 = vst.msk [vmem:[%s3464_s11] sm:$0xff] %vm988_vm0, %v2175_v48  ;;  %2887 = vtanh.f32 %v1993_v46  ;;  %v1930_v55 = vadd.f32 %v1866_v7, %v3436_v14  ;;  %v3496_v18 = vadd.f32 %v1456_v47, %v3374_v34  ;;  %v3502_v45 = vadd.f32 %v3302_v49, %v3429_v63 }
 0x178   : > { %v2176_v32 = vmul.f32 %v2112_v50, %v3420_v3  ;;  %2242 = vst.msk [vmem:[%s3464_s11 + $0x18] sm:$0xff] %vm988_vm0, %v2178_v26  ;;  %2889 = vtanh.f32 %v1991_v2  ;;  %v1800_v3 = vmul.f32 %v1736_v58, %v3454_v41  ;;  %v3506_v15 = vadd.f32 %v2618_v29, %v3393_v39 }
 0x179   : > { %v2880_v10 = vpop.eup %2879  ;;  %v3509_v31 = vmul.f32 0.5, %v3424_v13  ;;  %v1994_v34 = vmul.f32 0.7978846, %v1930_v55  ;;  %v1741_v43 = vmul.f32 0.044715, %v3493_v36  ;;  %v3513_v12 = vmul.f32 0.5, %v3427_v6 }
 0x17a   : > { %2240 = vst.msk [vmem:[%s3464_s11 + $0x8] sm:$0xff] %vm988_vm0, %v2176_v32  ;;  %v2882_v60 = vpop.eup %2881  ;;  %v2117_v33 = vadd.f32 1.0, %v2880_v10  ;;  %v1864_v63 = vmul.f32 %v1800_v3, %v3454_v41  ;;  %v1739_v21 = vmul.f32 0.044715, %v3496_v18  ;;  %v3517_v8 = vpop.f32.mrb[48].mxu0  ;;  %v3521_v13 = vmul.f32 0.5, %v3436_v14 }
 0x17b   : > { %v2115_v47 = vadd.f32 1.0, %v2882_v60  ;;  %v2621_v39 = vpop.f32.mrb[48].mxu1  ;;  %2891 = vtanh.f32 %v1994_v34  ;;  %v1805_v29 = vmul.f32 %v1741_v43, %v3493_v36  ;;  %v1217_v48 = vpop.f32.mrb[49].mxu0  ;;  %v1742_v26 = vmul.f32 0.044715, %v3506_v15 }
 0x17c   : > { %v2181_v22 = vmul.f32 %v2117_v33, %v3438_v19  ;;  %v1472_v50 = vpop.f32.mrb[49].mxu1  ;;  %v1928_v24 = vadd.f32 %v1864_v63, %v3454_v41  ;;  %v1803_v37 = vmul.f32 %v1739_v21, %v3496_v18  ;;  %v3528_v46 = vpop.f32.mrb[50].mxu0  ;;  %v3535_v7 = vmul.f32 0.5, %v3454_v41 }
 0x17d   : > { %v2179_v6 = vmul.f32 %v2115_v47, %v3441_v52  ;;  %v3530_v19 = vpop.f32.mrb[50].mxu1  ;;  %v2884_v14 = vpop.eup %2883  ;;  %v1869_v32 = vmul.f32 %v1805_v29, %v3493_v36  ;;  %v3539_v52 = vadd.f32 %v1459_v9, %v3381_v38  ;;  %v3542_v2 = vadd.f32 %v2621_v39, %v3432_v25 }
 0x17e   : > { %2245 = vst.msk [vmem:[%s3464_s11 + $0x30] sm:$0xff] %vm988_vm0, %v2181_v22  ;;  %v1220_v58 = vpop.f32.mrb[51].mxu0  ;;  %v1475_v55 = vpop.f32.mrb[51].mxu1  ;;  %v2118_v3 = vadd.f32 1.0, %v2884_v14  ;;  %v1992_v60 = vmul.f32 0.7978846, %v1928_v24  ;;  %v1867_v33 = vmul.f32 %v1803_v37, %v3496_v18  ;;  %v1806_v41 = vmul.f32 %v1742_v26, %v3506_v15 }
 0x17f   : > { %v2886_v10 = vpop.eup %2885  ;;  %2243 = vst.msk [vmem:[%s3464_s11 + $0x20] sm:$0xff] %vm988_vm0, %v2179_v6  ;;  %v1208_v38 = vadd.f32 %v3302_v49, %v3459_v56  ;;  %v1933_v9 = vadd.f32 %v1869_v32, %v3493_v36  ;;  %v1740_v25 = vmul.f32 0.044715, %v3539_v52  ;;  %v3558_v29 = vadd.f32 %v3302_v49, %v3470_v42 }
 0x180   : > { %v2116_v34 = vadd.f32 1.0, %v2886_v10  ;;  %v2182_v43 = vmul.f32 %v2118_v3, %v3456_v53  ;;  %2893 = vtanh.f32 %v1992_v60  ;;  %v1931_v47 = vadd.f32 %v1867_v33, %v3496_v18 }
 0x181   : > { %v1870_v63 = vmul.f32 %v1806_v41, %v3506_v15  ;;  %v2888_v21 = vpop.eup %2887  ;;  %v1997_v22 = vmul.f32 0.7978846, %v1933_v9  ;;  %v1804_v56 = vmul.f32 %v1740_v25, %v3539_v52  ;;  %v1745_v14 = vmul.f32 0.044715, %v3542_v2 }
 0x182   : > { %v2180_v39 = vmul.f32 %v2116_v34, %v3478_v62  ;;  %v3561_v48 = vpop.f32.mrb[52].mxu0  ;;  %v2625_v6 = vpop.f32.mrb[52].mxu1  ;;  %2246 = vst.msk [vmem:[%s3464_s11 + $0x38] sm:$0xff] %vm988_vm0, %v2182_v43  ;;  %v2121_v24 = vadd.f32 1.0, %v2888_v21  ;;  %v1995_v37 = vmul.f32 0.7978846, %v1931_v47  ;;  %v1473_v58 = vadd.f32 %v1472_v50, %v3402_v17 }
 0x183   : > { %v2890_v53 = vpop.eup %2889  ;;  %v1934_v26 = vadd.f32 %v1870_v63, %v3506_v15  ;;  %v1225_v62 = vpop.f32.mrb[53].mxu0  ;;  %2895 = vtanh.f32 %v1997_v22  ;;  %v1868_v42 = vmul.f32 %v1804_v56, %v3539_v52  ;;  %v1809_v41 = vmul.f32 %v1745_v14, %v3542_v2 }
 0x184   : > { %2244 = vst.msk [vmem:[%s3464_s11 + $0x28] sm:$0xff] %vm988_vm0, %v2180_v39  ;;  %v2119_v32 = vadd.f32 1.0, %v2890_v53  ;;  %v1488_v10 = vpop.f32.mrb[53].mxu1  ;;  %v3571_v3 = vpop.f32.mrb[54].mxu0  ;;  %v2185_v60 = vmul.f32 %v2121_v24, %v3509_v31  ;;  %2897 = vtanh.f32 %v1995_v37  ;;  %v1677_v47 = vmul.f32 0.5, %v3493_v36 }
 0x185   : > { %v1998_v33 = vmul.f32 0.7978846, %v1934_v26  ;;  %v3575_v34 = vpop.f32.mrb[54].mxu1  ;;  %v1228_v9 = vpop.f32.mrb[55].mxu0  ;;  %v1932_v17 = vadd.f32 %v1868_v42, %v3539_v52  ;;  %v1743_v50 = vmul.f32 0.044715, %v1473_v58  ;;  %v1873_v39 = vmul.f32 %v1809_v41, %v3542_v2 }
 0x186   : > { %v2892_v25 = vpop.eup %2891  ;;  %v2183_v43 = vmul.f32 %v2119_v32, %v3513_v12  ;;  %v3580_v63 = vpop.f32.mrb[55].mxu1  ;;  %2249 = vst.msk [vmem:[%s3464_s11 + $0x50] sm:$0xff] %vm988_vm0, %v2185_v60  ;;  %v1675_v21 = vmul.f32 0.5, %v3496_v18  ;;  %v3590_v36 = vadd.f32 %v3530_v19, %v3447_v30  ;;  %v3593_v56 = vadd.f32 %v1475_v55, %v3407_v28 }
 0x187   : > { %v2122_v31 = vadd.f32 1.0, %v2892_v25  ;;  %2899 = vtanh.f32 %v1998_v33  ;;  %v1996_v22 = vmul.f32 0.7978846, %v1932_v17  ;;  %v1807_v12 = vmul.f32 %v1743_v50, %v1473_v58 }
 0x188   : > { %2247 = vst.msk [vmem:[%s3464_s11 + $0x40] sm:$0xff] %vm988_vm0, %v2183_v43  ;;  %v3597_v24 = vmul.f32 0.5, %v3506_v15  ;;  %v1937_v18 = vadd.f32 %v1873_v39, %v3542_v2  ;;  %v3600_v37 = vadd.f32 %v2625_v6, %v1208_v38  ;;  %v3604_v26 = vadd.f32 %v3302_v49, %v3517_v8 }
 0x189   : > { %v2186_v53 = vmul.f32 %v2122_v31, %v3521_v13  ;;  %2901 = vtanh.f32 %v1996_v22  ;;  %v1871_v14 = vmul.f32 %v1807_v12, %v1473_v58  ;;  %v1746_v30 = vmul.f32 0.044715, %v3590_v36 }
 0x18a   : > { %v3607_v19 = vpop.f32.mrb[56].mxu0  ;;  %v3609_v28 = vpop.f32.mrb[56].mxu1  ;;  %v3614_v15 = vmul.f32 0.5, %v3539_v52  ;;  %v3617_v55 = vmul.f32 0.5, %v3542_v2  ;;  %v2001_v38 = vmul.f32 0.7978846, %v1937_v18  ;;  %v3628_v2 = vadd.f32 %v1488_v10, %v3486_v54 }
 0x18b   : > { %v2894_v13 = vpop.eup %2893  ;;  %2250 = vst.msk [vmem:[%s3464_s11 + $0x58] sm:$0xff] %vm988_vm0, %v2186_v53  ;;  %v1744_v8 = vmul.f32 0.044715, %v3593_v56  ;;  %v1935_v62 = vadd.f32 %v1871_v14, %v1473_v58  ;;  %v1810_v32 = vmul.f32 %v1746_v30, %v3590_v36  ;;  %v1749_v42 = vmul.f32 0.044715, %v3600_v37  ;;  %v1233_v60 = vpop.f32.mrb[57].mxu0 }
 0x18c   : > { %v2120_v6 = vadd.f32 1.0, %v2894_v13  ;;  %v3622_v33 = vpop.f32.mrb[57].mxu1  ;;  %2903 = vtanh.f32 %v2001_v38  ;;  %v3624_v41 = vmul.f32 0.5, %v1473_v58  ;;  %v3630_v9 = vpop.f32.mrb[58].mxu0  ;;  %v3641_v54 = vadd.f32 %v3302_v49, %v3528_v46 }
 0x18d   : > { %v1808_v52 = vmul.f32 %v1744_v8, %v3593_v56  ;;  %v3632_v25 = vpop.f32.mrb[58].mxu1  ;;  %v2896_v43 = vpop.eup %2895  ;;  %v1999_v50 = vmul.f32 0.7978846, %v1935_v62  ;;  %v1874_v31 = vmul.f32 %v1810_v32, %v3590_v36  ;;  %v1813_v39 = vmul.f32 %v1749_v42, %v3600_v37 }
 0x18e   : > { %v2184_v17 = vmul.f32 %v2120_v6, %v3535_v7  ;;  %v1236_v58 = vpop.f32.mrb[59].mxu0  ;;  %v3637_v22 = vpop.f32.mrb[59].mxu1  ;;  %v2125_v53 = vadd.f32 1.0, %v2896_v43  ;;  %v1747_v18 = vmul.f32 0.044715, %v3628_v2  ;;  %v3653_v6 = vadd.f32 %v3575_v34, %v3558_v29 }
 0x18f   : > { %v2898_v12 = vpop.eup %2897  ;;  %v1872_v10 = vmul.f32 %v1808_v52, %v3593_v56  ;;  %2905 = vtanh.f32 %v1999_v50  ;;  %v1938_v14 = vadd.f32 %v1874_v31, %v3590_v36  ;;  %v1877_v30 = vmul.f32 %v1813_v39, %v3600_v37 }
 0x190   : > { %2248 = vst.msk [vmem:[%s3464_s11 + $0x48] sm:$0xff] %vm988_vm0, %v2184_v17  ;;  %v2123_v7 = vadd.f32 1.0, %v2898_v12  ;;  %v2189_v38 = vmul.f32 %v2125_v53, %v1677_v47  ;;  %v1811_v46 = vmul.f32 %v1747_v18, %v3628_v2  ;;  %v1224_v17 = vadd.f32 %v3302_v49, %v3561_v48 }
 0x191   : > { %v2900_v13 = vpop.eup %2899  ;;  %v1936_v8 = vadd.f32 %v1872_v10, %v3593_v56  ;;  %v2002_v42 = vmul.f32 0.7978846, %v1938_v14  ;;  %v1941_v60 = vadd.f32 %v1877_v30, %v3600_v37  ;;  %v1750_v31 = vmul.f32 0.044715, %v3653_v6 }
 0x192   : > { %v2187_v62 = vmul.f32 %v2123_v7, %v1675_v21  ;;  %v2126_v32 = vadd.f32 1.0, %v2900_v13  ;;  %v1239_v52 = vpop.f32.mrb[60].mxu0  ;;  %v3656_v43 = vpop.f32.mrb[60].mxu1  ;;  %2253 = vst.msk [vmem:[%s3464_s11 + $0x70] sm:$0xff] %vm988_vm0, %v2189_v38  ;;  %v1875_v50 = vmul.f32 %v1811_v46, %v3628_v2  ;;  %v3669_v58 = vadd.f32 %v3580_v63, %v3502_v45 }
 0x193   : > { %v2000_v47 = vmul.f32 0.7978846, %v1936_v8  ;;  %v1241_v29 = vpop.f32.mrb[61].mxu0  ;;  %v2902_v34 = vpop.eup %2901  ;;  %2907 = vtanh.f32 %v2002_v42  ;;  %v2005_v39 = vmul.f32 0.7978846, %v1941_v60  ;;  %v1814_v18 = vmul.f32 %v1750_v31, %v3653_v6 }
 0x194   : > { %2251 = vst.msk [vmem:[%s3464_s11 + $0x60] sm:$0xff] %vm988_vm0, %v2187_v62  ;;  %v2190_v21 = vmul.f32 %v2126_v32, %v3597_v24  ;;  %v3671_v12 = vpop.f32.mrb[61].mxu1  ;;  %v3673_v48 = vpop.f32.mrb[62].mxu0  ;;  %v2124_v53 = vadd.f32 1.0, %v2902_v34  ;;  %v1939_v10 = vadd.f32 %v1875_v50, %v3628_v2  ;;  %v1682_v24 = vmul.f32 0.5, %v3590_v36 }
 0x195   : > { %2909 = vtanh.f32 %v2000_v47  ;;  %v3677_v7 = vpop.f32.mrb[62].mxu1  ;;  %v1244_v14 = vpop.f32.mrb[63].mxu0  ;;  %v3683_v45 = vmul.f32 0.5, %v3593_v56  ;;  %v1748_v63 = vmul.f32 0.044715, %v3669_v58  ;;  %v1878_v46 = vmul.f32 %v1814_v18, %v3653_v6 }
 0x196   : > { %2254 = vst.msk [vmem:[%s3464_s11 + $0x78] sm:$0xff] %vm988_vm0, %v2190_v21  ;;  %2911 = vtanh.f32 %v2005_v39  ;;  %v3686_v30 = vpop.f32.mrb[63].mxu1  ;;  %v2904_v13 = vpop.eup %2903  ;;  %v2188_v38 = vmul.f32 %v2124_v53, %v3614_v15  ;;  %v2003_v8 = vmul.f32 0.7978846, %v1939_v10  ;;  %v3691_v62 = vadd.f32 %v3609_v28, %v1224_v17 }
 0x197   : > { %v2129_v32 = vadd.f32 1.0, %v2904_v13  ;;  %v1685_v36 = vmul.f32 0.5, %v3600_v37  ;;  %v1812_v56 = vmul.f32 %v1748_v63, %v3669_v58  ;;  %v3697_v42 = vadd.f32 %v3622_v33, %v3604_v26 }
 0x198   : > { %2252 = vst.msk [vmem:[%s3464_s11 + $0x68] sm:$0xff] %vm988_vm0, %v2188_v38  ;;  %2913 = vtanh.f32 %v2003_v8  ;;  %v1227_v15 = vadd.f32 %v3302_v49, %v3571_v3  ;;  %v1942_v60 = vadd.f32 %v1878_v46, %v3653_v6  ;;  %v1753_v28 = vmul.f32 0.044715, %v3691_v62 }
 0x199   : > { %v2906_v47 = vpop.eup %2905  ;;  %v2193_v37 = vmul.f32 %v2129_v32, %v3617_v55  ;;  %v3707_v17 = vmul.f32 0.5, %v3628_v2  ;;  %v1876_v26 = vmul.f32 %v1812_v56, %v3669_v58  ;;  %v1751_v33 = vmul.f32 0.044715, %v3697_v42 }
 0x19a   : > { %v3711_v50 = vpop.f32.mrb[64].mxu0  ;;  %v3713_v31 = vpop.f32.mrb[64].mxu1  ;;  %v2127_v3 = vadd.f32 1.0, %v2906_v47  ;;  %v2006_v29 = vmul.f32 0.7978846, %v1942_v60  ;;  %v1817_v34 = vmul.f32 %v1753_v28, %v3691_v62  ;;  %v3717_v21 = vadd.f32 %v3632_v25, %v1227_v15 }
 0x19b   : > { %v1249_v39 = vpop.f32.mrb[65].mxu0  ;;  %v3719_v55 = vpop.f32.mrb[65].mxu1  ;;  %2257 = vst.msk [vmem:[%s3464_s11 + $0x90] sm:$0xff] %vm988_vm0, %v2193_v37  ;;  %v1940_v2 = vadd.f32 %v1876_v26, %v3669_v58  ;;  %v1815_v53 = vmul.f32 %v1751_v33, %v3697_v42  ;;  %v3727_v10 = vadd.f32 %v3637_v22, %v3641_v54  ;;  %v1240_v18 = vadd.f32 %v3302_v49, %v1239_v52 }
 0x19c   : > { %v3730_v14 = vpop.f32.mrb[66].mxu0  ;;  %v3732_v25 = vpop.f32.mrb[66].mxu1  ;;  %v2191_v63 = vmul.f32 %v2127_v3, %v3624_v41  ;;  %v3736_v13 = vmul.f32 0.5, %v3653_v6  ;;  %2915 = vtanh.f32 %v2006_v29  ;;  %v1881_v38 = vmul.f32 %v1817_v34, %v3691_v62 }
 0x19d   : > { %v1252_v8 = vpop.f32.mrb[67].mxu0  ;;  %v3739_v46 = vpop.f32.mrb[67].mxu1  ;;  %v2004_v54 = vmul.f32 0.7978846, %v1940_v2  ;;  %v1232_v52 = vadd.f32 %v3302_v49, %v3607_v19  ;;  %v1879_v32 = vmul.f32 %v1815_v53, %v3697_v42  ;;  %v1754_v56 = vmul.f32 0.044715, %v3717_v21 }
 0x19e   : > { %v2908_v22 = vpop.eup %2907  ;;  %2255 = vst.msk [vmem:[%s3464_s11 + $0x80] sm:$0xff] %vm988_vm0, %v2191_v63  ;;  %v1945_v6 = vadd.f32 %v1881_v38, %v3691_v62  ;;  %v1752_v60 = vmul.f32 0.044715, %v3727_v10  ;;  %v3750_v28 = vadd.f32 %v3656_v43, %v1240_v18  ;;  %v1235_v43 = vadd.f32 %v3302_v49, %v3630_v9 }
 0x19f   : > { %v2910_v15 = vpop.eup %2909  ;;  %v2130_v41 = vadd.f32 1.0, %v2908_v22  ;;  %2917 = vtanh.f32 %v2004_v54  ;;  %v1943_v19 = vadd.f32 %v1879_v32, %v3697_v42  ;;  %v1818_v26 = vmul.f32 %v1754_v56, %v3717_v21 }
 0x1a0   : > { %v2912_v47 = vpop.eup %2911  ;;  %v2128_v37 = vadd.f32 1.0, %v2910_v15  ;;  %v2009_v29 = vmul.f32 0.7978846, %v1945_v6  ;;  %v1816_v34 = vmul.f32 %v1752_v60, %v3727_v10  ;;  %v1757_v22 = vmul.f32 0.044715, %v3750_v28 }
 0x1a1   : > { %v2194_v33 = vmul.f32 %v2130_v41, %v1682_v24  ;;  %v2133_v3 = vadd.f32 1.0, %v2912_v47  ;;  %v2007_v2 = vmul.f32 0.7978846, %v1943_v19  ;;  %v1882_v53 = vmul.f32 %v1818_v26, %v3717_v21 }
 0x1a2   : > { %v2192_v39 = vmul.f32 %v2128_v37, %v3683_v45  ;;  %v1255_v18 = vpop.f32.mrb[68].mxu0  ;;  %v3759_v63 = vpop.f32.mrb[68].mxu1  ;;  %2919 = vtanh.f32 %v2009_v29  ;;  %v1880_v8 = vmul.f32 %v1816_v34, %v3727_v10  ;;  %v3771_v56 = vadd.f32 %v3671_v12, %v1232_v52 }
 0x1a3   : > { %v2914_v38 = vpop.eup %2913  ;;  %2258 = vst.msk [vmem:[%s3464_s11 + $0x98] sm:$0xff] %vm988_vm0, %v2194_v33  ;;  %v2197_v24 = vmul.f32 %v2133_v3, %v1685_v36  ;;  %v1257_v45 = vpop.f32.mrb[69].mxu0  ;;  %2921 = vtanh.f32 %v2007_v2  ;;  %v1946_v32 = vadd.f32 %v1882_v53, %v3717_v21  ;;  %v1821_v6 = vmul.f32 %v1757_v22, %v3750_v28 }
 0x1a4   : > { %v3765_v54 = vpop.f32.mrb[69].mxu1  ;;  %2256 = vst.msk [vmem:[%s3464_s11 + $0x88] sm:$0xff] %vm988_vm0, %v2192_v39  ;;  %v2131_v9 = vadd.f32 1.0, %v2914_v38  ;;  %v3773_v15 = vpop.f32.mrb[70].mxu0  ;;  %v1944_v41 = vadd.f32 %v1880_v8, %v3727_v10  ;;  %v1243_v60 = vadd.f32 %v3302_v49, %v3673_v48  ;;  %v3784_v47 = vadd.f32 %v3686_v30, %v1235_v43 }
 0x1a5   : > { %v3775_v36 = vpop.f32.mrb[70].mxu1  ;;  %2261 = vst.msk [vmem:[%s3464_s11 + $0xb0] sm:$0xff] %vm988_vm0, %v2197_v24  ;;  %v1260_v37 = vpop.f32.mrb[71].mxu0  ;;  %v1684_v19 = vmul.f32 0.5, %v3669_v58  ;;  %v2010_v26 = vmul.f32 0.7978846, %v1946_v32  ;;  %v1885_v39 = vmul.f32 %v1821_v6, %v3750_v28  ;;  %v1248_v8 = vadd.f32 %v3302_v49, %v3711_v50 }
 0x1a6   : > { %v3786_v12 = vpop.f32.mrb[71].mxu1  ;;  %v2195_v52 = vmul.f32 %v2131_v9, %v3707_v17  ;;  %v1755_v33 = vmul.f32 0.044715, %v3771_v56  ;;  %v2916_v3 = vpop.eup %2915  ;;  %v1689_v29 = vmul.f32 0.5, %v3691_v62  ;;  %v2008_v34 = vmul.f32 0.7978846, %v1944_v41 }
 0x1a7   : > { %v3794_v48 = vadd.f32 %v3677_v7, %v1243_v60  ;;  %v2134_v30 = vadd.f32 1.0, %v2916_v3  ;;  %2923 = vtanh.f32 %v2010_v26  ;;  %v1756_v58 = vmul.f32 0.044715, %v3784_v47 }
 0x1a8   : > { %2259 = vst.msk [vmem:[%s3464_s11 + $0xa0] sm:$0xff] %vm988_vm0, %v2195_v52  ;;  %v1819_v17 = vmul.f32 %v1755_v33, %v3771_v56  ;;  %v1687_v2 = vmul.f32 0.5, %v3697_v42  ;;  %2925 = vtanh.f32 %v2008_v34  ;;  %v1949_v62 = vadd.f32 %v1885_v39, %v3750_v28 }
 0x1a9   : > { %v1758_v43 = vmul.f32 0.044715, %v3794_v48  ;;  %v2918_v53 = vpop.eup %2917  ;;  %v2198_v7 = vmul.f32 %v2134_v30, %v3736_v13  ;;  %v1820_v24 = vmul.f32 %v1756_v58, %v3784_v47  ;;  %v1251_v41 = vadd.f32 %v3302_v49, %v3730_v14 }
 0x1aa   : > { %v1883_v38 = vmul.f32 %v1819_v17, %v3771_v56  ;;  %v1263_v22 = vpop.f32.mrb[72].mxu0  ;;  %v3808_v45 = vpop.f32.mrb[72].mxu1  ;;  %v2132_v42 = vadd.f32 1.0, %v2918_v53  ;;  %v2013_v9 = vmul.f32 0.7978846, %v1949_v62  ;;  %v3820_v50 = vadd.f32 %v3719_v55, %v1248_v8 }
 0x1ab   : > { %v1822_v32 = vmul.f32 %v1758_v43, %v3794_v48  ;;  %v1265_v6 = vpop.f32.mrb[73].mxu0  ;;  %v3813_v60 = vpop.f32.mrb[73].mxu1  ;;  %2262 = vst.msk [vmem:[%s3464_s11 + $0xb8] sm:$0xff] %vm988_vm0, %v2198_v7  ;;  %v1884_v37 = vmul.f32 %v1820_v24, %v3784_v47  ;;  %v1256_v52 = vadd.f32 %v3302_v49, %v1255_v18  ;;  %v3827_v39 = vadd.f32 %v3739_v46, %v1251_v41 }
 0x1ac   : > { %v1947_v13 = vadd.f32 %v1883_v38, %v3771_v56  ;;  %v1266_v26 = vpop.f32.mrb[74].mxu0  ;;  %v3823_v33 = vpop.f32.mrb[74].mxu1  ;;  %v2196_v14 = vmul.f32 %v2132_v42, %v1684_v19  ;;  %2927 = vtanh.f32 %v2013_v9  ;;  %v1690_v62 = vmul.f32 0.5, %v3717_v21 }
 0x1ad   : > { %v2920_v3 = vpop.eup %2919  ;;  %v1886_v34 = vmul.f32 %v1822_v32, %v3794_v48  ;;  %v1268_v30 = vpop.f32.mrb[75].mxu0  ;;  %v1948_v18 = vadd.f32 %v1884_v37, %v3784_v47  ;;  %v1688_v53 = vmul.f32 0.5, %v3727_v10  ;;  %v1759_v46 = vmul.f32 0.044715, %v3820_v50 }
 0x1ae   : > { %v3829_v17 = vpop.f32.mrb[75].mxu1  ;;  %v2922_v58 = vpop.eup %2921  ;;  %v2137_v55 = vadd.f32 1.0, %v2920_v3  ;;  %v2011_v43 = vmul.f32 0.7978846, %v1947_v13  ;;  %2260 = vst.msk [vmem:[%s3464_s11 + $0xa8] sm:$0xff] %vm988_vm0, %v2196_v14  ;;  %v3841_v32 = vadd.f32 %v3713_v31, %v1256_v52  ;;  %v1264_v6 = vadd.f32 %v3302_v49, %v1263_v22 }
 0x1af   : > { %v2135_v19 = vadd.f32 1.0, %v2922_v58  ;;  %v1950_v7 = vadd.f32 %v1886_v34, %v3794_v48  ;;  %v2012_v24 = vmul.f32 0.7978846, %v1948_v18  ;;  %v1760_v8 = vmul.f32 0.044715, %v3827_v39 }
 0x1b0   : > { %v2201_v38 = vmul.f32 %v2137_v55, %v1689_v29  ;;  %2929 = vtanh.f32 %v2011_v43  ;;  %v1823_v9 = vmul.f32 %v1759_v46, %v3820_v50  ;;  %v1259_v29 = vadd.f32 %v3302_v49, %v3773_v15 }
 0x1b1   : > { %v2199_v21 = vmul.f32 %v2135_v19, %v1687_v2  ;;  %v2014_v42 = vmul.f32 0.7978846, %v1950_v7  ;;  %v2924_v41 = vpop.eup %2923  ;;  %2931 = vtanh.f32 %v2012_v24  ;;  %v1824_v10 = vmul.f32 %v1760_v8, %v3827_v39  ;;  %v3871_v19 = vld [vmem:[%s4263_s2] ss:$0 sm:$0xff] }
 0x1b2   : > { %2265 = vst.msk [vmem:[%s3464_s11 + $0xd0] sm:$0xff] %vm988_vm0, %v2201_v38  ;;  %v1271_v13 = vpop.f32.mrb[76].mxu0  ;;  %v3849_v37 = vpop.f32.mrb[76].mxu1  ;;  %v2138_v3 = vadd.f32 1.0, %v2924_v41  ;;  %v1693_v31 = vmul.f32 0.5, %v3750_v28  ;;  %v1887_v52 = vmul.f32 %v1823_v9, %v3820_v50  ;;  %v3860_v22 = vadd.f32 %v3732_v25, %v1259_v29 }
 0x1b3   : > { %v2926_v2 = vpop.eup %2925  ;;  %2263 = vst.msk [vmem:[%s3464_s11 + $0xc0] sm:$0xff] %vm988_vm0, %v2199_v21  ;;  %2933 = vtanh.f32 %v2014_v42  ;;  %v1273_v14 = vpop.f32.mrb[77].mxu0  ;;  %v1888_v15 = vmul.f32 %v1824_v10, %v3827_v39  ;;  %v1761_v49 = vmul.f32 0.044715, %v3841_v32  ;;  %v3866_v18 = vadd.f32 %v3765_v54, %v1264_v6 }
 0x1b4   : > { %v3855_v34 = vpop.f32.mrb[77].mxu1  ;;  %v2136_v30 = vadd.f32 1.0, %v2926_v2  ;;  %v1274_v58 = vpop.f32.mrb[78].mxu0  ;;  %v2202_v43 = vmul.f32 %v2138_v3, %v1690_v62  ;;  %v1951_v28 = vadd.f32 %v1887_v52, %v3820_v50  ;;  %v1267_v7 = vadd.f32 %v3871_v19, %v1266_v26 }
 0x1b5   : > { %v3862_v55 = vpop.f32.mrb[78].mxu1  ;;  %v1276_v46 = vpop.f32.mrb[79].mxu0  ;;  %v1691_v24 = vmul.f32 0.5, %v3771_v56  ;;  %v1952_v62 = vadd.f32 %v1888_v15, %v3827_v39  ;;  %v1825_v8 = vmul.f32 %v1761_v49, %v3841_v32  ;;  %v1692_v54 = vmul.f32 0.5, %v3784_v47 }
 0x1b6   : > { %v3874_v25 = vpop.f32.mrb[79].mxu1  ;;  %v2200_v38 = vmul.f32 %v2136_v30, %v1688_v53  ;;  %v2928_v21 = vpop.eup %2927  ;;  %2266 = vst.msk [vmem:[%s3464_s11 + $0xd8] sm:$0xff] %vm988_vm0, %v2202_v43  ;;  %v2015_v42 = vmul.f32 0.7978846, %v1951_v28  ;;  %v3884_v26 = vadd.f32 %v3786_v12, %v1267_v7  ;;  %v1694_v29 = vmul.f32 0.5, %v3794_v48 }
 0x1b7   : > { %v1762_v9 = vmul.f32 0.044715, %v3860_v22  ;;  %v2141_v53 = vadd.f32 1.0, %v2928_v21  ;;  %v2016_v41 = vmul.f32 0.7978846, %v1952_v62  ;;  %v1889_v56 = vmul.f32 %v1825_v8, %v3841_v32 }
 0x1b8   : > { %2264 = vst.msk [vmem:[%s3464_s11 + $0xc8] sm:$0xff] %vm988_vm0, %v2200_v38  ;;  %v1763_v10 = vmul.f32 0.044715, %v3866_v18  ;;  %2935 = vtanh.f32 %v2015_v42  ;;  %v1764_v47 = vmul.f32 0.044715, %v3884_v26  ;;  %v1272_v43 = vadd.f32 %v3871_v19, %v1271_v13 }
 0x1b9   : > { %v1826_v6 = vmul.f32 %v1762_v9, %v3860_v22  ;;  %v2205_v3 = vmul.f32 %v2141_v53, %v1693_v31  ;;  %2937 = vtanh.f32 %v2016_v41  ;;  %v1953_v12 = vadd.f32 %v1889_v56, %v3841_v32 }
 0x1ba   : > { %v2930_v2 = vpop.eup %2929  ;;  %v1827_v52 = vmul.f32 %v1763_v10, %v3866_v18  ;;  %v1279_v14 = vpop.f32.mrb[80].mxu0  ;;  %v1828_v48 = vmul.f32 %v1764_v47, %v3884_v26  ;;  %v1275_v62 = vadd.f32 %v3871_v19, %v1274_v58 }
 0x1bb   : > { %v2653_v30 = vpop.f32.mrb[80].mxu1  ;;  %v2139_v15 = vadd.f32 1.0, %v2930_v2  ;;  %v1890_v49 = vmul.f32 %v1826_v6, %v3860_v22  ;;  %v1281_v28 = vpop.f32.mrb[81].mxu0  ;;  %2269 = vst.msk [vmem:[%s3464_s11 + $0xf0] sm:$0xff] %vm988_vm0, %v2205_v3  ;;  %v2017_v31 = vmul.f32 0.7978846, %v1953_v12  ;;  %v1280_v8 = vadd.f32 %v3871_v19, %v1279_v14 }
 0x1bc   : > { %v1600_v7 = vpop.f32.mrb[81].mxu1  ;;  %v2932_v46 = vpop.eup %2931  ;;  %v1891_v38 = vmul.f32 %v1827_v52, %v3866_v18  ;;  %v1892_v56 = vmul.f32 %v1828_v48, %v3884_v26  ;;  %v3911_v2 = vadd.f32 %v3759_v63, %v1272_v43  ;;  %v3917_v52 = vadd.f32 %v3775_v36, %v1275_v62 }
 0x1bd   : > { %v1282_v21 = vpop.f32.mrb[82].mxu0  ;;  %v3903_v42 = vpop.f32.mrb[82].mxu1  ;;  %v2203_v53 = vmul.f32 %v2139_v15, %v1691_v24  ;;  %v2140_v41 = vadd.f32 1.0, %v2932_v46  ;;  %v1954_v13 = vadd.f32 %v1890_v49, %v3860_v22  ;;  %2939 = vtanh.f32 %v2017_v31 }
 0x1be   : > { %v2934_v9 = vpop.eup %2933  ;;  %v1284_v10 = vpop.f32.mrb[83].mxu0  ;;  %v1955_v58 = vadd.f32 %v1891_v38, %v3866_v18  ;;  %v1956_v12 = vadd.f32 %v1892_v56, %v3884_v26  ;;  %v1695_v15 = vmul.f32 0.5, %v3820_v50  ;;  %v1765_v48 = vmul.f32 0.044715, %v3911_v2 }
 0x1bf   : > { %v3907_v6 = vpop.f32.mrb[83].mxu1  ;;  %v2142_v47 = vadd.f32 1.0, %v2934_v9  ;;  %2267 = vst.msk [vmem:[%s3464_s11 + $0xe0] sm:$0xff] %vm988_vm0, %v2203_v53  ;;  %v2204_v24 = vmul.f32 %v2140_v41, %v1692_v54  ;;  %v2018_v3 = vmul.f32 0.7978846, %v1954_v13  ;;  %v1696_v63 = vmul.f32 0.5, %v3827_v39 }
 0x1c0   : > { %v2019_v49 = vmul.f32 0.7978846, %v1955_v58  ;;  %v2020_v43 = vmul.f32 0.7978846, %v1956_v12  ;;  %v1766_v54 = vmul.f32 0.044715, %v3917_v52  ;;  %v1829_v36 = vmul.f32 %v1765_v48, %v3911_v2 }
 0x1c1   : > { %v2206_v14 = vmul.f32 %v2142_v47, %v1694_v29  ;;  %2268 = vst.msk [vmem:[%s3464_s11 + $0xe8] sm:$0xff] %vm988_vm0, %v2204_v24  ;;  %2941 = vtanh.f32 %v2018_v3  ;;  %v3929_v29 = vadd.f32 %v3813_v60, %v1280_v8  ;;  %v3932_v50 = vadd.f32 %v2653_v30, %v3318_v1 }
 0x1c2   : > { %2943 = vtanh.f32 %v2019_v49  ;;  %v3934_v28 = vpop.f32.mrb[84].mxu0  ;;  %v3936_v46 = vpop.f32.mrb[84].mxu1  ;;  %v1697_v31 = vmul.f32 0.5, %v3841_v32  ;;  %v1830_v38 = vmul.f32 %v1766_v54, %v3917_v52  ;;  %v3941_v62 = vadd.f32 %v1600_v7, %v3308_v57 }
 0x1c3   : > { %2270 = vst.msk [vmem:[%s3464_s11 + $0xf8] sm:$0xff] %vm988_vm0, %v2206_v14  ;;  %v2936_v39 = vpop.eup %2935  ;;  %2945 = vtanh.f32 %v2020_v43  ;;  %v1289_v9 = vpop.f32.mrb[85].mxu0  ;;  %v1893_v1 = vmul.f32 %v1829_v36, %v3911_v2  ;;  %v1767_v30 = vmul.f32 0.044715, %v3929_v29  ;;  %v1283_v41 = vadd.f32 %v3871_v19, %v1282_v21 }
 0x1c4   : > { %v3943_v53 = vpop.f32.mrb[85].mxu1  ;;  %v2938_v60 = vpop.eup %2937  ;;  %v2143_v8 = vadd.f32 1.0, %v2936_v39  ;;  %v1698_v57 = vmul.f32 0.5, %v3860_v22  ;;  %v1894_v7 = vmul.f32 %v1830_v38, %v3917_v52  ;;  %v1777_v10 = vmul.f32 0.044715, %v3932_v50 }
 0x1c5   : > { %v3948_v13 = vpop.f32.mrb[86].mxu0  ;;  %v3950_v32 = vpop.f32.mrb[86].mxu1  ;;  %v2144_v56 = vadd.f32 1.0, %v2938_v60  ;;  %v1699_v3 = vmul.f32 0.5, %v3866_v18  ;;  %v1957_v21 = vadd.f32 %v1893_v1, %v3911_v2  ;;  %v1831_v12 = vmul.f32 %v1767_v30, %v3929_v29 }
 0x1c6   : > { %v1292_v47 = vpop.f32.mrb[87].mxu0  ;;  %v3955_v58 = vpop.f32.mrb[87].mxu1  ;;  %v2207_v24 = vmul.f32 %v2143_v8, %v1695_v15  ;;  %v1958_v49 = vadd.f32 %v1894_v7, %v3917_v52  ;;  %v1841_v22 = vmul.f32 %v1777_v10, %v3932_v50  ;;  %v1775_v48 = vmul.f32 0.044715, %v3941_v62 }
 0x1c7   : > { %v2208_v14 = vmul.f32 %v2144_v56, %v1696_v63  ;;  %v2940_v43 = vpop.eup %2939  ;;  %v2021_v54 = vmul.f32 0.7978846, %v1957_v21  ;;  %v1895_v36 = vmul.f32 %v1831_v12, %v3929_v29  ;;  %v3967_v15 = vadd.f32 %v3829_v17, %v1283_v41 }
 0x1c8   : > { %2271 = vst.msk [vmem:[%s3464_s11 + $0x100] sm:$0xff] %vm988_vm0, %v2207_v24  ;;  %v3971_v18 = vadd.f32 %v3903_v42, %v3322_v51  ;;  %v2145_v63 = vadd.f32 1.0, %v2940_v43  ;;  %v2022_v39 = vmul.f32 0.7978846, %v1958_v49  ;;  %v1905_v38 = vmul.f32 %v1841_v22, %v3932_v50 }
 0x1c9   : > { %2272 = vst.msk [vmem:[%s3464_s11 + $0x108] sm:$0xff] %vm988_vm0, %v2208_v14  ;;  %v1839_v9 = vmul.f32 %v1775_v48, %v3941_v62  ;;  %v1700_v60 = vmul.f32 0.5, %v3884_v26  ;;  %2947 = vtanh.f32 %v2021_v54  ;;  %v1959_v8 = vadd.f32 %v1895_v36, %v3929_v29 }
 0x1ca   : > { %v1768_v17 = vmul.f32 0.044715, %v3967_v15  ;;  %v3980_v1 = vpop.f32.mrb[88].mxu0  ;;  %v3982_v30 = vpop.f32.mrb[88].mxu1  ;;  %v2209_v42 = vmul.f32 %v2145_v63, %v1697_v31  ;;  %2949 = vtanh.f32 %v2022_v39  ;;  %v1969_v41 = vadd.f32 %v1905_v38, %v3932_v50 }
 0x1cb   : > { %v2942_v51 = vpop.eup %2941  ;;  %v1903_v56 = vmul.f32 %v1839_v9, %v3941_v62  ;;  %v1297_v7 = vpop.f32.mrb[89].mxu0  ;;  %v1701_v24 = vmul.f32 0.5, %v3911_v2  ;;  %v2023_v21 = vmul.f32 0.7978846, %v1959_v8  ;;  %v1778_v54 = vmul.f32 0.044715, %v3971_v18 }
 0x1cc   : > { %v3986_v10 = vpop.f32.mrb[89].mxu1  ;;  %v2944_v26 = vpop.eup %2943  ;;  %v2146_v47 = vadd.f32 1.0, %v2942_v51  ;;  %v1832_v12 = vmul.f32 %v1768_v17, %v3967_v15  ;;  %2273 = vst.msk [vmem:[%s3464_s11 + $0x110] sm:$0xff] %vm988_vm0, %v2209_v42  ;;  %v2033_v48 = vmul.f32 0.7978846, %v1969_v41  ;;  %v1288_v41 = vadd.f32 %v3871_v19, %v3934_v28 }
 0x1cd   : > { %v3990_v14 = vpop.f32.mrb[90].mxu0  ;;  %v3992_v49 = vpop.f32.mrb[90].mxu1  ;;  %v2147_v22 = vadd.f32 1.0, %v2944_v26  ;;  %v1967_v43 = vadd.f32 %v1903_v56, %v3941_v62  ;;  %2951 = vtanh.f32 %v2023_v21  ;;  %v1842_v17 = vmul.f32 %v1778_v54, %v3971_v18 }
 0x1ce   : > { %v2946_v31 = vpop.eup %2945  ;;  %v1300_v36 = vpop.f32.mrb[91].mxu0  ;;  %v2210_v2 = vmul.f32 %v2146_v47, %v1698_v57  ;;  %v1896_v39 = vmul.f32 %v1832_v12, %v3967_v15  ;;  %2953 = vtanh.f32 %v2033_v48  ;;  %v4007_v57 = vadd.f32 %v3907_v6, %v3314_v61 }
 0x1cf   : > { %v2148_v63 = vadd.f32 1.0, %v2946_v31  ;;  %v3999_v38 = vpop.f32.mrb[91].mxu1  ;;  %v2211_v9 = vmul.f32 %v2147_v22, %v1699_v3  ;;  %v2031_v8 = vmul.f32 0.7978846, %v1967_v43  ;;  %v1906_v3 = vmul.f32 %v1842_v17, %v3971_v18 }
 0x1d0   : > { %2274 = vst.msk [vmem:[%s3464_s11 + $0x118] sm:$0xff] %vm988_vm0, %v2210_v2  ;;  %v1960_v42 = vadd.f32 %v1896_v39, %v3967_v15  ;;  %v4016_v56 = vadd.f32 %v3936_v46, %v3336_v0  ;;  %v1702_v61 = vmul.f32 0.5, %v3917_v52  ;;  %v1776_v28 = vmul.f32 0.044715, %v4007_v57 }
 0x1d1   : > { %v2212_v51 = vmul.f32 %v2148_v63, %v1700_v60  ;;  %2275 = vst.msk [vmem:[%s3464_s11 + $0x120] sm:$0xff] %vm988_vm0, %v2211_v9  ;;  %2955 = vtanh.f32 %v2031_v8  ;;  %v4020_v60 = vadd.f32 %v3943_v53, %v3326_v5  ;;  %v4027_v7 = vadd.f32 %v3808_v45, %v1288_v41 }
 0x1d2   : > { %v2024_v6 = vmul.f32 0.7978846, %v1960_v42  ;;  %v4029_v26 = vpop.f32.mrb[92].mxu0  ;;  %v1703_v47 = vmul.f32 0.5, %v3929_v29  ;;  %v1713_v0 = vmul.f32 0.5, %v3932_v50  ;;  %v1970_v46 = vadd.f32 %v1906_v3, %v3971_v18  ;;  %v4035_v53 = vpop.f32.mrb[92].mxu1 }
 0x1d3   : > { %2276 = vst.msk [vmem:[%s3464_s11 + $0x128] sm:$0xff] %vm988_vm0, %v2212_v51  ;;  %v1781_v5 = vmul.f32 0.044715, %v4016_v56  ;;  %v1305_v21 = vpop.f32.mrb[93].mxu0  ;;  %v2948_v52 = vpop.eup %2947  ;;  %v1711_v12 = vmul.f32 0.5, %v3941_v62  ;;  %v1840_v45 = vmul.f32 %v1776_v28, %v4007_v57  ;;  %v1291_v9 = vadd.f32 %v3871_v19, %v3948_v13 }
 0x1d4   : > { %2957 = vtanh.f32 %v2024_v6  ;;  %v1769_v31 = vmul.f32 0.044715, %v4027_v7  ;;  %v4040_v22 = vpop.f32.mrb[93].mxu1  ;;  %v4042_v29 = vpop.f32.mrb[94].mxu0  ;;  %v2149_v48 = vadd.f32 1.0, %v2948_v52 }
 0x1d5   : > { %v2950_v50 = vpop.eup %2949  ;;  %v2034_v43 = vmul.f32 0.7978846, %v1970_v46  ;;  %v1845_v54 = vmul.f32 %v1781_v5, %v4016_v56  ;;  %v1779_v36 = vmul.f32 0.044715, %v4020_v60  ;;  %v4046_v2 = vpop.f32.mrb[94].mxu1  ;;  %v1904_v62 = vmul.f32 %v1840_v45, %v4007_v57 }
 0x1d6   : > { %v2150_v63 = vadd.f32 1.0, %v2950_v50  ;;  %v1833_v39 = vmul.f32 %v1769_v31, %v4027_v7  ;;  %v1308_v8 = vpop.f32.mrb[95].mxu0  ;;  %v4052_v17 = vpop.f32.mrb[95].mxu1  ;;  %v2213_v51 = vmul.f32 %v2149_v48, %v1701_v24  ;;  %v4059_v5 = vadd.f32 %v3823_v33, %v1291_v9 }
 0x1d7   : > { %2959 = vtanh.f32 %v2034_v43  ;;  %v1909_v42 = vmul.f32 %v1845_v54, %v4016_v56  ;;  %v1843_v41 = vmul.f32 %v1779_v36, %v4020_v60  ;;  %v2952_v3 = vpop.eup %2951  ;;  %v1968_v28 = vadd.f32 %v1904_v62, %v4007_v57 }
 0x1d8   : > { %v2214_v6 = vmul.f32 %v2150_v63, %v1702_v61  ;;  %v1897_v46 = vmul.f32 %v1833_v39, %v4027_v7  ;;  %v2954_v13 = vpop.eup %2953  ;;  %2277 = vst.msk [vmem:[%s3464_s11 + $0x130] sm:$0xff] %vm988_vm0, %v2213_v51  ;;  %v2151_v21 = vadd.f32 1.0, %v2952_v3  ;;  %v4067_v45 = vadd.f32 %v3950_v32, %v3340_v4 }
 0x1d9   : > { %v1973_v24 = vadd.f32 %v1909_v42, %v4016_v56  ;;  %v1907_v52 = vmul.f32 %v1843_v41, %v4020_v60  ;;  %v2161_v61 = vadd.f32 1.0, %v2954_v13  ;;  %v1704_v31 = vmul.f32 0.5, %v3967_v15 }
 0x1da   : > { %2278 = vst.msk [vmem:[%s3464_s11 + $0x138] sm:$0xff] %vm988_vm0, %v2214_v6  ;;  %v2032_v33 = vmul.f32 0.7978846, %v1968_v28  ;;  %v1961_v50 = vadd.f32 %v1897_v46, %v4027_v7  ;;  %v2215_v43 = vmul.f32 %v2151_v21, %v1703_v47  ;;  %v1770_v63 = vmul.f32 0.044715, %v4059_v5 }
 0x1db   : > { %v2956_v48 = vpop.eup %2955  ;;  %v2037_v54 = vmul.f32 0.7978846, %v1973_v24  ;;  %v1971_v36 = vadd.f32 %v1907_v52, %v4020_v60  ;;  %v2225_v62 = vmul.f32 %v2161_v61, %v1713_v0  ;;  %v1714_v32 = vmul.f32 0.5, %v3971_v18 }
 0x1dc   : > { %v2159_v39 = vadd.f32 1.0, %v2956_v48  ;;  %2961 = vtanh.f32 %v2032_v33  ;;  %v2025_v4 = vmul.f32 0.7978846, %v1961_v50  ;;  %2279 = vst.msk [vmem:[%s3464_s11 + $0x140] sm:$0xff] %vm988_vm0, %v2215_v43  ;;  %v1834_v9 = vmul.f32 %v1770_v63, %v4059_v5 }
 0x1dd   : > { %2963 = vtanh.f32 %v2037_v54  ;;  %v2035_v15 = vmul.f32 0.7978846, %v1971_v36  ;;  %2289 = vst.msk [vmem:[%s3464_s11 + $0x190] sm:$0xff] %vm988_vm0, %v2225_v62  ;;  %v1782_v51 = vmul.f32 0.044715, %v4067_v45  ;;  %v4084_v0 = vadd.f32 %v3955_v58, %v3332_v59 }
 0x1de   : > { %v2958_v8 = vpop.eup %2957  ;;  %v2223_v47 = vmul.f32 %v2159_v39, %v1711_v12  ;;  %2965 = vtanh.f32 %v2025_v4  ;;  %v1898_v41 = vmul.f32 %v1834_v9, %v4059_v5  ;;  %v1296_v18 = vadd.f32 %v3871_v19, %v3980_v1 }
 0x1df   : > { %v2152_v42 = vadd.f32 1.0, %v2958_v8  ;;  %2967 = vtanh.f32 %v2035_v15  ;;  %v1712_v3 = vmul.f32 0.5, %v4007_v57  ;;  %v1846_v12 = vmul.f32 %v1782_v51, %v4067_v45 }
 0x1e0   : > { %2287 = vst.msk [vmem:[%s3464_s11 + $0x180] sm:$0xff] %vm988_vm0, %v2223_v47  ;;  %v1780_v6 = vmul.f32 0.044715, %v4084_v0  ;;  %v4096_v59 = vadd.f32 %v3982_v30, %v3363_v20  ;;  %v1962_v46 = vadd.f32 %v1898_v41, %v4059_v5  ;;  %v4100_v13 = vadd.f32 %v3855_v34, %v1296_v18 }
 0x1e1   : > { %v2960_v58 = vpop.eup %2959  ;;  %v2216_v28 = vmul.f32 %v2152_v42, %v1704_v31  ;;  %v4104_v1 = vadd.f32 %v3986_v10, %v3348_v11  ;;  %v1717_v21 = vmul.f32 0.5, %v4016_v56  ;;  %v1910_v24 = vmul.f32 %v1846_v12, %v4067_v45 }
 0x1e2   : > { %v2162_v57 = vadd.f32 1.0, %v2960_v58  ;;  %v1844_v20 = vmul.f32 %v1780_v6, %v4084_v0  ;;  %v1705_v30 = vmul.f32 0.5, %v4027_v7  ;;  %v1715_v52 = vmul.f32 0.5, %v4020_v60 }
 0x1e3   : > { %2280 = vst.msk [vmem:[%s3464_s11 + $0x148] sm:$0xff] %vm988_vm0, %v2216_v28  ;;  %v2026_v34 = vmul.f32 0.7978846, %v1962_v46  ;;  %v1771_v61 = vmul.f32 0.044715, %v4100_v13  ;;  %v1974_v11 = vadd.f32 %v1910_v24, %v4067_v45  ;;  %v1299_v7 = vadd.f32 %v3871_v19, %v3990_v14 }
 0x1e4   : > { %v2226_v31 = vmul.f32 %v2162_v57, %v1714_v32  ;;  %v1908_v10 = vmul.f32 %v1844_v20, %v4084_v0  ;;  %v1785_v56 = vmul.f32 0.044715, %v4096_v59  ;;  %v1783_v50 = vmul.f32 0.044715, %v4104_v1 }
 0x1e5   : > { %2969 = vtanh.f32 %v2026_v34  ;;  %v1835_v33 = vmul.f32 %v1771_v61, %v4100_v13  ;;  %v2038_v60 = vmul.f32 0.7978846, %v1974_v11  ;;  %v4127_v36 = vadd.f32 %v3992_v49, %v3370_v23 }
 0x1e6   : > { %v2962_v48 = vpop.eup %2961  ;;  %2290 = vst.msk [vmem:[%s3464_s11 + $0x198] sm:$0xff] %vm988_vm0, %v2226_v31  ;;  %v1972_v43 = vadd.f32 %v1908_v10, %v4084_v0  ;;  %v1849_v54 = vmul.f32 %v1785_v56, %v4096_v59  ;;  %v1847_v4 = vmul.f32 %v1783_v50, %v4104_v1  ;;  %v4132_v14 = vadd.f32 %v3874_v25, %v1299_v7 }
 0x1e7   : > { %v2964_v63 = vpop.eup %2963  ;;  %v2160_v62 = vadd.f32 1.0, %v2962_v48  ;;  %v1899_v39 = vmul.f32 %v1835_v33, %v4100_v13  ;;  %2971 = vtanh.f32 %v2038_v60  ;;  %v1706_v6 = vmul.f32 0.5, %v4059_v5 }
 0x1e8   : > { %v2966_v32 = vpop.eup %2965  ;;  %v2165_v15 = vadd.f32 1.0, %v2964_v63  ;;  %v2036_v9 = vmul.f32 0.7978846, %v1972_v43  ;;  %v1913_v8 = vmul.f32 %v1849_v54, %v4096_v59  ;;  %v1911_v42 = vmul.f32 %v1847_v4, %v4104_v1 }
 0x1e9   : > { %v2968_v47 = vpop.eup %2967  ;;  %v2224_v23 = vmul.f32 %v2160_v62, %v1712_v3  ;;  %v2153_v49 = vadd.f32 1.0, %v2966_v32  ;;  %v1963_v51 = vadd.f32 %v1899_v39, %v4100_v13  ;;  %v1718_v46 = vmul.f32 0.5, %v4067_v45 }
 0x1ea   : > { %v2229_v41 = vmul.f32 %v2165_v15, %v1717_v21  ;;  %v2163_v18 = vadd.f32 1.0, %v2968_v47  ;;  %2973 = vtanh.f32 %v2036_v9  ;;  %v1977_v25 = vadd.f32 %v1913_v8, %v4096_v59 }
 0x1eb   : > { %2288 = vst.msk [vmem:[%s3464_s11 + $0x188] sm:$0xff] %vm988_vm0, %v2224_v23  ;;  %v2217_v12 = vmul.f32 %v2153_v49, %v1705_v30  ;;  %v2027_v58 = vmul.f32 0.7978846, %v1963_v51  ;;  %v1975_v3 = vadd.f32 %v1911_v42, %v4104_v1  ;;  %v1772_v21 = vmul.f32 0.044715, %v4132_v14 }
 0x1ec   : > { %2293 = vst.msk [vmem:[%s3464_s11 + $0x1b0] sm:$0xff] %vm988_vm0, %v2229_v41  ;;  %v2227_v28 = vmul.f32 %v2163_v18, %v1715_v52  ;;  %v2041_v57 = vmul.f32 0.7978846, %v1977_v25  ;;  %v1786_v20 = vmul.f32 0.044715, %v4127_v36  ;;  %v4151_v5 = vadd.f32 %v3999_v38, %v3356_v16 }
 0x1ed   : > { %2281 = vst.msk [vmem:[%s3464_s11 + $0x150] sm:$0xff] %vm988_vm0, %v2217_v12  ;;  %2975 = vtanh.f32 %v2027_v58  ;;  %v2039_v24 = vmul.f32 0.7978846, %v1975_v3  ;;  %v1836_v30 = vmul.f32 %v1772_v21, %v4132_v14  ;;  %v1304_v45 = vadd.f32 %v3871_v19, %v4029_v26 }
 0x1ee   : > { %2291 = vst.msk [vmem:[%s3464_s11 + $0x1a0] sm:$0xff] %vm988_vm0, %v2227_v28  ;;  %2977 = vtanh.f32 %v2041_v57  ;;  %v4160_v52 = vadd.f32 %v4035_v53, %v3388_v35  ;;  %v1716_v61 = vmul.f32 0.5, %v4084_v0  ;;  %v1850_v31 = vmul.f32 %v1786_v20, %v4127_v36 }
 0x1ef   : > { %v2970_v34 = vpop.eup %2969  ;;  %2979 = vtanh.f32 %v2039_v24  ;;  %v1784_v16 = vmul.f32 0.044715, %v4151_v5  ;;  %v1721_v11 = vmul.f32 0.5, %v4096_v59  ;;  %v1900_v10 = vmul.f32 %v1836_v30, %v4132_v14 }
 0x1f0   : > { %v2154_v38 = vadd.f32 1.0, %v2970_v34  ;;  %v4168_v26 = vadd.f32 %v3849_v37, %v1304_v45  ;;  %v1914_v35 = vmul.f32 %v1850_v31, %v4127_v36  ;;  %v1789_v0 = vmul.f32 0.044715, %v4160_v52 }
 0x1f1   : > { %v1848_v53 = vmul.f32 %v1784_v16, %v4151_v5  ;;  %v4175_v56 = vadd.f32 %v4040_v22, %v3377_v27  ;;  %v2972_v33 = vpop.eup %2971  ;;  %v1707_v59 = vmul.f32 0.5, %v4100_v13  ;;  %v1964_v7 = vadd.f32 %v1900_v10, %v4132_v14 }
 0x1f2   : > { %v2218_v50 = vmul.f32 %v2154_v38, %v1706_v6  ;;  %v1773_v48 = vmul.f32 0.044715, %v4168_v26  ;;  %v2166_v37 = vadd.f32 1.0, %v2972_v33  ;;  %v1978_v60 = vadd.f32 %v1914_v35, %v4127_v36 }
 0x1f3   : > { %v1912_v43 = vmul.f32 %v1848_v53, %v4151_v5  ;;  %v1853_v54 = vmul.f32 %v1789_v0, %v4160_v52  ;;  %v1719_v27 = vmul.f32 0.5, %v4104_v1  ;;  %v2028_v22 = vmul.f32 0.7978846, %v1964_v7 }
 0x1f4   : > { %v2974_v63 = vpop.eup %2973  ;;  %2282 = vst.msk [vmem:[%s3464_s11 + $0x158] sm:$0xff] %vm988_vm0, %v2218_v50  ;;  %v1837_v13 = vmul.f32 %v1773_v48, %v4168_v26  ;;  %v1787_v62 = vmul.f32 0.044715, %v4175_v56  ;;  %v2230_v39 = vmul.f32 %v2166_v37, %v1718_v46  ;;  %v2042_v32 = vmul.f32 0.7978846, %v1978_v60 }
 0x1f5   : > { %v2164_v4 = vadd.f32 1.0, %v2974_v63  ;;  %v1976_v15 = vadd.f32 %v1912_v43, %v4151_v5  ;;  %2981 = vtanh.f32 %v2028_v22  ;;  %v1917_v8 = vmul.f32 %v1853_v54, %v4160_v52 }
 0x1f6   : > { %v1901_v9 = vmul.f32 %v1837_v13, %v4168_v26  ;;  %v1851_v47 = vmul.f32 %v1787_v62, %v4175_v56  ;;  %2294 = vst.msk [vmem:[%s3464_s11 + $0x1b8] sm:$0xff] %vm988_vm0, %v2230_v39  ;;  %2983 = vtanh.f32 %v2042_v32  ;;  %v1307_v51 = vadd.f32 %v3871_v19, %v4042_v29 }
 0x1f7   : > { %v2976_v23 = vpop.eup %2975  ;;  %v2228_v1 = vmul.f32 %v2164_v4, %v1716_v61  ;;  %v2040_v49 = vmul.f32 0.7978846, %v1976_v15  ;;  %v1981_v25 = vadd.f32 %v1917_v8, %v4160_v52  ;;  %v4206_v29 = vadd.f32 %v4046_v2, %v3398_v44 }
 0x1f8   : > { %v2978_v42 = vpop.eup %2977  ;;  %v2155_v41 = vadd.f32 1.0, %v2976_v23  ;;  %v1965_v18 = vadd.f32 %v1901_v9, %v4168_v26  ;;  %v1915_v12 = vmul.f32 %v1851_v47, %v4175_v56  ;;  %v4202_v3 = vadd.f32 %v3862_v55, %v1307_v51 }
 0x1f9   : > { %v2980_v6 = vpop.eup %2979  ;;  %2292 = vst.msk [vmem:[%s3464_s11 + $0x1a8] sm:$0xff] %vm988_vm0, %v2228_v1  ;;  %v2169_v58 = vadd.f32 1.0, %v2978_v42  ;;  %2985 = vtanh.f32 %v2040_v49  ;;  %v2045_v21 = vmul.f32 0.7978846, %v1981_v25  ;;  %v1363_v24 = vadd.f32 %v3871_v19, %v3293_v40 }
 0x1fa   : > { %v2219_v28 = vmul.f32 %v2155_v41, %v1707_v59  ;;  %v2167_v46 = vadd.f32 1.0, %v2980_v6  ;;  %v2029_v57 = vmul.f32 0.7978846, %v1965_v18  ;;  %v1979_v30 = vadd.f32 %v1915_v12, %v4175_v56 }
 0x1fb   : > { %v2233_v20 = vmul.f32 %v2169_v58, %v1721_v11  ;;  %v1774_v45 = vmul.f32 0.044715, %v4202_v3  ;;  %v1790_v44 = vmul.f32 0.044715, %v4206_v29  ;;  %v1652_v61 = vadd.f32 %v4052_v17, %v1363_v24 }
 0x1fc   : > { %2283 = vst.msk [vmem:[%s3464_s11 + $0x160] sm:$0xff] %vm988_vm0, %v2219_v28  ;;  %v2231_v55 = vmul.f32 %v2167_v46, %v1719_v27  ;;  %2987 = vtanh.f32 %v2029_v57  ;;  %v2043_v2 = vmul.f32 0.7978846, %v1979_v30  ;;  %v1708_v10 = vmul.f32 0.5, %v4132_v14 }
 0x1fd   : > { %2297 = vst.msk [vmem:[%s3464_s11 + $0x1d0] sm:$0xff] %vm988_vm0, %v2233_v20  ;;  %2989 = vtanh.f32 %v2045_v21  ;;  %v1838_v34 = vmul.f32 %v1774_v45, %v4202_v3  ;;  %v1854_v40 = vmul.f32 %v1790_v44, %v4206_v29  ;;  %v1788_v31 = vmul.f32 0.044715, %v1652_v61 }
 0x1fe   : > { %2295 = vst.msk [vmem:[%s3464_s11 + $0x1c0] sm:$0xff] %vm988_vm0, %v2231_v55  ;;  %2991 = vtanh.f32 %v2043_v2  ;;  %v1722_v17 = vmul.f32 0.5, %v4127_v36  ;;  %v1720_v43 = vmul.f32 0.5, %v4151_v5  ;;  %v1709_v13 = vmul.f32 0.5, %v4168_v26 }
 0x1ff   : > { %v1902_v19 = vmul.f32 %v1838_v34, %v4202_v3  ;;  %v2982_v16 = vpop.eup %2981  ;;  %v1918_v38 = vmul.f32 %v1854_v40, %v4206_v29  ;;  %v1852_v0 = vmul.f32 %v1788_v31, %v1652_v61  ;;  %v1725_v5 = vmul.f32 0.5, %v4160_v52 }
 0x200   : > { %v2984_v11 = vpop.eup %2983  ;;  %v2156_v35 = vadd.f32 1.0, %v2982_v16  ;;  %v1723_v8 = vmul.f32 0.5, %v4175_v56  ;;  %v1710_v1 = vmul.f32 0.5, %v4202_v3  ;;  %v1726_v51 = vmul.f32 0.5, %v4206_v29 }
 0x201   : > { %v1966_v53 = vadd.f32 %v1902_v19, %v4202_v3  ;;  %v2170_v33 = vadd.f32 1.0, %v2984_v11  ;;  %v1982_v50 = vadd.f32 %v1918_v38, %v4206_v29  ;;  %v1916_v37 = vmul.f32 %v1852_v0, %v1652_v61 }
 0x202   : > { %v2220_v7 = vmul.f32 %v2156_v35, %v1708_v10  ;;  %v1724_v25 = vmul.f32 0.5, %v1652_v61 }
 0x203   : > { %v2986_v59 = vpop.eup %2985  ;;  %v2030_v48 = vmul.f32 0.7978846, %v1966_v53  ;;  %v2234_v60 = vmul.f32 %v2170_v33, %v1722_v17  ;;  %v2046_v14 = vmul.f32 0.7978846, %v1982_v50  ;;  %v1980_v63 = vadd.f32 %v1916_v37, %v1652_v61 }
 0x204   : > { %v2168_v54 = vadd.f32 1.0, %v2986_v59  ;;  %2284 = vst.msk [vmem:[%s3464_s11 + $0x168] sm:$0xff] %vm988_vm0, %v2220_v7 }
 0x205   : > { %2993 = vtanh.f32 %v2030_v48  ;;  %2298 = vst.msk [vmem:[%s3464_s11 + $0x1d8] sm:$0xff] %vm988_vm0, %v2234_v60  ;;  %v2044_v39 = vmul.f32 0.7978846, %v1980_v63 }
 0x206   : > { %v2988_v27 = vpop.eup %2987  ;;  %v2232_v36 = vmul.f32 %v2168_v54, %v1720_v43  ;;  %2995 = vtanh.f32 %v2046_v14 }
 0x207   : > { %v2990_v22 = vpop.eup %2989  ;;  %v2157_v62 = vadd.f32 1.0, %v2988_v27  ;;  %2997 = vtanh.f32 %v2044_v39 }
 0x208   : > { %2296 = vst.msk [vmem:[%s3464_s11 + $0x1c8] sm:$0xff] %vm988_vm0, %v2232_v36  ;;  %v2173_v4 = vadd.f32 1.0, %v2990_v22  ;;  %v2992_v32 = vpop.eup %2991 }
 0x209   : > { %v2221_v15 = vmul.f32 %v2157_v62, %v1709_v13  ;;  %v2171_v47 = vadd.f32 1.0, %v2992_v32 }
 0x20a   : > { %v2237_v9 = vmul.f32 %v2173_v4, %v1725_v5 }
 0x20b   : > { %2285 = vst.msk [vmem:[%s3464_s11 + $0x170] sm:$0xff] %vm988_vm0, %v2221_v15  ;;  %v2235_v26 = vmul.f32 %v2171_v47, %v1723_v8 }
 0x20c   : > { %2301 = vst.msk [vmem:[%s3464_s11 + $0x1f0] sm:$0xff] %vm988_vm0, %v2237_v9 }
 0x20d   : > { %2299 = vst.msk [vmem:[%s3464_s11 + $0x1e0] sm:$0xff] %vm988_vm0, %v2235_v26 }
 0x20f   : > { %v2994_v23 = vpop.eup %2993 }
 0x210   : > { %v2996_v52 = vpop.eup %2995  ;;  %v2158_v49 = vadd.f32 1.0, %v2994_v23 }
 0x211   : > { %v2174_v42 = vadd.f32 1.0, %v2996_v52  ;;  %v2998_v56 = vpop.eup %2997 }
 0x212   : > { %v2222_v41 = vmul.f32 %v2158_v49, %v1710_v1  ;;  %v2172_v12 = vadd.f32 1.0, %v2998_v56 }
 0x213   : > { %v2238_v18 = vmul.f32 %v2174_v42, %v1726_v51 }
 0x214   : > { %2286 = vst.msk [vmem:[%s3464_s11 + $0x178] sm:$0xff] %vm988_vm0, %v2222_v41  ;;  %v2236_v6 = vmul.f32 %v2172_v12, %v1724_v25 }
 0x215   : > { %2302 = vst.msk [vmem:[%s3464_s11 + $0x1f8] sm:$0xff] %vm988_vm0, %v2238_v18 }
 0x216   : > { %2300 = vst.msk [vmem:[%s3464_s11 + $0x1e8] sm:$0xff] %vm988_vm0, %v2236_v6 }
 0x217 PF: > { %s13_s14 = sadd.s32 1, %s3022_s14   ;;  %s4265_s12 = smov %s3018_s13 }
 0x218   : > { %p10_p5 = scmp.ge.s32.totalorder %s13_s14, 4   ;;  %s4266_s13 = smov %s4268_s15 }
 0x21a   :  { %12 = sbr.rel (!%p10_p5) target bundleno = 2 (0x2), region = 68 }

// kernel: fsnet_fwd.28
= control target key start
LH: loop header
LB: loop body
LE: loop exit
PB: predicated region body
PF: predicated region fallthrough
CT: control target
= control target key end

     0   :  { %s2340_s12 = smov 0   ;;  %s2342_s13 = smov 0   ;;  %s2906_s0 = inlined_call_operand.vmem [shape: bf16[1024,288], index: 0, kind: input, shape index: {}]   ;;  %s2907_s1 = inlined_call_operand.vmem [shape: bf16[288,128], index: 1, kind: input, shape index: {}]   ;;  %s2908_s2 = inlined_call_operand.vmem [shape: f32[1,128], index: 2, kind: input, shape index: {}]   ;;  %s2909_s3 = inlined_call_operand.vmem [shape: f32[1024,32], index: 3, kind: output, shape index: {}]  }
   0x1   :  { %s2344_s14 = smov 0  }
   0x2 LB: > { %s25_s15 = sadd.s32 1, %s2313_s13  ;;  %p1835_p0 = scmp.ge.s32.totalorder %s2317_s14, 1  ;;  %s2317_s14 = sphi %s2344_s14, %s13_s14   ;;  %s2313_s13 = sphi %s2342_s13, %s2911_s13   ;;  %s2309_s12 = sphi %s2340_s12, %s2910_s12  }
   0x3   : > { %p27_p1 = scmp.ge.s32.totalorder %s25_s15, 2  ;;  %p170_p2 = scmp.lt.s32.totalorder %s2317_s14, 3 }
   0x5   : > { %s2913_s15 = smov (%p27_p1, %s25_s15), 0  ;;  %p171_p3 = pnand %p1835_p0, %p170_p2 }
   0x6   : > { %v2149_v0 = vld [vmem:[%s2907_s1] sm:$0xff] (!%p171_p3)   ;;  %v2319_v1 = vmov (!%p171_p3), 0   ;;  %s1836_s18 = sshll.u32 (!%p171_p3), %s2309_s12, 6  ;;  %v2150_v2 = vld [vmem:[%s2907_s1 + $0x8] sm:$0xff] (!%p171_p3)   ;;  %v2151_v3 = vld [vmem:[%s2907_s1 + $0x10] sm:$0xff] (!%p171_p3)   ;;  %vm988_vm0 = vcmask (!%p171_p3), 261120  }
   0x7   : > { %174 = sbr.rel (%p171_p3) target bundleno = 474 (0x1da), region = 32  ;;  %1085 = vmatprep.subr.bf16.mxu0 (!%p171_p3), %v2319_v1  ;;  %2091 = vmatprep.subr.bf16.mxu1 (!%p171_p3), %v2319_v1  ;;  %p206_p4 = scmp.lt.s32.totalorder (!%p171_p3), %s1836_s18, 127  ;;  %v2152_v4 = vld [vmem:[%s2907_s1 + $0x18] sm:$0xff] (!%p171_p3)   ;;  %v2153_v5 = vld [vmem:[%s2907_s1 + $0x20] sm:$0xff] (!%p171_p3)   ;;  %v2154_v7 = vld [vmem:[%s2907_s1 + $0x28] sm:$0xff] (!%p171_p3)  }
   0x8   : > { %1086 = vmatpush1.bf16.msra.mxu0 (!%p171_p3), %v2149_v0  ;;  %2107 = vmatpush1.bf16.msra.mxu1 (!%p171_p3), %v2149_v0  ;;  %v2155_v9 = vld [vmem:[%s2907_s1 + $0x30] sm:$0xff] (!%p171_p3)   ;;  %v2156_v10 = vld [vmem:[%s2907_s1 + $0x38] sm:$0xff] (!%p171_p3)   ;;  %v2157_v11 = vld [vmem:[%s2907_s1 + $0x40] sm:$0xff] (!%p171_p3)  }
   0x9   : > { %1087 = vmatprep.subr.bf16.mxu0 (!%p171_p3), %v2319_v1  ;;  %2092 = vmatprep.subr.bf16.mxu1 (!%p171_p3), %v2319_v1  ;;  %v2158_v12 = vld [vmem:[%s2907_s1 + $0x48] sm:$0xff] (!%p171_p3)   ;;  %v2159_v13 = vld [vmem:[%s2907_s1 + $0x50] sm:$0xff] (!%p171_p3)   ;;  %v2160_v14 = vld [vmem:[%s2907_s1 + $0x58] sm:$0xff] (!%p171_p3)  }
   0xa   : > { %v2161_v15 = vld [vmem:[%s2907_s1 + $0x60] sm:$0xff] (!%p171_p3)   ;;  %v2162_v16 = vld [vmem:[%s2907_s1 + $0x68] sm:$0xff] (!%p171_p3)   ;;  %v2163_v17 = vld [vmem:[%s2907_s1 + $0x70] sm:$0xff] (!%p171_p3)  }
   0xb   : > { %v2164_v18 = vld [vmem:[%s2907_s1 + $0x78] sm:$0xff] (!%p171_p3)   ;;  %v2171_v19 = vld [vmem:[%s2907_s1 + $0x80] sm:$0xff] (!%p171_p3)   ;;  %v2196_v24 = vld [vmem:[%s2907_s1 + $0x88] sm:$0xff] (!%p171_p3)  }
   0xc   : > { %1088 = vmatpush1.bf16.msra.mxu0 (!%p171_p3), %v2150_v2  ;;  %2108 = vmatpush1.bf16.msra.mxu1 (!%p171_p3), %v2150_v2 }
   0xd   : > { %1089 = vmatprep.subr.bf16.mxu0 (!%p171_p3), %v2319_v1  ;;  %2093 = vmatprep.subr.bf16.mxu1 (!%p171_p3), %v2319_v1 }
   0xe   : > { %s2915_s18 = smov (!%p206_p4, %s1836_s18), 127 }
   0xf   : > { %s2123_s25 = smul.u32 12, %s2915_s18  ;;  %s1839_s9 = sshll.u32 %s2915_s18, 3 }
  0x10   : > { %1090 = vmatpush1.bf16.msra.mxu0 %v2151_v3  ;;  %2109 = vmatpush1.bf16.msra.mxu1 %v2151_v3  ;;  %s2654_s12 = scalar_lea.vmem %s2909_s3, %s1839_s9 }
  0x11   : > { %1091 = vmatprep.subr.bf16.mxu0 %v2319_v1  ;;  %2094 = vmatprep.subr.bf16.mxu1 %v2319_v1  ;;  %s2387_s30 = scalar_lea.vmem %s2906_s0, %s2123_s25 }
  0x12   : > { %v2167_v6 = vld [vmem:[%s2387_s30 + $0x4] ss:$12 sps:$4 sm:$0xff]   ;;  %v2165_v20 = vld [vmem:[%s2387_s30] ss:$12 sps:$4 sm:$0xff]   ;;  %v2172_v22 = vld [vmem:[%s2387_s30 + $0x1c] ss:$12 sps:$4 sm:$0xff]  }
  0x13   : > { %v2170_v8 = vld [vmem:[%s2387_s30 + $0x244] ss:$12 sps:$4 sm:$0xff]   ;;  %1117 = vmatprep.mubr.bf16.mxu0 %v2167_v6  ;;  %v2168_v21 = vld [vmem:[%s2387_s30 + $0x240] ss:$12 sps:$4 sm:$0xff]   ;;  %v2174_v23 = vld [vmem:[%s2387_s30 + $0x25c] ss:$12 sps:$4 sm:$0xff]  }
  0x14   : > { %1092 = vmatpush1.bf16.msra.mxu0 %v2152_v4  ;;  %2110 = vmatpush1.bf16.msra.mxu1 %v2152_v4  ;;  %v2176_v25 = vld [vmem:[%s2387_s30 + $0x18] ss:$12 sps:$4 sm:$0xff]   ;;  %v2178_v27 = vld [vmem:[%s2387_s30 + $0x34] ss:$12 sps:$4 sm:$0xff]   ;;  %v2182_v29 = vld [vmem:[%s2387_s30 + $0x30] ss:$12 sps:$4 sm:$0xff]  }
  0x15   : > { %1093 = vmatprep.subr.bf16.mxu0 %v2319_v1  ;;  %2095 = vmatprep.subr.bf16.mxu1 %v2319_v1  ;;  %v2177_v26 = vld [vmem:[%s2387_s30 + $0x258] ss:$12 sps:$4 sm:$0xff]   ;;  %v2180_v28 = vld [vmem:[%s2387_s30 + $0x274] ss:$12 sps:$4 sm:$0xff]   ;;  %v2183_v30 = vld [vmem:[%s2387_s30 + $0x270] ss:$12 sps:$4 sm:$0xff]  }
  0x16   : > { %1309 = vmatprep.mubr.bf16.mxu1 %v2170_v8  ;;  %v2184_v31 = vld [vmem:[%s2387_s30 + $0x4c] ss:$12 sps:$4 sm:$0xff]   ;;  %v2188_v33 = vld [vmem:[%s2387_s30 + $0x48] ss:$12 sps:$4 sm:$0xff]   ;;  %v2190_v35 = vld [vmem:[%s2387_s30 + $0x64] ss:$12 sps:$4 sm:$0xff]  }
  0x17   : > { %v2186_v32 = vld [vmem:[%s2387_s30 + $0x28c] ss:$12 sps:$4 sm:$0xff]   ;;  %v2189_v34 = vld [vmem:[%s2387_s30 + $0x288] ss:$12 sps:$4 sm:$0xff]   ;;  %v2192_v36 = vld [vmem:[%s2387_s30 + $0x2a4] ss:$12 sps:$4 sm:$0xff]  }
  0x18   : > { %1094 = vmatpush1.bf16.msra.mxu0 %v2153_v5  ;;  %2111 = vmatpush1.bf16.msra.mxu1 %v2153_v5  ;;  %v2194_v37 = vld [vmem:[%s2387_s30 + $0x60] ss:$12 sps:$4 sm:$0xff]   ;;  %v2197_v39 = vld [vmem:[%s2387_s30 + $0x7c] ss:$12 sps:$4 sm:$0xff]   ;;  %v2201_v41 = vld [vmem:[%s2387_s30 + $0x78] ss:$12 sps:$4 sm:$0xff]  }
  0x19   : > { %1095 = vmatprep.subr.bf16.mxu0 %v2319_v1  ;;  %2096 = vmatprep.subr.bf16.mxu1 %v2319_v1  ;;  %v2195_v38 = vld [vmem:[%s2387_s30 + $0x2a0] ss:$12 sps:$4 sm:$0xff]   ;;  %v2199_v40 = vld [vmem:[%s2387_s30 + $0x2bc] ss:$12 sps:$4 sm:$0xff]   ;;  %v2202_v42 = vld [vmem:[%s2387_s30 + $0x2b8] ss:$12 sps:$4 sm:$0xff]  }
  0x1a   : > { %v2203_v43 = vld [vmem:[%s2387_s30 + $0x94] ss:$12 sps:$4 sm:$0xff]   ;;  %v2207_v45 = vld [vmem:[%s2387_s30 + $0x90] ss:$12 sps:$4 sm:$0xff]   ;;  %v2209_v47 = vld [vmem:[%s2387_s30 + $0xac] ss:$12 sps:$4 sm:$0xff]  }
  0x1b   : > { %v2205_v44 = vld [vmem:[%s2387_s30 + $0x2d4] ss:$12 sps:$4 sm:$0xff]   ;;  %v2208_v46 = vld [vmem:[%s2387_s30 + $0x2d0] ss:$12 sps:$4 sm:$0xff]   ;;  %v2211_v48 = vld [vmem:[%s2387_s30 + $0x2ec] ss:$12 sps:$4 sm:$0xff]  }
  0x1c   : > { %1096 = vmatpush1.bf16.msra.mxu0 %v2154_v7  ;;  %2112 = vmatpush1.bf16.msra.mxu1 %v2154_v7  ;;  %v2213_v49 = vld [vmem:[%s2387_s30 + $0xa8] ss:$12 sps:$4 sm:$0xff]   ;;  %v2215_v51 = vld [vmem:[%s2387_s30 + $0xc4] ss:$12 sps:$4 sm:$0xff]   ;;  %v2218_v53 = vld [vmem:[%s2387_s30 + $0xc0] ss:$12 sps:$4 sm:$0xff]  }
  0x1d   : > { %1097 = vmatprep.subr.bf16.mxu0 %v2319_v1  ;;  %2097 = vmatprep.subr.bf16.mxu1 %v2319_v1  ;;  %v2214_v50 = vld [vmem:[%s2387_s30 + $0x2e8] ss:$12 sps:$4 sm:$0xff]   ;;  %v2219_v54 = vld [vmem:[%s2387_s30 + $0x20] ss:$12 sps:$4 sm:$0xff]   ;;  %v2222_v56 = vld [vmem:[%s2387_s30 + $0x38] ss:$12 sps:$4 sm:$0xff]  }
  0x1e   : > { %v2217_v52 = vld [vmem:[%s2387_s30 + $0x8] ss:$12 sps:$4 sm:$0xff]   ;;  %v2223_v57 = vld [vmem:[%s2387_s30 + $0xd8] ss:$12 sps:$4 sm:$0xff]   ;;  %v2224_v58 = vld [vmem:[%s2387_s30 + $0x50] ss:$12 sps:$4 sm:$0xff]  }
  0x1f   : > { %v2220_v55 = vld [vmem:[%s2387_s30 + $0xdc] ss:$12 sps:$4 sm:$0xff]   ;;  %v2225_v59 = vld [vmem:[%s2387_s30 + $0xf4] ss:$12 sps:$4 sm:$0xff]   ;;  %v2230_v63 = vld [vmem:[%s2387_s30 + $0x10c] ss:$12 sps:$4 sm:$0xff]  }
  0x20   : > { %1098 = vmatpush1.bf16.msra.mxu0 %v2155_v9  ;;  %2113 = vmatpush1.bf16.msra.mxu1 %v2155_v9  ;;  %v2227_v60 = vld [vmem:[%s2387_s30 + $0x68] ss:$12 sps:$4 sm:$0xff]   ;;  %v2228_v61 = vld [vmem:[%s2387_s30 + $0xf0] ss:$12 sps:$4 sm:$0xff]   ;;  %v2229_v62 = vld [vmem:[%s2387_s30 + $0x80] ss:$12 sps:$4 sm:$0xff]  }
  0x21   : > { %1099 = vmatprep.subr.bf16.mxu0 %v2319_v1  ;;  %2098 = vmatprep.subr.bf16.mxu1 %v2319_v1  ;;  %v2232_v0 = vld [vmem:[%s2387_s30 + $0x98] ss:$12 sps:$4 sm:$0xff]   ;;  %v2234_v2 = vld [vmem:[%s2387_s30 + $0xb0] ss:$12 sps:$4 sm:$0xff]   ;;  %v2237_v4 = vld [vmem:[%s2387_s30 + $0xc8] ss:$12 sps:$4 sm:$0xff]  }
  0x22   : > { %v2235_v3 = vld [vmem:[%s2387_s30 + $0x124] ss:$12 sps:$4 sm:$0xff]   ;;  %v2238_v5 = vld [vmem:[%s2387_s30 + $0x120] ss:$12 sps:$4 sm:$0xff]   ;;  %v2240_v7 = vld [vmem:[%s2387_s30 + $0x13c] ss:$12 sps:$4 sm:$0xff]  }
  0x23   : > { %v2239_v6 = vld [vmem:[%s2387_s30 + $0xe0] ss:$12 sps:$4 sm:$0xff]   ;;  %v2242_v8 = vld [vmem:[%s2387_s30 + $0xf8] ss:$12 sps:$4 sm:$0xff]  }
  0x24   : > { %1100 = vmatpush1.bf16.msra.mxu0 %v2156_v10  ;;  %2114 = vmatpush1.bf16.msra.mxu1 %v2156_v10  ;;  %v2243_v9 = vld [vmem:[%s2387_s30 + $0x138] ss:$12 sps:$4 sm:$0xff]   ;;  %v2244_v10 = vld [vmem:[%s2387_s30 + $0x110] ss:$12 sps:$4 sm:$0xff]  }
  0x25   : > { %1101 = vmatprep.subr.bf16.mxu0 %v2319_v1  ;;  %2099 = vmatprep.subr.bf16.mxu1 %v2319_v1 }
  0x28   : > { %1102 = vmatpush1.bf16.msra.mxu0 %v2157_v11  ;;  %2115 = vmatpush1.bf16.msra.mxu1 %v2157_v11  ;;  %v2245_v11 = vld [vmem:[%s2387_s30 + $0x154] ss:$12 sps:$4 sm:$0xff]  }
  0x29   : > { %1103 = vmatprep.subr.bf16.mxu0 %v2319_v1  ;;  %2100 = vmatprep.subr.bf16.mxu1 %v2319_v1 }
  0x2c   : > { %1104 = vmatpush1.bf16.msra.mxu0 %v2158_v12  ;;  %2116 = vmatpush1.bf16.msra.mxu1 %v2158_v12  ;;  %v2247_v12 = vld [vmem:[%s2387_s30 + $0x128] ss:$12 sps:$4 sm:$0xff]  }
  0x2d   : > { %1105 = vmatprep.subr.bf16.mxu0 %v2319_v1  ;;  %2101 = vmatprep.subr.bf16.mxu1 %v2319_v1 }
  0x30   : > { %1106 = vmatpush1.bf16.msra.mxu0 %v2159_v13  ;;  %2117 = vmatpush1.bf16.msra.mxu1 %v2159_v13  ;;  %v2248_v13 = vld [vmem:[%s2387_s30 + $0x150] ss:$12 sps:$4 sm:$0xff]  }
  0x31   : > { %1107 = vmatprep.subr.bf16.mxu0 %v2319_v1  ;;  %2102 = vmatprep.subr.bf16.mxu1 %v2319_v1 }
  0x34   : > { %1108 = vmatpush1.bf16.msra.mxu0 %v2160_v14  ;;  %2118 = vmatpush1.bf16.msra.mxu1 %v2160_v14  ;;  %v2249_v14 = vld [vmem:[%s2387_s30 + $0x140] ss:$12 sps:$4 sm:$0xff]  }
  0x35   : > { %1109 = vmatprep.subr.bf16.mxu0 %v2319_v1  ;;  %2103 = vmatprep.subr.bf16.mxu1 %v2319_v1 }
  0x38   : > { %1110 = vmatpush1.bf16.msra.mxu0 %v2161_v15  ;;  %2119 = vmatpush1.bf16.msra.mxu1 %v2161_v15  ;;  %v2250_v15 = vld [vmem:[%s2387_s30 + $0x16c] ss:$12 sps:$4 sm:$0xff]  }
  0x39   : > { %1111 = vmatprep.subr.bf16.mxu0 %v2319_v1  ;;  %2104 = vmatprep.subr.bf16.mxu1 %v2319_v1 }
  0x3c   : > { %1112 = vmatpush1.bf16.msra.mxu0 %v2162_v16  ;;  %2120 = vmatpush1.bf16.msra.mxu1 %v2162_v16  ;;  %v2252_v16 = vld [vmem:[%s2387_s30 + $0x158] ss:$12 sps:$4 sm:$0xff]  }
  0x3d   : > { %1113 = vmatprep.subr.bf16.mxu0 %v2319_v1  ;;  %2105 = vmatprep.subr.bf16.mxu1 %v2319_v1 }
  0x40   : > { %1114 = vmatpush1.bf16.msra.mxu0 %v2163_v17  ;;  %2121 = vmatpush1.bf16.msra.mxu1 %v2163_v17  ;;  %v2253_v17 = vld [vmem:[%s2387_s30 + $0x168] ss:$12 sps:$4 sm:$0xff]  }
  0x41   : > { %1115 = vmatprep.subr.bf16.mxu0 %v2319_v1  ;;  %2106 = vmatprep.subr.bf16.mxu1 %v2319_v1  ;;  %v2233_v1 = vld [vmem:[%s2387_s30 + $0x108] ss:$12 sps:$4 sm:$0xff]  }
  0x44   : > { %1116 = vmatpush1.bf16.msra.mxu0 %v2164_v18  ;;  %2122 = vmatpush1.bf16.msra.mxu1 %v2164_v18  ;;  %v2254_v18 = vld [vmem:[%s2387_s30 + $0x170] ss:$12 sps:$4 sm:$0xff]  }
  0x45   : > { %2023 = vmatprep.subr.bf16.mxu1 %v2171_v19 }
  0x47   : > { %1118 = vmatmul.mubr.bf16.vlgmr.msra.gmra.mrb[0].mxu0 %v2165_v20  ;;  %1310 = vmatmul.mubr.bf16.vlgmr.msra.gmra.mrb[0].mxu1 %v2168_v21  ;;  %v2257_v20 = vld [vmem:[%s2387_s30 + $0x188] ss:$12 sps:$4 sm:$0xff]   ;;  %v2258_v21 = vld [vmem:[%s2387_s30 + $0x180] ss:$12 sps:$4 sm:$0xff]  }
  0x48   : > { %2024 = vmatpush3.bf16.msra.mxu1 %v2171_v19  ;;  %1125 = vmatprep.mubr.bf16.mxu0 %v2172_v22  ;;  %v2255_v19 = vld [vmem:[%s2387_s30 + $0x184] ss:$12 sps:$4 sm:$0xff]   ;;  %v2259_v22 = vld [vmem:[%s2387_s30 + $0x1a0] ss:$12 sps:$4 sm:$0xff]  }
  0x49   : > { %1317 = vmatprep.mubr.bf16.mxu1 %v2174_v23  ;;  %2025 = vmatprep.subr.bf16.mxu1 %v2196_v24  ;;  %v2260_v23 = vld [vmem:[%s2387_s30 + $0x19c] ss:$12 sps:$4 sm:$0xff]  }
  0x4c   : > { %2026 = vmatpush3.bf16.msra.mxu1 %v2196_v24  ;;  %v2262_v24 = vld [vmem:[%s2387_s30 + $0x1b8] ss:$12 sps:$4 sm:$0xff]  }
  0x4f   : > { %1126 = vmatmul.mubr.bf16.gmra.mrb[4].mxu0 %v2176_v25  ;;  %1318 = vmatmul.mubr.bf16.gmra.mrb[4].mxu1 %v2177_v26  ;;  %v2263_v25 = vld [vmem:[%s2387_s30 + $0x198] ss:$12 sps:$4 sm:$0xff]   ;;  %v2264_v26 = vld [vmem:[%s2387_s30 + $0x1d0] ss:$12 sps:$4 sm:$0xff]  }
  0x50   : > { %1133 = vmatprep.mubr.bf16.mxu0 %v2178_v27  ;;  %1325 = vmatprep.mubr.bf16.mxu1 %v2180_v28  ;;  %v2265_v27 = vld [vmem:[%s2387_s30 + $0x1b4] ss:$12 sps:$4 sm:$0xff]  }
  0x51   : > { %v2267_v28 = vld [vmem:[%s2387_s30 + $0x1e8] ss:$12 sps:$4 sm:$0xff]  }
  0x57   : > { %1134 = vmatmul.mubr.bf16.gmra.mrb[8].mxu0 %v2182_v29  ;;  %1326 = vmatmul.mubr.bf16.gmra.mrb[8].mxu1 %v2183_v30  ;;  %v2268_v29 = vld [vmem:[%s2387_s30 + $0x1b0] ss:$12 sps:$4 sm:$0xff]   ;;  %v2269_v30 = vld [vmem:[%s2387_s30 + $0x200] ss:$12 sps:$4 sm:$0xff]  }
  0x58   : > { %1141 = vmatprep.mubr.bf16.mxu0 %v2184_v31  ;;  %1333 = vmatprep.mubr.bf16.mxu1 %v2186_v32  ;;  %v2270_v31 = vld [vmem:[%s2387_s30 + $0x1cc] ss:$12 sps:$4 sm:$0xff]  }
  0x59   : > { %v2272_v32 = vld [vmem:[%s2387_s30 + $0x218] ss:$12 sps:$4 sm:$0xff]  }
  0x5f   : > { %1142 = vmatmul.mubr.bf16.gmra.mrb[12].mxu0 %v2188_v33  ;;  %1334 = vmatmul.mubr.bf16.gmra.mrb[12].mxu1 %v2189_v34  ;;  %v2273_v33 = vld [vmem:[%s2387_s30 + $0x1c8] ss:$12 sps:$4 sm:$0xff]   ;;  %v2274_v34 = vld [vmem:[%s2387_s30 + $0x230] ss:$12 sps:$4 sm:$0xff]  }
  0x60   : > { %1149 = vmatprep.mubr.bf16.mxu0 %v2190_v35  ;;  %1341 = vmatprep.mubr.bf16.mxu1 %v2192_v36  ;;  %v2275_v35 = vld [vmem:[%s2387_s30 + $0x1e4] ss:$12 sps:$4 sm:$0xff]   ;;  %v2277_v36 = vld [vmem:[%s2387_s30 + $0x248] ss:$12 sps:$4 sm:$0xff]  }
  0x67   : > { %1150 = vmatmul.mubr.bf16.gmra.mrb[16].mxu0 %v2194_v37  ;;  %1342 = vmatmul.mubr.bf16.gmra.mrb[16].mxu1 %v2195_v38  ;;  %v2278_v37 = vld [vmem:[%s2387_s30 + $0x1e0] ss:$12 sps:$4 sm:$0xff]  }
  0x68   : > { %1157 = vmatprep.mubr.bf16.mxu0 %v2197_v39  ;;  %1349 = vmatprep.mubr.bf16.mxu1 %v2199_v40  ;;  %v2279_v38 = vld [vmem:[%s2387_s30 + $0x260] ss:$12 sps:$4 sm:$0xff]   ;;  %v2280_v39 = vld [vmem:[%s2387_s30 + $0x1fc] ss:$12 sps:$4 sm:$0xff]   ;;  %v2282_v40 = vld [vmem:[%s2387_s30 + $0x278] ss:$12 sps:$4 sm:$0xff]  }
  0x6f   : > { %1158 = vmatmul.mubr.bf16.gmra.mrb[20].mxu0 %v2201_v41  ;;  %1350 = vmatmul.mubr.bf16.gmra.mrb[20].mxu1 %v2202_v42  ;;  %v2283_v41 = vld [vmem:[%s2387_s30 + $0x1f8] ss:$12 sps:$4 sm:$0xff]   ;;  %v2284_v42 = vld [vmem:[%s2387_s30 + $0x290] ss:$12 sps:$4 sm:$0xff]  }
  0x70   : > { %1165 = vmatprep.mubr.bf16.mxu0 %v2203_v43  ;;  %1357 = vmatprep.mubr.bf16.mxu1 %v2205_v44  ;;  %v2285_v43 = vld [vmem:[%s2387_s30 + $0x214] ss:$12 sps:$4 sm:$0xff]  }
  0x71   : > { %v2287_v44 = vld [vmem:[%s2387_s30 + $0x2a8] ss:$12 sps:$4 sm:$0xff]  }
  0x77   : > { %1166 = vmatmul.mubr.bf16.gmra.mrb[24].mxu0 %v2207_v45  ;;  %1358 = vmatmul.mubr.bf16.gmra.mrb[24].mxu1 %v2208_v46  ;;  %v2288_v45 = vld [vmem:[%s2387_s30 + $0x210] ss:$12 sps:$4 sm:$0xff]   ;;  %v2289_v46 = vld [vmem:[%s2387_s30 + $0x2c0] ss:$12 sps:$4 sm:$0xff]  }
  0x78   : > { %1173 = vmatprep.mubr.bf16.mxu0 %v2209_v47  ;;  %1365 = vmatprep.mubr.bf16.mxu1 %v2211_v48  ;;  %v2290_v47 = vld [vmem:[%s2387_s30 + $0x22c] ss:$12 sps:$4 sm:$0xff]  }
  0x79   : > { %v2292_v48 = vld [vmem:[%s2387_s30 + $0x2d8] ss:$12 sps:$4 sm:$0xff]  }
  0x7f   : > { %1174 = vmatmul.mubr.bf16.gmra.mrb[28].mxu0 %v2213_v49  ;;  %1366 = vmatmul.mubr.bf16.gmra.mrb[28].mxu1 %v2214_v50  ;;  %v2293_v49 = vld [vmem:[%s2387_s30 + $0x228] ss:$12 sps:$4 sm:$0xff]   ;;  %v2294_v50 = vld [vmem:[%s2387_s30 + $0x2f0] ss:$12 sps:$4 sm:$0xff]  }
  0x80   : > { %1181 = vmatprep.mubr.bf16.mxu0 %v2215_v51  ;;  %2027 = vmatprep.mubr.msk.bf16.mxu1 %vm988_vm0, %v2217_v52 }
  0x87   : > { %1182 = vmatmul.mubr.bf16.gmra.mrb[32].mxu0 %v2218_v53  ;;  %2028 = vmatmul.mubr.msk.bf16.vlgmr.msra.gmra.mrb[32].mxu1 %vm988_vm0, %v2219_v54 }
  0x88   : > { %1189 = vmatprep.mubr.bf16.mxu0 %v2220_v55  ;;  %2031 = vmatprep.mubr.msk.bf16.mxu1 %vm988_vm0, %v2222_v56 }
  0x8f   : > { %1190 = vmatmul.mubr.bf16.gmra.mrb[36].mxu0 %v2223_v57  ;;  %2032 = vmatmul.mubr.msk.bf16.gmra.mrb[36].mxu1 %vm988_vm0, %v2224_v58 }
  0x90   : > { %1197 = vmatprep.mubr.bf16.mxu0 %v2225_v59  ;;  %2035 = vmatprep.mubr.msk.bf16.mxu1 %vm988_vm0, %v2227_v60 }
  0x97   : > { %1198 = vmatmul.mubr.bf16.gmra.mrb[40].mxu0 %v2228_v61  ;;  %2036 = vmatmul.mubr.msk.bf16.gmra.mrb[40].mxu1 %vm988_vm0, %v2229_v62 }
  0x98   : > { %1205 = vmatprep.mubr.bf16.mxu0 %v2230_v63  ;;  %2039 = vmatprep.mubr.msk.bf16.mxu1 %vm988_vm0, %v2232_v0 }
  0x9f   : > { %1206 = vmatmul.mubr.bf16.gmra.mrb[44].mxu0 %v2233_v1  ;;  %2040 = vmatmul.mubr.msk.bf16.gmra.mrb[44].mxu1 %vm988_vm0, %v2234_v2 }
  0xa0   : > { %1213 = vmatprep.mubr.bf16.mxu0 %v2235_v3  ;;  %2043 = vmatprep.mubr.msk.bf16.mxu1 %vm988_vm0, %v2237_v4 }
  0xa7   : > { %1214 = vmatmul.mubr.bf16.gmra.mrb[48].mxu0 %v2238_v5  ;;  %2044 = vmatmul.mubr.msk.bf16.gmra.mrb[48].mxu1 %vm988_vm0, %v2239_v6 }
  0xa8   : > { %1221 = vmatprep.mubr.bf16.mxu0 %v2240_v7  ;;  %2047 = vmatprep.mubr.msk.bf16.mxu1 %vm988_vm0, %v2242_v8 }
  0xaf   : > { %1222 = vmatmul.mubr.bf16.gmra.mrb[52].mxu0 %v2243_v9  ;;  %2048 = vmatmul.mubr.msk.bf16.gmra.mrb[52].mxu1 %vm988_vm0, %v2244_v10 }
  0xb0   : > { %1229 = vmatprep.mubr.bf16.mxu0 %v2245_v11  ;;  %2051 = vmatprep.mubr.msk.bf16.mxu1 %vm988_vm0, %v2247_v12 }
  0xb7   : > { %1230 = vmatmul.mubr.bf16.gmra.mrb[56].mxu0 %v2248_v13  ;;  %2052 = vmatmul.mubr.msk.bf16.gmra.mrb[56].mxu1 %vm988_vm0, %v2249_v14 }
  0xb8   : > { %1237 = vmatprep.mubr.bf16.mxu0 %v2250_v15  ;;  %2055 = vmatprep.mubr.msk.bf16.mxu1 %vm988_vm0, %v2252_v16 }
  0xbf   : > { %1238 = vmatmul.mubr.bf16.gmra.mrb[60].mxu0 %v2253_v17  ;;  %2056 = vmatmul.mubr.msk.bf16.gmra.mrb[60].mxu1 %vm988_vm0, %v2254_v18 }
  0xc0   : > { %1245 = vmatprep.mubr.bf16.mxu0 %v2255_v19  ;;  %2059 = vmatprep.mubr.msk.bf16.mxu1 %vm988_vm0, %v2257_v20 }
  0xc7   : > { %1246 = vmatmul.mubr.bf16.gmra.mrb[64].mxu0 %v2258_v21  ;;  %2060 = vmatmul.mubr.msk.bf16.gmra.mrb[64].mxu1 %vm988_vm0, %v2259_v22 }
  0xc8   : > { %1253 = vmatprep.mubr.bf16.mxu0 %v2260_v23  ;;  %2063 = vmatprep.mubr.msk.bf16.mxu1 %vm988_vm0, %v2262_v24 }
  0xcf   : > { %1254 = vmatmul.mubr.bf16.gmra.mrb[68].mxu0 %v2263_v25  ;;  %2064 = vmatmul.mubr.msk.bf16.gmra.mrb[68].mxu1 %vm988_vm0, %v2264_v26 }
  0xd0   : > { %1261 = vmatprep.mubr.bf16.mxu0 %v2265_v27  ;;  %2067 = vmatprep.mubr.msk.bf16.mxu1 %vm988_vm0, %v2267_v28 }
  0xd7   : > { %1262 = vmatmul.mubr.bf16.gmra.mrb[72].mxu0 %v2268_v29  ;;  %2068 = vmatmul.mubr.msk.bf16.gmra.mrb[72].mxu1 %vm988_vm0, %v2269_v30 }
  0xd8   : > { %1269 = vmatprep.mubr.bf16.mxu0 %v2270_v31  ;;  %2071 = vmatprep.mubr.msk.bf16.mxu1 %vm988_vm0, %v2272_v32 }
  0xdf   : > { %1270 = vmatmul.mubr.bf16.gmra.mrb[76].mxu0 %v2273_v33  ;;  %2072 = vmatmul.mubr.msk.bf16.gmra.mrb[76].mxu1 %vm988_vm0, %v2274_v34 }
  0xe0   : > { %1277 = vmatprep.mubr.bf16.mxu0 %v2275_v35  ;;  %2075 = vmatprep.mubr.msk.bf16.mxu1 %vm988_vm0, %v2277_v36 }
  0xe7   : > { %1278 = vmatmul.mubr.bf16.gmra.mrb[80].mxu0 %v2278_v37  ;;  %2076 = vmatmul.mubr.msk.bf16.gmra.mrb[80].mxu1 %vm988_vm0, %v2279_v38 }
  0xe8   : > { %1285 = vmatprep.mubr.bf16.mxu0 %v2280_v39  ;;  %2079 = vmatprep.mubr.msk.bf16.mxu1 %vm988_vm0, %v2282_v40 }
  0xef   : > { %1286 = vmatmul.mubr.bf16.gmra.mrb[84].mxu0 %v2283_v41  ;;  %2080 = vmatmul.mubr.msk.bf16.gmra.mrb[84].mxu1 %vm988_vm0, %v2284_v42 }
  0xf0   : > { %1293 = vmatprep.mubr.bf16.mxu0 %v2285_v43  ;;  %2083 = vmatprep.mubr.msk.bf16.mxu1 %vm988_vm0, %v2287_v44 }
  0xf7   : > { %1294 = vmatmul.mubr.bf16.gmra.mrb[88].mxu0 %v2288_v45  ;;  %2084 = vmatmul.mubr.msk.bf16.gmra.mrb[88].mxu1 %vm988_vm0, %v2289_v46 }
  0xf8   : > { %1301 = vmatprep.mubr.bf16.mxu0 %v2290_v47  ;;  %2087 = vmatprep.mubr.msk.bf16.mxu1 %vm988_vm0, %v2292_v48 }
  0xff   : > { %1302 = vmatmul.mubr.bf16.gmra.mrb[92].mxu0 %v2293_v49  ;;  %2088 = vmatmul.mubr.msk.bf16.gmra.mrb[92].mxu1 %vm988_vm0, %v2294_v50 }
 0x11a   : > { %v2580_v51 = vpop.f32.mrb[0].mxu0  ;;  %v2582_v52 = vpop.f32.mrb[0].mxu1 }
 0x11b   : > { %v1121_v53 = vpop.f32.mrb[1].mxu0  ;;  %v1313_v54 = vpop.f32.mrb[1].mxu1 }
 0x11c   : > { %v2584_v55 = vpop.f32.mrb[2].mxu0  ;;  %v2586_v56 = vpop.f32.mrb[2].mxu1  ;;  %v2643_v53 = vld [vmem:[%s2908_s2] ss:$0 sm:$0xff] }
 0x11d   : > { %v1124_v57 = vpop.f32.mrb[3].mxu0  ;;  %v1316_v58 = vpop.f32.mrb[3].mxu1 }
 0x11e   : > { %v1120_v57 = vadd.f32 %v2643_v53, %v2580_v51  ;;  %v1123_v51 = vadd.f32 %v2643_v53, %v2584_v55 }
 0x122   : > { %v1127_v59 = vpop.f32.mrb[4].mxu0  ;;  %v2588_v60 = vpop.f32.mrb[4].mxu1 }
 0x123   : > { %v1129_v61 = vpop.f32.mrb[5].mxu0  ;;  %v1321_v62 = vpop.f32.mrb[5].mxu1  ;;  %v1128_v54 = vadd.f32 %v2643_v53, %v1127_v59 }
 0x124   : > { %v1130_v63 = vpop.f32.mrb[6].mxu0  ;;  %v2590_v0 = vpop.f32.mrb[6].mxu1 }
 0x125   : > { %v1132_v1 = vpop.f32.mrb[7].mxu0  ;;  %v1324_v2 = vpop.f32.mrb[7].mxu1  ;;  %v1131_v62 = vadd.f32 %v2643_v53, %v1130_v63 }
 0x12a   : > { %v2592_v3 = vpop.f32.mrb[8].mxu0  ;;  %v2594_v4 = vpop.f32.mrb[8].mxu1 }
 0x12b   : > { %v1137_v5 = vpop.f32.mrb[9].mxu0  ;;  %v1329_v6 = vpop.f32.mrb[9].mxu1  ;;  %v1136_v63 = vadd.f32 %v2643_v53, %v2592_v3 }
 0x12c   : > { %v2596_v7 = vpop.f32.mrb[10].mxu0  ;;  %v2598_v8 = vpop.f32.mrb[10].mxu1 }
 0x12d   : > { %v1140_v9 = vpop.f32.mrb[11].mxu0  ;;  %v1332_v10 = vpop.f32.mrb[11].mxu1 }
 0x132   : > { %v2600_v11 = vpop.f32.mrb[12].mxu0  ;;  %v2602_v12 = vpop.f32.mrb[12].mxu1 }
 0x133   : > { %v1145_v13 = vpop.f32.mrb[13].mxu0  ;;  %v1337_v14 = vpop.f32.mrb[13].mxu1  ;;  %v1144_v55 = vadd.f32 %v2643_v53, %v2600_v11 }
 0x134   : > { %v2604_v15 = vpop.f32.mrb[14].mxu0  ;;  %v2606_v16 = vpop.f32.mrb[14].mxu1 }
 0x135   : > { %v1148_v17 = vpop.f32.mrb[15].mxu0  ;;  %v1340_v18 = vpop.f32.mrb[15].mxu1 }
 0x13a   : > { %v2608_v19 = vpop.f32.mrb[16].mxu0  ;;  %v2610_v20 = vpop.f32.mrb[16].mxu1 }
 0x13b   : > { %v1153_v21 = vpop.f32.mrb[17].mxu0  ;;  %v1345_v22 = vpop.f32.mrb[17].mxu1 }
 0x13c   : > { %v2612_v23 = vpop.f32.mrb[18].mxu0  ;;  %v2614_v24 = vpop.f32.mrb[18].mxu1  ;;  %v1147_v22 = vadd.f32 %v2643_v53, %v2604_v15 }
 0x13d   : > { %v1156_v25 = vpop.f32.mrb[19].mxu0  ;;  %v1348_v26 = vpop.f32.mrb[19].mxu1 }
 0x142   : > { %v2616_v27 = vpop.f32.mrb[20].mxu0  ;;  %v2618_v28 = vpop.f32.mrb[20].mxu1 }
 0x143   : > { %v1161_v29 = vpop.f32.mrb[21].mxu0  ;;  %v1353_v30 = vpop.f32.mrb[21].mxu1  ;;  %v1160_v15 = vadd.f32 %v2643_v53, %v2616_v27 }
 0x144   : > { %v2620_v31 = vpop.f32.mrb[22].mxu0  ;;  %v2622_v32 = vpop.f32.mrb[22].mxu1  ;;  %v1139_v30 = vadd.f32 %v2643_v53, %v2596_v7  ;;  %v1152_v7 = vadd.f32 %v2643_v53, %v2608_v19 }
 0x145   : > { %v1164_v33 = vpop.f32.mrb[23].mxu0  ;;  %v1356_v34 = vpop.f32.mrb[23].mxu1 }
 0x14a   : > { %v2624_v35 = vpop.f32.mrb[24].mxu0  ;;  %v2626_v36 = vpop.f32.mrb[24].mxu1 }
 0x14b   : > { %v1169_v37 = vpop.f32.mrb[25].mxu0  ;;  %v1361_v38 = vpop.f32.mrb[25].mxu1 }
 0x14c   : > { %v2628_v39 = vpop.f32.mrb[26].mxu0  ;;  %v2630_v40 = vpop.f32.mrb[26].mxu1 }
 0x14d   : > { %v1172_v41 = vpop.f32.mrb[27].mxu0  ;;  %v1364_v42 = vpop.f32.mrb[27].mxu1 }
 0x152   : > { %v2632_v43 = vpop.f32.mrb[28].mxu0  ;;  %v2634_v44 = vpop.f32.mrb[28].mxu1 }
 0x153   : > { %v1177_v45 = vpop.f32.mrb[29].mxu0  ;;  %v1369_v46 = vpop.f32.mrb[29].mxu1 }
 0x154   : > { %v2636_v47 = vpop.f32.mrb[30].mxu0  ;;  %v2638_v48 = vpop.f32.mrb[30].mxu1  ;;  %v1163_v46 = vadd.f32 %v2643_v53, %v2620_v31  ;;  %v1176_v31 = vadd.f32 %v2643_v53, %v2632_v43 }
 0x155   : > { %v1180_v49 = vpop.f32.mrb[31].mxu0  ;;  %v1372_v50 = vpop.f32.mrb[31].mxu1 }
 0x15a   : > { %v2649_v58 = vpop.f32.mrb[32].mxu0  ;;  %v2029_v61 = vpop.f32.mrb[32].mxu1 }
 0x15b   : > { %v1417_v1 = vadd.f32 %v2029_v61, %v1128_v54  ;;  %v1185_v2 = vpop.f32.mrb[33].mxu0  ;;  %v1408_v59 = vpop.f32.mrb[33].mxu1 }
 0x15c   : > { %v1409_v5 = vadd.f32 %v1408_v59, %v1120_v57  ;;  %v2659_v6 = vpop.f32.mrb[34].mxu0  ;;  %v2030_v9 = vpop.f32.mrb[34].mxu1  ;;  %v1155_v57 = vadd.f32 %v2643_v53, %v2612_v23  ;;  %v1168_v23 = vadd.f32 %v2643_v53, %v2624_v35 }
 0x15d   : > { %1665 = vst.msk [vmem:[%s2654_s12 + $0x10] sm:$0xff] %vm988_vm0, %v1417_v1  ;;  %v1420_v10 = vadd.f32 %v2030_v9, %v1131_v62  ;;  %v1188_v13 = vpop.f32.mrb[35].mxu0  ;;  %v1411_v14 = vpop.f32.mrb[35].mxu1  ;;  %v1179_v9 = vadd.f32 %v2643_v53, %v2636_v47 }
 0x15e   : > { %1663 = vst.msk [vmem:[%s2654_s12] sm:$0xff] %vm988_vm0, %v1409_v5  ;;  %v1412_v17 = vadd.f32 %v1411_v14, %v1123_v51 }
 0x15f   : > { %1666 = vst.msk [vmem:[%s2654_s12 + $0x18] sm:$0xff] %vm988_vm0, %v1420_v10 }
 0x160   : > { %1664 = vst.msk [vmem:[%s2654_s12 + $0x8] sm:$0xff] %vm988_vm0, %v1412_v17  ;;  %v1171_v17 = vadd.f32 %v2643_v53, %v2628_v39  ;;  %v1184_v39 = vadd.f32 %v2643_v53, %v2649_v58 }
 0x162   : > { %v1191_v18 = vpop.f32.mrb[36].mxu0  ;;  %v2033_v21 = vpop.f32.mrb[36].mxu1 }
 0x163   : > { %v1433_v25 = vadd.f32 %v2033_v21, %v1144_v55  ;;  %v1193_v26 = vpop.f32.mrb[37].mxu0  ;;  %v1424_v29 = vpop.f32.mrb[37].mxu1  ;;  %v1192_v47 = vadd.f32 %v2643_v53, %v1191_v18 }
 0x164   : > { %v1425_v33 = vadd.f32 %v1424_v29, %v1136_v63  ;;  %v1194_v34 = vpop.f32.mrb[38].mxu0  ;;  %v2034_v11 = vpop.f32.mrb[38].mxu1 }
 0x165   : > { %1669 = vst.msk [vmem:[%s2654_s12 + $0x30] sm:$0xff] %vm988_vm0, %v1433_v25  ;;  %v1436_v37 = vadd.f32 %v2034_v11, %v1147_v22  ;;  %v1196_v3 = vpop.f32.mrb[39].mxu0  ;;  %v1427_v38 = vpop.f32.mrb[39].mxu1 }
 0x166   : > { %1667 = vst.msk [vmem:[%s2654_s12 + $0x20] sm:$0xff] %vm988_vm0, %v1425_v33  ;;  %v1428_v41 = vadd.f32 %v1427_v38, %v1139_v30  ;;  %v1195_v30 = vadd.f32 %v2643_v53, %v1194_v34  ;;  %v1187_v3 = vadd.f32 %v2643_v53, %v2659_v6 }
 0x167   : > { %1670 = vst.msk [vmem:[%s2654_s12 + $0x38] sm:$0xff] %vm988_vm0, %v1436_v37 }
 0x168   : > { %1668 = vst.msk [vmem:[%s2654_s12 + $0x28] sm:$0xff] %vm988_vm0, %v1428_v41 }
 0x16a   : > { %v1199_v42 = vpop.f32.mrb[40].mxu0  ;;  %v2037_v45 = vpop.f32.mrb[40].mxu1 }
 0x16b   : > { %v1449_v49 = vadd.f32 %v2037_v45, %v1160_v15  ;;  %v1201_v50 = vpop.f32.mrb[41].mxu0  ;;  %v1440_v54 = vpop.f32.mrb[41].mxu1  ;;  %v1200_v6 = vadd.f32 %v2643_v53, %v1199_v42 }
 0x16c   : > { %v1441_v61 = vadd.f32 %v1440_v54, %v1152_v7  ;;  %v1202_v62 = vpop.f32.mrb[42].mxu0  ;;  %v2038_v27 = vpop.f32.mrb[42].mxu1 }
 0x16d   : > { %1673 = vst.msk [vmem:[%s2654_s12 + $0x50] sm:$0xff] %vm988_vm0, %v1449_v49  ;;  %v1452_v1 = vadd.f32 %v2038_v27, %v1163_v46  ;;  %v1204_v19 = vpop.f32.mrb[43].mxu0  ;;  %v1443_v2 = vpop.f32.mrb[43].mxu1  ;;  %v1203_v27 = vadd.f32 %v2643_v53, %v1202_v62 }
 0x16e   : > { %1671 = vst.msk [vmem:[%s2654_s12 + $0x40] sm:$0xff] %vm988_vm0, %v1441_v61  ;;  %v1444_v59 = vadd.f32 %v1443_v2, %v1155_v57 }
 0x16f   : > { %1674 = vst.msk [vmem:[%s2654_s12 + $0x58] sm:$0xff] %vm988_vm0, %v1452_v1 }
 0x170   : > { %1672 = vst.msk [vmem:[%s2654_s12 + $0x48] sm:$0xff] %vm988_vm0, %v1444_v59 }
 0x172   : > { %v1207_v51 = vpop.f32.mrb[44].mxu0  ;;  %v2041_v5 = vpop.f32.mrb[44].mxu1 }
 0x173   : > { %v1465_v10 = vadd.f32 %v2041_v5, %v1176_v31  ;;  %v1209_v13 = vpop.f32.mrb[45].mxu0  ;;  %v1456_v14 = vpop.f32.mrb[45].mxu1  ;;  %v1208_v34 = vadd.f32 %v2643_v53, %v1207_v51 }
 0x174   : > { %v1457_v55 = vadd.f32 %v1456_v14, %v1168_v23  ;;  %v1210_v63 = vpop.f32.mrb[46].mxu0  ;;  %v2042_v43 = vpop.f32.mrb[46].mxu1 }
 0x175   : > { %1677 = vst.msk [vmem:[%s2654_s12 + $0x70] sm:$0xff] %vm988_vm0, %v1465_v10  ;;  %v1468_v21 = vadd.f32 %v2042_v43, %v1179_v9  ;;  %v1212_v35 = vpop.f32.mrb[47].mxu0  ;;  %v1459_v22 = vpop.f32.mrb[47].mxu1  ;;  %v1211_v50 = vadd.f32 %v2643_v53, %v1210_v63 }
 0x176   : > { %1675 = vst.msk [vmem:[%s2654_s12 + $0x60] sm:$0xff] %vm988_vm0, %v1457_v55  ;;  %v1460_v25 = vadd.f32 %v1459_v22, %v1171_v17 }
 0x177   : > { %1678 = vst.msk [vmem:[%s2654_s12 + $0x78] sm:$0xff] %vm988_vm0, %v1468_v21 }
 0x178   : > { %1676 = vst.msk [vmem:[%s2654_s12 + $0x68] sm:$0xff] %vm988_vm0, %v1460_v25 }
 0x17a   : > { %v1215_v26 = vpop.f32.mrb[48].mxu0  ;;  %v2045_v29 = vpop.f32.mrb[48].mxu1 }
 0x17b   : > { %v1481_v33 = vadd.f32 %v2045_v29, %v1192_v47  ;;  %v1217_v11 = vpop.f32.mrb[49].mxu0  ;;  %v1472_v37 = vpop.f32.mrb[49].mxu1  ;;  %v1216_v62 = vadd.f32 %v2643_v53, %v1215_v26 }
 0x17c   : > { %v1473_v38 = vadd.f32 %v1472_v37, %v1184_v39  ;;  %v1218_v41 = vpop.f32.mrb[50].mxu0  ;;  %v2046_v15 = vpop.f32.mrb[50].mxu1 }
 0x17d   : > { %1681 = vst.msk [vmem:[%s2654_s12 + $0x90] sm:$0xff] %vm988_vm0, %v1481_v33  ;;  %v1484_v18 = vadd.f32 %v2046_v15, %v1195_v30  ;;  %v1220_v7 = vpop.f32.mrb[51].mxu0  ;;  %v1475_v58 = vpop.f32.mrb[51].mxu1  ;;  %v1219_v55 = vadd.f32 %v2643_v53, %v1218_v41 }
 0x17e   : > { %1679 = vst.msk [vmem:[%s2654_s12 + $0x80] sm:$0xff] %vm988_vm0, %v1473_v38  ;;  %v1476_v45 = vadd.f32 %v1475_v58, %v1187_v3 }
 0x17f   : > { %1682 = vst.msk [vmem:[%s2654_s12 + $0x98] sm:$0xff] %vm988_vm0, %v1484_v18 }
 0x180   : > { %1680 = vst.msk [vmem:[%s2654_s12 + $0x88] sm:$0xff] %vm988_vm0, %v1476_v45 }
 0x182   : > { %v1223_v46 = vpop.f32.mrb[52].mxu0  ;;  %v2049_v49 = vpop.f32.mrb[52].mxu1 }
 0x183   : > { %v1497_v54 = vadd.f32 %v2049_v49, %v1208_v34  ;;  %v1225_v57 = vpop.f32.mrb[53].mxu0  ;;  %v1488_v61 = vpop.f32.mrb[53].mxu1  ;;  %v1224_v51 = vadd.f32 %v2643_v53, %v1223_v46 }
 0x184   : > { %v1489_v1 = vadd.f32 %v1488_v61, %v1200_v6  ;;  %v1226_v19 = vpop.f32.mrb[54].mxu0  ;;  %v2050_v2 = vpop.f32.mrb[54].mxu1 }
 0x185   : > { %1685 = vst.msk [vmem:[%s2654_s12 + $0xb0] sm:$0xff] %vm988_vm0, %v1497_v54  ;;  %v1500_v59 = vadd.f32 %v2050_v2, %v1211_v50  ;;  %v1228_v31 = vpop.f32.mrb[55].mxu0  ;;  %v1491_v23 = vpop.f32.mrb[55].mxu1  ;;  %v1227_v10 = vadd.f32 %v2643_v53, %v1226_v19 }
 0x186   : > { %1683 = vst.msk [vmem:[%s2654_s12 + $0xa0] sm:$0xff] %vm988_vm0, %v1489_v1  ;;  %v1492_v42 = vadd.f32 %v1491_v23, %v1203_v27 }
 0x187   : > { %1686 = vst.msk [vmem:[%s2654_s12 + $0xb8] sm:$0xff] %vm988_vm0, %v1500_v59 }
 0x188   : > { %1684 = vst.msk [vmem:[%s2654_s12 + $0xa8] sm:$0xff] %vm988_vm0, %v1492_v42 }
 0x18a   : > { %v1231_v5 = vpop.f32.mrb[56].mxu0  ;;  %v2053_v9 = vpop.f32.mrb[56].mxu1 }
 0x18b   : > { %v1513_v13 = vadd.f32 %v2053_v9, %v1224_v51  ;;  %v1233_v14 = vpop.f32.mrb[57].mxu0  ;;  %v1504_v17 = vpop.f32.mrb[57].mxu1  ;;  %v1232_v39 = vadd.f32 %v2643_v53, %v1231_v5 }
 0x18c   : > { %v1505_v63 = vadd.f32 %v1504_v17, %v1216_v62  ;;  %v1234_v43 = vpop.f32.mrb[58].mxu0  ;;  %v2054_v21 = vpop.f32.mrb[58].mxu1 }
 0x18d   : > { %1689 = vst.msk [vmem:[%s2654_s12 + $0xd0] sm:$0xff] %vm988_vm0, %v1513_v13  ;;  %v1516_v35 = vadd.f32 %v2054_v21, %v1227_v10  ;;  %v1236_v22 = vpop.f32.mrb[59].mxu0  ;;  %v1507_v25 = vpop.f32.mrb[59].mxu1  ;;  %v1235_v37 = vadd.f32 %v2643_v53, %v1234_v43 }
 0x18e   : > { %1687 = vst.msk [vmem:[%s2654_s12 + $0xc0] sm:$0xff] %vm988_vm0, %v1505_v63  ;;  %v1508_v47 = vadd.f32 %v1507_v25, %v1219_v55 }
 0x18f   : > { %1690 = vst.msk [vmem:[%s2654_s12 + $0xd8] sm:$0xff] %vm988_vm0, %v1516_v35 }
 0x190   : > { %1688 = vst.msk [vmem:[%s2654_s12 + $0xc8] sm:$0xff] %vm988_vm0, %v1508_v47 }
 0x192   : > { %v1239_v26 = vpop.f32.mrb[60].mxu0  ;;  %v2057_v29 = vpop.f32.mrb[60].mxu1 }
 0x193   : > { %v1240_v30 = vadd.f32 %v2643_v53, %v1239_v26  ;;  %v1241_v33 = vpop.f32.mrb[61].mxu0  ;;  %v1520_v11 = vpop.f32.mrb[61].mxu1 }
 0x194   : > { %v1521_v3 = vadd.f32 %v1520_v11, %v1232_v39  ;;  %v1242_v38 = vpop.f32.mrb[62].mxu0  ;;  %v2058_v41 = vpop.f32.mrb[62].mxu1 }
 0x195   : > { %v1529_v15 = vadd.f32 %v2057_v29, %v1240_v30  ;;  %v1243_v18 = vadd.f32 %v2643_v53, %v1242_v38  ;;  %v1244_v7 = vpop.f32.mrb[63].mxu0  ;;  %v1523_v58 = vpop.f32.mrb[63].mxu1 }
 0x196   : > { %1691 = vst.msk [vmem:[%s2654_s12 + $0xe0] sm:$0xff] %vm988_vm0, %v1521_v3  ;;  %v1524_v45 = vadd.f32 %v1523_v58, %v1235_v37 }
 0x197   : > { %1693 = vst.msk [vmem:[%s2654_s12 + $0xf0] sm:$0xff] %vm988_vm0, %v1529_v15  ;;  %v1532_v34 = vadd.f32 %v2058_v41, %v1243_v18 }
 0x198   : > { %1692 = vst.msk [vmem:[%s2654_s12 + $0xe8] sm:$0xff] %vm988_vm0, %v1524_v45 }
 0x199   : > { %1694 = vst.msk [vmem:[%s2654_s12 + $0xf8] sm:$0xff] %vm988_vm0, %v1532_v34 }
 0x19a   : > { %v1247_v6 = vpop.f32.mrb[64].mxu0  ;;  %v2061_v46 = vpop.f32.mrb[64].mxu1 }
 0x19b   : > { %v1248_v49 = vadd.f32 %v2643_v53, %v1247_v6  ;;  %v1249_v50 = vpop.f32.mrb[65].mxu0  ;;  %v1536_v54 = vpop.f32.mrb[65].mxu1 }
 0x19c   : > { %v1250_v57 = vpop.f32.mrb[66].mxu0  ;;  %v2062_v61 = vpop.f32.mrb[66].mxu1 }
 0x19d   : > { %v1537_v27 = vadd.f32 %v1536_v54, %v1248_v49  ;;  %v1251_v1 = vadd.f32 %v2643_v53, %v1250_v57  ;;  %v1252_v19 = vpop.f32.mrb[67].mxu0  ;;  %v1539_v2 = vpop.f32.mrb[67].mxu1  ;;  %v1312_v49 = vadd.f32 %v2643_v53, %v2582_v52  ;;  %v1323_v57 = vadd.f32 %v2643_v53, %v2590_v0 }
 0x19f   : > { %1695 = vst.msk [vmem:[%s2654_s12 + $0x100] sm:$0xff] %vm988_vm0, %v1537_v27  ;;  %v1540_v59 = vadd.f32 %v1539_v2, %v1251_v1 }
 0x1a1   : > { %1696 = vst.msk [vmem:[%s2654_s12 + $0x108] sm:$0xff] %vm988_vm0, %v1540_v59 }
 0x1a2   : > { %v1255_v31 = vpop.f32.mrb[68].mxu0  ;;  %v2065_v23 = vpop.f32.mrb[68].mxu1 }
 0x1a3   : > { %v1256_v42 = vadd.f32 %v2643_v53, %v1255_v31  ;;  %v1257_v51 = vpop.f32.mrb[69].mxu0  ;;  %v1552_v62 = vpop.f32.mrb[69].mxu1 }
 0x1a4   : > { %v1258_v5 = vpop.f32.mrb[70].mxu0  ;;  %v2066_v9 = vpop.f32.mrb[70].mxu1 }
 0x1a5   : > { %v1545_v10 = vadd.f32 %v2061_v46, %v1256_v42  ;;  %v1259_v13 = vadd.f32 %v2643_v53, %v1258_v5  ;;  %v1260_v14 = vpop.f32.mrb[71].mxu0  ;;  %v1555_v17 = vpop.f32.mrb[71].mxu1  ;;  %v1320_v46 = vadd.f32 %v2643_v53, %v2588_v60  ;;  %v1315_v60 = vadd.f32 %v2643_v53, %v2586_v56 }
 0x1a6   : > { %v1336_v56 = vadd.f32 %v2643_v53, %v2602_v12  ;;  %v1339_v14 = vadd.f32 %v2643_v53, %v2606_v16  ;;  %v1331_v12 = vadd.f32 %v2643_v53, %v2598_v8 }
 0x1a7   : > { %1697 = vst.msk [vmem:[%s2654_s12 + $0x110] sm:$0xff] %vm988_vm0, %v1545_v10  ;;  %v1548_v55 = vadd.f32 %v2062_v61, %v1259_v13 }
 0x1a9   : > { %1698 = vst.msk [vmem:[%s2654_s12 + $0x118] sm:$0xff] %vm988_vm0, %v1548_v55 }
 0x1aa   : > { %v1263_v63 = vpop.f32.mrb[72].mxu0  ;;  %v2779_v43 = vpop.f32.mrb[72].mxu1 }
 0x1ab   : > { %v1264_v21 = vadd.f32 %v2643_v53, %v1263_v63  ;;  %v1265_v35 = vpop.f32.mrb[73].mxu0  ;;  %v1568_v22 = vpop.f32.mrb[73].mxu1 }
 0x1ac   : > { %v1266_v25 = vpop.f32.mrb[74].mxu0  ;;  %v2782_v47 = vpop.f32.mrb[74].mxu1 }
 0x1ad   : > { %v1553_v39 = vadd.f32 %v1552_v62, %v1264_v21  ;;  %v1267_v26 = vadd.f32 %v2643_v53, %v1266_v25  ;;  %v1268_v29 = vpop.f32.mrb[75].mxu0  ;;  %v1571_v30 = vpop.f32.mrb[75].mxu1 }
 0x1af   : > { %1699 = vst.msk [vmem:[%s2654_s12 + $0x120] sm:$0xff] %vm988_vm0, %v1553_v39  ;;  %v1556_v33 = vadd.f32 %v1555_v17, %v1267_v26 }
 0x1b1   : > { %1700 = vst.msk [vmem:[%s2654_s12 + $0x128] sm:$0xff] %vm988_vm0, %v1556_v33  ;;  %v1344_v33 = vadd.f32 %v2643_v53, %v2610_v20 }
 0x1b2   : > { %v1271_v11 = vpop.f32.mrb[76].mxu0  ;;  %v2789_v37 = vpop.f32.mrb[76].mxu1 }
 0x1b3   : > { %v1272_v3 = vadd.f32 %v2643_v53, %v1271_v11  ;;  %v1273_v38 = vpop.f32.mrb[77].mxu0  ;;  %v2792_v41 = vpop.f32.mrb[77].mxu1 }
 0x1b4   : > { %v1274_v15 = vpop.f32.mrb[78].mxu0  ;;  %v2794_v18 = vpop.f32.mrb[78].mxu1  ;;  %v1355_v38 = vadd.f32 %v2643_v53, %v2622_v32 }
 0x1b5   : > { %v1561_v7 = vadd.f32 %v2065_v23, %v1272_v3  ;;  %v1275_v58 = vadd.f32 %v2643_v53, %v1274_v15  ;;  %v1276_v45 = vpop.f32.mrb[79].mxu0  ;;  %v2797_v34 = vpop.f32.mrb[79].mxu1 }
 0x1b7   : > { %1701 = vst.msk [vmem:[%s2654_s12 + $0x130] sm:$0xff] %vm988_vm0, %v1561_v7  ;;  %v1564_v6 = vadd.f32 %v2066_v9, %v1275_v58  ;;  %v1328_v9 = vadd.f32 %v2643_v53, %v2594_v4 }
 0x1b9   : > { %1702 = vst.msk [vmem:[%s2654_s12 + $0x138] sm:$0xff] %vm988_vm0, %v1564_v6 }
 0x1ba   : > { %v1279_v50 = vpop.f32.mrb[80].mxu0  ;;  %v2077_v54 = vpop.f32.mrb[80].mxu1 }
 0x1bb   : > { %v1280_v61 = vadd.f32 %v2643_v53, %v1279_v50  ;;  %v1609_v27 = vadd.f32 %v2077_v54, %v1320_v46  ;;  %v1281_v1 = vpop.f32.mrb[81].mxu0  ;;  %v1600_v19 = vpop.f32.mrb[81].mxu1 }
 0x1bc   : > { %v1601_v2 = vadd.f32 %v1600_v19, %v1312_v49  ;;  %v1282_v52 = vpop.f32.mrb[82].mxu0  ;;  %v2078_v59 = vpop.f32.mrb[82].mxu1  ;;  %v1371_v19 = vadd.f32 %v2643_v53, %v2638_v48 }
 0x1bd   : > { %v1569_v31 = vadd.f32 %v1568_v22, %v1280_v61  ;;  %1713 = vst.msk [vmem:[%s2654_s12 + $0x190] sm:$0xff] %vm988_vm0, %v1609_v27  ;;  %v1283_v0 = vadd.f32 %v2643_v53, %v1282_v52  ;;  %v1612_v23 = vadd.f32 %v2078_v59, %v1323_v57  ;;  %v1284_v42 = vpop.f32.mrb[83].mxu0  ;;  %v1603_v51 = vpop.f32.mrb[83].mxu1  ;;  %v1360_v61 = vadd.f32 %v2643_v53, %v2626_v36 }
 0x1be   : > { %1711 = vst.msk [vmem:[%s2654_s12 + $0x180] sm:$0xff] %vm988_vm0, %v1601_v2  ;;  %v1604_v62 = vadd.f32 %v1603_v51, %v1315_v60 }
 0x1bf   : > { %1703 = vst.msk [vmem:[%s2654_s12 + $0x140] sm:$0xff] %vm988_vm0, %v1569_v31  ;;  %v1572_v5 = vadd.f32 %v1571_v30, %v1283_v0  ;;  %1714 = vst.msk [vmem:[%s2654_s12 + $0x198] sm:$0xff] %vm988_vm0, %v1612_v23 }
 0x1c0   : > { %1712 = vst.msk [vmem:[%s2654_s12 + $0x188] sm:$0xff] %vm988_vm0, %v1604_v62 }
 0x1c1   : > { %1704 = vst.msk [vmem:[%s2654_s12 + $0x148] sm:$0xff] %vm988_vm0, %v1572_v5 }
 0x1c2   : > { %v1287_v10 = vpop.f32.mrb[84].mxu0  ;;  %v2081_v13 = vpop.f32.mrb[84].mxu1 }
 0x1c3   : > { %v1288_v17 = vadd.f32 %v2643_v53, %v1287_v10  ;;  %v1625_v55 = vadd.f32 %v2081_v13, %v1336_v56  ;;  %v1289_v63 = vpop.f32.mrb[85].mxu0  ;;  %v1616_v21 = vpop.f32.mrb[85].mxu1 }
 0x1c4   : > { %v1617_v35 = vadd.f32 %v1616_v21, %v1328_v9  ;;  %v1290_v4 = vpop.f32.mrb[86].mxu0  ;;  %v2082_v22 = vpop.f32.mrb[86].mxu1 }
 0x1c5   : > { %v1577_v25 = vadd.f32 %v2779_v43, %v1288_v17  ;;  %1717 = vst.msk [vmem:[%s2654_s12 + $0x1b0] sm:$0xff] %vm988_vm0, %v1625_v55  ;;  %v1291_v16 = vadd.f32 %v2643_v53, %v1290_v4  ;;  %v1628_v39 = vadd.f32 %v2082_v22, %v1339_v14  ;;  %v1292_v26 = vpop.f32.mrb[87].mxu0  ;;  %v1619_v29 = vpop.f32.mrb[87].mxu1  ;;  %v1352_v43 = vadd.f32 %v2643_v53, %v2618_v28 }
 0x1c6   : > { %1715 = vst.msk [vmem:[%s2654_s12 + $0x1a0] sm:$0xff] %vm988_vm0, %v1617_v35  ;;  %v1620_v30 = vadd.f32 %v1619_v29, %v1331_v12  ;;  %v1347_v28 = vadd.f32 %v2643_v53, %v2614_v24 }
 0x1c7   : > { %1705 = vst.msk [vmem:[%s2654_s12 + $0x150] sm:$0xff] %vm988_vm0, %v1577_v25  ;;  %v1580_v8 = vadd.f32 %v2782_v47, %v1291_v16  ;;  %1718 = vst.msk [vmem:[%s2654_s12 + $0x1b8] sm:$0xff] %vm988_vm0, %v1628_v39 }
 0x1c8   : > { %1716 = vst.msk [vmem:[%s2654_s12 + $0x1a8] sm:$0xff] %vm988_vm0, %v1620_v30 }
 0x1c9   : > { %1706 = vst.msk [vmem:[%s2654_s12 + $0x158] sm:$0xff] %vm988_vm0, %v1580_v8 }
 0x1ca   : > { %v1295_v11 = vpop.f32.mrb[88].mxu0  ;;  %v2085_v3 = vpop.f32.mrb[88].mxu1 }
 0x1cb   : > { %v1296_v47 = vadd.f32 %v2643_v53, %v1295_v11  ;;  %v1641_v15 = vadd.f32 %v2085_v3, %v1352_v43  ;;  %v1297_v7 = vpop.f32.mrb[89].mxu0  ;;  %v1632_v58 = vpop.f32.mrb[89].mxu1 }
 0x1cc   : > { %v1633_v45 = vadd.f32 %v1632_v58, %v1344_v33  ;;  %v1298_v20 = vpop.f32.mrb[90].mxu0  ;;  %v2086_v6 = vpop.f32.mrb[90].mxu1 }
 0x1cd   : > { %v1585_v46 = vadd.f32 %v2792_v41, %v1296_v47  ;;  %1721 = vst.msk [vmem:[%s2654_s12 + $0x1d0] sm:$0xff] %vm988_vm0, %v1641_v15  ;;  %v1299_v32 = vadd.f32 %v2643_v53, %v1298_v20  ;;  %v1644_v49 = vadd.f32 %v2086_v6, %v1355_v38  ;;  %v1300_v50 = vpop.f32.mrb[91].mxu0  ;;  %v1635_v54 = vpop.f32.mrb[91].mxu1  ;;  %v1368_v41 = vadd.f32 %v2643_v53, %v2634_v44 }
 0x1ce   : > { %1719 = vst.msk [vmem:[%s2654_s12 + $0x1c0] sm:$0xff] %vm988_vm0, %v1633_v45  ;;  %v1636_v57 = vadd.f32 %v1635_v54, %v1347_v28  ;;  %v1363_v44 = vadd.f32 %v2643_v53, %v2630_v40 }
 0x1cf   : > { %1707 = vst.msk [vmem:[%s2654_s12 + $0x160] sm:$0xff] %vm988_vm0, %v1585_v46  ;;  %v1588_v24 = vadd.f32 %v2797_v34, %v1299_v32  ;;  %1722 = vst.msk [vmem:[%s2654_s12 + $0x1d8] sm:$0xff] %vm988_vm0, %v1644_v49 }
 0x1d0   : > { %1720 = vst.msk [vmem:[%s2654_s12 + $0x1c8] sm:$0xff] %vm988_vm0, %v1636_v57 }
 0x1d1   : > { %1708 = vst.msk [vmem:[%s2654_s12 + $0x168] sm:$0xff] %vm988_vm0, %v1588_v24 }
 0x1d2   : > { %v1303_v27 = vpop.f32.mrb[92].mxu0  ;;  %v2089_v1 = vpop.f32.mrb[92].mxu1 }
 0x1d3   : > { %v1304_v34 = vadd.f32 %v2643_v53, %v1303_v27  ;;  %v1657_v60 = vadd.f32 %v2089_v1, %v1368_v41  ;;  %v1305_v2 = vpop.f32.mrb[93].mxu0  ;;  %v1648_v52 = vpop.f32.mrb[93].mxu1 }
 0x1d4   : > { %v1649_v59 = vadd.f32 %v1648_v52, %v1360_v61  ;;  %v1306_v36 = vpop.f32.mrb[94].mxu0  ;;  %v2090_v31 = vpop.f32.mrb[94].mxu1 }
 0x1d5   : > { %v1593_v0 = vadd.f32 %v2789_v37, %v1304_v34  ;;  %1725 = vst.msk [vmem:[%s2654_s12 + $0x1f0] sm:$0xff] %vm988_vm0, %v1657_v60  ;;  %v1307_v48 = vadd.f32 %v2643_v53, %v1306_v36  ;;  %v1660_v23 = vadd.f32 %v2090_v31, %v1371_v19  ;;  %v1308_v42 = vpop.f32.mrb[95].mxu0  ;;  %v1651_v51 = vpop.f32.mrb[95].mxu1 }
 0x1d6   : > { %1723 = vst.msk [vmem:[%s2654_s12 + $0x1e0] sm:$0xff] %vm988_vm0, %v1649_v59  ;;  %v1652_v62 = vadd.f32 %v1651_v51, %v1363_v44 }
 0x1d7   : > { %1709 = vst.msk [vmem:[%s2654_s12 + $0x170] sm:$0xff] %vm988_vm0, %v1593_v0  ;;  %v1596_v40 = vadd.f32 %v2794_v18, %v1307_v48  ;;  %1726 = vst.msk [vmem:[%s2654_s12 + $0x1f8] sm:$0xff] %vm988_vm0, %v1660_v23 }
 0x1d8   : > { %1724 = vst.msk [vmem:[%s2654_s12 + $0x1e8] sm:$0xff] %vm988_vm0, %v1652_v62 }
 0x1d9   : > { %1710 = vst.msk [vmem:[%s2654_s12 + $0x178] sm:$0xff] %vm988_vm0, %v1596_v40 }
 0x1da PF: > { %s13_s14 = sadd.s32 1, %s2317_s14   ;;  %s2910_s12 = smov %s2313_s13 }
 0x1db   : > { %p10_p5 = scmp.ge.s32.totalorder %s13_s14, 4   ;;  %s2911_s13 = smov %s2913_s15 }
 0x1dd   :  { %12 = sbr.rel (!%p10_p5) target bundleno = 2 (0x2), region = 68 }

// kernel: fsnet_fwd.31
= control target key start
LH: loop header
LB: loop body
LE: loop exit
PB: predicated region body
PF: predicated region fallthrough
CT: control target
= control target key end

     0   :  { %s1339_s12 = smov 0   ;;  %s1341_s13 = smov 0   ;;  %s1645_s0 = inlined_call_operand.vmem [shape: bf16[256,288], index: 0, kind: input, shape index: {}]   ;;  %s1646_s1 = inlined_call_operand.vmem [shape: bf16[288,128], index: 1, kind: input, shape index: {}]   ;;  %s1647_s2 = inlined_call_operand.vmem [shape: f32[1,128], index: 2, kind: input, shape index: {}]   ;;  %s1648_s3 = inlined_call_operand.vmem [shape: f32[256,64], index: 3, kind: output, shape index: {}]  }
   0x1   :  { %s1343_s14 = smov 0  }
   0x2 LB: > { %s25_s15 = sadd.s32 1, %s1313_s13  ;;  %p1020_p0 = scmp.ge.s32.totalorder %s1317_s14, 1  ;;  %s1317_s14 = sphi %s1343_s14, %s13_s14   ;;  %s1313_s13 = sphi %s1341_s13, %s1650_s13   ;;  %s1309_s12 = sphi %s1339_s12, %s1649_s12  }
   0x3   : > { %p27_p1 = scmp.ge.s32.totalorder %s25_s15, 2  ;;  %p170_p2 = scmp.lt.s32.totalorder %s1317_s14, 3 }
   0x5   : > { %s1652_s15 = smov (%p27_p1, %s25_s15), 0  ;;  %p171_p3 = pnand %p1020_p0, %p170_p2 }
   0x6   : > { %v1213_v0 = vld [vmem:[%s1646_s1 + $0x40] sm:$0xff] (!%p171_p3)   ;;  %s1021_s18 = sshll.u32 (!%p171_p3), %s1309_s12, 4  ;;  %v1215_v2 = vld [vmem:[%s1646_s1 + $0x48] sm:$0xff] (!%p171_p3)   ;;  %v1217_v4 = vld [vmem:[%s1646_s1 + $0x50] sm:$0xff] (!%p171_p3)   ;;  %vm532_vm0 = vcmask (!%p171_p3), 261120   ;;  %vm895_vm1 = vcmask (!%p171_p3), 523264  }
   0x7   : > { %174 = sbr.rel (%p171_p3) target bundleno = 333 (0x14d), region = 32  ;;  %v1214_v1 = vld [vmem:[%s1646_s1] sm:$0xff] (!%p171_p3)   ;;  %1078 = vmatprep.subr.bf16.mxu0 (!%p171_p3), %v1213_v0  ;;  %1172 = vmatprep.subr.bf16.mxu1 (!%p171_p3), %v1213_v0  ;;  %p206_p4 = scmp.lt.s32.totalorder (!%p171_p3), %s1021_s18, 31  ;;  %v1216_v3 = vld [vmem:[%s1646_s1 + $0x8] sm:$0xff] (!%p171_p3)   ;;  %v1218_v5 = vld [vmem:[%s1646_s1 + $0x10] sm:$0xff] (!%p171_p3)  }
   0x8   : > { %1079 = vmatpush3.bf16.msra.mxu0 (!%p171_p3), %v1214_v1  ;;  %1180 = vmatpush3.bf16.msra.mxu1 (!%p171_p3), %v1214_v1  ;;  %v1219_v6 = vld [vmem:[%s1646_s1 + $0x58] sm:$0xff] (!%p171_p3)   ;;  %v1221_v8 = vld [vmem:[%s1646_s1 + $0x60] sm:$0xff] (!%p171_p3)   ;;  %v1223_v10 = vld [vmem:[%s1646_s1 + $0x68] sm:$0xff] (!%p171_p3)  }
   0x9   : > { %1080 = vmatprep.subr.bf16.mxu0 (!%p171_p3), %v1215_v2  ;;  %1173 = vmatprep.subr.bf16.mxu1 (!%p171_p3), %v1215_v2  ;;  %v1220_v7 = vld [vmem:[%s1646_s1 + $0x18] sm:$0xff] (!%p171_p3)   ;;  %v1222_v9 = vld [vmem:[%s1646_s1 + $0x20] sm:$0xff] (!%p171_p3)   ;;  %v1224_v13 = vld [vmem:[%s1646_s1 + $0x28] sm:$0xff] (!%p171_p3)  }
   0xa   : > { %v1225_v14 = vld [vmem:[%s1646_s1 + $0x70] sm:$0xff] (!%p171_p3)   ;;  %v1227_v16 = vld [vmem:[%s1646_s1 + $0x78] sm:$0xff] (!%p171_p3)   ;;  %v1235_v19 = vld [vmem:[%s1646_s1 + $0x80] sm:$0xff] (!%p171_p3)  }
   0xb   : > { %v1226_v15 = vld [vmem:[%s1646_s1 + $0x30] sm:$0xff] (!%p171_p3)   ;;  %v1228_v17 = vld [vmem:[%s1646_s1 + $0x38] sm:$0xff] (!%p171_p3)   ;;  %v1242_v23 = vld [vmem:[%s1646_s1 + $0x88] sm:$0xff] (!%p171_p3)  }
   0xc   : > { %1081 = vmatpush3.bf16.msra.mxu0 (!%p171_p3), %v1216_v3  ;;  %1181 = vmatpush3.bf16.msra.mxu1 (!%p171_p3), %v1216_v3  ;;  %v1462_v2 = vld [vmem:[%s1647_s2] ss:$0 sm:$0xff] (!%p171_p3) }
   0xd   : > { %1082 = vmatprep.subr.bf16.mxu0 (!%p171_p3), %v1217_v4  ;;  %1174 = vmatprep.subr.bf16.mxu1 (!%p171_p3), %v1217_v4 }
   0xe   : > { %s1654_s18 = smov (!%p206_p4, %s1021_s18), 31 }
   0xf   : > { %s1188_s4 = smul.u32 12, %s1654_s18  ;;  %s1024_s9 = sshll.u32 %s1654_s18, 3 }
  0x10   : > { %1083 = vmatpush3.bf16.msra.mxu0 %v1218_v5  ;;  %1182 = vmatpush3.bf16.msra.mxu1 %v1218_v5 }
  0x11   : > { %1084 = vmatprep.subr.bf16.mxu0 %v1219_v6  ;;  %1175 = vmatprep.subr.bf16.mxu1 %v1219_v6  ;;  %s1390_s11 = scalar_lea.vmem %s1645_s0, %s1188_s4 }
  0x12   : > { %v1231_v11 = vld [vmem:[%s1390_s11 + $0x4] ss:$12 sps:$4 sm:$0xff]   ;;  %v1234_v12 = vld [vmem:[%s1390_s11 + $0x94] ss:$12 sps:$4 sm:$0xff]   ;;  %v1236_v21 = vld [vmem:[%s1390_s11 + $0x1c] ss:$12 sps:$4 sm:$0xff]  }
  0x13   : > { %589 = vmatprep.mubr.bf16.mxu0 %v1231_v11  ;;  %637 = vmatprep.mubr.bf16.mxu1 %v1234_v12  ;;  %v1229_v18 = vld [vmem:[%s1390_s11] ss:$12 sps:$4 sm:$0xff]   ;;  %v1232_v20 = vld [vmem:[%s1390_s11 + $0x90] ss:$12 sps:$4 sm:$0xff]   ;;  %v1240_v24 = vld [vmem:[%s1390_s11 + $0x18] ss:$12 sps:$4 sm:$0xff]  }
  0x14   : > { %1085 = vmatpush3.bf16.msra.mxu0 %v1220_v7  ;;  %1183 = vmatpush3.bf16.msra.mxu1 %v1220_v7  ;;  %v1238_v22 = vld [vmem:[%s1390_s11 + $0xac] ss:$12 sps:$4 sm:$0xff]   ;;  %v1241_v25 = vld [vmem:[%s1390_s11 + $0xa8] ss:$12 sps:$4 sm:$0xff]   ;;  %v1246_v28 = vld [vmem:[%s1390_s11 + $0x30] ss:$12 sps:$4 sm:$0xff]  }
  0x15   : > { %1086 = vmatprep.subr.bf16.mxu0 %v1221_v8  ;;  %1176 = vmatprep.subr.bf16.mxu1 %v1221_v8  ;;  %v1243_v26 = vld [vmem:[%s1390_s11 + $0x34] ss:$12 sps:$4 sm:$0xff]   ;;  %v1248_v30 = vld [vmem:[%s1390_s11 + $0x4c] ss:$12 sps:$4 sm:$0xff]   ;;  %v1252_v33 = vld [vmem:[%s1390_s11 + $0x50] ss:$12 sps:$4 sm:$0xff]  }
  0x16   : > { %v1245_v27 = vld [vmem:[%s1390_s11 + $0x8] ss:$12 sps:$4 sm:$0xff]   ;;  %v1247_v29 = vld [vmem:[%s1390_s11 + $0x20] ss:$12 sps:$4 sm:$0xff]   ;;  %v1250_v31 = vld [vmem:[%s1390_s11 + $0x38] ss:$12 sps:$4 sm:$0xff]  }
  0x17   : > { %v1251_v32 = vld [vmem:[%s1390_s11 + $0x48] ss:$12 sps:$4 sm:$0xff]   ;;  %v1253_v34 = vld [vmem:[%s1390_s11 + $0x64] ss:$12 sps:$4 sm:$0xff]   ;;  %v1256_v36 = vld [vmem:[%s1390_s11 + $0x60] ss:$12 sps:$4 sm:$0xff]  }
  0x18   : > { %1087 = vmatpush3.bf16.msra.mxu0 %v1222_v9  ;;  %1184 = vmatpush3.bf16.msra.mxu1 %v1222_v9  ;;  %v1255_v35 = vld [vmem:[%s1390_s11 + $0x68] ss:$12 sps:$4 sm:$0xff]   ;;  %v1257_v37 = vld [vmem:[%s1390_s11 + $0x80] ss:$12 sps:$4 sm:$0xff]   ;;  %v1260_v39 = vld [vmem:[%s1390_s11 + $0x98] ss:$12 sps:$4 sm:$0xff]  }
  0x19   : > { %1088 = vmatprep.subr.bf16.mxu0 %v1223_v10  ;;  %1177 = vmatprep.subr.bf16.mxu1 %v1223_v10  ;;  %v1258_v38 = vld [vmem:[%s1390_s11 + $0x7c] ss:$12 sps:$4 sm:$0xff]   ;;  %v1261_v40 = vld [vmem:[%s1390_s11 + $0x78] ss:$12 sps:$4 sm:$0xff]  }
  0x1a   : > { %v1262_v41 = vld [vmem:[%s1390_s11 + $0xb0] ss:$12 sps:$4 sm:$0xff]   ;;  %s1540_s11 = scalar_lea.vmem %s1648_s3, %s1024_s9 }
  0x1c   : > { %1089 = vmatpush3.bf16.msra.mxu0 %v1224_v13  ;;  %1185 = vmatpush3.bf16.msra.mxu1 %v1224_v13 }
  0x1d   : > { %1090 = vmatprep.subr.bf16.mxu0 %v1225_v14  ;;  %1178 = vmatprep.subr.bf16.mxu1 %v1225_v14 }
  0x20   : > { %1091 = vmatpush3.bf16.msra.mxu0 %v1226_v15  ;;  %1186 = vmatpush3.bf16.msra.mxu1 %v1226_v15 }
  0x21   : > { %1092 = vmatprep.subr.bf16.mxu0 %v1227_v16  ;;  %1179 = vmatprep.subr.bf16.mxu1 %v1227_v16 }
  0x24   : > { %1093 = vmatpush3.bf16.msra.mxu0 %v1228_v17  ;;  %1187 = vmatpush3.bf16.msra.mxu1 %v1228_v17 }
  0x25   : > { %1152 = vmatprep.subr.bf16.mxu1 %v1235_v19 }
  0x27   : > { %590 = vmatmul.mubr.bf16.vlgmr.msra.gmra.mrb[0].mxu0 %v1229_v18  ;;  %638 = vmatmul.mubr.bf16.vlgmr.msra.gmra.mrb[0].mxu1 %v1232_v20 }
  0x28   : > { %1153 = vmatpush3.bf16.msra.mxu1 %v1235_v19  ;;  %597 = vmatprep.mubr.bf16.mxu0 %v1236_v21 }
  0x29   : > { %645 = vmatprep.mubr.bf16.mxu1 %v1238_v22  ;;  %1154 = vmatprep.subr.bf16.mxu1 %v1242_v23 }
  0x2c   : > { %1155 = vmatpush3.bf16.msra.mxu1 %v1242_v23 }
  0x2f   : > { %598 = vmatmul.mubr.bf16.gmra.mrb[4].mxu0 %v1240_v24  ;;  %646 = vmatmul.mubr.bf16.gmra.mrb[4].mxu1 %v1241_v25 }
  0x30   : > { %605 = vmatprep.mubr.bf16.mxu0 %v1243_v26  ;;  %1156 = vmatprep.mubr.msk.bf16.mxu1 %vm532_vm0, %v1245_v27 }
  0x37   : > { %606 = vmatmul.mubr.bf16.gmra.mrb[8].mxu0 %v1246_v28  ;;  %1157 = vmatmul.mubr.msk.bf16.vlgmr.msra.gmra.mrb[8].mxu1 %vm532_vm0, %v1247_v29 }
  0x38   : > { %613 = vmatprep.mubr.bf16.mxu0 %v1248_v30  ;;  %1160 = vmatprep.mubr.msk.bf16.mxu1 %vm532_vm0, %v1250_v31 }
  0x3f   : > { %614 = vmatmul.mubr.bf16.gmra.mrb[12].mxu0 %v1251_v32  ;;  %1161 = vmatmul.mubr.msk.bf16.gmra.mrb[12].mxu1 %vm532_vm0, %v1252_v33 }
  0x40   : > { %621 = vmatprep.mubr.bf16.mxu0 %v1253_v34  ;;  %1164 = vmatprep.mubr.msk.bf16.mxu1 %vm532_vm0, %v1255_v35 }
  0x47   : > { %622 = vmatmul.mubr.bf16.gmra.mrb[16].mxu0 %v1256_v36  ;;  %1165 = vmatmul.mubr.msk.bf16.gmra.mrb[16].mxu1 %vm532_vm0, %v1257_v37 }
  0x48   : > { %629 = vmatprep.mubr.bf16.mxu0 %v1258_v38  ;;  %1168 = vmatprep.mubr.msk.bf16.mxu1 %vm532_vm0, %v1260_v39 }
  0x4f   : > { %630 = vmatmul.mubr.bf16.gmra.mrb[20].mxu0 %v1261_v40  ;;  %1169 = vmatmul.mubr.msk.bf16.gmra.mrb[20].mxu1 %vm532_vm0, %v1262_v41 }
  0xfa   : > { %v1094_v42 = vpop.f32.mrb[0].mxu0  ;;  %v1130_v43 = vpop.f32.mrb[0].mxu1 }
  0xfb   : > { %v1095_v44 = vpop.f32.mrb[1].mxu0  ;;  %v1131_v45 = vpop.f32.mrb[1].mxu1 }
  0xfc   : > { %v1096_v46 = vadd.f32 %v1095_v44, %v1094_v42  ;;  %v1097_v47 = vpop.f32.mrb[2].mxu0  ;;  %v1451_v48 = vadd.f32 %v1131_v45, %v1130_v43  ;;  %v1133_v49 = vpop.f32.mrb[2].mxu1 }
  0xfd   : > { %v1098_v50 = vpop.f32.mrb[3].mxu0  ;;  %v1134_v51 = vpop.f32.mrb[3].mxu1 }
  0xfe   : > { %v1099_v52 = vadd.f32 %v1098_v50, %v1097_v47  ;;  %v1453_v53 = vadd.f32 %v1134_v51, %v1133_v49  ;;  %v592_v6 = vadd.f32 %v1096_v46, %v1462_v2 }
 0x100   : > { %v595_v15 = vadd.f32 %v1099_v52, %v1462_v2 }
 0x102   : > { %v1100_v54 = vpop.f32.mrb[4].mxu0  ;;  %v1136_v55 = vpop.f32.mrb[4].mxu1 }
 0x103   : > { %v1101_v56 = vpop.f32.mrb[5].mxu0  ;;  %v1137_v57 = vpop.f32.mrb[5].mxu1 }
 0x104   : > { %v1102_v58 = vadd.f32 %v1101_v56, %v1100_v54  ;;  %v1103_v59 = vpop.f32.mrb[6].mxu0  ;;  %v1455_v60 = vadd.f32 %v1137_v57, %v1136_v55  ;;  %v1139_v61 = vpop.f32.mrb[6].mxu1 }
 0x105   : > { %v1104_v62 = vpop.f32.mrb[7].mxu0  ;;  %v1140_v63 = vpop.f32.mrb[7].mxu1 }
 0x106   : > { %v1105_v0 = vadd.f32 %v1104_v62, %v1103_v59  ;;  %v1457_v1 = vadd.f32 %v1140_v63, %v1139_v61  ;;  %v600_v3 = vadd.f32 %v1102_v58, %v1462_v2 }
 0x108   : > { %v603_v10 = vadd.f32 %v1105_v0, %v1462_v2 }
 0x10a   : > { %v1106_v4 = vpop.f32.mrb[8].mxu0  ;;  %v1158_v5 = vpop.f32.mrb[8].mxu1 }
 0x10b   : > { %v1466_v7 = vadd.f32 %v1158_v5, %v600_v3  ;;  %v1107_v8 = vpop.f32.mrb[9].mxu0  ;;  %v688_v9 = vpop.f32.mrb[9].mxu1 }
 0x10c   : > { %v1108_v11 = vadd.f32 %v1107_v8, %v1106_v4  ;;  %v1469_v12 = vadd.f32 %v688_v9, %v592_v6  ;;  %v1109_v13 = vpop.f32.mrb[10].mxu0  ;;  %v1159_v14 = vpop.f32.mrb[10].mxu1 }
 0x10d   : > { %v769_v16 = vmul.f32 0.044715, %v1466_v7  ;;  %v1473_v17 = vadd.f32 %v1159_v14, %v603_v10  ;;  %v1110_v18 = vpop.f32.mrb[11].mxu0  ;;  %v691_v19 = vpop.f32.mrb[11].mxu1 }
 0x10e   : > { %v767_v20 = vmul.f32 0.044715, %v1469_v12  ;;  %v1111_v21 = vadd.f32 %v1110_v18, %v1109_v13  ;;  %v1476_v22 = vadd.f32 %v691_v19, %v595_v15  ;;  %v608_v33 = vadd.f32 %v1108_v11, %v1462_v2 }
 0x10f   : > { %v785_v23 = vmul.f32 %v769_v16, %v1466_v7  ;;  %v770_v24 = vmul.f32 0.044715, %v1473_v17 }
 0x110   : > { %v783_v25 = vmul.f32 %v767_v20, %v1469_v12  ;;  %v768_v26 = vmul.f32 0.044715, %v1476_v22  ;;  %v611_v52 = vadd.f32 %v1111_v21, %v1462_v2  ;;  %v640_v21 = vadd.f32 %v1451_v48, %v1462_v2 }
 0x111   : > { %v801_v27 = vmul.f32 %v785_v23, %v1466_v7  ;;  %v786_v28 = vmul.f32 %v770_v24, %v1473_v17 }
 0x112   : > { %v799_v29 = vmul.f32 %v783_v25, %v1469_v12  ;;  %v784_v30 = vmul.f32 %v768_v26, %v1476_v22  ;;  %v1112_v31 = vpop.f32.mrb[12].mxu0  ;;  %v1162_v32 = vpop.f32.mrb[12].mxu1  ;;  %v648_v26 = vadd.f32 %v1455_v60, %v1462_v2 }
 0x113   : > { %v817_v34 = vadd.f32 %v801_v27, %v1466_v7  ;;  %v802_v35 = vmul.f32 %v786_v28, %v1473_v17  ;;  %v1113_v36 = vpop.f32.mrb[13].mxu0  ;;  %v704_v37 = vpop.f32.mrb[13].mxu1  ;;  %v753_v27 = vmul.f32 0.5, %v1466_v7 }
 0x114   : > { %v815_v38 = vadd.f32 %v799_v29, %v1469_v12  ;;  %v800_v39 = vmul.f32 %v784_v30, %v1476_v22  ;;  %v1114_v40 = vadd.f32 %v1113_v36, %v1112_v31  ;;  %v1491_v41 = vadd.f32 %v704_v37, %v608_v33  ;;  %v1115_v42 = vpop.f32.mrb[14].mxu0  ;;  %v1163_v43 = vpop.f32.mrb[14].mxu1 }
 0x115   : > { %v833_v44 = vmul.f32 0.7978846, %v817_v34  ;;  %v818_v45 = vadd.f32 %v802_v35, %v1473_v17  ;;  %v1116_v46 = vpop.f32.mrb[15].mxu0  ;;  %v707_v47 = vpop.f32.mrb[15].mxu1  ;;  %v751_v31 = vmul.f32 0.5, %v1469_v12  ;;  %v754_v35 = vmul.f32 0.5, %v1473_v17 }
 0x116   : > { %v831_v49 = vmul.f32 0.7978846, %v815_v38  ;;  %v816_v50 = vadd.f32 %v800_v39, %v1476_v22  ;;  %v616_v51 = vadd.f32 %v1114_v40, %v1462_v2  ;;  %v771_v55 = vmul.f32 0.044715, %v1491_v41 }
 0x117   : > { %1263 = vtanh.f32 %v833_v44  ;;  %v834_v54 = vmul.f32 0.7978846, %v818_v45  ;;  %v1117_v56 = vadd.f32 %v1116_v46, %v1115_v42  ;;  %v1500_v59 = vadd.f32 %v707_v47, %v611_v52 }
 0x118   : > { %1265 = vtanh.f32 %v831_v49  ;;  %v832_v57 = vmul.f32 0.7978846, %v816_v50  ;;  %v1498_v58 = vadd.f32 %v1162_v32, %v616_v51  ;;  %v787_v61 = vmul.f32 %v771_v55, %v1491_v41 }
 0x119   : > { %1267 = vtanh.f32 %v834_v54  ;;  %v619_v62 = vadd.f32 %v1117_v56, %v1462_v2  ;;  %v772_v6 = vmul.f32 0.044715, %v1500_v59  ;;  %v752_v38 = vmul.f32 0.5, %v1476_v22 }
 0x11a   : > { %1269 = vtanh.f32 %v832_v57  ;;  %v773_v63 = vmul.f32 0.044715, %v1498_v58  ;;  %v1118_v0 = vpop.f32.mrb[16].mxu0  ;;  %v1505_v3 = vpop.f32.mrb[16].mxu1  ;;  %v803_v4 = vmul.f32 %v787_v61, %v1491_v41 }
 0x11b   : > { %v1508_v5 = vadd.f32 %v1163_v43, %v619_v62  ;;  %v1119_v8 = vpop.f32.mrb[17].mxu0  ;;  %v720_v9 = vpop.f32.mrb[17].mxu1  ;;  %v788_v18 = vmul.f32 %v772_v6, %v1500_v59 }
 0x11c   : > { %v789_v10 = vmul.f32 %v773_v63, %v1498_v58  ;;  %v1120_v11 = vadd.f32 %v1119_v8, %v1118_v0  ;;  %v1121_v13 = vpop.f32.mrb[18].mxu0  ;;  %v1512_v14 = vpop.f32.mrb[18].mxu1  ;;  %v819_v15 = vadd.f32 %v803_v4, %v1491_v41  ;;  %v651_v4 = vadd.f32 %v1457_v1, %v1462_v2 }
 0x11d   : > { %v774_v16 = vmul.f32 0.044715, %v1508_v5  ;;  %v1122_v19 = vpop.f32.mrb[19].mxu0  ;;  %v723_v20 = vpop.f32.mrb[19].mxu1  ;;  %v804_v30 = vmul.f32 %v788_v18, %v1500_v59 }
 0x11e   : > { %v805_v23 = vmul.f32 %v789_v10, %v1498_v58  ;;  %v624_v24 = vadd.f32 %v1120_v11, %v1462_v2  ;;  %v1123_v25 = vadd.f32 %v1122_v19, %v1121_v13  ;;  %v835_v28 = vmul.f32 0.7978846, %v819_v15 }
 0x11f   : > { %v790_v29 = vmul.f32 %v774_v16, %v1508_v5  ;;  %v820_v7 = vadd.f32 %v804_v30, %v1500_v59 }
 0x120   : > { %v821_v48 = vadd.f32 %v805_v23, %v1498_v58  ;;  %v1529_v32 = vadd.f32 %v720_v9, %v624_v24  ;;  %v627_v33 = vadd.f32 %v1123_v25, %v1462_v2  ;;  %1271 = vtanh.f32 %v835_v28 }
 0x121   : > { %v1264_v34 = vpop.eup %1263  ;;  %v806_v60 = vmul.f32 %v790_v29, %v1508_v5  ;;  %v836_v43 = vmul.f32 0.7978846, %v820_v7  ;;  %v643_v23 = vadd.f32 %v1453_v53, %v1462_v2  ;;  %v755_v24 = vmul.f32 0.5, %v1491_v41 }
 0x122   : > { %v1266_v36 = vpop.eup %1265  ;;  %v865_v37 = vadd.f32 1.0, %v1264_v34  ;;  %v837_v39 = vmul.f32 0.7978846, %v821_v48  ;;  %v775_v12 = vmul.f32 0.044715, %v1529_v32  ;;  %v1543_v44 = vadd.f32 %v723_v20, %v627_v33  ;;  %v1124_v45 = vpop.f32.mrb[20].mxu0 }
 0x123   : > { %v1268_v40 = vpop.eup %1267  ;;  %v863_v42 = vadd.f32 1.0, %v1266_v36  ;;  %v822_v17 = vadd.f32 %v806_v60, %v1508_v5  ;;  %v1170_v46 = vpop.f32.mrb[20].mxu1  ;;  %v757_v28 = vmul.f32 0.5, %v1498_v58  ;;  %v756_v33 = vmul.f32 0.5, %v1500_v59 }
 0x124   : > { %v1270_v47 = vpop.eup %1269  ;;  %v881_v22 = vmul.f32 %v865_v37, %v753_v27  ;;  %v866_v49 = vadd.f32 1.0, %v1268_v40  ;;  %1273 = vtanh.f32 %v837_v39  ;;  %v791_v50 = vmul.f32 %v775_v12, %v1529_v32  ;;  %v1125_v51 = vpop.f32.mrb[21].mxu0 }
 0x125   : > { %v736_v52 = vpop.f32.mrb[21].mxu1  ;;  %v879_v54 = vmul.f32 %v863_v42, %v751_v31  ;;  %v864_v55 = vadd.f32 1.0, %v1270_v47  ;;  %v838_v56 = vmul.f32 0.7978846, %v822_v17  ;;  %1275 = vtanh.f32 %v836_v43  ;;  %v1127_v57 = vpop.f32.mrb[22].mxu0 }
 0x126   : > { %v1171_v61 = vpop.f32.mrb[22].mxu1  ;;  %898 = vst.msk [vmem:[%s1540_s11 + $0x10] sm:$0xff] %vm895_vm1, %v881_v22  ;;  %v882_v62 = vmul.f32 %v866_v49, %v754_v35  ;;  %v807_v63 = vmul.f32 %v791_v50, %v1529_v32  ;;  %v776_v0 = vmul.f32 0.044715, %v1543_v44  ;;  %v1128_v6 = vpop.f32.mrb[23].mxu0  ;;  %v1556_v10 = vadd.f32 %v1170_v46, %v648_v26 }
 0x127   : > { %v1552_v8 = vpop.f32.mrb[23].mxu1  ;;  %896 = vst.msk [vmem:[%s1540_s11] sm:$0xff] %vm895_vm1, %v879_v54  ;;  %v880_v9 = vmul.f32 %v864_v55, %v752_v38  ;;  %1277 = vtanh.f32 %v838_v56  ;;  %v1126_v11 = vadd.f32 %v1125_v51, %v1124_v45  ;;  %v1562_v16 = vadd.f32 %v736_v52, %v640_v21 }
 0x128   : > { %899 = vst.msk [vmem:[%s1540_s11 + $0x18] sm:$0xff] %vm895_vm1, %v882_v62  ;;  %v823_v13 = vadd.f32 %v807_v63, %v1529_v32  ;;  %v792_v15 = vmul.f32 %v776_v0, %v1543_v44  ;;  %v1564_v18 = vadd.f32 %v1171_v61, %v651_v4  ;;  %v781_v1 = vmul.f32 0.044715, %v1556_v10 }
 0x129   : > { %897 = vst.msk [vmem:[%s1540_s11 + $0x8] sm:$0xff] %vm895_vm1, %v880_v9  ;;  %v632_v19 = vadd.f32 %v1126_v11, %v1462_v2  ;;  %v1129_v20 = vadd.f32 %v1128_v6, %v1127_v57  ;;  %v779_v21 = vmul.f32 0.044715, %v1562_v16  ;;  %v758_v49 = vmul.f32 0.5, %v1508_v5 }
 0x12a   : > { %v839_v25 = vmul.f32 0.7978846, %v823_v13  ;;  %v808_v26 = vmul.f32 %v792_v15, %v1543_v44  ;;  %v1272_v27 = vpop.eup %1271  ;;  %v797_v29 = vmul.f32 %v781_v1, %v1556_v10  ;;  %v782_v31 = vmul.f32 0.044715, %v1564_v18 }
 0x12b   : > { %v1578_v30 = vadd.f32 %v1505_v3, %v632_v19  ;;  %v867_v48 = vadd.f32 1.0, %v1272_v27  ;;  %v795_v41 = vmul.f32 %v779_v21, %v1562_v16  ;;  %v635_v37 = vadd.f32 %v1129_v20, %v1462_v2 }
 0x12c   : > { %1279 = vtanh.f32 %v839_v25  ;;  %v824_v53 = vadd.f32 %v808_v26, %v1543_v44  ;;  %v813_v34 = vmul.f32 %v797_v29, %v1556_v10  ;;  %v798_v35 = vmul.f32 %v782_v31, %v1564_v18 }
 0x12d   : > { %v777_v58 = vmul.f32 0.044715, %v1578_v30  ;;  %v883_v3 = vmul.f32 %v867_v48, %v755_v24  ;;  %v811_v36 = vmul.f32 %v795_v41, %v1562_v16  ;;  %v1596_v43 = vadd.f32 %v1512_v14, %v635_v37 }
 0x12e   : > { %v1274_v60 = vpop.eup %1273  ;;  %v840_v7 = vmul.f32 0.7978846, %v824_v53  ;;  %v829_v12 = vadd.f32 %v813_v34, %v1556_v10  ;;  %v814_v59 = vmul.f32 %v798_v35, %v1564_v18  ;;  %v740_v57 = vadd.f32 %v1552_v8, %v643_v23 }
 0x12f   : > { %v1276_v38 = vpop.eup %1275  ;;  %v869_v39 = vadd.f32 1.0, %v1274_v60  ;;  %v793_v40 = vmul.f32 %v777_v58, %v1578_v30  ;;  %900 = vst.msk [vmem:[%s1540_s11 + $0x20] sm:$0xff] %vm895_vm1, %v883_v3  ;;  %v827_v17 = vadd.f32 %v811_v36, %v1562_v16  ;;  %v778_v55 = vmul.f32 0.044715, %v1596_v43 }
 0x130   : > { %v868_v42 = vadd.f32 1.0, %v1276_v38  ;;  %1281 = vtanh.f32 %v840_v7  ;;  %v845_v46 = vmul.f32 0.7978846, %v829_v12  ;;  %v830_v22 = vadd.f32 %v814_v59, %v1564_v18 }
 0x131   : > { %v1278_v2 = vpop.eup %1277  ;;  %v885_v45 = vmul.f32 %v869_v39, %v757_v28  ;;  %v809_v47 = vmul.f32 %v793_v40, %v1578_v30  ;;  %v843_v52 = vmul.f32 0.7978846, %v827_v17  ;;  %v794_v61 = vmul.f32 %v778_v55, %v1596_v43 }
 0x132   : > { %v870_v50 = vadd.f32 1.0, %v1278_v2  ;;  %v884_v51 = vmul.f32 %v868_v42, %v756_v33  ;;  %1283 = vtanh.f32 %v845_v46  ;;  %v846_v54 = vmul.f32 0.7978846, %v830_v22 }
 0x133   : > { %902 = vst.msk [vmem:[%s1540_s11 + $0x30] sm:$0xff] %vm895_vm1, %v885_v45  ;;  %v825_v14 = vadd.f32 %v809_v47, %v1578_v30  ;;  %1285 = vtanh.f32 %v843_v52  ;;  %v780_v63 = vmul.f32 0.044715, %v740_v57  ;;  %v759_v0 = vmul.f32 0.5, %v1529_v32 }
 0x134   : > { %v886_v56 = vmul.f32 %v870_v50, %v758_v49  ;;  %901 = vst.msk [vmem:[%s1540_s11 + $0x28] sm:$0xff] %vm895_vm1, %v884_v51  ;;  %1287 = vtanh.f32 %v846_v54  ;;  %v810_v6 = vmul.f32 %v794_v61, %v1596_v43  ;;  %v760_v1 = vmul.f32 0.5, %v1543_v44 }
 0x135   : > { %v841_v5 = vmul.f32 0.7978846, %v825_v14  ;;  %v796_v9 = vmul.f32 %v780_v63, %v740_v57  ;;  %v765_v26 = vmul.f32 0.5, %v1556_v10  ;;  %v763_v44 = vmul.f32 0.5, %v1562_v16 }
 0x136   : > { %v1280_v62 = vpop.eup %1279  ;;  %903 = vst.msk [vmem:[%s1540_s11 + $0x38] sm:$0xff] %vm895_vm1, %v886_v56  ;;  %v826_v13 = vadd.f32 %v810_v6, %v1596_v43  ;;  %v766_v48 = vmul.f32 0.5, %v1564_v18  ;;  %v761_v10 = vmul.f32 0.5, %v1578_v30  ;;  %v762_v18 = vmul.f32 0.5, %v1596_v43 }
 0x137   : > { %v871_v4 = vadd.f32 1.0, %v1280_v62  ;;  %1289 = vtanh.f32 %v841_v5  ;;  %v812_v15 = vmul.f32 %v796_v9, %v740_v57  ;;  %v764_v36 = vmul.f32 0.5, %v740_v57 }
 0x138   : > { %v842_v20 = vmul.f32 0.7978846, %v826_v13 }
 0x139   : > { %v887_v11 = vmul.f32 %v871_v4, %v759_v0  ;;  %v828_v23 = vadd.f32 %v812_v15, %v740_v57 }
 0x13a   : > { %v1282_v8 = vpop.eup %1281  ;;  %1291 = vtanh.f32 %v842_v20 }
 0x13b   : > { %904 = vst.msk [vmem:[%s1540_s11 + $0x40] sm:$0xff] %vm895_vm1, %v887_v11  ;;  %v872_v19 = vadd.f32 1.0, %v1282_v8  ;;  %v844_v27 = vmul.f32 0.7978846, %v828_v23 }
 0x13c   : > { %v1284_v24 = vpop.eup %1283 }
 0x13d   : > { %v888_v32 = vmul.f32 %v872_v19, %v760_v1  ;;  %v1286_v25 = vpop.eup %1285  ;;  %v877_v21 = vadd.f32 1.0, %v1284_v24  ;;  %1293 = vtanh.f32 %v844_v27 }
 0x13e   : > { %v1288_v28 = vpop.eup %1287  ;;  %v875_v29 = vadd.f32 1.0, %v1286_v25 }
 0x13f   : > { %905 = vst.msk [vmem:[%s1540_s11 + $0x48] sm:$0xff] %vm895_vm1, %v888_v32  ;;  %v893_v31 = vmul.f32 %v877_v21, %v765_v26  ;;  %v878_v53 = vadd.f32 1.0, %v1288_v28 }
 0x140   : > { %v891_v33 = vmul.f32 %v875_v29, %v763_v44 }
 0x141   : > { %v1290_v41 = vpop.eup %1289  ;;  %910 = vst.msk [vmem:[%s1540_s11 + $0x70] sm:$0xff] %vm895_vm1, %v893_v31  ;;  %v894_v58 = vmul.f32 %v878_v53, %v766_v48 }
 0x142   : > { %v873_v34 = vadd.f32 1.0, %v1290_v41  ;;  %908 = vst.msk [vmem:[%s1540_s11 + $0x60] sm:$0xff] %vm895_vm1, %v891_v33 }
 0x143   : > { %911 = vst.msk [vmem:[%s1540_s11 + $0x78] sm:$0xff] %vm895_vm1, %v894_v58 }
 0x144   : > { %v889_v35 = vmul.f32 %v873_v34, %v761_v10  ;;  %v1292_v16 = vpop.eup %1291 }
 0x145   : > { %v874_v60 = vadd.f32 1.0, %v1292_v16 }
 0x146   : > { %906 = vst.msk [vmem:[%s1540_s11 + $0x50] sm:$0xff] %vm895_vm1, %v889_v35 }
 0x147   : > { %v1294_v3 = vpop.eup %1293  ;;  %v890_v7 = vmul.f32 %v874_v60, %v762_v18 }
 0x148   : > { %v876_v37 = vadd.f32 1.0, %v1294_v3 }
 0x149   : > { %907 = vst.msk [vmem:[%s1540_s11 + $0x58] sm:$0xff] %vm895_vm1, %v890_v7 }
 0x14a   : > { %v892_v30 = vmul.f32 %v876_v37, %v764_v36 }
 0x14c   : > { %909 = vst.msk [vmem:[%s1540_s11 + $0x68] sm:$0xff] %vm895_vm1, %v892_v30 }
 0x14d PF: > { %s13_s14 = sadd.s32 1, %s1317_s14   ;;  %s1649_s12 = smov %s1313_s13 }
 0x14e   : > { %p10_p5 = scmp.ge.s32.totalorder %s13_s14, 4   ;;  %s1650_s13 = smov %s1652_s15 }
 0x150   :  { %12 = sbr.rel (!%p10_p5) target bundleno = 2 (0x2), region = 68 }

// kernel: fsnet_fwd.32
= control target key start
LH: loop header
LB: loop body
LE: loop exit
PB: predicated region body
PF: predicated region fallthrough
CT: control target
= control target key end

     0   :  { %s2587_s12 = smov 0   ;;  %s2589_s13 = smov 0   ;;  %s3050_s0 = inlined_call_operand.vmem [shape: bf16[256,1152], index: 0, kind: input, shape index: {}]   ;;  %s3051_s1 = inlined_call_operand.vmem [shape: bf16[1152,128], index: 1, kind: input, shape index: {}]   ;;  %s3052_s2 = inlined_call_operand.vmem [shape: f32[1,128], index: 2, kind: input, shape index: {}]   ;;  %s3053_s3 = inlined_call_operand.vmem [shape: f32[256,64], index: 3, kind: output, shape index: {}]  }
   0x1   :  { %s2591_s14 = smov 0  }
   0x2 LB: > { %s25_s15 = sadd.s32 1, %s2561_s13  ;;  %p1870_p0 = scmp.ge.s32.totalorder %s2565_s14, 1  ;;  %s2565_s14 = sphi %s2591_s14, %s13_s14   ;;  %s2561_s13 = sphi %s2589_s13, %s3055_s13   ;;  %s2557_s12 = sphi %s2587_s12, %s3054_s12  }
   0x3   : > { %p27_p1 = scmp.ge.s32.totalorder %s25_s15, 2  ;;  %p170_p2 = scmp.lt.s32.totalorder %s2565_s14, 3 }
   0x5   : > { %s3057_s15 = smov (%p27_p1, %s25_s15), 0  ;;  %p171_p3 = pnand %p1870_p0, %p170_p2 }
   0x6   : > { %v2367_v0 = vld [vmem:[%s3051_s1 + $0x40] sm:$0xff] (!%p171_p3)   ;;  %v2371_v4 = vld [vmem:[%s3051_s1 + $0x48] sm:$0xff] (!%p171_p3)   ;;  %v2375_v8 = vld [vmem:[%s3051_s1 + $0x50] sm:$0xff] (!%p171_p3)   ;;  %s1871_s23 = sshll.u32 (!%p171_p3), %s2557_s12, 4  ;;  %vm1745_vm0 = vcmask (!%p171_p3), 523264  }
   0x7   : > { %174 = sbr.rel (%p171_p3) target bundleno = 395 (0x18b), region = 32  ;;  %v2368_v1 = vld [vmem:[%s3051_s1 + $0xc0] sm:$0xff] (!%p171_p3)   ;;  %2022 = vmatprep.subr.bf16.mxu0 (!%p171_p3), %v2367_v0  ;;  %v2372_v5 = vld [vmem:[%s3051_s1 + $0xc8] sm:$0xff] (!%p171_p3)   ;;  %v2376_v9 = vld [vmem:[%s3051_s1 + $0xd0] sm:$0xff] (!%p171_p3)   ;;  %p206_p4 = scmp.lt.s32.totalorder (!%p171_p3), %s1871_s23, 31 }
   0x8   : > { %v2369_v2 = vld [vmem:[%s3051_s1] sm:$0xff] (!%p171_p3)   ;;  %2086 = vmatprep.subr.bf16.mxu1 (!%p171_p3), %v2368_v1  ;;  %v2373_v6 = vld [vmem:[%s3051_s1 + $0x8] sm:$0xff] (!%p171_p3)   ;;  %v2377_v10 = vld [vmem:[%s3051_s1 + $0x10] sm:$0xff] (!%p171_p3)  }
   0x9   : > { %v2370_v3 = vld [vmem:[%s3051_s1 + $0x80] sm:$0xff] (!%p171_p3)   ;;  %2023 = vmatpush3.bf16.msra.mxu0 (!%p171_p3), %v2369_v2  ;;  %v2374_v7 = vld [vmem:[%s3051_s1 + $0x88] sm:$0xff] (!%p171_p3)   ;;  %v2378_v11 = vld [vmem:[%s3051_s1 + $0x90] sm:$0xff] (!%p171_p3)  }
   0xa   : > { %2087 = vmatpush3.bf16.msra.mxu1 (!%p171_p3), %v2370_v3  ;;  %2024 = vmatprep.subr.bf16.mxu0 (!%p171_p3), %v2371_v4  ;;  %v2379_v12 = vld [vmem:[%s3051_s1 + $0x58] sm:$0xff] (!%p171_p3)   ;;  %v2383_v16 = vld [vmem:[%s3051_s1 + $0x60] sm:$0xff] (!%p171_p3)   ;;  %v2387_v20 = vld [vmem:[%s3051_s1 + $0x68] sm:$0xff] (!%p171_p3)  }
   0xb   : > { %2088 = vmatprep.subr.bf16.mxu1 (!%p171_p3), %v2372_v5  ;;  %v2380_v13 = vld [vmem:[%s3051_s1 + $0xd8] sm:$0xff] (!%p171_p3)   ;;  %v2384_v17 = vld [vmem:[%s3051_s1 + $0xe0] sm:$0xff] (!%p171_p3)   ;;  %v2388_v21 = vld [vmem:[%s3051_s1 + $0xe8] sm:$0xff] (!%p171_p3)  }
   0xc   : > { %v2381_v14 = vld [vmem:[%s3051_s1 + $0x18] sm:$0xff] (!%p171_p3)   ;;  %v2385_v18 = vld [vmem:[%s3051_s1 + $0x20] sm:$0xff] (!%p171_p3)   ;;  %v2389_v22 = vld [vmem:[%s3051_s1 + $0x28] sm:$0xff] (!%p171_p3)  }
   0xd   : > { %2025 = vmatpush3.bf16.msra.mxu0 (!%p171_p3), %v2373_v6  ;;  %v2382_v15 = vld [vmem:[%s3051_s1 + $0x98] sm:$0xff] (!%p171_p3)   ;;  %v2386_v19 = vld [vmem:[%s3051_s1 + $0xa0] sm:$0xff] (!%p171_p3)   ;;  %v2390_v23 = vld [vmem:[%s3051_s1 + $0xa8] sm:$0xff] (!%p171_p3)  }
   0xe   : > { %2089 = vmatpush3.bf16.msra.mxu1 %v2374_v7  ;;  %2026 = vmatprep.subr.bf16.mxu0 %v2375_v8  ;;  %s3059_s23 = smov (!%p206_p4, %s1871_s23), 31  ;;  %v2391_v24 = vld [vmem:[%s3051_s1 + $0x70] sm:$0xff]   ;;  %v2395_v28 = vld [vmem:[%s3051_s1 + $0x78] sm:$0xff]   ;;  %v2405_v36 = vld [vmem:[%s3051_s1 + $0x140] sm:$0xff]  }
   0xf   : > { %2090 = vmatprep.subr.bf16.mxu1 %v2376_v9  ;;  %v2392_v25 = vld [vmem:[%s3051_s1 + $0xf0] sm:$0xff]   ;;  %s2342_s22 = smul.u32 36, %s3059_s23  ;;  %v2396_v29 = vld [vmem:[%s3051_s1 + $0xf8] sm:$0xff]   ;;  %v2406_v37 = vld [vmem:[%s3051_s1 + $0x1c0] sm:$0xff]  }
  0x10   : > { %v2393_v26 = vld [vmem:[%s3051_s1 + $0x30] sm:$0xff]   ;;  %v2397_v30 = vld [vmem:[%s3051_s1 + $0x38] sm:$0xff]   ;;  %v2407_v38 = vld [vmem:[%s3051_s1 + $0x100] sm:$0xff]  }
  0x11   : > { %2027 = vmatpush3.bf16.msra.mxu0 %v2377_v10  ;;  %v2394_v27 = vld [vmem:[%s3051_s1 + $0xb0] sm:$0xff]   ;;  %s2704_s6 = scalar_lea.vmem %s3050_s0, %s2342_s22  ;;  %v2398_v31 = vld [vmem:[%s3051_s1 + $0xb8] sm:$0xff]   ;;  %v2408_v39 = vld [vmem:[%s3051_s1 + $0x180] sm:$0xff]  }
  0x12   : > { %2091 = vmatpush3.bf16.msra.mxu1 %v2378_v11  ;;  %2028 = vmatprep.subr.bf16.mxu0 %v2379_v12  ;;  %v2399_v32 = vld [vmem:[%s2704_s6] ss:$36 sps:$4 sm:$0xff]   ;;  %v2402_v34 = vld [vmem:[%s2704_s6 + $0x8] ss:$36 sps:$4 sm:$0xff]   ;;  %v2411_v41 = vld [vmem:[%s2704_s6 + $0x54] ss:$36 sps:$4 sm:$0xff]  }
  0x13   : > { %2092 = vmatprep.subr.bf16.mxu1 %v2380_v13  ;;  %v2401_v33 = vld [vmem:[%s2704_s6 + $0x4] ss:$36 sps:$4 sm:$0xff]   ;;  %v2404_v35 = vld [vmem:[%s2704_s6 + $0xc] ss:$36 sps:$4 sm:$0xff]   ;;  %v2419_v48 = vld [vmem:[%s2704_s6 + $0x94] ss:$36 sps:$4 sm:$0xff]  }
  0x14   : > { %1292 = vmatprep.mubr.bf16.mxu0 %v2401_v33  ;;  %1389 = vmatprep.mubr.bf16.mxu1 %v2404_v35  ;;  %v2409_v40 = vld [vmem:[%s2704_s6 + $0x4c] ss:$36 sps:$4 sm:$0xff]   ;;  %v2421_v49 = vld [vmem:[%s2704_s6 + $0x9c] ss:$36 sps:$4 sm:$0xff]   ;;  %v2431_v57 = vld [vmem:[%s2704_s6 + $0xe4] ss:$36 sps:$4 sm:$0xff]  }
  0x15   : > { %2029 = vmatpush3.bf16.msra.mxu0 %v2381_v14  ;;  %v2413_v42 = vld [vmem:[%s2704_s6 + $0x48] ss:$36 sps:$4 sm:$0xff]   ;;  %v2414_v43 = vld [vmem:[%s2704_s6 + $0x50] ss:$36 sps:$4 sm:$0xff]   ;;  %v2424_v51 = vld [vmem:[%s2704_s6 + $0x98] ss:$36 sps:$4 sm:$0xff]  }
  0x16   : > { %2093 = vmatpush3.bf16.msra.mxu1 %v2382_v15  ;;  %2030 = vmatprep.subr.bf16.mxu0 %v2383_v16  ;;  %v2415_v44 = vld [vmem:[%s3051_s1 + $0x148] sm:$0xff]   ;;  %v2423_v50 = vld [vmem:[%s2704_s6 + $0x90] ss:$36 sps:$4 sm:$0xff]   ;;  %v2429_v56 = vld [vmem:[%s2704_s6 + $0xdc] ss:$36 sps:$4 sm:$0xff]  }
  0x17   : > { %2094 = vmatprep.subr.bf16.mxu1 %v2384_v17  ;;  %v2416_v45 = vld [vmem:[%s3051_s1 + $0x1c8] sm:$0xff]   ;;  %v2425_v52 = vld [vmem:[%s3051_s1 + $0x150] sm:$0xff]   ;;  %v2433_v58 = vld [vmem:[%s2704_s6 + $0xd8] ss:$36 sps:$4 sm:$0xff]  }
  0x18   : > { %v2417_v46 = vld [vmem:[%s3051_s1 + $0x108] sm:$0xff]   ;;  %v2426_v53 = vld [vmem:[%s3051_s1 + $0x1d0] sm:$0xff]   ;;  %v2434_v59 = vld [vmem:[%s2704_s6 + $0xe0] ss:$36 sps:$4 sm:$0xff]  }
  0x19   : > { %2031 = vmatpush3.bf16.msra.mxu0 %v2385_v18  ;;  %v2418_v47 = vld [vmem:[%s3051_s1 + $0x188] sm:$0xff]   ;;  %v2427_v54 = vld [vmem:[%s3051_s1 + $0x110] sm:$0xff]   ;;  %v2435_v60 = vld [vmem:[%s3051_s1 + $0x158] sm:$0xff]  }
  0x1a   : > { %2095 = vmatpush3.bf16.msra.mxu1 %v2386_v19  ;;  %2032 = vmatprep.subr.bf16.mxu0 %v2387_v20  ;;  %v2428_v55 = vld [vmem:[%s3051_s1 + $0x190] sm:$0xff]   ;;  %v2436_v61 = vld [vmem:[%s3051_s1 + $0x1d8] sm:$0xff]   ;;  %v2439_v0 = vld [vmem:[%s2704_s6 + $0x124] ss:$36 sps:$4 sm:$0xff]  }
  0x1b   : > { %2096 = vmatprep.subr.bf16.mxu1 %v2388_v21  ;;  %v2437_v62 = vld [vmem:[%s3051_s1 + $0x118] sm:$0xff]   ;;  %v2441_v1 = vld [vmem:[%s2704_s6 + $0x12c] ss:$36 sps:$4 sm:$0xff]   ;;  %v2443_v2 = vld [vmem:[%s2704_s6 + $0x120] ss:$36 sps:$4 sm:$0xff]  }
  0x1c   : > { %v2438_v63 = vld [vmem:[%s3051_s1 + $0x198] sm:$0xff]   ;;  %v2445_v3 = vld [vmem:[%s3051_s1 + $0x160] sm:$0xff]   ;;  %v2444_v4 = vld [vmem:[%s2704_s6 + $0x128] ss:$36 sps:$4 sm:$0xff]  }
  0x1d   : > { %2033 = vmatpush3.bf16.msra.mxu0 %v2389_v22  ;;  %v2446_v5 = vld [vmem:[%s3051_s1 + $0x1e0] sm:$0xff]   ;;  %v2449_v8 = vld [vmem:[%s2704_s6 + $0x16c] ss:$36 sps:$4 sm:$0xff]   ;;  %v2451_v9 = vld [vmem:[%s2704_s6 + $0x174] ss:$36 sps:$4 sm:$0xff]  }
  0x1e   : > { %2097 = vmatpush3.bf16.msra.mxu1 %v2390_v23  ;;  %2034 = vmatprep.subr.bf16.mxu0 %v2391_v24  ;;  %v2447_v6 = vld [vmem:[%s3051_s1 + $0x120] sm:$0xff]   ;;  %v2455_v10 = vld [vmem:[%s3051_s1 + $0x168] sm:$0xff]   ;;  %v2454_v15 = vld [vmem:[%s2704_s6 + $0x170] ss:$36 sps:$4 sm:$0xff]  }
  0x1f   : > { %2098 = vmatprep.subr.bf16.mxu1 %v2392_v25  ;;  %v2448_v7 = vld [vmem:[%s3051_s1 + $0x1a0] sm:$0xff]   ;;  %v2456_v11 = vld [vmem:[%s3051_s1 + $0x1e8] sm:$0xff]   ;;  %v2459_v16 = vld [vmem:[%s2704_s6 + $0x1b4] ss:$36 sps:$4 sm:$0xff]  }
  0x20   : > { %v2453_v12 = vld [vmem:[%s2704_s6 + $0x168] ss:$36 sps:$4 sm:$0xff]   ;;  %v2461_v17 = vld [vmem:[%s2704_s6 + $0x1bc] ss:$36 sps:$4 sm:$0xff]   ;;  %v2465_v18 = vld [vmem:[%s3051_s1 + $0x170] sm:$0xff]  }
  0x21   : > { %2035 = vmatpush3.bf16.msra.mxu0 %v2393_v26  ;;  %v2457_v13 = vld [vmem:[%s3051_s1 + $0x128] sm:$0xff]   ;;  %v2466_v19 = vld [vmem:[%s3051_s1 + $0x1f0] sm:$0xff]   ;;  %v2464_v23 = vld [vmem:[%s2704_s6 + $0x1b8] ss:$36 sps:$4 sm:$0xff]  }
  0x22   : > { %2099 = vmatpush3.bf16.msra.mxu1 %v2394_v27  ;;  %2036 = vmatprep.subr.bf16.mxu0 %v2395_v28  ;;  %v2458_v14 = vld [vmem:[%s3051_s1 + $0x1a8] sm:$0xff]   ;;  %v2467_v20 = vld [vmem:[%s3051_s1 + $0x130] sm:$0xff]   ;;  %v2469_v24 = vld [vmem:[%s2704_s6 + $0x1fc] ss:$36 sps:$4 sm:$0xff]  }
  0x23   : > { %2100 = vmatprep.subr.bf16.mxu1 %v2396_v29  ;;  %v2468_v21 = vld [vmem:[%s3051_s1 + $0x1b0] sm:$0xff]   ;;  %v2471_v25 = vld [vmem:[%s2704_s6 + $0x204] ss:$36 sps:$4 sm:$0xff]   ;;  %v2475_v26 = vld [vmem:[%s3051_s1 + $0x178] sm:$0xff]  }
  0x24   : > { %v2463_v22 = vld [vmem:[%s2704_s6 + $0x1b0] ss:$36 sps:$4 sm:$0xff]   ;;  %v2476_v27 = vld [vmem:[%s3051_s1 + $0x1f8] sm:$0xff]  }
  0x25   : > { %2037 = vmatpush3.bf16.msra.mxu0 %v2397_v30  ;;  %v2477_v28 = vld [vmem:[%s3051_s1 + $0x138] sm:$0xff]   ;;  %v2479_v35 = vld [vmem:[%s2704_s6 + $0x10] ss:$36 sps:$4 sm:$0xff]  }
  0x26   : > { %2101 = vmatpush3.bf16.msra.mxu1 %v2398_v31  ;;  %2150 = vmatprep.subr.bf16.mxu0 %v2405_v36  ;;  %v2478_v29 = vld [vmem:[%s3051_s1 + $0x1b8] sm:$0xff]   ;;  %v2474_v31 = vld [vmem:[%s2704_s6 + $0x200] ss:$36 sps:$4 sm:$0xff]  }
  0x27   : > { %2214 = vmatprep.subr.bf16.mxu1 %v2406_v37  ;;  %v2473_v30 = vld [vmem:[%s2704_s6 + $0x1f8] ss:$36 sps:$4 sm:$0xff]  }
  0x28   : > { %1293 = vmatmul.mubr.bf16.vlgmr.msra.gmra.mrb[0].mxu0 %v2399_v32  ;;  %v2485_v32 = vld [vmem:[%s3051_s1 + $0x200] sm:$0xff]   ;;  %v2481_v33 = vld [vmem:[%s2704_s6 + $0x14] ss:$36 sps:$4 sm:$0xff]  }
  0x29   : > { %1390 = vmatmul.mubr.bf16.vlgmr.msra.gmra.mrb[0].mxu1 %v2402_v34  ;;  %2151 = vmatpush3.bf16.msra.mxu0 %v2407_v38  ;;  %v2484_v34 = vld [vmem:[%s2704_s6 + $0x1c] ss:$36 sps:$4 sm:$0xff]   ;;  %v2488_v38 = vld [vmem:[%s2704_s6 + $0x64] ss:$36 sps:$4 sm:$0xff]  }
  0x2a   : > { %2215 = vmatpush3.bf16.msra.mxu1 %v2408_v39  ;;  %1300 = vmatprep.mubr.bf16.mxu0 %v2409_v40  ;;  %v2482_v36 = vld [vmem:[%s2704_s6 + $0x18] ss:$36 sps:$4 sm:$0xff]   ;;  %v2492_v39 = vld [vmem:[%s3051_s1 + $0x208] sm:$0xff]   ;;  %v2499_v40 = vld [vmem:[%s3051_s1 + $0x210] sm:$0xff]  }
  0x2b   : > { %1397 = vmatprep.mubr.bf16.mxu1 %v2411_v41  ;;  %2152 = vmatprep.subr.bf16.mxu0 %v2415_v44  ;;  %v2486_v37 = vld [vmem:[%s2704_s6 + $0x5c] ss:$36 sps:$4 sm:$0xff]   ;;  %v2495_v44 = vld [vmem:[%s2704_s6 + $0xac] ss:$36 sps:$4 sm:$0xff]  }
  0x2c   : > { %2216 = vmatprep.subr.bf16.mxu1 %v2416_v45  ;;  %v2490_v41 = vld [vmem:[%s2704_s6 + $0x58] ss:$36 sps:$4 sm:$0xff]  }
  0x2d   : > { %2153 = vmatpush3.bf16.msra.mxu0 %v2417_v46  ;;  %v2506_v45 = vld [vmem:[%s3051_s1 + $0x218] sm:$0xff]   ;;  %v2513_v46 = vld [vmem:[%s3051_s1 + $0x220] sm:$0xff]  }
  0x2e   : > { %2217 = vmatpush3.bf16.msra.mxu1 %v2418_v47  ;;  %2154 = vmatprep.subr.bf16.mxu0 %v2425_v52  ;;  %v2497_v47 = vld [vmem:[%s2704_s6 + $0xa0] ss:$36 sps:$4 sm:$0xff]   ;;  %v2504_v52 = vld [vmem:[%s2704_s6 + $0xe8] ss:$36 sps:$4 sm:$0xff]  }
  0x2f   : > { %2218 = vmatprep.subr.bf16.mxu1 %v2426_v53  ;;  %v2527_v53 = vld [vmem:[%s3051_s1 + $0x230] sm:$0xff]  }
  0x30   : > { %1301 = vmatmul.mubr.bf16.gmra.mrb[4].mxu0 %v2413_v42  ;;  %v2491_v42 = vld [vmem:[%s2704_s6 + $0x60] ss:$36 sps:$4 sm:$0xff]  }
  0x31   : > { %1398 = vmatmul.mubr.bf16.gmra.mrb[4].mxu1 %v2414_v43  ;;  %1308 = vmatprep.mubr.bf16.mxu0 %v2419_v48  ;;  %v2493_v43 = vld [vmem:[%s2704_s6 + $0xa4] ss:$36 sps:$4 sm:$0xff]  }
  0x32   : > { %1405 = vmatprep.mubr.bf16.mxu1 %v2421_v49  ;;  %2155 = vmatpush3.bf16.msra.mxu0 %v2427_v54  ;;  %v2498_v48 = vld [vmem:[%s2704_s6 + $0xa8] ss:$36 sps:$4 sm:$0xff]   ;;  %v2505_v54 = vld [vmem:[%s2704_s6 + $0xf0] ss:$36 sps:$4 sm:$0xff]  }
  0x33   : > { %2219 = vmatpush3.bf16.msra.mxu1 %v2428_v55  ;;  %2156 = vmatprep.subr.bf16.mxu0 %v2435_v60  ;;  %v2500_v49 = vld [vmem:[%s2704_s6 + $0xec] ss:$36 sps:$4 sm:$0xff]   ;;  %v2507_v55 = vld [vmem:[%s2704_s6 + $0x134] ss:$36 sps:$4 sm:$0xff]   ;;  %v2514_v60 = vld [vmem:[%s2704_s6 + $0x17c] ss:$36 sps:$4 sm:$0xff]  }
  0x34   : > { %2220 = vmatprep.subr.bf16.mxu1 %v2436_v61  ;;  %v2516_v61 = vld [vmem:[%s2704_s6 + $0x184] ss:$36 sps:$4 sm:$0xff]  }
  0x36   : > { %2157 = vmatpush3.bf16.msra.mxu0 %v2437_v62  ;;  %v2518_v62 = vld [vmem:[%s2704_s6 + $0x178] ss:$36 sps:$4 sm:$0xff]  }
  0x37   : > { %2221 = vmatpush3.bf16.msra.mxu1 %v2438_v63  ;;  %2158 = vmatprep.subr.bf16.mxu0 %v2445_v3  ;;  %v2519_v63 = vld [vmem:[%s2704_s6 + $0x180] ss:$36 sps:$4 sm:$0xff]   ;;  %v2526_v3 = vld [vmem:[%s2704_s6 + $0x1c8] ss:$36 sps:$4 sm:$0xff]  }
  0x38   : > { %1309 = vmatmul.mubr.bf16.gmra.mrb[8].mxu0 %v2423_v50  ;;  %2222 = vmatprep.subr.bf16.mxu1 %v2446_v5  ;;  %v2502_v50 = vld [vmem:[%s2704_s6 + $0xf4] ss:$36 sps:$4 sm:$0xff]  }
  0x39   : > { %1406 = vmatmul.mubr.bf16.gmra.mrb[8].mxu1 %v2424_v51  ;;  %1316 = vmatprep.mubr.bf16.mxu0 %v2429_v56  ;;  %v2520_v51 = vld [vmem:[%s3051_s1 + $0x228] sm:$0xff]   ;;  %v2509_v56 = vld [vmem:[%s2704_s6 + $0x13c] ss:$36 sps:$4 sm:$0xff]   ;;  %v2530_v5 = vld [vmem:[%s2704_s6 + $0x214] ss:$36 sps:$4 sm:$0xff]  }
  0x3a   : > { %1413 = vmatprep.mubr.bf16.mxu1 %v2431_v57  ;;  %2159 = vmatpush3.bf16.msra.mxu0 %v2447_v6  ;;  %v2534_v57 = vld [vmem:[%s3051_s1 + $0x238] sm:$0xff]   ;;  %v2532_v6 = vld [vmem:[%s2704_s6 + $0x208] ss:$36 sps:$4 sm:$0xff]  }
  0x3b   : > { %2223 = vmatpush3.bf16.msra.mxu1 %v2448_v7  ;;  %2160 = vmatprep.subr.bf16.mxu0 %v2455_v10  ;;  %v2533_v7 = vld [vmem:[%s2704_s6 + $0x210] ss:$36 sps:$4 sm:$0xff]   ;;  %v2537_v10 = vld [vmem:[%s2704_s6 + $0x68] ss:$36 sps:$4 sm:$0xff]  }
  0x3c   : > { %2224 = vmatprep.subr.bf16.mxu1 %v2456_v11  ;;  %v2538_v11 = vld [vmem:[%s2704_s6 + $0x188] ss:$36 sps:$4 sm:$0xff]  }
  0x3e   : > { %2161 = vmatpush3.bf16.msra.mxu0 %v2457_v13  ;;  %v2540_v13 = vld [vmem:[%s2704_s6 + $0x1d0] ss:$36 sps:$4 sm:$0xff]  }
  0x3f   : > { %2225 = vmatpush3.bf16.msra.mxu1 %v2458_v14  ;;  %2162 = vmatprep.subr.bf16.mxu0 %v2465_v18  ;;  %v2541_v14 = vld [vmem:[%s2704_s6 + $0xf8] ss:$36 sps:$4 sm:$0xff]   ;;  %v2907_v18 = vld [vmem:[%s3052_s2] ss:$0 sm:$0xff] }
  0x40   : > { %1317 = vmatmul.mubr.bf16.gmra.mrb[12].mxu0 %v2433_v58  ;;  %2226 = vmatprep.subr.bf16.mxu1 %v2466_v19  ;;  %v2511_v58 = vld [vmem:[%s2704_s6 + $0x130] ss:$36 sps:$4 sm:$0xff]  }
  0x41   : > { %1414 = vmatmul.mubr.bf16.gmra.mrb[12].mxu1 %v2434_v59  ;;  %1324 = vmatprep.mubr.bf16.mxu0 %v2439_v0  ;;  %v2512_v59 = vld [vmem:[%s2704_s6 + $0x138] ss:$36 sps:$4 sm:$0xff]   ;;  %v2521_v0 = vld [vmem:[%s2704_s6 + $0x1c4] ss:$36 sps:$4 sm:$0xff]  }
  0x42   : > { %1421 = vmatprep.mubr.bf16.mxu1 %v2441_v1  ;;  %2163 = vmatpush3.bf16.msra.mxu0 %v2467_v20  ;;  %v2523_v1 = vld [vmem:[%s2704_s6 + $0x1cc] ss:$36 sps:$4 sm:$0xff]  }
  0x43   : > { %2227 = vmatpush3.bf16.msra.mxu1 %v2468_v21  ;;  %2164 = vmatprep.subr.bf16.mxu0 %v2475_v26 }
  0x44   : > { %2228 = vmatprep.subr.bf16.mxu1 %v2476_v27 }
  0x46   : > { %2165 = vmatpush3.bf16.msra.mxu0 %v2477_v28 }
  0x47   : > { %2229 = vmatpush3.bf16.msra.mxu1 %v2478_v29  ;;  %2294 = vmatprep.subr.bf16.mxu0 %v2485_v32 }
  0x48   : > { %1325 = vmatmul.mubr.bf16.gmra.mrb[16].mxu0 %v2443_v2  ;;  %2326 = vmatprep.subr.bf16.mxu1 %v2485_v32  ;;  %v2525_v2 = vld [vmem:[%s2704_s6 + $0x1c0] ss:$36 sps:$4 sm:$0xff]  }
  0x49   : > { %1422 = vmatmul.mubr.bf16.gmra.mrb[16].mxu1 %v2444_v4  ;;  %1332 = vmatprep.mubr.bf16.mxu0 %v2449_v8  ;;  %v2528_v4 = vld [vmem:[%s2704_s6 + $0x20c] ss:$36 sps:$4 sm:$0xff]   ;;  %v2535_v8 = vld [vmem:[%s2704_s6 + $0x20] ss:$36 sps:$4 sm:$0xff]  }
  0x4a   : > { %1429 = vmatprep.mubr.bf16.mxu1 %v2451_v9  ;;  %v2536_v9 = vld [vmem:[%s2704_s6 + $0x140] ss:$36 sps:$4 sm:$0xff]  }
  0x50   : > { %1333 = vmatmul.mubr.bf16.gmra.mrb[20].mxu0 %v2453_v12  ;;  %v2539_v12 = vld [vmem:[%s2704_s6 + $0xb0] ss:$36 sps:$4 sm:$0xff]  }
  0x51   : > { %1430 = vmatmul.mubr.bf16.gmra.mrb[20].mxu1 %v2454_v15  ;;  %1340 = vmatprep.mubr.bf16.mxu0 %v2459_v16  ;;  %v2542_v15 = vld [vmem:[%s2704_s6 + $0x218] ss:$36 sps:$4 sm:$0xff]   ;;  %s1874_s6 = sshll.u32 %s3059_s23, 3 }
  0x52   : > { %1437 = vmatprep.mubr.bf16.mxu1 %v2461_v17  ;;  %s2997_s7 = scalar_lea.vmem %s3053_s3, %s1874_s6 }
  0x58   : > { %1341 = vmatmul.mubr.bf16.gmra.mrb[24].mxu0 %v2463_v22 }
  0x59   : > { %1438 = vmatmul.mubr.bf16.gmra.mrb[24].mxu1 %v2464_v23  ;;  %1348 = vmatprep.mubr.bf16.mxu0 %v2469_v24 }
  0x5a   : > { %1445 = vmatprep.mubr.bf16.mxu1 %v2471_v25 }
  0x60   : > { %1349 = vmatmul.mubr.bf16.gmra.mrb[28].mxu0 %v2473_v30 }
  0x61   : > { %1446 = vmatmul.mubr.bf16.gmra.mrb[28].mxu1 %v2474_v31  ;;  %1486 = vmatprep.mubr.bf16.mxu0 %v2481_v33 }
  0x62   : > { %1583 = vmatprep.mubr.bf16.mxu1 %v2484_v34 }
  0x68   : > { %1487 = vmatmul.mubr.bf16.vlgmr.msra.gmra.mrb[32].mxu0 %v2479_v35 }
  0x69   : > { %1584 = vmatmul.mubr.bf16.vlgmr.msra.gmra.mrb[32].mxu1 %v2482_v36  ;;  %2295 = vmatpush3.bf16.msra.mxu0 %v2485_v32 }
  0x6a   : > { %2334 = vmatpush3.bf16.msra.mxu1 %v2485_v32  ;;  %1494 = vmatprep.mubr.bf16.mxu0 %v2486_v37 }
  0x6b   : > { %1591 = vmatprep.mubr.bf16.mxu1 %v2488_v38  ;;  %2296 = vmatprep.subr.bf16.mxu0 %v2492_v39 }
  0x6c   : > { %2327 = vmatprep.subr.bf16.mxu1 %v2492_v39 }
  0x6d   : > { %2297 = vmatpush3.bf16.msra.mxu0 %v2492_v39 }
  0x6e   : > { %2335 = vmatpush3.bf16.msra.mxu1 %v2492_v39  ;;  %2298 = vmatprep.subr.bf16.mxu0 %v2499_v40 }
  0x6f   : > { %2328 = vmatprep.subr.bf16.mxu1 %v2499_v40 }
  0x70   : > { %1495 = vmatmul.mubr.bf16.gmra.mrb[36].mxu0 %v2490_v41 }
  0x71   : > { %1592 = vmatmul.mubr.bf16.gmra.mrb[36].mxu1 %v2491_v42  ;;  %1502 = vmatprep.mubr.bf16.mxu0 %v2493_v43 }
  0x72   : > { %1599 = vmatprep.mubr.bf16.mxu1 %v2495_v44  ;;  %2299 = vmatpush3.bf16.msra.mxu0 %v2499_v40 }
  0x73   : > { %2336 = vmatpush3.bf16.msra.mxu1 %v2499_v40  ;;  %2300 = vmatprep.subr.bf16.mxu0 %v2506_v45 }
  0x74   : > { %2329 = vmatprep.subr.bf16.mxu1 %v2506_v45 }
  0x76   : > { %2301 = vmatpush3.bf16.msra.mxu0 %v2506_v45 }
  0x77   : > { %2337 = vmatpush3.bf16.msra.mxu1 %v2506_v45  ;;  %2302 = vmatprep.subr.bf16.mxu0 %v2513_v46 }
  0x78   : > { %1503 = vmatmul.mubr.bf16.gmra.mrb[40].mxu0 %v2497_v47  ;;  %2330 = vmatprep.subr.bf16.mxu1 %v2513_v46 }
  0x79   : > { %1600 = vmatmul.mubr.bf16.gmra.mrb[40].mxu1 %v2498_v48  ;;  %1510 = vmatprep.mubr.bf16.mxu0 %v2500_v49 }
  0x7a   : > { %1607 = vmatprep.mubr.bf16.mxu1 %v2502_v50  ;;  %2303 = vmatpush3.bf16.msra.mxu0 %v2513_v46 }
  0x7b   : > { %2338 = vmatpush3.bf16.msra.mxu1 %v2513_v46  ;;  %2304 = vmatprep.subr.bf16.mxu0 %v2520_v51 }
  0x7c   : > { %2331 = vmatprep.subr.bf16.mxu1 %v2520_v51 }
  0x7e   : > { %2305 = vmatpush3.bf16.msra.mxu0 %v2520_v51 }
  0x7f   : > { %2339 = vmatpush3.bf16.msra.mxu1 %v2520_v51  ;;  %2306 = vmatprep.subr.bf16.mxu0 %v2527_v53 }
  0x80   : > { %1511 = vmatmul.mubr.bf16.gmra.mrb[44].mxu0 %v2504_v52  ;;  %2332 = vmatprep.subr.bf16.mxu1 %v2527_v53 }
  0x81   : > { %1608 = vmatmul.mubr.bf16.gmra.mrb[44].mxu1 %v2505_v54  ;;  %1518 = vmatprep.mubr.bf16.mxu0 %v2507_v55 }
  0x82   : > { %1615 = vmatprep.mubr.bf16.mxu1 %v2509_v56  ;;  %2307 = vmatpush3.bf16.msra.mxu0 %v2527_v53 }
  0x83   : > { %2340 = vmatpush3.bf16.msra.mxu1 %v2527_v53  ;;  %2308 = vmatprep.subr.bf16.mxu0 %v2534_v57 }
  0x84   : > { %2333 = vmatprep.subr.bf16.mxu1 %v2534_v57 }
  0x86   : > { %2309 = vmatpush3.bf16.msra.mxu0 %v2534_v57 }
  0x87   : > { %2341 = vmatpush3.bf16.msra.mxu1 %v2534_v57 }
  0x88   : > { %1519 = vmatmul.mubr.bf16.gmra.mrb[48].mxu0 %v2511_v58 }
  0x89   : > { %1616 = vmatmul.mubr.bf16.gmra.mrb[48].mxu1 %v2512_v59  ;;  %1526 = vmatprep.mubr.bf16.mxu0 %v2514_v60 }
  0x8a   : > { %1623 = vmatprep.mubr.bf16.mxu1 %v2516_v61 }
  0x90   : > { %1527 = vmatmul.mubr.bf16.gmra.mrb[52].mxu0 %v2518_v62 }
  0x91   : > { %1624 = vmatmul.mubr.bf16.gmra.mrb[52].mxu1 %v2519_v63  ;;  %1534 = vmatprep.mubr.bf16.mxu0 %v2521_v0 }
  0x92   : > { %1631 = vmatprep.mubr.bf16.mxu1 %v2523_v1 }
  0x98   : > { %1535 = vmatmul.mubr.bf16.gmra.mrb[56].mxu0 %v2525_v2 }
  0x99   : > { %1632 = vmatmul.mubr.bf16.gmra.mrb[56].mxu1 %v2526_v3  ;;  %1542 = vmatprep.mubr.bf16.mxu0 %v2528_v4 }
  0x9a   : > { %1639 = vmatprep.mubr.bf16.mxu1 %v2530_v5 }
  0xa0   : > { %1543 = vmatmul.mubr.bf16.gmra.mrb[60].mxu0 %v2532_v6 }
  0xa1   : > { %1640 = vmatmul.mubr.bf16.gmra.mrb[60].mxu1 %v2533_v7  ;;  %2310 = vmatprep.mubr.bf16.mxu0 %v2535_v8 }
  0xa2   : > { %2318 = vmatprep.mubr.bf16.mxu1 %v2536_v9 }
  0xa8   : > { %2311 = vmatmul.mubr.bf16.vlgmr.msra.gmra.mrb[64].mxu0 %v2537_v10 }
  0xa9   : > { %2319 = vmatmul.mubr.bf16.vlgmr.msra.gmra.mrb[64].mxu1 %v2538_v11  ;;  %2314 = vmatprep.mubr.bf16.mxu0 %v2539_v12 }
  0xaa   : > { %2322 = vmatprep.mubr.bf16.mxu1 %v2540_v13 }
  0xb0   : > { %2315 = vmatmul.mubr.bf16.gmra.mrb[68].mxu0 %v2541_v14 }
  0xb1   : > { %2323 = vmatmul.mubr.bf16.gmra.mrb[68].mxu1 %v2542_v15 }
  0xfb   : > { %v2038_v16 = vpop.f32.mrb[0].mxu0 }
  0xfc   : > { %v2102_v17 = vpop.f32.mrb[0].mxu1  ;;  %v2039_v19 = vpop.f32.mrb[1].mxu0 }
  0xfd   : > { %v2040_v20 = vadd.f32 %v2039_v19, %v2038_v16  ;;  %v2103_v21 = vpop.f32.mrb[1].mxu1  ;;  %v2041_v22 = vpop.f32.mrb[2].mxu0 }
  0xfe   : > { %v2104_v23 = vadd.f32 %v2103_v21, %v2102_v17  ;;  %v2105_v24 = vpop.f32.mrb[2].mxu1  ;;  %v2042_v25 = vpop.f32.mrb[3].mxu0 }
  0xff   : > { %v1295_v26 = vadd.f32 %v2040_v20, %v2907_v18  ;;  %v2043_v27 = vadd.f32 %v2042_v25, %v2041_v22  ;;  %v2106_v28 = vpop.f32.mrb[3].mxu1 }
 0x100   : > { %v2107_v29 = vadd.f32 %v2106_v28, %v2105_v24 }
 0x101   : > { %v2910_v30 = vadd.f32 %v2104_v23, %v1295_v26  ;;  %v1298_v31 = vadd.f32 %v2043_v27, %v2907_v18 }
 0x103   : > { %v2913_v32 = vadd.f32 %v2107_v29, %v1298_v31  ;;  %v2044_v33 = vpop.f32.mrb[4].mxu0 }
 0x104   : > { %v2108_v34 = vpop.f32.mrb[4].mxu1  ;;  %v2045_v35 = vpop.f32.mrb[5].mxu0 }
 0x105   : > { %v2046_v36 = vadd.f32 %v2045_v35, %v2044_v33  ;;  %v2109_v37 = vpop.f32.mrb[5].mxu1  ;;  %v2047_v38 = vpop.f32.mrb[6].mxu0 }
 0x106   : > { %v2110_v39 = vadd.f32 %v2109_v37, %v2108_v34  ;;  %v2111_v40 = vpop.f32.mrb[6].mxu1  ;;  %v2048_v41 = vpop.f32.mrb[7].mxu0 }
 0x107   : > { %v1303_v42 = vadd.f32 %v2046_v36, %v2907_v18  ;;  %v2049_v43 = vadd.f32 %v2048_v41, %v2047_v38  ;;  %v2112_v44 = vpop.f32.mrb[7].mxu1 }
 0x108   : > { %v2113_v45 = vadd.f32 %v2112_v44, %v2111_v40 }
 0x109   : > { %v2916_v46 = vadd.f32 %v2110_v39, %v1303_v42  ;;  %v1306_v47 = vadd.f32 %v2049_v43, %v2907_v18 }
 0x10b   : > { %v2919_v48 = vadd.f32 %v2113_v45, %v1306_v47  ;;  %v2050_v49 = vpop.f32.mrb[8].mxu0 }
 0x10c   : > { %v2114_v50 = vpop.f32.mrb[8].mxu1  ;;  %v2051_v51 = vpop.f32.mrb[9].mxu0 }
 0x10d   : > { %v2052_v52 = vadd.f32 %v2051_v51, %v2050_v49  ;;  %v2115_v53 = vpop.f32.mrb[9].mxu1  ;;  %v2053_v54 = vpop.f32.mrb[10].mxu0 }
 0x10e   : > { %v2116_v55 = vadd.f32 %v2115_v53, %v2114_v50  ;;  %v2117_v56 = vpop.f32.mrb[10].mxu1  ;;  %v2054_v57 = vpop.f32.mrb[11].mxu0 }
 0x10f   : > { %v1311_v58 = vadd.f32 %v2052_v52, %v2907_v18  ;;  %v2055_v59 = vadd.f32 %v2054_v57, %v2053_v54  ;;  %v2118_v60 = vpop.f32.mrb[11].mxu1 }
 0x110   : > { %v2119_v61 = vadd.f32 %v2118_v60, %v2117_v56 }
 0x111   : > { %v2922_v62 = vadd.f32 %v2116_v55, %v1311_v58  ;;  %v1314_v63 = vadd.f32 %v2055_v59, %v2907_v18 }
 0x113   : > { %v2925_v0 = vadd.f32 %v2119_v61, %v1314_v63  ;;  %v2056_v1 = vpop.f32.mrb[12].mxu0 }
 0x114   : > { %v2120_v2 = vpop.f32.mrb[12].mxu1  ;;  %v2057_v3 = vpop.f32.mrb[13].mxu0 }
 0x115   : > { %v2058_v4 = vadd.f32 %v2057_v3, %v2056_v1  ;;  %v2121_v5 = vpop.f32.mrb[13].mxu1  ;;  %v2059_v6 = vpop.f32.mrb[14].mxu0 }
 0x116   : > { %v2122_v7 = vadd.f32 %v2121_v5, %v2120_v2  ;;  %v2123_v8 = vpop.f32.mrb[14].mxu1  ;;  %v2060_v9 = vpop.f32.mrb[15].mxu0 }
 0x117   : > { %v1319_v10 = vadd.f32 %v2058_v4, %v2907_v18  ;;  %v2061_v11 = vadd.f32 %v2060_v9, %v2059_v6  ;;  %v2124_v12 = vpop.f32.mrb[15].mxu1 }
 0x118   : > { %v2125_v13 = vadd.f32 %v2124_v12, %v2123_v8 }
 0x119   : > { %v2928_v14 = vadd.f32 %v2122_v7, %v1319_v10  ;;  %v1322_v15 = vadd.f32 %v2061_v11, %v2907_v18 }
 0x11b   : > { %v2931_v16 = vadd.f32 %v2125_v13, %v1322_v15  ;;  %v2062_v17 = vpop.f32.mrb[16].mxu0 }
 0x11c   : > { %v2126_v19 = vpop.f32.mrb[16].mxu1  ;;  %v2063_v20 = vpop.f32.mrb[17].mxu0 }
 0x11d   : > { %v2064_v21 = vadd.f32 %v2063_v20, %v2062_v17  ;;  %v2127_v22 = vpop.f32.mrb[17].mxu1  ;;  %v2065_v23 = vpop.f32.mrb[18].mxu0 }
 0x11e   : > { %v2128_v24 = vadd.f32 %v2127_v22, %v2126_v19  ;;  %v2129_v25 = vpop.f32.mrb[18].mxu1  ;;  %v2066_v26 = vpop.f32.mrb[19].mxu0 }
 0x11f   : > { %v1327_v27 = vadd.f32 %v2064_v21, %v2907_v18  ;;  %v2067_v28 = vadd.f32 %v2066_v26, %v2065_v23  ;;  %v2130_v29 = vpop.f32.mrb[19].mxu1 }
 0x120   : > { %v2131_v31 = vadd.f32 %v2130_v29, %v2129_v25 }
 0x121   : > { %v2934_v33 = vadd.f32 %v2128_v24, %v1327_v27  ;;  %v1330_v34 = vadd.f32 %v2067_v28, %v2907_v18 }
 0x123   : > { %v2937_v35 = vadd.f32 %v2131_v31, %v1330_v34  ;;  %v2068_v36 = vpop.f32.mrb[20].mxu0 }
 0x124   : > { %v2132_v37 = vpop.f32.mrb[20].mxu1  ;;  %v2069_v38 = vpop.f32.mrb[21].mxu0 }
 0x125   : > { %v2070_v39 = vadd.f32 %v2069_v38, %v2068_v36  ;;  %v2133_v40 = vpop.f32.mrb[21].mxu1  ;;  %v2071_v41 = vpop.f32.mrb[22].mxu0 }
 0x126   : > { %v2134_v42 = vadd.f32 %v2133_v40, %v2132_v37  ;;  %v2135_v43 = vpop.f32.mrb[22].mxu1  ;;  %v2072_v44 = vpop.f32.mrb[23].mxu0 }
 0x127   : > { %v1335_v45 = vadd.f32 %v2070_v39, %v2907_v18  ;;  %v2073_v47 = vadd.f32 %v2072_v44, %v2071_v41  ;;  %v2136_v49 = vpop.f32.mrb[23].mxu1 }
 0x128   : > { %v2137_v50 = vadd.f32 %v2136_v49, %v2135_v43 }
 0x129   : > { %v2940_v51 = vadd.f32 %v2134_v42, %v1335_v45  ;;  %v1338_v52 = vadd.f32 %v2073_v47, %v2907_v18 }
 0x12b   : > { %v2943_v53 = vadd.f32 %v2137_v50, %v1338_v52  ;;  %v2074_v54 = vpop.f32.mrb[24].mxu0 }
 0x12c   : > { %v2138_v55 = vpop.f32.mrb[24].mxu1  ;;  %v2075_v56 = vpop.f32.mrb[25].mxu0 }
 0x12d   : > { %v2076_v57 = vadd.f32 %v2075_v56, %v2074_v54  ;;  %v2139_v58 = vpop.f32.mrb[25].mxu1  ;;  %v2077_v59 = vpop.f32.mrb[26].mxu0 }
 0x12e   : > { %v2140_v60 = vadd.f32 %v2139_v58, %v2138_v55  ;;  %v2141_v61 = vpop.f32.mrb[26].mxu1  ;;  %v2078_v63 = vpop.f32.mrb[27].mxu0 }
 0x12f   : > { %v1343_v1 = vadd.f32 %v2076_v57, %v2907_v18  ;;  %v2079_v2 = vadd.f32 %v2078_v63, %v2077_v59  ;;  %v2142_v3 = vpop.f32.mrb[27].mxu1 }
 0x130   : > { %v2143_v4 = vadd.f32 %v2142_v3, %v2141_v61 }
 0x131   : > { %v2946_v5 = vadd.f32 %v2140_v60, %v1343_v1  ;;  %v1346_v6 = vadd.f32 %v2079_v2, %v2907_v18 }
 0x133   : > { %v2949_v7 = vadd.f32 %v2143_v4, %v1346_v6  ;;  %v2080_v8 = vpop.f32.mrb[28].mxu0 }
 0x134   : > { %v2144_v9 = vpop.f32.mrb[28].mxu1  ;;  %v2081_v10 = vpop.f32.mrb[29].mxu0 }
 0x135   : > { %v2082_v11 = vadd.f32 %v2081_v10, %v2080_v8  ;;  %v2145_v12 = vpop.f32.mrb[29].mxu1  ;;  %v2083_v13 = vpop.f32.mrb[30].mxu0 }
 0x136   : > { %v2146_v15 = vadd.f32 %v2145_v12, %v2144_v9  ;;  %v2147_v17 = vpop.f32.mrb[30].mxu1  ;;  %v2084_v19 = vpop.f32.mrb[31].mxu0 }
 0x137   : > { %v1351_v20 = vadd.f32 %v2082_v11, %v2907_v18  ;;  %v2085_v21 = vadd.f32 %v2084_v19, %v2083_v13  ;;  %v2148_v22 = vpop.f32.mrb[31].mxu1 }
 0x138   : > { %v2149_v23 = vadd.f32 %v2148_v22, %v2147_v17 }
 0x139   : > { %v2952_v24 = vadd.f32 %v2146_v15, %v1351_v20  ;;  %v1354_v25 = vadd.f32 %v2085_v21, %v2907_v18 }
 0x13b   : > { %v2955_v26 = vadd.f32 %v2149_v23, %v1354_v25  ;;  %v2166_v27 = vpop.f32.mrb[32].mxu0 }
 0x13c   : > { %v2230_v28 = vpop.f32.mrb[32].mxu1  ;;  %v2167_v29 = vpop.f32.mrb[33].mxu0 }
 0x13d   : > { %v2168_v31 = vadd.f32 %v2167_v29, %v2166_v27  ;;  %v2231_v34 = vpop.f32.mrb[33].mxu1  ;;  %v2169_v36 = vpop.f32.mrb[34].mxu0 }
 0x13e   : > { %v2232_v37 = vadd.f32 %v2231_v34, %v2230_v28  ;;  %v2233_v38 = vpop.f32.mrb[34].mxu1  ;;  %v2170_v39 = vpop.f32.mrb[35].mxu0 }
 0x13f   : > { %v1489_v40 = vadd.f32 %v2168_v31, %v2910_v30  ;;  %v2171_v41 = vadd.f32 %v2170_v39, %v2169_v36  ;;  %v2234_v42 = vpop.f32.mrb[35].mxu1 }
 0x140   : > { %v2235_v43 = vadd.f32 %v2234_v42, %v2233_v38 }
 0x141   : > { %v1492_v44 = vadd.f32 %v2171_v41, %v2913_v32  ;;  %v2959_v45 = vadd.f32 %v2232_v37, %v1489_v40 }
 0x143   : > { %v2172_v18 = vpop.f32.mrb[36].mxu0  ;;  %v2961_v47 = vadd.f32 %v2235_v43, %v1492_v44 }
 0x144   : > { %v2236_v49 = vpop.f32.mrb[36].mxu1  ;;  %v2173_v50 = vpop.f32.mrb[37].mxu0 }
 0x145   : > { %v2174_v52 = vadd.f32 %v2173_v50, %v2172_v18  ;;  %v2237_v54 = vpop.f32.mrb[37].mxu1  ;;  %v2175_v55 = vpop.f32.mrb[38].mxu0 }
 0x146   : > { %v2238_v56 = vadd.f32 %v2237_v54, %v2236_v49  ;;  %v2239_v57 = vpop.f32.mrb[38].mxu1  ;;  %v2176_v58 = vpop.f32.mrb[39].mxu0 }
 0x147   : > { %v1497_v30 = vadd.f32 %v2174_v52, %v2916_v46  ;;  %v2177_v59 = vadd.f32 %v2176_v58, %v2175_v55  ;;  %v2240_v60 = vpop.f32.mrb[39].mxu1 }
 0x148   : > { %v2241_v61 = vadd.f32 %v2240_v60, %v2239_v57 }
 0x149   : > { %v1500_v32 = vadd.f32 %v2177_v59, %v2919_v48  ;;  %v2965_v63 = vadd.f32 %v2238_v56, %v1497_v30 }
 0x14b   : > { %v2178_v1 = vpop.f32.mrb[40].mxu0  ;;  %v2967_v2 = vadd.f32 %v2241_v61, %v1500_v32 }
 0x14c   : > { %v2242_v3 = vpop.f32.mrb[40].mxu1  ;;  %v2179_v4 = vpop.f32.mrb[41].mxu0 }
 0x14d   : > { %v2180_v6 = vadd.f32 %v2179_v4, %v2178_v1  ;;  %v2243_v8 = vpop.f32.mrb[41].mxu1  ;;  %v2181_v9 = vpop.f32.mrb[42].mxu0 }
 0x14e   : > { %v2244_v10 = vadd.f32 %v2243_v8, %v2242_v3  ;;  %v2245_v11 = vpop.f32.mrb[42].mxu1  ;;  %v2182_v12 = vpop.f32.mrb[43].mxu0 }
 0x14f   : > { %v1505_v46 = vadd.f32 %v2180_v6, %v2922_v62  ;;  %v2183_v13 = vadd.f32 %v2182_v12, %v2181_v9  ;;  %v2246_v15 = vpop.f32.mrb[43].mxu1 }
 0x150   : > { %v2247_v17 = vadd.f32 %v2246_v15, %v2245_v11 }
 0x151   : > { %v1508_v48 = vadd.f32 %v2183_v13, %v2925_v0  ;;  %v2971_v19 = vadd.f32 %v2244_v10, %v1505_v46 }
 0x153   : > { %v2184_v20 = vpop.f32.mrb[44].mxu0  ;;  %v2973_v21 = vadd.f32 %v2247_v17, %v1508_v48 }
 0x154   : > { %v2248_v22 = vpop.f32.mrb[44].mxu1  ;;  %v2185_v23 = vpop.f32.mrb[45].mxu0 }
 0x155   : > { %v2186_v25 = vadd.f32 %v2185_v23, %v2184_v20  ;;  %v2249_v27 = vpop.f32.mrb[45].mxu1  ;;  %v2187_v28 = vpop.f32.mrb[46].mxu0 }
 0x156   : > { %v2250_v29 = vadd.f32 %v2249_v27, %v2248_v22  ;;  %v2251_v31 = vpop.f32.mrb[46].mxu1  ;;  %v2188_v34 = vpop.f32.mrb[47].mxu0 }
 0x157   : > { %v1513_v62 = vadd.f32 %v2186_v25, %v2928_v14  ;;  %v2189_v36 = vadd.f32 %v2188_v34, %v2187_v28  ;;  %v2252_v37 = vpop.f32.mrb[47].mxu1 }
 0x158   : > { %v2253_v38 = vadd.f32 %v2252_v37, %v2251_v31 }
 0x159   : > { %v1516_v0 = vadd.f32 %v2189_v36, %v2931_v16  ;;  %v2977_v39 = vadd.f32 %v2250_v29, %v1513_v62 }
 0x15b   : > { %v2190_v40 = vpop.f32.mrb[48].mxu0  ;;  %v2979_v41 = vadd.f32 %v2253_v38, %v1516_v0 }
 0x15c   : > { %v2254_v42 = vpop.f32.mrb[48].mxu1  ;;  %v2191_v43 = vpop.f32.mrb[49].mxu0 }
 0x15d   : > { %v2192_v44 = vadd.f32 %v2191_v43, %v2190_v40  ;;  %v2255_v18 = vpop.f32.mrb[49].mxu1  ;;  %v2193_v49 = vpop.f32.mrb[50].mxu0 }
 0x15e   : > { %v2256_v50 = vadd.f32 %v2255_v18, %v2254_v42  ;;  %v2257_v52 = vpop.f32.mrb[50].mxu1  ;;  %v2194_v54 = vpop.f32.mrb[51].mxu0 }
 0x15f   : > { %v1521_v14 = vadd.f32 %v2192_v44, %v2934_v33  ;;  %v2195_v55 = vadd.f32 %v2194_v54, %v2193_v49  ;;  %v2258_v56 = vpop.f32.mrb[51].mxu1 }
 0x160   : > { %v2259_v57 = vadd.f32 %v2258_v56, %v2257_v52 }
 0x161   : > { %v1524_v16 = vadd.f32 %v2195_v55, %v2937_v35  ;;  %v1618_v58 = vadd.f32 %v2256_v50, %v1521_v14 }
 0x163   : > { %v2196_v30 = vpop.f32.mrb[52].mxu0  ;;  %v2983_v59 = vadd.f32 %v2259_v57, %v1524_v16 }
 0x164   : > { %v2260_v60 = vpop.f32.mrb[52].mxu1  ;;  %v2197_v61 = vpop.f32.mrb[53].mxu0 }
 0x165   : > { %v2198_v32 = vadd.f32 %v2197_v61, %v2196_v30  ;;  %v2261_v1 = vpop.f32.mrb[53].mxu1  ;;  %v2199_v3 = vpop.f32.mrb[54].mxu0 }
 0x166   : > { %v2262_v4 = vadd.f32 %v2261_v1, %v2260_v60  ;;  %v2263_v6 = vpop.f32.mrb[54].mxu1  ;;  %v2200_v8 = vpop.f32.mrb[55].mxu0 }
 0x167   : > { %v1529_v9 = vadd.f32 %v2198_v32, %v2940_v51  ;;  %v2201_v33 = vadd.f32 %v2200_v8, %v2199_v3  ;;  %v2264_v10 = vpop.f32.mrb[55].mxu1 }
 0x168   : > { %v2265_v11 = vadd.f32 %v2264_v10, %v2263_v6 }
 0x169   : > { %v1532_v12 = vadd.f32 %v2201_v33, %v2943_v53  ;;  %v1626_v35 = vadd.f32 %v2262_v4, %v1529_v9 }
 0x16b   : > { %v2202_v46 = vpop.f32.mrb[56].mxu0  ;;  %v1629_v13 = vadd.f32 %v2265_v11, %v1532_v12 }
 0x16c   : > { %v2266_v15 = vpop.f32.mrb[56].mxu1  ;;  %v2203_v17 = vpop.f32.mrb[57].mxu0 }
 0x16d   : > { %v2204_v48 = vadd.f32 %v2203_v17, %v2202_v46  ;;  %v2267_v20 = vpop.f32.mrb[57].mxu1  ;;  %v2205_v22 = vpop.f32.mrb[58].mxu0 }
 0x16e   : > { %v2268_v23 = vadd.f32 %v2267_v20, %v2266_v15  ;;  %v2269_v25 = vpop.f32.mrb[58].mxu1  ;;  %v2206_v27 = vpop.f32.mrb[59].mxu0 }
 0x16f   : > { %v1537_v28 = vadd.f32 %v2204_v48, %v2946_v5  ;;  %v2207_v29 = vadd.f32 %v2206_v27, %v2205_v22  ;;  %v2270_v51 = vpop.f32.mrb[59].mxu1 }
 0x170   : > { %v2271_v31 = vadd.f32 %v2270_v51, %v2269_v25 }
 0x171   : > { %v1540_v34 = vadd.f32 %v2207_v29, %v2949_v7  ;;  %v1634_v53 = vadd.f32 %v2268_v23, %v1537_v28 }
 0x173   : > { %v2208_v62 = vpop.f32.mrb[60].mxu0  ;;  %v2989_v36 = vadd.f32 %v2271_v31, %v1540_v34 }
 0x174   : > { %v2272_v37 = vpop.f32.mrb[60].mxu1  ;;  %v2209_v38 = vpop.f32.mrb[61].mxu0 }
 0x175   : > { %v2210_v0 = vadd.f32 %v2209_v38, %v2208_v62  ;;  %v2273_v40 = vpop.f32.mrb[61].mxu1  ;;  %v2211_v42 = vpop.f32.mrb[62].mxu0 }
 0x176   : > { %v2274_v43 = vadd.f32 %v2273_v40, %v2272_v37  ;;  %v2275_v44 = vpop.f32.mrb[62].mxu1  ;;  %v2212_v18 = vpop.f32.mrb[63].mxu0 }
 0x177   : > { %v1545_v5 = vadd.f32 %v2210_v0, %v2952_v24  ;;  %v2213_v49 = vadd.f32 %v2212_v18, %v2211_v42  ;;  %v2276_v50 = vpop.f32.mrb[63].mxu1 }
 0x178   : > { %v2277_v52 = vadd.f32 %v2276_v50, %v2275_v44 }
 0x179   : > { %v1548_v7 = vadd.f32 %v2213_v49, %v2955_v26  ;;  %v1642_v54 = vadd.f32 %v2274_v43, %v1545_v5 }
 0x17b   : > { %v2312_v14 = vpop.f32.mrb[64].mxu0  ;;  %v1645_v55 = vadd.f32 %v2277_v52, %v1548_v7 }
 0x17c   : > { %v1691_v24 = vadd.f32 %v2312_v14, %v2965_v63  ;;  %v2320_v56 = vpop.f32.mrb[64].mxu1  ;;  %v1682_v57 = vpop.f32.mrb[65].mxu0 }
 0x17d   : > { %v1723_v16 = vadd.f32 %v2320_v56, %v1626_v35  ;;  %v1683_v26 = vadd.f32 %v1682_v57, %v2959_v45  ;;  %v1714_v30 = vpop.f32.mrb[65].mxu1  ;;  %v2313_v60 = vpop.f32.mrb[66].mxu0 }
 0x17e   : > { %1748 = vst.msk [vmem:[%s2997_s7 + $0x10] sm:$0xff] %vm1745_vm0, %v1691_v24  ;;  %v1715_v61 = vadd.f32 %v1714_v30, %v1618_v58  ;;  %v1694_v32 = vadd.f32 %v2313_v60, %v2967_v2  ;;  %v2321_v1 = vpop.f32.mrb[66].mxu1  ;;  %v1685_v3 = vpop.f32.mrb[67].mxu0 }
 0x17f   : > { %1756 = vst.msk [vmem:[%s2997_s7 + $0x50] sm:$0xff] %vm1745_vm0, %v1723_v16  ;;  %1746 = vst.msk [vmem:[%s2997_s7] sm:$0xff] %vm1745_vm0, %v1683_v26  ;;  %v1726_v63 = vadd.f32 %v2321_v1, %v1629_v13  ;;  %v1686_v4 = vadd.f32 %v1685_v3, %v2961_v47  ;;  %v1717_v45 = vpop.f32.mrb[67].mxu1 }
 0x180   : > { %1754 = vst.msk [vmem:[%s2997_s7 + $0x40] sm:$0xff] %vm1745_vm0, %v1715_v61  ;;  %1749 = vst.msk [vmem:[%s2997_s7 + $0x18] sm:$0xff] %vm1745_vm0, %v1694_v32  ;;  %v1718_v6 = vadd.f32 %v1717_v45, %v2983_v59 }
 0x181   : > { %1757 = vst.msk [vmem:[%s2997_s7 + $0x58] sm:$0xff] %vm1745_vm0, %v1726_v63  ;;  %1747 = vst.msk [vmem:[%s2997_s7 + $0x8] sm:$0xff] %vm1745_vm0, %v1686_v4 }
 0x182   : > { %1755 = vst.msk [vmem:[%s2997_s7 + $0x48] sm:$0xff] %vm1745_vm0, %v1718_v6 }
 0x183   : > { %v2316_v2 = vpop.f32.mrb[68].mxu0 }
 0x184   : > { %v1707_v58 = vadd.f32 %v2316_v2, %v2977_v39  ;;  %v2324_v47 = vpop.f32.mrb[68].mxu1  ;;  %v1698_v8 = vpop.f32.mrb[69].mxu0 }
 0x185   : > { %v1739_v9 = vadd.f32 %v2324_v47, %v1642_v54  ;;  %v1699_v33 = vadd.f32 %v1698_v8, %v2971_v19  ;;  %v1730_v59 = vpop.f32.mrb[69].mxu1  ;;  %v2317_v10 = vpop.f32.mrb[70].mxu0 }
 0x186   : > { %1752 = vst.msk [vmem:[%s2997_s7 + $0x30] sm:$0xff] %vm1745_vm0, %v1707_v58  ;;  %v1731_v11 = vadd.f32 %v1730_v59, %v1634_v53  ;;  %v1710_v12 = vadd.f32 %v2317_v10, %v2979_v41  ;;  %v2325_v35 = vpop.f32.mrb[70].mxu1  ;;  %v1701_v46 = vpop.f32.mrb[71].mxu0 }
 0x187   : > { %1760 = vst.msk [vmem:[%s2997_s7 + $0x70] sm:$0xff] %vm1745_vm0, %v1739_v9  ;;  %1750 = vst.msk [vmem:[%s2997_s7 + $0x20] sm:$0xff] %vm1745_vm0, %v1699_v33  ;;  %v1742_v39 = vadd.f32 %v2325_v35, %v1645_v55  ;;  %v1702_v13 = vadd.f32 %v1701_v46, %v2973_v21  ;;  %v1733_v19 = vpop.f32.mrb[71].mxu1 }
 0x188   : > { %1758 = vst.msk [vmem:[%s2997_s7 + $0x60] sm:$0xff] %vm1745_vm0, %v1731_v11  ;;  %1753 = vst.msk [vmem:[%s2997_s7 + $0x38] sm:$0xff] %vm1745_vm0, %v1710_v12  ;;  %v1734_v15 = vadd.f32 %v1733_v19, %v2989_v36 }
 0x189   : > { %1761 = vst.msk [vmem:[%s2997_s7 + $0x78] sm:$0xff] %vm1745_vm0, %v1742_v39  ;;  %1751 = vst.msk [vmem:[%s2997_s7 + $0x28] sm:$0xff] %vm1745_vm0, %v1702_v13 }
 0x18a   : > { %1759 = vst.msk [vmem:[%s2997_s7 + $0x68] sm:$0xff] %vm1745_vm0, %v1734_v15 }
 0x18b PF: > { %s13_s14 = sadd.s32 1, %s2565_s14   ;;  %s3054_s12 = smov %s2561_s13 }
 0x18c   : > { %p10_p5 = scmp.ge.s32.totalorder %s13_s14, 4   ;;  %s3055_s13 = smov %s3057_s15 }
 0x18e   :  { %12 = sbr.rel (!%p10_p5) target bundleno = 2 (0x2), region = 68 }

// kernel: fsnet_fwd.33
= control target key start
LH: loop header
LB: loop body
LE: loop exit
PB: predicated region body
PF: predicated region fallthrough
CT: control target
= control target key end

     0   :  { %s1813_s12 = smov 0   ;;  %s1815_s13 = smov 0   ;;  %s2199_s0 = inlined_call_operand.vmem [shape: bf16[256,576], index: 0, kind: input, shape index: {}]   ;;  %s2200_s1 = inlined_call_operand.vmem [shape: bf16[576,128], index: 1, kind: input, shape index: {}]   ;;  %s2201_s2 = inlined_call_operand.vmem [shape: f32[1,128], index: 2, kind: input, shape index: {}]   ;;  %s2202_s3 = inlined_call_operand.vmem [shape: f32[256,64], index: 3, kind: output, shape index: {}]  }
   0x1   :  { %s1817_s14 = smov 0  }
   0x2 LB: > { %s25_s15 = sadd.s32 1, %s1787_s13  ;;  %p1356_p0 = scmp.ge.s32.totalorder %s1791_s14, 1  ;;  %s1791_s14 = sphi %s1817_s14, %s13_s14   ;;  %s1787_s13 = sphi %s1815_s13, %s2204_s13   ;;  %s1783_s12 = sphi %s1813_s12, %s2203_s12  }
   0x3   : > { %p27_p1 = scmp.ge.s32.totalorder %s25_s15, 2  ;;  %p170_p2 = scmp.lt.s32.totalorder %s1791_s14, 3 }
   0x5   : > { %s2206_s15 = smov (%p27_p1, %s25_s15), 0  ;;  %p171_p3 = pnand %p1356_p0, %p170_p2 }
   0x6   : > { %v1645_v0 = vld [vmem:[%s2200_s1 + $0x40] sm:$0xff] (!%p171_p3)   ;;  %v1649_v4 = vld [vmem:[%s2200_s1 + $0x48] sm:$0xff] (!%p171_p3)   ;;  %v1653_v8 = vld [vmem:[%s2200_s1 + $0x50] sm:$0xff] (!%p171_p3)   ;;  %s1357_s23 = sshll.u32 (!%p171_p3), %s1783_s12, 4  ;;  %vm772_vm0 = vcmask (!%p171_p3), 523264  }
   0x7   : > { %174 = sbr.rel (%p171_p3) target bundleno = 373 (0x175), region = 32  ;;  %v1646_v1 = vld [vmem:[%s2200_s1 + $0xc0] sm:$0xff] (!%p171_p3)   ;;  %1448 = vmatprep.subr.bf16.mxu0 (!%p171_p3), %v1645_v0  ;;  %v1650_v5 = vld [vmem:[%s2200_s1 + $0xc8] sm:$0xff] (!%p171_p3)   ;;  %v1654_v9 = vld [vmem:[%s2200_s1 + $0xd0] sm:$0xff] (!%p171_p3)   ;;  %p206_p4 = scmp.lt.s32.totalorder (!%p171_p3), %s1357_s23, 31 }
   0x8   : > { %v1647_v2 = vld [vmem:[%s2200_s1] sm:$0xff] (!%p171_p3)   ;;  %1512 = vmatprep.subr.bf16.mxu1 (!%p171_p3), %v1646_v1  ;;  %v1651_v6 = vld [vmem:[%s2200_s1 + $0x8] sm:$0xff] (!%p171_p3)   ;;  %v1655_v10 = vld [vmem:[%s2200_s1 + $0x10] sm:$0xff] (!%p171_p3)  }
   0x9   : > { %v1648_v3 = vld [vmem:[%s2200_s1 + $0x80] sm:$0xff] (!%p171_p3)   ;;  %1449 = vmatpush3.bf16.msra.mxu0 (!%p171_p3), %v1647_v2  ;;  %v1652_v7 = vld [vmem:[%s2200_s1 + $0x88] sm:$0xff] (!%p171_p3)   ;;  %v1656_v11 = vld [vmem:[%s2200_s1 + $0x90] sm:$0xff] (!%p171_p3)  }
   0xa   : > { %1513 = vmatpush3.bf16.msra.mxu1 (!%p171_p3), %v1648_v3  ;;  %1450 = vmatprep.subr.bf16.mxu0 (!%p171_p3), %v1649_v4  ;;  %v1657_v12 = vld [vmem:[%s2200_s1 + $0x58] sm:$0xff] (!%p171_p3)   ;;  %v1661_v16 = vld [vmem:[%s2200_s1 + $0x60] sm:$0xff] (!%p171_p3)   ;;  %v1665_v20 = vld [vmem:[%s2200_s1 + $0x68] sm:$0xff] (!%p171_p3)  }
   0xb   : > { %1514 = vmatprep.subr.bf16.mxu1 (!%p171_p3), %v1650_v5  ;;  %v1658_v13 = vld [vmem:[%s2200_s1 + $0xd8] sm:$0xff] (!%p171_p3)   ;;  %v1662_v17 = vld [vmem:[%s2200_s1 + $0xe0] sm:$0xff] (!%p171_p3)   ;;  %v1666_v21 = vld [vmem:[%s2200_s1 + $0xe8] sm:$0xff] (!%p171_p3)  }
   0xc   : > { %v1659_v14 = vld [vmem:[%s2200_s1 + $0x18] sm:$0xff] (!%p171_p3)   ;;  %v1663_v18 = vld [vmem:[%s2200_s1 + $0x20] sm:$0xff] (!%p171_p3)   ;;  %v1667_v22 = vld [vmem:[%s2200_s1 + $0x28] sm:$0xff] (!%p171_p3)  }
   0xd   : > { %1451 = vmatpush3.bf16.msra.mxu0 (!%p171_p3), %v1651_v6  ;;  %v1660_v15 = vld [vmem:[%s2200_s1 + $0x98] sm:$0xff] (!%p171_p3)   ;;  %v1664_v19 = vld [vmem:[%s2200_s1 + $0xa0] sm:$0xff] (!%p171_p3)   ;;  %v1668_v23 = vld [vmem:[%s2200_s1 + $0xa8] sm:$0xff] (!%p171_p3)  }
   0xe   : > { %1515 = vmatpush3.bf16.msra.mxu1 %v1652_v7  ;;  %1452 = vmatprep.subr.bf16.mxu0 %v1653_v8  ;;  %s2208_s23 = smov (!%p206_p4, %s1357_s23), 31  ;;  %v1669_v24 = vld [vmem:[%s2200_s1 + $0x70] sm:$0xff]   ;;  %v1673_v28 = vld [vmem:[%s2200_s1 + $0x78] sm:$0xff]   ;;  %v1683_v36 = vld [vmem:[%s2200_s1 + $0x100] sm:$0xff]  }
   0xf   : > { %1516 = vmatprep.subr.bf16.mxu1 %v1654_v9  ;;  %v1670_v25 = vld [vmem:[%s2200_s1 + $0xf0] sm:$0xff]   ;;  %s1620_s22 = smul.u32 20, %s2208_s23  ;;  %v1674_v29 = vld [vmem:[%s2200_s1 + $0xf8] sm:$0xff]   ;;  %v1696_v42 = vld [vmem:[%s2200_s1 + $0x108] sm:$0xff]   ;;  %s1360_s26 = sshll.u32 %s2208_s23, 3 }
  0x10   : > { %v1671_v26 = vld [vmem:[%s2200_s1 + $0x30] sm:$0xff]   ;;  %v1675_v30 = vld [vmem:[%s2200_s1 + $0x38] sm:$0xff]   ;;  %s2129_s28 = scalar_lea.vmem %s2202_s3, %s1360_s26 }
  0x11   : > { %1453 = vmatpush3.bf16.msra.mxu0 %v1655_v10  ;;  %v1672_v27 = vld [vmem:[%s2200_s1 + $0xb0] sm:$0xff]   ;;  %s1930_s6 = scalar_lea.vmem %s2199_s0, %s1620_s22  ;;  %v1676_v31 = vld [vmem:[%s2200_s1 + $0xb8] sm:$0xff]  }
  0x12   : > { %1517 = vmatpush3.bf16.msra.mxu1 %v1656_v11  ;;  %1454 = vmatprep.subr.bf16.mxu0 %v1657_v12  ;;  %v1677_v32 = vld [vmem:[%s1930_s6] ss:$20 sps:$4 sm:$0xff]   ;;  %v1679_v33 = vld [vmem:[%s1930_s6 + $0x4] ss:$20 sps:$4 sm:$0xff]   ;;  %v1680_v34 = vld [vmem:[%s1930_s6 + $0x8] ss:$20 sps:$4 sm:$0xff]  }
  0x13   : > { %1518 = vmatprep.subr.bf16.mxu1 %v1658_v13  ;;  %v1682_v35 = vld [vmem:[%s1930_s6 + $0xc] ss:$20 sps:$4 sm:$0xff]   ;;  %829 = vmatprep.mubr.bf16.mxu0 %v1679_v33  ;;  %v1686_v38 = vld [vmem:[%s1930_s6 + $0x34] ss:$20 sps:$4 sm:$0xff]   ;;  %v1689_v40 = vld [vmem:[%s1930_s6 + $0x30] ss:$20 sps:$4 sm:$0xff]  }
  0x14   : > { %926 = vmatprep.mubr.bf16.mxu1 %v1682_v35  ;;  %v1684_v37 = vld [vmem:[%s1930_s6 + $0x2c] ss:$20 sps:$4 sm:$0xff]   ;;  %v1688_v39 = vld [vmem:[%s1930_s6 + $0x28] ss:$20 sps:$4 sm:$0xff]   ;;  %v1694_v44 = vld [vmem:[%s1930_s6 + $0x50] ss:$20 sps:$4 sm:$0xff]  }
  0x15   : > { %1455 = vmatpush3.bf16.msra.mxu0 %v1659_v14  ;;  %v1690_v41 = vld [vmem:[%s1930_s6 + $0x54] ss:$20 sps:$4 sm:$0xff]   ;;  %v1692_v43 = vld [vmem:[%s1930_s6 + $0x5c] ss:$20 sps:$4 sm:$0xff]   ;;  %v1695_v45 = vld [vmem:[%s1930_s6 + $0x58] ss:$20 sps:$4 sm:$0xff]  }
  0x16   : > { %1519 = vmatpush3.bf16.msra.mxu1 %v1660_v15  ;;  %1456 = vmatprep.subr.bf16.mxu0 %v1661_v16  ;;  %v1709_v46 = vld [vmem:[%s2200_s1 + $0x110] sm:$0xff]   ;;  %v1699_v48 = vld [vmem:[%s1930_s6 + $0x84] ss:$20 sps:$4 sm:$0xff]   ;;  %v1705_v53 = vld [vmem:[%s1930_s6 + $0xac] ss:$20 sps:$4 sm:$0xff]  }
  0x17   : > { %1520 = vmatprep.subr.bf16.mxu1 %v1662_v17  ;;  %v1697_v47 = vld [vmem:[%s1930_s6 + $0x7c] ss:$20 sps:$4 sm:$0xff]   ;;  %v1701_v50 = vld [vmem:[%s1930_s6 + $0x78] ss:$20 sps:$4 sm:$0xff]   ;;  %v1702_v51 = vld [vmem:[%s1930_s6 + $0x80] ss:$20 sps:$4 sm:$0xff]  }
  0x18   : > { %v1722_v49 = vld [vmem:[%s2200_s1 + $0x118] sm:$0xff]   ;;  %v1707_v54 = vld [vmem:[%s1930_s6 + $0xa0] ss:$20 sps:$4 sm:$0xff]   ;;  %v1715_v59 = vld [vmem:[%s1930_s6 + $0xd0] ss:$20 sps:$4 sm:$0xff]  }
  0x19   : > { %1457 = vmatpush3.bf16.msra.mxu0 %v1663_v18  ;;  %v1703_v52 = vld [vmem:[%s1930_s6 + $0xa4] ss:$20 sps:$4 sm:$0xff]   ;;  %v1708_v55 = vld [vmem:[%s1930_s6 + $0xa8] ss:$20 sps:$4 sm:$0xff]   ;;  %v1710_v56 = vld [vmem:[%s1930_s6 + $0xcc] ss:$20 sps:$4 sm:$0xff]  }
  0x1a   : > { %1521 = vmatpush3.bf16.msra.mxu1 %v1664_v19  ;;  %1458 = vmatprep.subr.bf16.mxu0 %v1665_v20  ;;  %v1712_v57 = vld [vmem:[%s1930_s6 + $0xd4] ss:$20 sps:$4 sm:$0xff]   ;;  %v1718_v61 = vld [vmem:[%s1930_s6 + $0xfc] ss:$20 sps:$4 sm:$0xff]   ;;  %v1721_v63 = vld [vmem:[%s1930_s6 + $0xf8] ss:$20 sps:$4 sm:$0xff]  }
  0x1b   : > { %1522 = vmatprep.subr.bf16.mxu1 %v1666_v21  ;;  %v1714_v58 = vld [vmem:[%s1930_s6 + $0xc8] ss:$20 sps:$4 sm:$0xff]   ;;  %v1720_v62 = vld [vmem:[%s1930_s6 + $0xf0] ss:$20 sps:$4 sm:$0xff]   ;;  %v1727_v2 = vld [vmem:[%s1930_s6 + $0x118] ss:$20 sps:$4 sm:$0xff]  }
  0x1c   : > { %v1716_v60 = vld [vmem:[%s1930_s6 + $0xf4] ss:$20 sps:$4 sm:$0xff]   ;;  %v1723_v0 = vld [vmem:[%s1930_s6 + $0x11c] ss:$20 sps:$4 sm:$0xff]   ;;  %v1725_v1 = vld [vmem:[%s1930_s6 + $0x124] ss:$20 sps:$4 sm:$0xff]  }
  0x1d   : > { %1459 = vmatpush3.bf16.msra.mxu0 %v1667_v22  ;;  %v1728_v3 = vld [vmem:[%s1930_s6 + $0x120] ss:$20 sps:$4 sm:$0xff]   ;;  %v1729_v4 = vld [vmem:[%s1930_s6 + $0x10] ss:$20 sps:$4 sm:$0xff]   ;;  %v1731_v6 = vld [vmem:[%s1930_s6 + $0x38] ss:$20 sps:$4 sm:$0xff]  }
  0x1e   : > { %1523 = vmatpush3.bf16.msra.mxu1 %v1668_v23  ;;  %1460 = vmatprep.subr.bf16.mxu0 %v1669_v24  ;;  %v1730_v5 = vld [vmem:[%s1930_s6 + $0xb0] ss:$20 sps:$4 sm:$0xff]   ;;  %v1732_v7 = vld [vmem:[%s1930_s6 + $0xd8] ss:$20 sps:$4 sm:$0xff]   ;;  %v1733_v8 = vld [vmem:[%s1930_s6 + $0x60] ss:$20 sps:$4 sm:$0xff]  }
  0x1f   : > { %1524 = vmatprep.subr.bf16.mxu1 %v1670_v25  ;;  %v1734_v9 = vld [vmem:[%s1930_s6 + $0x100] ss:$20 sps:$4 sm:$0xff]   ;;  %v1735_v10 = vld [vmem:[%s1930_s6 + $0x88] ss:$20 sps:$4 sm:$0xff]  }
  0x20   : > { %v1736_v11 = vld [vmem:[%s1930_s6 + $0x128] ss:$20 sps:$4 sm:$0xff]   ;;  %v2001_v14 = vld [vmem:[%s2201_s2] ss:$0 sm:$0xff] }
  0x21   : > { %1461 = vmatpush3.bf16.msra.mxu0 %v1671_v26 }
  0x22   : > { %1525 = vmatpush3.bf16.msra.mxu1 %v1672_v27  ;;  %1462 = vmatprep.subr.bf16.mxu0 %v1673_v28 }
  0x23   : > { %1526 = vmatprep.subr.bf16.mxu1 %v1674_v29 }
  0x25   : > { %1463 = vmatpush3.bf16.msra.mxu0 %v1675_v30 }
  0x26   : > { %1527 = vmatpush3.bf16.msra.mxu1 %v1676_v31  ;;  %1588 = vmatprep.subr.bf16.mxu0 %v1683_v36 }
  0x27   : > { %1612 = vmatprep.subr.bf16.mxu1 %v1683_v36 }
  0x28   : > { %830 = vmatmul.mubr.bf16.vlgmr.msra.gmra.mrb[0].mxu0 %v1677_v32 }
  0x29   : > { %927 = vmatmul.mubr.bf16.vlgmr.msra.gmra.mrb[0].mxu1 %v1680_v34  ;;  %1589 = vmatpush3.bf16.msra.mxu0 %v1683_v36 }
  0x2a   : > { %1616 = vmatpush3.bf16.msra.mxu1 %v1683_v36  ;;  %837 = vmatprep.mubr.bf16.mxu0 %v1684_v37 }
  0x2b   : > { %934 = vmatprep.mubr.bf16.mxu1 %v1686_v38  ;;  %1590 = vmatprep.subr.bf16.mxu0 %v1696_v42 }
  0x2c   : > { %1613 = vmatprep.subr.bf16.mxu1 %v1696_v42 }
  0x2d   : > { %1591 = vmatpush3.bf16.msra.mxu0 %v1696_v42 }
  0x2e   : > { %1617 = vmatpush3.bf16.msra.mxu1 %v1696_v42  ;;  %1592 = vmatprep.subr.bf16.mxu0 %v1709_v46 }
  0x2f   : > { %1614 = vmatprep.subr.bf16.mxu1 %v1709_v46 }
  0x30   : > { %838 = vmatmul.mubr.bf16.gmra.mrb[4].mxu0 %v1688_v39 }
  0x31   : > { %935 = vmatmul.mubr.bf16.gmra.mrb[4].mxu1 %v1689_v40  ;;  %845 = vmatprep.mubr.bf16.mxu0 %v1690_v41 }
  0x32   : > { %942 = vmatprep.mubr.bf16.mxu1 %v1692_v43  ;;  %1593 = vmatpush3.bf16.msra.mxu0 %v1709_v46 }
  0x33   : > { %1618 = vmatpush3.bf16.msra.mxu1 %v1709_v46  ;;  %1594 = vmatprep.subr.bf16.mxu0 %v1722_v49 }
  0x34   : > { %1615 = vmatprep.subr.bf16.mxu1 %v1722_v49 }
  0x36   : > { %1595 = vmatpush3.bf16.msra.mxu0 %v1722_v49 }
  0x37   : > { %1619 = vmatpush3.bf16.msra.mxu1 %v1722_v49 }
  0x38   : > { %846 = vmatmul.mubr.bf16.gmra.mrb[8].mxu0 %v1694_v44 }
  0x39   : > { %943 = vmatmul.mubr.bf16.gmra.mrb[8].mxu1 %v1695_v45  ;;  %853 = vmatprep.mubr.bf16.mxu0 %v1697_v47 }
  0x3a   : > { %950 = vmatprep.mubr.bf16.mxu1 %v1699_v48 }
  0x40   : > { %854 = vmatmul.mubr.bf16.gmra.mrb[12].mxu0 %v1701_v50 }
  0x41   : > { %951 = vmatmul.mubr.bf16.gmra.mrb[12].mxu1 %v1702_v51  ;;  %861 = vmatprep.mubr.bf16.mxu0 %v1703_v52 }
  0x42   : > { %958 = vmatprep.mubr.bf16.mxu1 %v1705_v53 }
  0x48   : > { %862 = vmatmul.mubr.bf16.gmra.mrb[16].mxu0 %v1707_v54 }
  0x49   : > { %959 = vmatmul.mubr.bf16.gmra.mrb[16].mxu1 %v1708_v55  ;;  %869 = vmatprep.mubr.bf16.mxu0 %v1710_v56 }
  0x4a   : > { %966 = vmatprep.mubr.bf16.mxu1 %v1712_v57 }
  0x50   : > { %870 = vmatmul.mubr.bf16.gmra.mrb[20].mxu0 %v1714_v58 }
  0x51   : > { %967 = vmatmul.mubr.bf16.gmra.mrb[20].mxu1 %v1715_v59  ;;  %877 = vmatprep.mubr.bf16.mxu0 %v1716_v60 }
  0x52   : > { %974 = vmatprep.mubr.bf16.mxu1 %v1718_v61 }
  0x58   : > { %878 = vmatmul.mubr.bf16.gmra.mrb[24].mxu0 %v1720_v62 }
  0x59   : > { %975 = vmatmul.mubr.bf16.gmra.mrb[24].mxu1 %v1721_v63  ;;  %885 = vmatprep.mubr.bf16.mxu0 %v1723_v0 }
  0x5a   : > { %982 = vmatprep.mubr.bf16.mxu1 %v1725_v1 }
  0x60   : > { %886 = vmatmul.mubr.bf16.gmra.mrb[28].mxu0 %v1727_v2 }
  0x61   : > { %983 = vmatmul.mubr.bf16.gmra.mrb[28].mxu1 %v1728_v3  ;;  %1596 = vmatprep.mubr.msk.bf16.mxu0 %vm772_vm0, %v1729_v4 }
  0x62   : > { %1604 = vmatprep.mubr.msk.bf16.mxu1 %vm772_vm0, %v1730_v5 }
  0x68   : > { %1597 = vmatmul.mubr.msk.bf16.vlgmr.msra.gmra.mrb[32].mxu0 %vm772_vm0, %v1731_v6 }
  0x69   : > { %1605 = vmatmul.mubr.msk.bf16.vlgmr.msra.gmra.mrb[32].mxu1 %vm772_vm0, %v1732_v7  ;;  %1600 = vmatprep.mubr.msk.bf16.mxu0 %vm772_vm0, %v1733_v8 }
  0x6a   : > { %1608 = vmatprep.mubr.msk.bf16.mxu1 %vm772_vm0, %v1734_v9 }
  0x70   : > { %1601 = vmatmul.mubr.msk.bf16.gmra.mrb[36].mxu0 %vm772_vm0, %v1735_v10 }
  0x71   : > { %1609 = vmatmul.mubr.msk.bf16.gmra.mrb[36].mxu1 %vm772_vm0, %v1736_v11 }
  0xfb   : > { %v1464_v12 = vpop.f32.mrb[0].mxu0 }
  0xfc   : > { %v1528_v13 = vpop.f32.mrb[0].mxu1  ;;  %v1465_v15 = vpop.f32.mrb[1].mxu0 }
  0xfd   : > { %v1466_v16 = vadd.f32 %v1465_v15, %v1464_v12  ;;  %v1529_v17 = vpop.f32.mrb[1].mxu1  ;;  %v1467_v18 = vpop.f32.mrb[2].mxu0 }
  0xfe   : > { %v1530_v19 = vadd.f32 %v1529_v17, %v1528_v13  ;;  %v1531_v20 = vpop.f32.mrb[2].mxu1  ;;  %v1468_v21 = vpop.f32.mrb[3].mxu0 }
  0xff   : > { %v832_v22 = vadd.f32 %v1466_v16, %v2001_v14  ;;  %v1469_v23 = vadd.f32 %v1468_v21, %v1467_v18  ;;  %v1532_v24 = vpop.f32.mrb[3].mxu1 }
 0x100   : > { %v1533_v25 = vadd.f32 %v1532_v24, %v1531_v20 }
 0x101   : > { %v835_v26 = vadd.f32 %v1469_v23, %v2001_v14  ;;  %v2005_v27 = vadd.f32 %v1530_v19, %v832_v22 }
 0x103   : > { %v1470_v28 = vpop.f32.mrb[4].mxu0  ;;  %v2007_v29 = vadd.f32 %v1533_v25, %v835_v26 }
 0x104   : > { %v1534_v30 = vpop.f32.mrb[4].mxu1  ;;  %v1471_v31 = vpop.f32.mrb[5].mxu0 }
 0x105   : > { %v1472_v32 = vadd.f32 %v1471_v31, %v1470_v28  ;;  %v1535_v33 = vpop.f32.mrb[5].mxu1  ;;  %v1473_v34 = vpop.f32.mrb[6].mxu0 }
 0x106   : > { %v1536_v35 = vadd.f32 %v1535_v33, %v1534_v30  ;;  %v1537_v36 = vpop.f32.mrb[6].mxu1  ;;  %v1474_v37 = vpop.f32.mrb[7].mxu0 }
 0x107   : > { %v840_v38 = vadd.f32 %v1472_v32, %v2001_v14  ;;  %v1475_v39 = vadd.f32 %v1474_v37, %v1473_v34  ;;  %v1538_v40 = vpop.f32.mrb[7].mxu1 }
 0x108   : > { %v1539_v41 = vadd.f32 %v1538_v40, %v1537_v36 }
 0x109   : > { %v843_v42 = vadd.f32 %v1475_v39, %v2001_v14  ;;  %v2011_v43 = vadd.f32 %v1536_v35, %v840_v38 }
 0x10b   : > { %v1476_v44 = vpop.f32.mrb[8].mxu0  ;;  %v2013_v45 = vadd.f32 %v1539_v41, %v843_v42 }
 0x10c   : > { %v1540_v46 = vpop.f32.mrb[8].mxu1  ;;  %v1477_v47 = vpop.f32.mrb[9].mxu0 }
 0x10d   : > { %v1478_v48 = vadd.f32 %v1477_v47, %v1476_v44  ;;  %v1541_v49 = vpop.f32.mrb[9].mxu1  ;;  %v1479_v50 = vpop.f32.mrb[10].mxu0 }
 0x10e   : > { %v1542_v51 = vadd.f32 %v1541_v49, %v1540_v46  ;;  %v1543_v52 = vpop.f32.mrb[10].mxu1  ;;  %v1480_v53 = vpop.f32.mrb[11].mxu0 }
 0x10f   : > { %v848_v54 = vadd.f32 %v1478_v48, %v2001_v14  ;;  %v1481_v55 = vadd.f32 %v1480_v53, %v1479_v50  ;;  %v1544_v56 = vpop.f32.mrb[11].mxu1 }
 0x110   : > { %v1545_v57 = vadd.f32 %v1544_v56, %v1543_v52 }
 0x111   : > { %v851_v58 = vadd.f32 %v1481_v55, %v2001_v14  ;;  %v2017_v59 = vadd.f32 %v1542_v51, %v848_v54 }
 0x113   : > { %v1482_v60 = vpop.f32.mrb[12].mxu0  ;;  %v2019_v61 = vadd.f32 %v1545_v57, %v851_v58 }
 0x114   : > { %v1546_v62 = vpop.f32.mrb[12].mxu1  ;;  %v1483_v63 = vpop.f32.mrb[13].mxu0 }
 0x115   : > { %v1484_v0 = vadd.f32 %v1483_v63, %v1482_v60  ;;  %v1547_v1 = vpop.f32.mrb[13].mxu1  ;;  %v1485_v2 = vpop.f32.mrb[14].mxu0 }
 0x116   : > { %v1548_v3 = vadd.f32 %v1547_v1, %v1546_v62  ;;  %v1549_v4 = vpop.f32.mrb[14].mxu1  ;;  %v1486_v5 = vpop.f32.mrb[15].mxu0 }
 0x117   : > { %v856_v6 = vadd.f32 %v1484_v0, %v2001_v14  ;;  %v1487_v7 = vadd.f32 %v1486_v5, %v1485_v2  ;;  %v1550_v8 = vpop.f32.mrb[15].mxu1 }
 0x118   : > { %v1551_v9 = vadd.f32 %v1550_v8, %v1549_v4 }
 0x119   : > { %v859_v10 = vadd.f32 %v1487_v7, %v2001_v14  ;;  %v2023_v11 = vadd.f32 %v1548_v3, %v856_v6 }
 0x11b   : > { %v1488_v12 = vpop.f32.mrb[16].mxu0  ;;  %v2025_v13 = vadd.f32 %v1551_v9, %v859_v10 }
 0x11c   : > { %v1552_v15 = vpop.f32.mrb[16].mxu1  ;;  %v1489_v16 = vpop.f32.mrb[17].mxu0 }
 0x11d   : > { %v1490_v17 = vadd.f32 %v1489_v16, %v1488_v12  ;;  %v1553_v18 = vpop.f32.mrb[17].mxu1  ;;  %v1491_v19 = vpop.f32.mrb[18].mxu0 }
 0x11e   : > { %v1554_v20 = vadd.f32 %v1553_v18, %v1552_v15  ;;  %v1555_v21 = vpop.f32.mrb[18].mxu1  ;;  %v1492_v22 = vpop.f32.mrb[19].mxu0 }
 0x11f   : > { %v864_v23 = vadd.f32 %v1490_v17, %v2001_v14  ;;  %v1493_v24 = vadd.f32 %v1492_v22, %v1491_v19  ;;  %v1556_v25 = vpop.f32.mrb[19].mxu1 }
 0x120   : > { %v1557_v26 = vadd.f32 %v1556_v25, %v1555_v21 }
 0x121   : > { %v867_v28 = vadd.f32 %v1493_v24, %v2001_v14  ;;  %v961_v30 = vadd.f32 %v1554_v20, %v864_v23 }
 0x123   : > { %v1494_v31 = vpop.f32.mrb[20].mxu0  ;;  %v2029_v32 = vadd.f32 %v1557_v26, %v867_v28 }
 0x124   : > { %v1558_v33 = vpop.f32.mrb[20].mxu1  ;;  %v1495_v34 = vpop.f32.mrb[21].mxu0 }
 0x125   : > { %v1496_v35 = vadd.f32 %v1495_v34, %v1494_v31  ;;  %v1559_v36 = vpop.f32.mrb[21].mxu1  ;;  %v1497_v37 = vpop.f32.mrb[22].mxu0 }
 0x126   : > { %v1560_v38 = vadd.f32 %v1559_v36, %v1558_v33  ;;  %v1561_v39 = vpop.f32.mrb[22].mxu1  ;;  %v1498_v40 = vpop.f32.mrb[23].mxu0 }
 0x127   : > { %v872_v41 = vadd.f32 %v1496_v35, %v2001_v14  ;;  %v1499_v42 = vadd.f32 %v1498_v40, %v1497_v37  ;;  %v1562_v44 = vpop.f32.mrb[23].mxu1 }
 0x128   : > { %v1563_v46 = vadd.f32 %v1562_v44, %v1561_v39 }
 0x129   : > { %v875_v47 = vadd.f32 %v1499_v42, %v2001_v14  ;;  %v969_v48 = vadd.f32 %v1560_v38, %v872_v41 }
 0x12b   : > { %v1500_v49 = vpop.f32.mrb[24].mxu0  ;;  %v972_v50 = vadd.f32 %v1563_v46, %v875_v47 }
 0x12c   : > { %v1564_v51 = vpop.f32.mrb[24].mxu1  ;;  %v1501_v52 = vpop.f32.mrb[25].mxu0 }
 0x12d   : > { %v1502_v53 = vadd.f32 %v1501_v52, %v1500_v49  ;;  %v1565_v54 = vpop.f32.mrb[25].mxu1  ;;  %v1503_v55 = vpop.f32.mrb[26].mxu0 }
 0x12e   : > { %v1566_v56 = vadd.f32 %v1565_v54, %v1564_v51  ;;  %v1567_v57 = vpop.f32.mrb[26].mxu1  ;;  %v1504_v58 = vpop.f32.mrb[27].mxu0 }
 0x12f   : > { %v880_v60 = vadd.f32 %v1502_v53, %v2001_v14  ;;  %v1505_v62 = vadd.f32 %v1504_v58, %v1503_v55  ;;  %v1568_v63 = vpop.f32.mrb[27].mxu1 }
 0x130   : > { %v1569_v0 = vadd.f32 %v1568_v63, %v1567_v57 }
 0x131   : > { %v883_v1 = vadd.f32 %v1505_v62, %v2001_v14  ;;  %v2035_v2 = vadd.f32 %v1566_v56, %v880_v60 }
 0x133   : > { %v1506_v3 = vpop.f32.mrb[28].mxu0  ;;  %v2037_v4 = vadd.f32 %v1569_v0, %v883_v1 }
 0x134   : > { %v1570_v5 = vpop.f32.mrb[28].mxu1  ;;  %v1507_v6 = vpop.f32.mrb[29].mxu0 }
 0x135   : > { %v1508_v7 = vadd.f32 %v1507_v6, %v1506_v3  ;;  %v1571_v8 = vpop.f32.mrb[29].mxu1  ;;  %v1509_v9 = vpop.f32.mrb[30].mxu0 }
 0x136   : > { %v1572_v10 = vadd.f32 %v1571_v8, %v1570_v5  ;;  %v1573_v12 = vpop.f32.mrb[30].mxu1  ;;  %v1510_v15 = vpop.f32.mrb[31].mxu0 }
 0x137   : > { %v888_v16 = vadd.f32 %v1508_v7, %v2001_v14  ;;  %v1511_v17 = vadd.f32 %v1510_v15, %v1509_v9  ;;  %v1574_v18 = vpop.f32.mrb[31].mxu1 }
 0x138   : > { %v1575_v19 = vadd.f32 %v1574_v18, %v1573_v12 }
 0x139   : > { %v891_v20 = vadd.f32 %v1511_v17, %v2001_v14  ;;  %v2041_v21 = vadd.f32 %v1572_v10, %v888_v16 }
 0x13b   : > { %v1598_v22 = vpop.f32.mrb[32].mxu0  ;;  %v2043_v23 = vadd.f32 %v1575_v19, %v891_v20 }
 0x13c   : > { %v1034_v24 = vadd.f32 %v1598_v22, %v2011_v43  ;;  %v1606_v25 = vpop.f32.mrb[32].mxu1  ;;  %v1025_v26 = vpop.f32.mrb[33].mxu0 }
 0x13d   : > { %v1066_v28 = vadd.f32 %v1606_v25, %v969_v48  ;;  %v2047_v31 = vadd.f32 %v1025_v26, %v2005_v27  ;;  %v1057_v33 = vpop.f32.mrb[33].mxu1  ;;  %v1599_v34 = vpop.f32.mrb[34].mxu0 }
 0x13e   : > { %v1106_v35 = vmul.f32 0.044715, %v1034_v24  ;;  %v2049_v36 = vadd.f32 %v1057_v33, %v961_v30  ;;  %v2052_v14 = vadd.f32 %v1599_v34, %v2013_v45  ;;  %v1607_v37 = vpop.f32.mrb[34].mxu1  ;;  %v1028_v38 = vpop.f32.mrb[35].mxu0  ;;  %v1090_v34 = vmul.f32 0.5, %v1034_v24 }
 0x13f   : > { %v1114_v39 = vmul.f32 0.044715, %v1066_v28  ;;  %v1104_v40 = vmul.f32 0.044715, %v2047_v31  ;;  %v1060_v42 = vpop.f32.mrb[35].mxu1  ;;  %v2058_v47 = vadd.f32 %v1607_v37, %v972_v50  ;;  %v2062_v48 = vadd.f32 %v1028_v38, %v2007_v29 }
 0x140   : > { %v1122_v43 = vmul.f32 %v1106_v35, %v1034_v24  ;;  %v1112_v41 = vmul.f32 0.044715, %v2049_v36  ;;  %v1107_v46 = vmul.f32 0.044715, %v2052_v14  ;;  %v2065_v49 = vadd.f32 %v1060_v42, %v2029_v32 }
 0x141   : > { %v1130_v44 = vmul.f32 %v1114_v39, %v1066_v28  ;;  %v1120_v27 = vmul.f32 %v1104_v40, %v2047_v31  ;;  %v1115_v50 = vmul.f32 0.044715, %v2058_v47  ;;  %v1105_v32 = vmul.f32 0.044715, %v2062_v48 }
 0x142   : > { %v1138_v30 = vmul.f32 %v1122_v43, %v1034_v24  ;;  %v1128_v45 = vmul.f32 %v1112_v41, %v2049_v36  ;;  %v1123_v53 = vmul.f32 %v1107_v46, %v2052_v14  ;;  %v1113_v18 = vmul.f32 0.044715, %v2065_v49 }
 0x143   : > { %v1146_v51 = vmul.f32 %v1130_v44, %v1066_v28  ;;  %v1136_v52 = vmul.f32 %v1120_v27, %v2047_v31  ;;  %v1602_v54 = vpop.f32.mrb[36].mxu0  ;;  %v1131_v5 = vmul.f32 %v1115_v50, %v2058_v47  ;;  %v1121_v12 = vmul.f32 %v1105_v32, %v2062_v48 }
 0x144   : > { %v1154_v55 = vadd.f32 %v1138_v30, %v1034_v24  ;;  %v1144_v56 = vmul.f32 %v1128_v45, %v2049_v36  ;;  %v1610_v57 = vpop.f32.mrb[36].mxu1  ;;  %v1041_v58 = vpop.f32.mrb[37].mxu0  ;;  %v1139_v62 = vmul.f32 %v1123_v53, %v2052_v14  ;;  %v2084_v22 = vadd.f32 %v1602_v54, %v2023_v11 }
 0x145   : > { %v1162_v60 = vadd.f32 %v1146_v51, %v1066_v28  ;;  %v1152_v29 = vadd.f32 %v1136_v52, %v2047_v31  ;;  %v1073_v63 = vpop.f32.mrb[37].mxu1  ;;  %v1603_v0 = vpop.f32.mrb[38].mxu0  ;;  %v1147_v17 = vmul.f32 %v1131_v5, %v2058_v47  ;;  %v1137_v20 = vmul.f32 %v1121_v12, %v2062_v48 }
 0x146   : > { %v1170_v1 = vmul.f32 0.7978846, %v1154_v55  ;;  %v1160_v3 = vadd.f32 %v1144_v56, %v2049_v36  ;;  %v1611_v6 = vpop.f32.mrb[38].mxu1  ;;  %v1044_v7 = vpop.f32.mrb[39].mxu0  ;;  %v1155_v10 = vadd.f32 %v1139_v62, %v2052_v14  ;;  %v1129_v26 = vmul.f32 %v1113_v18, %v2065_v49 }
 0x147   : > { %v1178_v8 = vmul.f32 0.7978846, %v1162_v60  ;;  %v1168_v9 = vmul.f32 0.7978846, %v1152_v29  ;;  %v2078_v15 = vpop.f32.mrb[39].mxu1  ;;  %v1163_v25 = vadd.f32 %v1147_v17, %v2058_v47  ;;  %v2089_v33 = vadd.f32 %v1610_v57, %v2041_v21 }
 0x148   : > { %1737 = vtanh.f32 %v1170_v1  ;;  %v1176_v16 = vmul.f32 0.7978846, %v1160_v3  ;;  %v1171_v19 = vmul.f32 0.7978846, %v1155_v10  ;;  %v1153_v35 = vadd.f32 %v1137_v20, %v2062_v48 }
 0x149   : > { %1739 = vtanh.f32 %v1178_v8  ;;  %v1110_v37 = vmul.f32 0.044715, %v2084_v22  ;;  %v1098_v38 = vmul.f32 0.5, %v1066_v28  ;;  %v1179_v39 = vmul.f32 0.7978846, %v1163_v25 }
 0x14a   : > { %1741 = vtanh.f32 %v1168_v9  ;;  %v1145_v11 = vmul.f32 %v1129_v26, %v2065_v49  ;;  %v1169_v40 = vmul.f32 0.7978846, %v1153_v35  ;;  %v1118_v41 = vmul.f32 0.044715, %v2089_v33 }
 0x14b   : > { %1743 = vtanh.f32 %v1176_v16  ;;  %v1126_v43 = vmul.f32 %v1110_v37, %v2084_v22  ;;  %v2097_v21 = vadd.f32 %v1041_v58, %v2017_v59  ;;  %v2101_v42 = vadd.f32 %v1073_v63, %v2035_v2 }
 0x14c   : > { %1745 = vtanh.f32 %v1171_v19  ;;  %v1161_v24 = vadd.f32 %v1145_v11, %v2065_v49  ;;  %v2104_v28 = vadd.f32 %v1603_v0, %v2025_v13  ;;  %v1088_v44 = vmul.f32 0.5, %v2047_v31 }
 0x14d   : > { %1747 = vtanh.f32 %v1179_v39  ;;  %v1142_v27 = vmul.f32 %v1126_v43, %v2084_v22  ;;  %v1134_v46 = vmul.f32 %v1118_v41, %v2089_v33  ;;  %v1096_v30 = vmul.f32 0.5, %v2049_v36 }
 0x14e   : > { %1749 = vtanh.f32 %v1169_v40  ;;  %v1091_v59 = vmul.f32 0.5, %v2052_v14  ;;  %v1177_v45 = vmul.f32 0.7978846, %v1161_v24  ;;  %v1108_v51 = vmul.f32 0.044715, %v2097_v21 }
 0x14f   : > { %v1158_v2 = vadd.f32 %v1142_v27, %v2084_v22  ;;  %v1150_v13 = vmul.f32 %v1134_v46, %v2089_v33  ;;  %v1116_v52 = vmul.f32 0.044715, %v2101_v42  ;;  %v1111_v31 = vmul.f32 0.044715, %v2104_v28 }
 0x150   : > { %1751 = vtanh.f32 %v1177_v45  ;;  %v1124_v54 = vmul.f32 %v1108_v51, %v2097_v21  ;;  %v2119_v36 = vadd.f32 %v1611_v6, %v2043_v23  ;;  %v2122_v14 = vadd.f32 %v1044_v7, %v2019_v61 }
 0x151   : > { %v1174_v50 = vmul.f32 0.7978846, %v1158_v2  ;;  %v1166_v57 = vadd.f32 %v1150_v13, %v2089_v33  ;;  %v1132_v58 = vmul.f32 %v1116_v52, %v2101_v42  ;;  %v1099_v23 = vmul.f32 0.5, %v2058_v47 }
 0x152   : > { %v1738_v53 = vpop.eup %1737  ;;  %v1140_v61 = vmul.f32 %v1124_v54, %v2097_v21  ;;  %v1127_v62 = vmul.f32 %v1111_v31, %v2104_v28  ;;  %v1119_v19 = vmul.f32 0.044715, %v2119_v36  ;;  %v1109_v43 = vmul.f32 0.044715, %v2122_v14 }
 0x153   : > { %v1740_v55 = vpop.eup %1739  ;;  %v1202_v56 = vadd.f32 1.0, %v1738_v53  ;;  %1753 = vtanh.f32 %v1174_v50  ;;  %v1182_v1 = vmul.f32 0.7978846, %v1166_v57  ;;  %v1148_v8 = vmul.f32 %v1132_v58, %v2101_v42 }
 0x154   : > { %v1742_v60 = vpop.eup %1741  ;;  %v1210_v29 = vadd.f32 1.0, %v1740_v55  ;;  %v1156_v7 = vadd.f32 %v1140_v61, %v2097_v21  ;;  %v1143_v10 = vmul.f32 %v1127_v62, %v2104_v28  ;;  %v1135_v39 = vmul.f32 %v1119_v19, %v2119_v36 }
 0x155   : > { %v1744_v32 = vpop.eup %1743  ;;  %v1218_v63 = vmul.f32 %v1202_v56, %v1090_v34  ;;  %v1200_v0 = vadd.f32 1.0, %v1742_v60  ;;  %1755 = vtanh.f32 %v1182_v1  ;;  %v1164_v18 = vadd.f32 %v1148_v8, %v2101_v42 }
 0x156   : > { %v1746_v3 = vpop.eup %1745  ;;  %v1226_v5 = vmul.f32 %v1210_v29, %v1098_v38  ;;  %v1208_v6 = vadd.f32 1.0, %v1744_v32  ;;  %v1172_v17 = vmul.f32 0.7978846, %v1156_v7  ;;  %v1089_v34 = vmul.f32 0.5, %v2062_v48 }
 0x157   : > { %1234 = vst.msk [vmem:[%s2129_s28 + $0x10] sm:$0xff] %vm772_vm0, %v1218_v63  ;;  %v1216_v47 = vmul.f32 %v1200_v0, %v1088_v44  ;;  %v1203_v9 = vadd.f32 1.0, %v1746_v3  ;;  %v1748_v12 = vpop.eup %1747  ;;  %v1159_v35 = vadd.f32 %v1143_v10, %v2104_v28  ;;  %v1180_v38 = vmul.f32 0.7978846, %v1164_v18 }
 0x158   : > { %1242 = vst.msk [vmem:[%s2129_s28 + $0x50] sm:$0xff] %vm772_vm0, %v1226_v5  ;;  %v1224_v16 = vmul.f32 %v1208_v6, %v1096_v30  ;;  %v1750_v20 = vpop.eup %1749  ;;  %v1211_v26 = vadd.f32 1.0, %v1748_v12  ;;  %1757 = vtanh.f32 %v1172_v17  ;;  %v1077_v48 = vadd.f32 %v2078_v15, %v2037_v4 }
 0x159   : > { %1232 = vst.msk [vmem:[%s2129_s28] sm:$0xff] %vm772_vm0, %v1216_v47  ;;  %v1219_v25 = vmul.f32 %v1203_v9, %v1091_v59  ;;  %v1201_v37 = vadd.f32 1.0, %v1750_v20  ;;  %v1175_v40 = vmul.f32 0.7978846, %v1159_v35  ;;  %1759 = vtanh.f32 %v1180_v38 }
 0x15a   : > { %1240 = vst.msk [vmem:[%s2129_s28 + $0x40] sm:$0xff] %vm772_vm0, %v1224_v16  ;;  %v1227_v11 = vmul.f32 %v1211_v26, %v1099_v23  ;;  %v1752_v41 = vpop.eup %1751  ;;  %v1151_v44 = vmul.f32 %v1135_v39, %v2119_v36  ;;  %v1097_v27 = vmul.f32 0.5, %v2065_v49  ;;  %v1125_v30 = vmul.f32 %v1109_v43, %v2122_v14 }
 0x15b   : > { %1235 = vst.msk [vmem:[%s2129_s28 + $0x18] sm:$0xff] %vm772_vm0, %v1219_v25  ;;  %v1217_v24 = vmul.f32 %v1201_v37, %v1089_v34  ;;  %v1209_v46 = vadd.f32 1.0, %v1752_v41  ;;  %1761 = vtanh.f32 %v1175_v40  ;;  %v1117_v45 = vmul.f32 0.044715, %v1077_v48 }
 0x15c   : > { %1243 = vst.msk [vmem:[%s2129_s28 + $0x58] sm:$0xff] %vm772_vm0, %v1227_v11  ;;  %v1167_v59 = vadd.f32 %v1151_v44, %v2119_v36  ;;  %v1141_v51 = vmul.f32 %v1125_v30, %v2122_v14  ;;  %v1094_v2 = vmul.f32 0.5, %v2084_v22  ;;  %v1102_v53 = vmul.f32 0.5, %v2089_v33 }
 0x15d   : > { %1233 = vst.msk [vmem:[%s2129_s28 + $0x8] sm:$0xff] %vm772_vm0, %v1217_v24  ;;  %v1754_v4 = vpop.eup %1753  ;;  %v1225_v15 = vmul.f32 %v1209_v46, %v1097_v27  ;;  %v1133_v31 = vmul.f32 %v1117_v45, %v1077_v48  ;;  %v1092_v29 = vmul.f32 0.5, %v2097_v21  ;;  %v1100_v63 = vmul.f32 0.5, %v2101_v42 }
 0x15e   : > { %v1206_v13 = vadd.f32 1.0, %v1754_v4  ;;  %v1183_v52 = vmul.f32 0.7978846, %v1167_v59  ;;  %v1157_v54 = vadd.f32 %v1141_v51, %v2122_v14  ;;  %v1095_v1 = vmul.f32 0.5, %v2104_v28 }
 0x15f   : > { %v1756_v49 = vpop.eup %1755  ;;  %1241 = vst.msk [vmem:[%s2129_s28 + $0x48] sm:$0xff] %vm772_vm0, %v1225_v15  ;;  %v1149_v50 = vmul.f32 %v1133_v31, %v1077_v48  ;;  %v1103_v7 = vmul.f32 0.5, %v2119_v36  ;;  %v1093_v28 = vmul.f32 0.5, %v2122_v14  ;;  %v1101_v16 = vmul.f32 0.5, %v1077_v48 }
 0x160   : > { %v1222_v55 = vmul.f32 %v1206_v13, %v1094_v2  ;;  %v1214_v56 = vadd.f32 1.0, %v1756_v49  ;;  %1763 = vtanh.f32 %v1183_v52  ;;  %v1173_v57 = vmul.f32 0.7978846, %v1157_v54 }
 0x161   : > { %v1165_v60 = vadd.f32 %v1149_v50, %v1077_v48 }
 0x162   : > { %v1758_v58 = vpop.eup %1757  ;;  %1238 = vst.msk [vmem:[%s2129_s28 + $0x30] sm:$0xff] %vm772_vm0, %v1222_v55  ;;  %v1230_v22 = vmul.f32 %v1214_v56, %v1102_v53  ;;  %1765 = vtanh.f32 %v1173_v57 }
 0x163   : > { %v1204_v23 = vadd.f32 1.0, %v1758_v58  ;;  %v1760_v33 = vpop.eup %1759  ;;  %v1181_v61 = vmul.f32 0.7978846, %v1165_v60 }
 0x164   : > { %1246 = vst.msk [vmem:[%s2129_s28 + $0x70] sm:$0xff] %vm772_vm0, %v1230_v22  ;;  %v1212_v0 = vadd.f32 1.0, %v1760_v33 }
 0x165   : > { %v1762_v62 = vpop.eup %1761  ;;  %v1220_v32 = vmul.f32 %v1204_v23, %v1092_v29  ;;  %1767 = vtanh.f32 %v1181_v61 }
 0x166   : > { %v1207_v3 = vadd.f32 1.0, %v1762_v62  ;;  %v1228_v21 = vmul.f32 %v1212_v0, %v1100_v63 }
 0x167   : > { %1236 = vst.msk [vmem:[%s2129_s28 + $0x20] sm:$0xff] %vm772_vm0, %v1220_v32 }
 0x168   : > { %v1223_v5 = vmul.f32 %v1207_v3, %v1095_v1  ;;  %1244 = vst.msk [vmem:[%s2129_s28 + $0x60] sm:$0xff] %vm772_vm0, %v1228_v21 }
 0x16a   : > { %v1764_v6 = vpop.eup %1763  ;;  %1239 = vst.msk [vmem:[%s2129_s28 + $0x38] sm:$0xff] %vm772_vm0, %v1223_v5 }
 0x16b   : > { %v1215_v42 = vadd.f32 1.0, %v1764_v6 }
 0x16c   : > { %v1766_v8 = vpop.eup %1765 }
 0x16d   : > { %v1231_v47 = vmul.f32 %v1215_v42, %v1103_v7  ;;  %v1205_v9 = vadd.f32 1.0, %v1766_v8 }
 0x16f   : > { %1247 = vst.msk [vmem:[%s2129_s28 + $0x78] sm:$0xff] %vm772_vm0, %v1231_v47  ;;  %v1768_v10 = vpop.eup %1767  ;;  %v1221_v12 = vmul.f32 %v1205_v9, %v1093_v28 }
 0x170   : > { %v1213_v17 = vadd.f32 1.0, %v1768_v10 }
 0x171   : > { %1237 = vst.msk [vmem:[%s2129_s28 + $0x28] sm:$0xff] %vm772_vm0, %v1221_v12 }
 0x172   : > { %v1229_v18 = vmul.f32 %v1213_v17, %v1101_v16 }
 0x174   : > { %1245 = vst.msk [vmem:[%s2129_s28 + $0x68] sm:$0xff] %vm772_vm0, %v1229_v18 }
 0x175 PF: > { %s13_s14 = sadd.s32 1, %s1791_s14   ;;  %s2203_s12 = smov %s1787_s13 }
 0x176   : > { %p10_p5 = scmp.ge.s32.totalorder %s13_s14, 4   ;;  %s2204_s13 = smov %s2206_s15 }
 0x178   :  { %12 = sbr.rel (!%p10_p5) target bundleno = 2 (0x2), region = 68 }

// kernel: fsnet_fwd.34
= control target key start
LH: loop header
LB: loop body
LE: loop exit
PB: predicated region body
PF: predicated region fallthrough
CT: control target
= control target key end

     0   :  { %s1637_s12 = smov 0   ;;  %s1639_s13 = smov 0   ;;  %s1917_s0 = inlined_call_operand.vmem [shape: bf16[256,576], index: 0, kind: input, shape index: {}]   ;;  %s1918_s1 = inlined_call_operand.vmem [shape: bf16[576,128], index: 1, kind: input, shape index: {}]   ;;  %s1919_s2 = inlined_call_operand.vmem [shape: f32[1,128], index: 2, kind: input, shape index: {}]   ;;  %s1920_s3 = inlined_call_operand.vmem [shape: f32[256,64], index: 3, kind: output, shape index: {}]  }
   0x1   :  { %s1641_s14 = smov 0  }
   0x2 LB: > { %s25_s15 = sadd.s32 1, %s1611_s13  ;;  %p1212_p0 = scmp.ge.s32.totalorder %s1615_s14, 1  ;;  %s1615_s14 = sphi %s1641_s14, %s13_s14   ;;  %s1611_s13 = sphi %s1639_s13, %s1922_s13   ;;  %s1607_s12 = sphi %s1637_s12, %s1921_s12  }
   0x3   : > { %p27_p1 = scmp.ge.s32.totalorder %s25_s15, 2  ;;  %p170_p2 = scmp.lt.s32.totalorder %s1615_s14, 3 }
   0x5   : > { %s1924_s15 = smov (%p27_p1, %s25_s15), 0  ;;  %p171_p3 = pnand %p1212_p0, %p170_p2 }
   0x6   : > { %v1501_v0 = vld [vmem:[%s1918_s1 + $0x40] sm:$0xff] (!%p171_p3)   ;;  %v1505_v4 = vld [vmem:[%s1918_s1 + $0x48] sm:$0xff] (!%p171_p3)   ;;  %v1509_v8 = vld [vmem:[%s1918_s1 + $0x50] sm:$0xff] (!%p171_p3)   ;;  %s1213_s23 = sshll.u32 (!%p171_p3), %s1607_s12, 4  ;;  %vm772_vm0 = vcmask (!%p171_p3), 523264  }
   0x7   : > { %174 = sbr.rel (%p171_p3) target bundleno = 331 (0x14b), region = 32  ;;  %v1502_v1 = vld [vmem:[%s1918_s1 + $0xc0] sm:$0xff] (!%p171_p3)   ;;  %1304 = vmatprep.subr.bf16.mxu0 (!%p171_p3), %v1501_v0  ;;  %v1506_v5 = vld [vmem:[%s1918_s1 + $0xc8] sm:$0xff] (!%p171_p3)   ;;  %v1510_v9 = vld [vmem:[%s1918_s1 + $0xd0] sm:$0xff] (!%p171_p3)   ;;  %p206_p4 = scmp.lt.s32.totalorder (!%p171_p3), %s1213_s23, 31 }
   0x8   : > { %v1503_v2 = vld [vmem:[%s1918_s1] sm:$0xff] (!%p171_p3)   ;;  %1368 = vmatprep.subr.bf16.mxu1 (!%p171_p3), %v1502_v1  ;;  %v1507_v6 = vld [vmem:[%s1918_s1 + $0x8] sm:$0xff] (!%p171_p3)   ;;  %v1511_v10 = vld [vmem:[%s1918_s1 + $0x10] sm:$0xff] (!%p171_p3)  }
   0x9   : > { %v1504_v3 = vld [vmem:[%s1918_s1 + $0x80] sm:$0xff] (!%p171_p3)   ;;  %1305 = vmatpush3.bf16.msra.mxu0 (!%p171_p3), %v1503_v2  ;;  %v1508_v7 = vld [vmem:[%s1918_s1 + $0x88] sm:$0xff] (!%p171_p3)   ;;  %v1512_v11 = vld [vmem:[%s1918_s1 + $0x90] sm:$0xff] (!%p171_p3)  }
   0xa   : > { %1369 = vmatpush3.bf16.msra.mxu1 (!%p171_p3), %v1504_v3  ;;  %1306 = vmatprep.subr.bf16.mxu0 (!%p171_p3), %v1505_v4  ;;  %v1513_v12 = vld [vmem:[%s1918_s1 + $0x58] sm:$0xff] (!%p171_p3)   ;;  %v1517_v16 = vld [vmem:[%s1918_s1 + $0x60] sm:$0xff] (!%p171_p3)   ;;  %v1521_v20 = vld [vmem:[%s1918_s1 + $0x68] sm:$0xff] (!%p171_p3)  }
   0xb   : > { %1370 = vmatprep.subr.bf16.mxu1 (!%p171_p3), %v1506_v5  ;;  %v1514_v13 = vld [vmem:[%s1918_s1 + $0xd8] sm:$0xff] (!%p171_p3)   ;;  %v1518_v17 = vld [vmem:[%s1918_s1 + $0xe0] sm:$0xff] (!%p171_p3)   ;;  %v1522_v21 = vld [vmem:[%s1918_s1 + $0xe8] sm:$0xff] (!%p171_p3)  }
   0xc   : > { %v1515_v14 = vld [vmem:[%s1918_s1 + $0x18] sm:$0xff] (!%p171_p3)   ;;  %v1519_v18 = vld [vmem:[%s1918_s1 + $0x20] sm:$0xff] (!%p171_p3)   ;;  %v1523_v22 = vld [vmem:[%s1918_s1 + $0x28] sm:$0xff] (!%p171_p3)  }
   0xd   : > { %1307 = vmatpush3.bf16.msra.mxu0 (!%p171_p3), %v1507_v6  ;;  %v1516_v15 = vld [vmem:[%s1918_s1 + $0x98] sm:$0xff] (!%p171_p3)   ;;  %v1520_v19 = vld [vmem:[%s1918_s1 + $0xa0] sm:$0xff] (!%p171_p3)   ;;  %v1524_v23 = vld [vmem:[%s1918_s1 + $0xa8] sm:$0xff] (!%p171_p3)  }
   0xe   : > { %1371 = vmatpush3.bf16.msra.mxu1 %v1508_v7  ;;  %1308 = vmatprep.subr.bf16.mxu0 %v1509_v8  ;;  %s1926_s23 = smov (!%p206_p4, %s1213_s23), 31  ;;  %v1525_v24 = vld [vmem:[%s1918_s1 + $0x70] sm:$0xff]   ;;  %v1529_v28 = vld [vmem:[%s1918_s1 + $0x78] sm:$0xff]   ;;  %v1539_v36 = vld [vmem:[%s1918_s1 + $0x100] sm:$0xff]  }
   0xf   : > { %1372 = vmatprep.subr.bf16.mxu1 %v1510_v9  ;;  %v1526_v25 = vld [vmem:[%s1918_s1 + $0xf0] sm:$0xff]   ;;  %s1476_s22 = smul.u32 20, %s1926_s23  ;;  %v1530_v29 = vld [vmem:[%s1918_s1 + $0xf8] sm:$0xff]   ;;  %v1552_v42 = vld [vmem:[%s1918_s1 + $0x108] sm:$0xff]   ;;  %s1216_s26 = sshll.u32 %s1926_s23, 3 }
  0x10   : > { %v1527_v26 = vld [vmem:[%s1918_s1 + $0x30] sm:$0xff]   ;;  %v1531_v30 = vld [vmem:[%s1918_s1 + $0x38] sm:$0xff]   ;;  %s1865_s29 = scalar_lea.vmem %s1920_s3, %s1216_s26 }
  0x11   : > { %1309 = vmatpush3.bf16.msra.mxu0 %v1511_v10  ;;  %v1528_v27 = vld [vmem:[%s1918_s1 + $0xb0] sm:$0xff]   ;;  %s1754_s6 = scalar_lea.vmem %s1917_s0, %s1476_s22  ;;  %v1532_v31 = vld [vmem:[%s1918_s1 + $0xb8] sm:$0xff]  }
  0x12   : > { %1373 = vmatpush3.bf16.msra.mxu1 %v1512_v11  ;;  %1310 = vmatprep.subr.bf16.mxu0 %v1513_v12  ;;  %v1533_v32 = vld [vmem:[%s1754_s6] ss:$20 sps:$4 sm:$0xff]   ;;  %v1535_v33 = vld [vmem:[%s1754_s6 + $0x4] ss:$20 sps:$4 sm:$0xff]   ;;  %v1536_v34 = vld [vmem:[%s1754_s6 + $0x8] ss:$20 sps:$4 sm:$0xff]  }
  0x13   : > { %1374 = vmatprep.subr.bf16.mxu1 %v1514_v13  ;;  %v1538_v35 = vld [vmem:[%s1754_s6 + $0xc] ss:$20 sps:$4 sm:$0xff]   ;;  %829 = vmatprep.mubr.bf16.mxu0 %v1535_v33  ;;  %v1542_v38 = vld [vmem:[%s1754_s6 + $0x34] ss:$20 sps:$4 sm:$0xff]   ;;  %v1545_v40 = vld [vmem:[%s1754_s6 + $0x30] ss:$20 sps:$4 sm:$0xff]  }
  0x14   : > { %926 = vmatprep.mubr.bf16.mxu1 %v1538_v35  ;;  %v1540_v37 = vld [vmem:[%s1754_s6 + $0x2c] ss:$20 sps:$4 sm:$0xff]   ;;  %v1544_v39 = vld [vmem:[%s1754_s6 + $0x28] ss:$20 sps:$4 sm:$0xff]   ;;  %v1550_v44 = vld [vmem:[%s1754_s6 + $0x50] ss:$20 sps:$4 sm:$0xff]  }
  0x15   : > { %1311 = vmatpush3.bf16.msra.mxu0 %v1515_v14  ;;  %v1546_v41 = vld [vmem:[%s1754_s6 + $0x54] ss:$20 sps:$4 sm:$0xff]   ;;  %v1548_v43 = vld [vmem:[%s1754_s6 + $0x5c] ss:$20 sps:$4 sm:$0xff]   ;;  %v1551_v45 = vld [vmem:[%s1754_s6 + $0x58] ss:$20 sps:$4 sm:$0xff]  }
  0x16   : > { %1375 = vmatpush3.bf16.msra.mxu1 %v1516_v15  ;;  %1312 = vmatprep.subr.bf16.mxu0 %v1517_v16  ;;  %v1565_v46 = vld [vmem:[%s1918_s1 + $0x110] sm:$0xff]   ;;  %v1555_v48 = vld [vmem:[%s1754_s6 + $0x84] ss:$20 sps:$4 sm:$0xff]   ;;  %v1561_v53 = vld [vmem:[%s1754_s6 + $0xac] ss:$20 sps:$4 sm:$0xff]  }
  0x17   : > { %1376 = vmatprep.subr.bf16.mxu1 %v1518_v17  ;;  %v1553_v47 = vld [vmem:[%s1754_s6 + $0x7c] ss:$20 sps:$4 sm:$0xff]   ;;  %v1557_v50 = vld [vmem:[%s1754_s6 + $0x78] ss:$20 sps:$4 sm:$0xff]   ;;  %v1558_v51 = vld [vmem:[%s1754_s6 + $0x80] ss:$20 sps:$4 sm:$0xff]  }
  0x18   : > { %v1578_v49 = vld [vmem:[%s1918_s1 + $0x118] sm:$0xff]   ;;  %v1563_v54 = vld [vmem:[%s1754_s6 + $0xa0] ss:$20 sps:$4 sm:$0xff]   ;;  %v1571_v59 = vld [vmem:[%s1754_s6 + $0xd0] ss:$20 sps:$4 sm:$0xff]  }
  0x19   : > { %1313 = vmatpush3.bf16.msra.mxu0 %v1519_v18  ;;  %v1559_v52 = vld [vmem:[%s1754_s6 + $0xa4] ss:$20 sps:$4 sm:$0xff]   ;;  %v1564_v55 = vld [vmem:[%s1754_s6 + $0xa8] ss:$20 sps:$4 sm:$0xff]   ;;  %v1566_v56 = vld [vmem:[%s1754_s6 + $0xcc] ss:$20 sps:$4 sm:$0xff]  }
  0x1a   : > { %1377 = vmatpush3.bf16.msra.mxu1 %v1520_v19  ;;  %1314 = vmatprep.subr.bf16.mxu0 %v1521_v20  ;;  %v1568_v57 = vld [vmem:[%s1754_s6 + $0xd4] ss:$20 sps:$4 sm:$0xff]   ;;  %v1574_v61 = vld [vmem:[%s1754_s6 + $0xfc] ss:$20 sps:$4 sm:$0xff]   ;;  %v1577_v63 = vld [vmem:[%s1754_s6 + $0xf8] ss:$20 sps:$4 sm:$0xff]  }
  0x1b   : > { %1378 = vmatprep.subr.bf16.mxu1 %v1522_v21  ;;  %v1570_v58 = vld [vmem:[%s1754_s6 + $0xc8] ss:$20 sps:$4 sm:$0xff]   ;;  %v1576_v62 = vld [vmem:[%s1754_s6 + $0xf0] ss:$20 sps:$4 sm:$0xff]   ;;  %v1583_v2 = vld [vmem:[%s1754_s6 + $0x118] ss:$20 sps:$4 sm:$0xff]  }
  0x1c   : > { %v1572_v60 = vld [vmem:[%s1754_s6 + $0xf4] ss:$20 sps:$4 sm:$0xff]   ;;  %v1579_v0 = vld [vmem:[%s1754_s6 + $0x11c] ss:$20 sps:$4 sm:$0xff]   ;;  %v1581_v1 = vld [vmem:[%s1754_s6 + $0x124] ss:$20 sps:$4 sm:$0xff]  }
  0x1d   : > { %1315 = vmatpush3.bf16.msra.mxu0 %v1523_v22  ;;  %v1584_v3 = vld [vmem:[%s1754_s6 + $0x120] ss:$20 sps:$4 sm:$0xff]   ;;  %v1585_v4 = vld [vmem:[%s1754_s6 + $0x10] ss:$20 sps:$4 sm:$0xff]   ;;  %v1587_v6 = vld [vmem:[%s1754_s6 + $0x38] ss:$20 sps:$4 sm:$0xff]  }
  0x1e   : > { %1379 = vmatpush3.bf16.msra.mxu1 %v1524_v23  ;;  %1316 = vmatprep.subr.bf16.mxu0 %v1525_v24  ;;  %v1586_v5 = vld [vmem:[%s1754_s6 + $0xb0] ss:$20 sps:$4 sm:$0xff]   ;;  %v1588_v7 = vld [vmem:[%s1754_s6 + $0xd8] ss:$20 sps:$4 sm:$0xff]   ;;  %v1589_v8 = vld [vmem:[%s1754_s6 + $0x60] ss:$20 sps:$4 sm:$0xff]  }
  0x1f   : > { %1380 = vmatprep.subr.bf16.mxu1 %v1526_v25  ;;  %v1590_v9 = vld [vmem:[%s1754_s6 + $0x100] ss:$20 sps:$4 sm:$0xff]   ;;  %v1591_v10 = vld [vmem:[%s1754_s6 + $0x88] ss:$20 sps:$4 sm:$0xff]  }
  0x20   : > { %v1592_v11 = vld [vmem:[%s1754_s6 + $0x128] ss:$20 sps:$4 sm:$0xff]   ;;  %v1825_v14 = vld [vmem:[%s1919_s2] ss:$0 sm:$0xff] }
  0x21   : > { %1317 = vmatpush3.bf16.msra.mxu0 %v1527_v26 }
  0x22   : > { %1381 = vmatpush3.bf16.msra.mxu1 %v1528_v27  ;;  %1318 = vmatprep.subr.bf16.mxu0 %v1529_v28 }
  0x23   : > { %1382 = vmatprep.subr.bf16.mxu1 %v1530_v29 }
  0x25   : > { %1319 = vmatpush3.bf16.msra.mxu0 %v1531_v30 }
  0x26   : > { %1383 = vmatpush3.bf16.msra.mxu1 %v1532_v31  ;;  %1444 = vmatprep.subr.bf16.mxu0 %v1539_v36 }
  0x27   : > { %1468 = vmatprep.subr.bf16.mxu1 %v1539_v36 }
  0x28   : > { %830 = vmatmul.mubr.bf16.vlgmr.msra.gmra.mrb[0].mxu0 %v1533_v32 }
  0x29   : > { %927 = vmatmul.mubr.bf16.vlgmr.msra.gmra.mrb[0].mxu1 %v1536_v34  ;;  %1445 = vmatpush3.bf16.msra.mxu0 %v1539_v36 }
  0x2a   : > { %1472 = vmatpush3.bf16.msra.mxu1 %v1539_v36  ;;  %837 = vmatprep.mubr.bf16.mxu0 %v1540_v37 }
  0x2b   : > { %934 = vmatprep.mubr.bf16.mxu1 %v1542_v38  ;;  %1446 = vmatprep.subr.bf16.mxu0 %v1552_v42 }
  0x2c   : > { %1469 = vmatprep.subr.bf16.mxu1 %v1552_v42 }
  0x2d   : > { %1447 = vmatpush3.bf16.msra.mxu0 %v1552_v42 }
  0x2e   : > { %1473 = vmatpush3.bf16.msra.mxu1 %v1552_v42  ;;  %1448 = vmatprep.subr.bf16.mxu0 %v1565_v46 }
  0x2f   : > { %1470 = vmatprep.subr.bf16.mxu1 %v1565_v46 }
  0x30   : > { %838 = vmatmul.mubr.bf16.gmra.mrb[4].mxu0 %v1544_v39 }
  0x31   : > { %935 = vmatmul.mubr.bf16.gmra.mrb[4].mxu1 %v1545_v40  ;;  %845 = vmatprep.mubr.bf16.mxu0 %v1546_v41 }
  0x32   : > { %942 = vmatprep.mubr.bf16.mxu1 %v1548_v43  ;;  %1449 = vmatpush3.bf16.msra.mxu0 %v1565_v46 }
  0x33   : > { %1474 = vmatpush3.bf16.msra.mxu1 %v1565_v46  ;;  %1450 = vmatprep.subr.bf16.mxu0 %v1578_v49 }
  0x34   : > { %1471 = vmatprep.subr.bf16.mxu1 %v1578_v49 }
  0x36   : > { %1451 = vmatpush3.bf16.msra.mxu0 %v1578_v49 }
  0x37   : > { %1475 = vmatpush3.bf16.msra.mxu1 %v1578_v49 }
  0x38   : > { %846 = vmatmul.mubr.bf16.gmra.mrb[8].mxu0 %v1550_v44 }
  0x39   : > { %943 = vmatmul.mubr.bf16.gmra.mrb[8].mxu1 %v1551_v45  ;;  %853 = vmatprep.mubr.bf16.mxu0 %v1553_v47 }
  0x3a   : > { %950 = vmatprep.mubr.bf16.mxu1 %v1555_v48 }
  0x40   : > { %854 = vmatmul.mubr.bf16.gmra.mrb[12].mxu0 %v1557_v50 }
  0x41   : > { %951 = vmatmul.mubr.bf16.gmra.mrb[12].mxu1 %v1558_v51  ;;  %861 = vmatprep.mubr.bf16.mxu0 %v1559_v52 }
  0x42   : > { %958 = vmatprep.mubr.bf16.mxu1 %v1561_v53 }
  0x48   : > { %862 = vmatmul.mubr.bf16.gmra.mrb[16].mxu0 %v1563_v54 }
  0x49   : > { %959 = vmatmul.mubr.bf16.gmra.mrb[16].mxu1 %v1564_v55  ;;  %869 = vmatprep.mubr.bf16.mxu0 %v1566_v56 }
  0x4a   : > { %966 = vmatprep.mubr.bf16.mxu1 %v1568_v57 }
  0x50   : > { %870 = vmatmul.mubr.bf16.gmra.mrb[20].mxu0 %v1570_v58 }
  0x51   : > { %967 = vmatmul.mubr.bf16.gmra.mrb[20].mxu1 %v1571_v59  ;;  %877 = vmatprep.mubr.bf16.mxu0 %v1572_v60 }
  0x52   : > { %974 = vmatprep.mubr.bf16.mxu1 %v1574_v61 }
  0x58   : > { %878 = vmatmul.mubr.bf16.gmra.mrb[24].mxu0 %v1576_v62 }
  0x59   : > { %975 = vmatmul.mubr.bf16.gmra.mrb[24].mxu1 %v1577_v63  ;;  %885 = vmatprep.mubr.bf16.mxu0 %v1579_v0 }
  0x5a   : > { %982 = vmatprep.mubr.bf16.mxu1 %v1581_v1 }
  0x60   : > { %886 = vmatmul.mubr.bf16.gmra.mrb[28].mxu0 %v1583_v2 }
  0x61   : > { %983 = vmatmul.mubr.bf16.gmra.mrb[28].mxu1 %v1584_v3  ;;  %1452 = vmatprep.mubr.msk.bf16.mxu0 %vm772_vm0, %v1585_v4 }
  0x62   : > { %1460 = vmatprep.mubr.msk.bf16.mxu1 %vm772_vm0, %v1586_v5 }
  0x68   : > { %1453 = vmatmul.mubr.msk.bf16.vlgmr.msra.gmra.mrb[32].mxu0 %vm772_vm0, %v1587_v6 }
  0x69   : > { %1461 = vmatmul.mubr.msk.bf16.vlgmr.msra.gmra.mrb[32].mxu1 %vm772_vm0, %v1588_v7  ;;  %1456 = vmatprep.mubr.msk.bf16.mxu0 %vm772_vm0, %v1589_v8 }
  0x6a   : > { %1464 = vmatprep.mubr.msk.bf16.mxu1 %vm772_vm0, %v1590_v9 }
  0x70   : > { %1457 = vmatmul.mubr.msk.bf16.gmra.mrb[36].mxu0 %vm772_vm0, %v1591_v10 }
  0x71   : > { %1465 = vmatmul.mubr.msk.bf16.gmra.mrb[36].mxu1 %vm772_vm0, %v1592_v11 }
  0xfb   : > { %v1320_v12 = vpop.f32.mrb[0].mxu0 }
  0xfc   : > { %v1384_v13 = vpop.f32.mrb[0].mxu1  ;;  %v1321_v15 = vpop.f32.mrb[1].mxu0 }
  0xfd   : > { %v1322_v16 = vadd.f32 %v1321_v15, %v1320_v12  ;;  %v1385_v17 = vpop.f32.mrb[1].mxu1  ;;  %v1323_v18 = vpop.f32.mrb[2].mxu0 }
  0xfe   : > { %v1386_v19 = vadd.f32 %v1385_v17, %v1384_v13  ;;  %v1387_v20 = vpop.f32.mrb[2].mxu1  ;;  %v1324_v21 = vpop.f32.mrb[3].mxu0 }
  0xff   : > { %v832_v22 = vadd.f32 %v1322_v16, %v1825_v14  ;;  %v1325_v23 = vadd.f32 %v1324_v21, %v1323_v18  ;;  %v1388_v24 = vpop.f32.mrb[3].mxu1 }
 0x100   : > { %v1389_v25 = vadd.f32 %v1388_v24, %v1387_v20 }
 0x101   : > { %v835_v26 = vadd.f32 %v1325_v23, %v1825_v14  ;;  %v1829_v27 = vadd.f32 %v1386_v19, %v832_v22 }
 0x103   : > { %v1326_v28 = vpop.f32.mrb[4].mxu0  ;;  %v1831_v29 = vadd.f32 %v1389_v25, %v835_v26 }
 0x104   : > { %v1390_v30 = vpop.f32.mrb[4].mxu1  ;;  %v1327_v31 = vpop.f32.mrb[5].mxu0 }
 0x105   : > { %v1328_v32 = vadd.f32 %v1327_v31, %v1326_v28  ;;  %v1391_v33 = vpop.f32.mrb[5].mxu1  ;;  %v1329_v34 = vpop.f32.mrb[6].mxu0 }
 0x106   : > { %v1392_v35 = vadd.f32 %v1391_v33, %v1390_v30  ;;  %v1393_v36 = vpop.f32.mrb[6].mxu1  ;;  %v1330_v37 = vpop.f32.mrb[7].mxu0 }
 0x107   : > { %v840_v38 = vadd.f32 %v1328_v32, %v1825_v14  ;;  %v1331_v39 = vadd.f32 %v1330_v37, %v1329_v34  ;;  %v1394_v40 = vpop.f32.mrb[7].mxu1 }
 0x108   : > { %v1395_v41 = vadd.f32 %v1394_v40, %v1393_v36 }
 0x109   : > { %v843_v42 = vadd.f32 %v1331_v39, %v1825_v14  ;;  %v1835_v43 = vadd.f32 %v1392_v35, %v840_v38 }
 0x10b   : > { %v1332_v44 = vpop.f32.mrb[8].mxu0  ;;  %v1837_v45 = vadd.f32 %v1395_v41, %v843_v42 }
 0x10c   : > { %v1396_v46 = vpop.f32.mrb[8].mxu1  ;;  %v1333_v47 = vpop.f32.mrb[9].mxu0 }
 0x10d   : > { %v1334_v48 = vadd.f32 %v1333_v47, %v1332_v44  ;;  %v1397_v49 = vpop.f32.mrb[9].mxu1  ;;  %v1335_v50 = vpop.f32.mrb[10].mxu0 }
 0x10e   : > { %v1398_v51 = vadd.f32 %v1397_v49, %v1396_v46  ;;  %v1399_v52 = vpop.f32.mrb[10].mxu1  ;;  %v1336_v53 = vpop.f32.mrb[11].mxu0 }
 0x10f   : > { %v848_v54 = vadd.f32 %v1334_v48, %v1825_v14  ;;  %v1337_v55 = vadd.f32 %v1336_v53, %v1335_v50  ;;  %v1400_v56 = vpop.f32.mrb[11].mxu1 }
 0x110   : > { %v1401_v57 = vadd.f32 %v1400_v56, %v1399_v52 }
 0x111   : > { %v851_v58 = vadd.f32 %v1337_v55, %v1825_v14  ;;  %v1841_v59 = vadd.f32 %v1398_v51, %v848_v54 }
 0x113   : > { %v1338_v60 = vpop.f32.mrb[12].mxu0  ;;  %v1843_v61 = vadd.f32 %v1401_v57, %v851_v58 }
 0x114   : > { %v1402_v62 = vpop.f32.mrb[12].mxu1  ;;  %v1339_v63 = vpop.f32.mrb[13].mxu0 }
 0x115   : > { %v1340_v0 = vadd.f32 %v1339_v63, %v1338_v60  ;;  %v1403_v1 = vpop.f32.mrb[13].mxu1  ;;  %v1341_v2 = vpop.f32.mrb[14].mxu0 }
 0x116   : > { %v1404_v3 = vadd.f32 %v1403_v1, %v1402_v62  ;;  %v1405_v4 = vpop.f32.mrb[14].mxu1  ;;  %v1342_v5 = vpop.f32.mrb[15].mxu0 }
 0x117   : > { %v856_v6 = vadd.f32 %v1340_v0, %v1825_v14  ;;  %v1343_v7 = vadd.f32 %v1342_v5, %v1341_v2  ;;  %v1406_v8 = vpop.f32.mrb[15].mxu1 }
 0x118   : > { %v1407_v9 = vadd.f32 %v1406_v8, %v1405_v4 }
 0x119   : > { %v859_v10 = vadd.f32 %v1343_v7, %v1825_v14  ;;  %v1847_v11 = vadd.f32 %v1404_v3, %v856_v6 }
 0x11b   : > { %v1344_v12 = vpop.f32.mrb[16].mxu0  ;;  %v1849_v13 = vadd.f32 %v1407_v9, %v859_v10 }
 0x11c   : > { %v1408_v15 = vpop.f32.mrb[16].mxu1  ;;  %v1345_v16 = vpop.f32.mrb[17].mxu0 }
 0x11d   : > { %v1346_v17 = vadd.f32 %v1345_v16, %v1344_v12  ;;  %v1409_v18 = vpop.f32.mrb[17].mxu1  ;;  %v1347_v19 = vpop.f32.mrb[18].mxu0 }
 0x11e   : > { %v1410_v20 = vadd.f32 %v1409_v18, %v1408_v15  ;;  %v1411_v21 = vpop.f32.mrb[18].mxu1  ;;  %v1348_v22 = vpop.f32.mrb[19].mxu0 }
 0x11f   : > { %v864_v23 = vadd.f32 %v1346_v17, %v1825_v14  ;;  %v1349_v24 = vadd.f32 %v1348_v22, %v1347_v19  ;;  %v1412_v25 = vpop.f32.mrb[19].mxu1 }
 0x120   : > { %v1413_v26 = vadd.f32 %v1412_v25, %v1411_v21 }
 0x121   : > { %v867_v28 = vadd.f32 %v1349_v24, %v1825_v14  ;;  %v961_v30 = vadd.f32 %v1410_v20, %v864_v23 }
 0x123   : > { %v1350_v31 = vpop.f32.mrb[20].mxu0  ;;  %v1853_v32 = vadd.f32 %v1413_v26, %v867_v28 }
 0x124   : > { %v1414_v33 = vpop.f32.mrb[20].mxu1  ;;  %v1351_v34 = vpop.f32.mrb[21].mxu0 }
 0x125   : > { %v1352_v35 = vadd.f32 %v1351_v34, %v1350_v31  ;;  %v1415_v36 = vpop.f32.mrb[21].mxu1  ;;  %v1353_v37 = vpop.f32.mrb[22].mxu0 }
 0x126   : > { %v1416_v38 = vadd.f32 %v1415_v36, %v1414_v33  ;;  %v1417_v39 = vpop.f32.mrb[22].mxu1  ;;  %v1354_v40 = vpop.f32.mrb[23].mxu0 }
 0x127   : > { %v872_v41 = vadd.f32 %v1352_v35, %v1825_v14  ;;  %v1355_v42 = vadd.f32 %v1354_v40, %v1353_v37  ;;  %v1418_v44 = vpop.f32.mrb[23].mxu1 }
 0x128   : > { %v1419_v46 = vadd.f32 %v1418_v44, %v1417_v39 }
 0x129   : > { %v875_v47 = vadd.f32 %v1355_v42, %v1825_v14  ;;  %v969_v48 = vadd.f32 %v1416_v38, %v872_v41 }
 0x12b   : > { %v1356_v49 = vpop.f32.mrb[24].mxu0  ;;  %v972_v50 = vadd.f32 %v1419_v46, %v875_v47 }
 0x12c   : > { %v1420_v51 = vpop.f32.mrb[24].mxu1  ;;  %v1357_v52 = vpop.f32.mrb[25].mxu0 }
 0x12d   : > { %v1358_v53 = vadd.f32 %v1357_v52, %v1356_v49  ;;  %v1421_v54 = vpop.f32.mrb[25].mxu1  ;;  %v1359_v55 = vpop.f32.mrb[26].mxu0 }
 0x12e   : > { %v1422_v56 = vadd.f32 %v1421_v54, %v1420_v51  ;;  %v1423_v57 = vpop.f32.mrb[26].mxu1  ;;  %v1360_v58 = vpop.f32.mrb[27].mxu0 }
 0x12f   : > { %v880_v60 = vadd.f32 %v1358_v53, %v1825_v14  ;;  %v1361_v62 = vadd.f32 %v1360_v58, %v1359_v55  ;;  %v1424_v63 = vpop.f32.mrb[27].mxu1 }
 0x130   : > { %v1425_v0 = vadd.f32 %v1424_v63, %v1423_v57 }
 0x131   : > { %v883_v1 = vadd.f32 %v1361_v62, %v1825_v14  ;;  %v977_v2 = vadd.f32 %v1422_v56, %v880_v60 }
 0x133   : > { %v1362_v3 = vpop.f32.mrb[28].mxu0  ;;  %v980_v4 = vadd.f32 %v1425_v0, %v883_v1 }
 0x134   : > { %v1426_v5 = vpop.f32.mrb[28].mxu1  ;;  %v1363_v6 = vpop.f32.mrb[29].mxu0 }
 0x135   : > { %v1364_v7 = vadd.f32 %v1363_v6, %v1362_v3  ;;  %v1427_v8 = vpop.f32.mrb[29].mxu1  ;;  %v1365_v9 = vpop.f32.mrb[30].mxu0 }
 0x136   : > { %v1428_v10 = vadd.f32 %v1427_v8, %v1426_v5  ;;  %v1429_v12 = vpop.f32.mrb[30].mxu1  ;;  %v1366_v15 = vpop.f32.mrb[31].mxu0 }
 0x137   : > { %v888_v16 = vadd.f32 %v1364_v7, %v1825_v14  ;;  %v1367_v17 = vadd.f32 %v1366_v15, %v1365_v9  ;;  %v1430_v18 = vpop.f32.mrb[31].mxu1 }
 0x138   : > { %v1431_v19 = vadd.f32 %v1430_v18, %v1429_v12 }
 0x139   : > { %v891_v20 = vadd.f32 %v1367_v17, %v1825_v14  ;;  %v985_v21 = vadd.f32 %v1428_v10, %v888_v16 }
 0x13b   : > { %v1454_v22 = vpop.f32.mrb[32].mxu0  ;;  %v988_v23 = vadd.f32 %v1431_v19, %v891_v20 }
 0x13c   : > { %v1034_v24 = vadd.f32 %v1454_v22, %v1835_v43  ;;  %v1462_v25 = vpop.f32.mrb[32].mxu1  ;;  %v1025_v26 = vpop.f32.mrb[33].mxu0 }
 0x13d   : > { %v1066_v28 = vadd.f32 %v1462_v25, %v969_v48  ;;  %v1026_v14 = vadd.f32 %v1025_v26, %v1829_v27  ;;  %v1057_v31 = vpop.f32.mrb[33].mxu1  ;;  %v1455_v33 = vpop.f32.mrb[34].mxu0 }
 0x13e   : > { %1090 = vst.msk [vmem:[%s1865_s29 + $0x10] sm:$0xff] %vm772_vm0, %v1034_v24  ;;  %v1058_v34 = vadd.f32 %v1057_v31, %v961_v30  ;;  %v1037_v35 = vadd.f32 %v1455_v33, %v1837_v45  ;;  %v1463_v36 = vpop.f32.mrb[34].mxu1  ;;  %v1028_v37 = vpop.f32.mrb[35].mxu0 }
 0x13f   : > { %1098 = vst.msk [vmem:[%s1865_s29 + $0x50] sm:$0xff] %vm772_vm0, %v1066_v28  ;;  %1088 = vst.msk [vmem:[%s1865_s29] sm:$0xff] %vm772_vm0, %v1026_v14  ;;  %v1069_v43 = vadd.f32 %v1463_v36, %v972_v50  ;;  %v1029_v38 = vadd.f32 %v1028_v37, %v1831_v29  ;;  %v1060_v27 = vpop.f32.mrb[35].mxu1 }
 0x140   : > { %1096 = vst.msk [vmem:[%s1865_s29 + $0x40] sm:$0xff] %vm772_vm0, %v1058_v34  ;;  %1091 = vst.msk [vmem:[%s1865_s29 + $0x18] sm:$0xff] %vm772_vm0, %v1037_v35  ;;  %v1061_v39 = vadd.f32 %v1060_v27, %v1853_v32 }
 0x141   : > { %1099 = vst.msk [vmem:[%s1865_s29 + $0x58] sm:$0xff] %vm772_vm0, %v1069_v43  ;;  %1089 = vst.msk [vmem:[%s1865_s29 + $0x8] sm:$0xff] %vm772_vm0, %v1029_v38 }
 0x142   : > { %1097 = vst.msk [vmem:[%s1865_s29 + $0x48] sm:$0xff] %vm772_vm0, %v1061_v39 }
 0x143   : > { %v1458_v45 = vpop.f32.mrb[36].mxu0 }
 0x144   : > { %v1050_v30 = vadd.f32 %v1458_v45, %v1847_v11  ;;  %v1466_v29 = vpop.f32.mrb[36].mxu1  ;;  %v1041_v40 = vpop.f32.mrb[37].mxu0 }
 0x145   : > { %v1082_v41 = vadd.f32 %v1466_v29, %v985_v21  ;;  %v1042_v42 = vadd.f32 %v1041_v40, %v1841_v59  ;;  %v1073_v32 = vpop.f32.mrb[37].mxu1  ;;  %v1459_v44 = vpop.f32.mrb[38].mxu0 }
 0x146   : > { %1094 = vst.msk [vmem:[%s1865_s29 + $0x30] sm:$0xff] %vm772_vm0, %v1050_v30  ;;  %v1074_v46 = vadd.f32 %v1073_v32, %v977_v2  ;;  %v1053_v47 = vadd.f32 %v1459_v44, %v1849_v13  ;;  %v1467_v48 = vpop.f32.mrb[38].mxu1  ;;  %v1044_v49 = vpop.f32.mrb[39].mxu0 }
 0x147   : > { %1102 = vst.msk [vmem:[%s1865_s29 + $0x70] sm:$0xff] %vm772_vm0, %v1082_v41  ;;  %1092 = vst.msk [vmem:[%s1865_s29 + $0x20] sm:$0xff] %vm772_vm0, %v1042_v42  ;;  %v1085_v11 = vadd.f32 %v1467_v48, %v988_v23  ;;  %v1045_v50 = vadd.f32 %v1044_v49, %v1843_v61  ;;  %v1076_v59 = vpop.f32.mrb[39].mxu1 }
 0x148   : > { %1100 = vst.msk [vmem:[%s1865_s29 + $0x60] sm:$0xff] %vm772_vm0, %v1074_v46  ;;  %1095 = vst.msk [vmem:[%s1865_s29 + $0x38] sm:$0xff] %vm772_vm0, %v1053_v47  ;;  %v1077_v51 = vadd.f32 %v1076_v59, %v980_v4 }
 0x149   : > { %1103 = vst.msk [vmem:[%s1865_s29 + $0x78] sm:$0xff] %vm772_vm0, %v1085_v11  ;;  %1093 = vst.msk [vmem:[%s1865_s29 + $0x28] sm:$0xff] %vm772_vm0, %v1045_v50 }
 0x14a   : > { %1101 = vst.msk [vmem:[%s1865_s29 + $0x68] sm:$0xff] %vm772_vm0, %v1077_v51 }
 0x14b PF: > { %s13_s14 = sadd.s32 1, %s1615_s14   ;;  %s1921_s12 = smov %s1611_s13 }
 0x14c   : > { %p10_p5 = scmp.ge.s32.totalorder %s13_s14, 4   ;;  %s1922_s13 = smov %s1924_s15 }
 0x14e   :  { %12 = sbr.rel (!%p10_p5) target bundleno = 2 (0x2), region = 68 }

// kernel: fsnet_fwd.49
= control target key start
LH: loop header
LB: loop body
LE: loop exit
PB: predicated region body
PF: predicated region fallthrough
CT: control target
= control target key end

     0   :  { %s1996_s12 = smov 0   ;;  %s1998_s13 = smov 0   ;;  %s2635_s0 = inlined_call_operand.vmem [shape: bf16[289,256], index: 0, kind: input, shape index: {}]   ;;  %s2636_s1 = inlined_call_operand.vmem [shape: bf16[256,128], index: 1, kind: input, shape index: {}]   ;;  %s2637_s2 = inlined_call_operand.vmem [shape: f32[1,128], index: 2, kind: input, shape index: {}]   ;;  %s2638_s3 = inlined_call_operand.vmem [shape: f32[289,128], index: 3, kind: output, shape index: {}]  }
   0x1   :  { %s2000_s14 = smov 0   ;;  %s2002_s15 = smov 0  }
   0x2   :  { %s2004_s16 = smov 0  }
   0x3 LB: > { %s1431_s17 = sadd.s32 4294967295, %s1942_s16   ;;  %s25_s18 = sadd.s32 1, %s1938_s15  ;;  %s1942_s16 = sphi %s2004_s16, %s13_s16   ;;  %s1938_s15 = sphi %s2002_s15, %s2648_s15   ;;  %s1934_s14 = sphi %s2000_s14, %s2647_s14   ;;  %s1930_s13 = sphi %s1998_s13, %s2646_s13   ;;  %s1926_s12 = sphi %s1996_s12, %s2645_s12  }
   0x4   : > { %p27_p0 = scmp.ge.s32.totalorder %s25_s18, 2  ;;  %s112_s19 = sadd.s32 1, %s1930_s13 }
   0x5   : > { %p122_p1 = scmp.ne.s32.totalorder %s1930_s13, %s1926_s12  ;;  %p123_p2 = scmp.eq.s32.totalorder %s1431_s17, 1 }
   0x6   : > { %s2650_s18 = smov (%p27_p0, %s25_s18), 0  ;;  %p1437_p4 = scmp.ge.s32.totalorder %s1942_s16, 1 }
   0x7   : > { %p2028_p3 = por %p123_p2, %p122_p1  ;;  %s107_s21 = ssub.s32 %s1938_s15, %s2650_s18 }
   0x8   : > { %p180_p5 = scmp.lt.s32.totalorder %s1942_s16, 3  ;;  %p110_p6 = scmp.eq.s32.totalorder %s107_s21, 0 }
   0xa   : > { %p181_p7 = pnand %p1437_p4, %p180_p5 }
   0xb   : > { %s2037_s22 = scalar_select %p110_p6, %s1930_s13, %s112_s19  }
   0xc   : > { %184 = sbr.rel (%p181_p7) target bundleno = 423 (0x1a7), region = 32  ;;  %v1744_v0 = vld [vmem:[%s2636_s1 + $0x40] sm:$0xff] (!%p181_p7)   ;;  %s2043_s25 = sshll.u32 (!%p181_p7), %s1934_s14, 5  ;;  %v1746_v2 = vld [vmem:[%s2636_s1 + $0x48] sm:$0xff] (!%p181_p7)   ;;  %v1748_v4 = vld [vmem:[%s2636_s1 + $0x50] sm:$0xff] (!%p181_p7)  }
   0xd   : > { %v1745_v1 = vld [vmem:[%s2636_s1] sm:$0xff] (!%p181_p7)   ;;  %1512 = vmatprep.subr.bf16.mxu0 (!%p181_p7), %v1744_v0  ;;  %1624 = vmatprep.subr.bf16.mxu1 (!%p181_p7), %v1744_v0  ;;  %v1747_v3 = vld [vmem:[%s2636_s1 + $0x8] sm:$0xff] (!%p181_p7)   ;;  %p222_p8 = scmp.lt.s32.totalorder (!%p181_p7), %s2043_s25, 36  ;;  %v1749_v5 = vld [vmem:[%s2636_s1 + $0x10] sm:$0xff] (!%p181_p7)   ;;  %s213_s27 = sand.u32 (!%p181_p7), 1, %s1926_s12  }
   0xe   : > { %1513 = vmatpush3.bf16.msra.mxu0 (!%p181_p7), %v1745_v1  ;;  %1632 = vmatpush3.bf16.msra.mxu1 (!%p181_p7), %v1745_v1  ;;  %v1750_v6 = vld [vmem:[%s2636_s1 + $0x58] sm:$0xff] (!%p181_p7)   ;;  %v1752_v8 = vld [vmem:[%s2636_s1 + $0x60] sm:$0xff] (!%p181_p7)   ;;  %v1754_v10 = vld [vmem:[%s2636_s1 + $0x68] sm:$0xff] (!%p181_p7)   ;;  %s2181_s12 = sshll.u32 (!%p181_p7), %s213_s27, 8 }
   0xf   : > { %1514 = vmatprep.subr.bf16.mxu0 (!%p181_p7), %v1746_v2  ;;  %1625 = vmatprep.subr.bf16.mxu1 (!%p181_p7), %v1746_v2  ;;  %v1751_v7 = vld [vmem:[%s2636_s1 + $0x18] sm:$0xff] (!%p181_p7)   ;;  %v1753_v9 = vld [vmem:[%s2636_s1 + $0x20] sm:$0xff] (!%p181_p7)   ;;  %v1755_v13 = vld [vmem:[%s2636_s1 + $0x28] sm:$0xff] (!%p181_p7)  }
  0x10   : > { %v1756_v14 = vld [vmem:[%s2636_s1 + $0x70] sm:$0xff] (!%p181_p7)   ;;  %v1758_v16 = vld [vmem:[%s2636_s1 + $0x78] sm:$0xff] (!%p181_p7)   ;;  %v2132_v50 = vld [vmem:[%s2637_s2] ss:$0 sm:$0xff] (!%p181_p7) }
  0x11   : > { %v1757_v15 = vld [vmem:[%s2636_s1 + $0x30] sm:$0xff] (!%p181_p7)   ;;  %v1759_v17 = vld [vmem:[%s2636_s1 + $0x38] sm:$0xff] (!%p181_p7)  }
  0x12   : > { %1515 = vmatpush3.bf16.msra.mxu0 (!%p181_p7), %v1747_v3  ;;  %1633 = vmatpush3.bf16.msra.mxu1 (!%p181_p7), %v1747_v3 }
  0x13   : > { %s223_s9 = scalar_select %p222_p8, %s2043_s25, 36  ;;  %1516 = vmatprep.subr.bf16.mxu0 %v1748_v4  ;;  %1626 = vmatprep.subr.bf16.mxu1 %v1748_v4 }
  0x14   : > { %s1062_s29 = ssub.s32 (%p2028_p3), 37, %s2043_s25  ;;  %s1509_s30 = sshll.u32 (%p2028_p3), %s1934_s14, 8 }
  0x15   : > { %s1508_s21 = sshll.u32 %s223_s9, 3  ;;  %p1063_p9 = scmp.lt.s32.totalorder (%p2028_p3), %s1062_s29, 32 }
  0x16   : > { %1517 = vmatpush3.bf16.msra.mxu0 %v1749_v5  ;;  %1634 = vmatpush3.bf16.msra.mxu1 %v1749_v5  ;;  %s2074_s28 = scalar_lea.vmem %s2635_s0, %s1508_s21  ;;  %s2498_s6 = scalar_lea.vmem (%p2028_p3), %s2638_s3, %s1509_s30  }
  0x17   : > { %1518 = vmatprep.subr.bf16.mxu0 %v1750_v6  ;;  %1627 = vmatprep.subr.bf16.mxu1 %v1750_v6  ;;  %v1762_v11 = vld [vmem:[%s2074_s28 + $0x4] ss:$8 sps:$4 sm:$0xff]   ;;  %v1760_v18 = vld [vmem:[%s2074_s28] ss:$8 sps:$4 sm:$0xff]   ;;  %v1766_v20 = vld [vmem:[%s2074_s28 + $0x14] ss:$8 sps:$4 sm:$0xff]  }
  0x18   : > { %v1765_v12 = vld [vmem:[%s2074_s28 + $0x84] ss:$8 sps:$4 sm:$0xff]   ;;  %605 = vmatprep.mubr.bf16.mxu0 %v1762_v11  ;;  %v1763_v19 = vld [vmem:[%s2074_s28 + $0x80] ss:$8 sps:$4 sm:$0xff]   ;;  %v1768_v21 = vld [vmem:[%s2074_s28 + $0x94] ss:$8 sps:$4 sm:$0xff]  }
  0x19   : > { %669 = vmatprep.mubr.bf16.mxu1 %v1765_v12  ;;  %v1770_v22 = vld [vmem:[%s2074_s28 + $0x10] ss:$8 sps:$4 sm:$0xff]   ;;  %v1772_v24 = vld [vmem:[%s2074_s28 + $0x24] ss:$8 sps:$4 sm:$0xff]   ;;  %v1776_v26 = vld [vmem:[%s2074_s28 + $0x20] ss:$8 sps:$4 sm:$0xff]  }
  0x1a   : > { %1519 = vmatpush3.bf16.msra.mxu0 %v1751_v7  ;;  %1635 = vmatpush3.bf16.msra.mxu1 %v1751_v7  ;;  %v1771_v23 = vld [vmem:[%s2074_s28 + $0x90] ss:$8 sps:$4 sm:$0xff]   ;;  %v1774_v25 = vld [vmem:[%s2074_s28 + $0xa4] ss:$8 sps:$4 sm:$0xff]   ;;  %v1777_v27 = vld [vmem:[%s2074_s28 + $0xa0] ss:$8 sps:$4 sm:$0xff]  }
  0x1b   : > { %1520 = vmatprep.subr.bf16.mxu0 %v1752_v8  ;;  %1628 = vmatprep.subr.bf16.mxu1 %v1752_v8  ;;  %v1778_v28 = vld [vmem:[%s2074_s28 + $0x34] ss:$8 sps:$4 sm:$0xff]   ;;  %v1782_v30 = vld [vmem:[%s2074_s28 + $0x30] ss:$8 sps:$4 sm:$0xff]   ;;  %v1784_v32 = vld [vmem:[%s2074_s28 + $0x44] ss:$8 sps:$4 sm:$0xff]  }
  0x1c   : > { %v1780_v29 = vld [vmem:[%s2074_s28 + $0xb4] ss:$8 sps:$4 sm:$0xff]   ;;  %v1783_v31 = vld [vmem:[%s2074_s28 + $0xb0] ss:$8 sps:$4 sm:$0xff]   ;;  %v1786_v33 = vld [vmem:[%s2074_s28 + $0xc4] ss:$8 sps:$4 sm:$0xff]  }
  0x1d   : > { %v1788_v34 = vld [vmem:[%s2074_s28 + $0x40] ss:$8 sps:$4 sm:$0xff]   ;;  %v1790_v36 = vld [vmem:[%s2074_s28 + $0x54] ss:$8 sps:$4 sm:$0xff]   ;;  %v1794_v38 = vld [vmem:[%s2074_s28 + $0x50] ss:$8 sps:$4 sm:$0xff]  }
  0x1e   : > { %1521 = vmatpush3.bf16.msra.mxu0 %v1753_v9  ;;  %1636 = vmatpush3.bf16.msra.mxu1 %v1753_v9  ;;  %v1789_v35 = vld [vmem:[%s2074_s28 + $0xc0] ss:$8 sps:$4 sm:$0xff]   ;;  %v1792_v37 = vld [vmem:[%s2074_s28 + $0xd4] ss:$8 sps:$4 sm:$0xff]   ;;  %v1795_v39 = vld [vmem:[%s2074_s28 + $0xd0] ss:$8 sps:$4 sm:$0xff]  }
  0x1f   : > { %1522 = vmatprep.subr.bf16.mxu0 %v1754_v10  ;;  %1629 = vmatprep.subr.bf16.mxu1 %v1754_v10  ;;  %v1796_v40 = vld [vmem:[%s2074_s28 + $0x64] ss:$8 sps:$4 sm:$0xff]   ;;  %v1800_v42 = vld [vmem:[%s2074_s28 + $0x60] ss:$8 sps:$4 sm:$0xff]   ;;  %v1802_v44 = vld [vmem:[%s2074_s28 + $0x74] ss:$8 sps:$4 sm:$0xff]  }
  0x20   : > { %v1798_v41 = vld [vmem:[%s2074_s28 + $0xe4] ss:$8 sps:$4 sm:$0xff]   ;;  %v1801_v43 = vld [vmem:[%s2074_s28 + $0xe0] ss:$8 sps:$4 sm:$0xff]   ;;  %v1804_v45 = vld [vmem:[%s2074_s28 + $0xf4] ss:$8 sps:$4 sm:$0xff]  }
  0x21   : > { %v1806_v46 = vld [vmem:[%s2074_s28 + $0x70] ss:$8 sps:$4 sm:$0xff]  }
  0x22   : > { %1523 = vmatpush3.bf16.msra.mxu0 %v1755_v13  ;;  %1637 = vmatpush3.bf16.msra.mxu1 %v1755_v13  ;;  %v1807_v47 = vld [vmem:[%s2074_s28 + $0xf0] ss:$8 sps:$4 sm:$0xff]   ;;  %s2203_s28 = scalar_lea.vmem [#allocation2], %s2181_s12  }
  0x23   : > { %1524 = vmatprep.subr.bf16.mxu0 %v1756_v14  ;;  %1630 = vmatprep.subr.bf16.mxu1 %v1756_v14 }
  0x26   : > { %1525 = vmatpush3.bf16.msra.mxu0 %v1757_v15  ;;  %1638 = vmatpush3.bf16.msra.mxu1 %v1757_v15 }
  0x27   : > { %1526 = vmatprep.subr.bf16.mxu0 %v1758_v16  ;;  %1631 = vmatprep.subr.bf16.mxu1 %v1758_v16 }
  0x2a   : > { %1527 = vmatpush3.bf16.msra.mxu0 %v1759_v17  ;;  %1639 = vmatpush3.bf16.msra.mxu1 %v1759_v17 }
  0x2d   : > { %606 = vmatmul.mubr.bf16.vlgmr.msra.gmra.mrb[0].mxu0 %v1760_v18  ;;  %670 = vmatmul.mubr.bf16.vlgmr.msra.gmra.mrb[0].mxu1 %v1763_v19 }
  0x2e   : > { %613 = vmatprep.mubr.bf16.mxu0 %v1766_v20  ;;  %677 = vmatprep.mubr.bf16.mxu1 %v1768_v21 }
  0x35   : > { %614 = vmatmul.mubr.bf16.gmra.mrb[4].mxu0 %v1770_v22  ;;  %678 = vmatmul.mubr.bf16.gmra.mrb[4].mxu1 %v1771_v23 }
  0x36   : > { %621 = vmatprep.mubr.bf16.mxu0 %v1772_v24  ;;  %685 = vmatprep.mubr.bf16.mxu1 %v1774_v25 }
  0x3d   : > { %622 = vmatmul.mubr.bf16.gmra.mrb[8].mxu0 %v1776_v26  ;;  %686 = vmatmul.mubr.bf16.gmra.mrb[8].mxu1 %v1777_v27 }
  0x3e   : > { %629 = vmatprep.mubr.bf16.mxu0 %v1778_v28  ;;  %693 = vmatprep.mubr.bf16.mxu1 %v1780_v29 }
  0x45   : > { %630 = vmatmul.mubr.bf16.gmra.mrb[12].mxu0 %v1782_v30  ;;  %694 = vmatmul.mubr.bf16.gmra.mrb[12].mxu1 %v1783_v31 }
  0x46   : > { %637 = vmatprep.mubr.bf16.mxu0 %v1784_v32  ;;  %701 = vmatprep.mubr.bf16.mxu1 %v1786_v33 }
  0x4d   : > { %638 = vmatmul.mubr.bf16.gmra.mrb[16].mxu0 %v1788_v34  ;;  %702 = vmatmul.mubr.bf16.gmra.mrb[16].mxu1 %v1789_v35 }
  0x4e   : > { %645 = vmatprep.mubr.bf16.mxu0 %v1790_v36  ;;  %709 = vmatprep.mubr.bf16.mxu1 %v1792_v37 }
  0x55   : > { %646 = vmatmul.mubr.bf16.gmra.mrb[20].mxu0 %v1794_v38  ;;  %710 = vmatmul.mubr.bf16.gmra.mrb[20].mxu1 %v1795_v39 }
  0x56   : > { %653 = vmatprep.mubr.bf16.mxu0 %v1796_v40  ;;  %717 = vmatprep.mubr.bf16.mxu1 %v1798_v41 }
  0x5d   : > { %654 = vmatmul.mubr.bf16.gmra.mrb[24].mxu0 %v1800_v42  ;;  %718 = vmatmul.mubr.bf16.gmra.mrb[24].mxu1 %v1801_v43 }
  0x5e   : > { %661 = vmatprep.mubr.bf16.mxu0 %v1802_v44  ;;  %725 = vmatprep.mubr.bf16.mxu1 %v1804_v45 }
  0x65   : > { %662 = vmatmul.mubr.bf16.gmra.mrb[28].mxu0 %v1806_v46  ;;  %726 = vmatmul.mubr.bf16.gmra.mrb[28].mxu1 %v1807_v47 }
 0x100   : > { %v1528_v48 = vpop.f32.mrb[0].mxu0  ;;  %v1576_v49 = vpop.f32.mrb[0].mxu1 }
 0x101   : > { %v1529_v51 = vpop.f32.mrb[1].mxu0  ;;  %v1577_v52 = vpop.f32.mrb[1].mxu1 }
 0x102   : > { %v1530_v53 = vadd.f32 %v1529_v51, %v1528_v48  ;;  %v1578_v54 = vadd.f32 %v1577_v52, %v1576_v49  ;;  %v1531_v55 = vpop.f32.mrb[2].mxu0  ;;  %v1579_v56 = vpop.f32.mrb[2].mxu1 }
 0x103   : > { %v1532_v57 = vpop.f32.mrb[3].mxu0  ;;  %v1580_v58 = vpop.f32.mrb[3].mxu1 }
 0x104   : > { %v608_v59 = vadd.f32 %v1530_v53, %v2132_v50  ;;  %v672_v60 = vadd.f32 %v1578_v54, %v2132_v50  ;;  %v1533_v61 = vadd.f32 %v1532_v57, %v1531_v55  ;;  %v1581_v62 = vadd.f32 %v1580_v58, %v1579_v56 }
 0x106   : > { %v766_v63 = vmul.f32 0.044715, %v608_v59  ;;  %v782_v0 = vmul.f32 0.044715, %v672_v60  ;;  %v2137_v1 = vadd.f32 %v1533_v61, %v2132_v50  ;;  %v2140_v2 = vadd.f32 %v1581_v62, %v2132_v50 }
 0x107   : > { %v734_v43 = vmul.f32 0.5, %v608_v59  ;;  %v750_v55 = vmul.f32 0.5, %v672_v60 }
 0x108   : > { %v798_v3 = vmul.f32 %v766_v63, %v608_v59  ;;  %v814_v4 = vmul.f32 %v782_v0, %v672_v60  ;;  %v1534_v5 = vpop.f32.mrb[4].mxu0  ;;  %v1582_v6 = vpop.f32.mrb[4].mxu1  ;;  %v767_v7 = vmul.f32 0.044715, %v2137_v1  ;;  %v783_v8 = vmul.f32 0.044715, %v2140_v2 }
 0x109   : > { %v1535_v11 = vpop.f32.mrb[5].mxu0  ;;  %v1583_v12 = vpop.f32.mrb[5].mxu1 }
 0x10a   : > { %v830_v9 = vmul.f32 %v798_v3, %v608_v59  ;;  %v846_v10 = vmul.f32 %v814_v4, %v672_v60  ;;  %v799_v13 = vmul.f32 %v767_v7, %v2137_v1  ;;  %v815_v14 = vmul.f32 %v783_v8, %v2140_v2  ;;  %v1537_v17 = vpop.f32.mrb[6].mxu0  ;;  %v1585_v18 = vpop.f32.mrb[6].mxu1 }
 0x10b   : > { %v1536_v15 = vadd.f32 %v1535_v11, %v1534_v5  ;;  %v1584_v16 = vadd.f32 %v1583_v12, %v1582_v6  ;;  %v1538_v21 = vpop.f32.mrb[7].mxu0  ;;  %v1586_v22 = vpop.f32.mrb[7].mxu1  ;;  %v735_v4 = vmul.f32 0.5, %v2137_v1  ;;  %v751_v8 = vmul.f32 0.5, %v2140_v2 }
 0x10c   : > { %v862_v19 = vadd.f32 %v830_v9, %v608_v59  ;;  %v878_v20 = vadd.f32 %v846_v10, %v672_v60  ;;  %v831_v23 = vmul.f32 %v799_v13, %v2137_v1  ;;  %v847_v24 = vmul.f32 %v815_v14, %v2140_v2 }
 0x10d   : > { %v616_v25 = vadd.f32 %v1536_v15, %v2132_v50  ;;  %v2150_v26 = vadd.f32 %v1584_v16, %v2132_v50  ;;  %v1539_v29 = vadd.f32 %v1538_v21, %v1537_v17  ;;  %v1587_v30 = vadd.f32 %v1586_v22, %v1585_v18 }
 0x10e   : > { %v894_v27 = vmul.f32 0.7978846, %v862_v19  ;;  %v910_v28 = vmul.f32 0.7978846, %v878_v20  ;;  %v863_v31 = vadd.f32 %v831_v23, %v2137_v1  ;;  %v879_v32 = vadd.f32 %v847_v24, %v2140_v2 }
 0x10f   : > { %v768_v33 = vmul.f32 0.044715, %v616_v25  ;;  %v784_v34 = vmul.f32 0.044715, %v2150_v26  ;;  %v2156_v35 = vadd.f32 %v1539_v29, %v2132_v50  ;;  %v2161_v46 = vadd.f32 %v1587_v30, %v2132_v50 }
 0x110   : > { %1808 = vtanh.f32 %v894_v27  ;;  %v1540_v36 = vpop.f32.mrb[8].mxu0  ;;  %v1588_v37 = vpop.f32.mrb[8].mxu1  ;;  %v895_v38 = vmul.f32 0.7978846, %v863_v31  ;;  %v911_v39 = vmul.f32 0.7978846, %v879_v32 }
 0x111   : > { %1810 = vtanh.f32 %v910_v28  ;;  %v800_v40 = vmul.f32 %v768_v33, %v616_v25  ;;  %v1541_v41 = vpop.f32.mrb[9].mxu0  ;;  %v1589_v42 = vpop.f32.mrb[9].mxu1  ;;  %v816_v44 = vmul.f32 %v784_v34, %v2150_v26  ;;  %v769_v45 = vmul.f32 0.044715, %v2156_v35 }
 0x112   : > { %v1543_v47 = vpop.f32.mrb[10].mxu0  ;;  %v1591_v48 = vpop.f32.mrb[10].mxu1  ;;  %1812 = vtanh.f32 %v895_v38  ;;  %v1542_v51 = vadd.f32 %v1541_v41, %v1540_v36  ;;  %v1590_v52 = vadd.f32 %v1589_v42, %v1588_v37  ;;  %v785_v59 = vmul.f32 0.044715, %v2161_v46 }
 0x113   : > { %v832_v49 = vmul.f32 %v800_v40, %v616_v25  ;;  %v1544_v53 = vpop.f32.mrb[11].mxu0  ;;  %v1592_v54 = vpop.f32.mrb[11].mxu1  ;;  %1814 = vtanh.f32 %v911_v39  ;;  %v848_v56 = vmul.f32 %v816_v44, %v2150_v26  ;;  %v801_v57 = vmul.f32 %v769_v45, %v2156_v35 }
 0x114   : > { %v2167_v61 = vadd.f32 %v1542_v51, %v2132_v50  ;;  %v2170_v62 = vadd.f32 %v1590_v52, %v2132_v50  ;;  %v1545_v60 = vadd.f32 %v1544_v53, %v1543_v47  ;;  %v1593_v3 = vadd.f32 %v1592_v54, %v1591_v48 }
 0x115   : > { %v864_v58 = vadd.f32 %v832_v49, %v616_v25  ;;  %v880_v63 = vadd.f32 %v848_v56, %v2150_v26  ;;  %v833_v0 = vmul.f32 %v801_v57, %v2156_v35  ;;  %v817_v6 = vmul.f32 %v785_v59, %v2161_v46 }
 0x116   : > { %v770_v7 = vmul.f32 0.044715, %v2167_v61  ;;  %v786_v11 = vmul.f32 0.044715, %v2170_v62  ;;  %v2186_v14 = vadd.f32 %v1545_v60, %v2132_v50  ;;  %v2188_v2 = vmul.f32 0.5, %v616_v25 }
 0x117   : > { %v896_v5 = vmul.f32 0.7978846, %v864_v58  ;;  %v912_v9 = vmul.f32 0.7978846, %v880_v63  ;;  %v865_v10 = vadd.f32 %v833_v0, %v2156_v35  ;;  %v849_v13 = vmul.f32 %v817_v6, %v2161_v46 }
 0x118   : > { %v1546_v12 = vpop.f32.mrb[12].mxu0  ;;  %v802_v1 = vmul.f32 %v770_v7, %v2167_v61  ;;  %v1594_v15 = vpop.f32.mrb[12].mxu1  ;;  %v818_v19 = vmul.f32 %v786_v11, %v2170_v62  ;;  %v2194_v28 = vadd.f32 %v1593_v3, %v2132_v50  ;;  %v771_v32 = vmul.f32 0.044715, %v2186_v14 }
 0x119   : > { %1816 = vtanh.f32 %v896_v5  ;;  %v1547_v16 = vpop.f32.mrb[13].mxu0  ;;  %v897_v18 = vmul.f32 0.7978846, %v865_v10  ;;  %v1595_v20 = vpop.f32.mrb[13].mxu1  ;;  %v881_v24 = vadd.f32 %v849_v13, %v2161_v46  ;;  %v752_v37 = vmul.f32 0.5, %v2150_v26 }
 0x11a   : > { %v1809_v17 = vpop.eup %1808  ;;  %1818 = vtanh.f32 %v912_v9  ;;  %v1549_v21 = vpop.f32.mrb[14].mxu0  ;;  %v834_v27 = vmul.f32 %v802_v1, %v2167_v61  ;;  %v850_v31 = vmul.f32 %v818_v19, %v2170_v62  ;;  %v803_v45 = vmul.f32 %v771_v32, %v2186_v14 }
 0x11b   : > { %v1811_v22 = vpop.eup %1810  ;;  %v958_v23 = vadd.f32 1.0, %v1809_v17  ;;  %v1597_v29 = vpop.f32.mrb[14].mxu1  ;;  %1820 = vtanh.f32 %v897_v18  ;;  %v913_v38 = vmul.f32 0.7978846, %v881_v24  ;;  %v787_v26 = vmul.f32 0.044715, %v2194_v28 }
 0x11c   : > { %v1550_v30 = vpop.f32.mrb[15].mxu0  ;;  %v974_v25 = vadd.f32 1.0, %v1811_v22  ;;  %v1598_v33 = vpop.f32.mrb[15].mxu1  ;;  %v866_v39 = vadd.f32 %v834_v27, %v2167_v61  ;;  %v882_v44 = vadd.f32 %v850_v31, %v2170_v62  ;;  %v835_v51 = vmul.f32 %v803_v45, %v2186_v14 }
 0x11d   : > { %v1813_v34 = vpop.eup %1812  ;;  %v990_v36 = vmul.f32 %v958_v23, %v734_v43  ;;  %1822 = vtanh.f32 %v913_v38  ;;  %v1548_v52 = vadd.f32 %v1547_v16, %v1546_v12  ;;  %v819_v56 = vmul.f32 %v787_v26, %v2194_v28 }
 0x11e   : > { %v1815_v40 = vpop.eup %1814  ;;  %v1006_v41 = vmul.f32 %v974_v25, %v750_v55  ;;  %v959_v42 = vadd.f32 1.0, %v1813_v34  ;;  %v898_v43 = vmul.f32 0.7978846, %v866_v39  ;;  %v914_v49 = vmul.f32 0.7978846, %v882_v44 }
 0x11f   : > { %1022 = vst [vmem:[%s2203_s28] sm:$0xff] %v990_v36  ;;  %v975_v47 = vadd.f32 1.0, %v1815_v40  ;;  %v1596_v57 = vadd.f32 %v1595_v20, %v1594_v15  ;;  %v867_v63 = vadd.f32 %v835_v51, %v2186_v14  ;;  %v2217_v0 = vadd.f32 %v1548_v52, %v2132_v50 }
 0x120   : > { %1038 = vst [vmem:[%s2203_s28 + $0x80] sm:$0xff] %v1006_v41  ;;  %v991_v48 = vmul.f32 %v959_v42, %v735_v4  ;;  %v1552_v53 = vpop.f32.mrb[16].mxu0  ;;  %v2209_v54 = vpop.f32.mrb[16].mxu1  ;;  %1824 = vtanh.f32 %v898_v43  ;;  %v1551_v60 = vadd.f32 %v1550_v30, %v1549_v21  ;;  %v851_v6 = vmul.f32 %v819_v56, %v2194_v28 }
 0x121   : > { %v1007_v55 = vmul.f32 %v975_v47, %v751_v8  ;;  %v1553_v58 = vpop.f32.mrb[17].mxu0  ;;  %v2212_v59 = vpop.f32.mrb[17].mxu1  ;;  %1826 = vtanh.f32 %v914_v49  ;;  %v2226_v7 = vadd.f32 %v1596_v57, %v2132_v50  ;;  %v1599_v8 = vadd.f32 %v1598_v33, %v1597_v29 }
 0x122   : > { %1023 = vst [vmem:[%s2203_s28 + $0x8] sm:$0xff] %v991_v48  ;;  %v2219_v3 = vpop.f32.mrb[18].mxu0  ;;  %v2221_v4 = vpop.f32.mrb[18].mxu1  ;;  %v1554_v9 = vadd.f32 %v1553_v58, %v1552_v53  ;;  %v737_v1 = vmul.f32 0.5, %v2156_v35  ;;  %v899_v15 = vmul.f32 0.7978846, %v867_v63  ;;  %v883_v19 = vadd.f32 %v851_v6, %v2194_v28 }
 0x123   : > { %v1817_v5 = vpop.eup %1816  ;;  %1039 = vst [vmem:[%s2203_s28 + $0x88] sm:$0xff] %v1007_v55  ;;  %v2228_v10 = vpop.f32.mrb[19].mxu0  ;;  %v772_v16 = vmul.f32 0.044715, %v2217_v0  ;;  %v753_v18 = vmul.f32 0.5, %v2161_v46  ;;  %v2240_v35 = vadd.f32 %v1551_v60, %v2132_v50  ;;  %v738_v46 = vmul.f32 0.5, %v2167_v61 }
 0x124   : > { %v2230_v11 = vpop.f32.mrb[19].mxu1  ;;  %v1819_v12 = vpop.eup %1818  ;;  %v960_v13 = vadd.f32 1.0, %v1817_v5  ;;  %v788_v20 = vmul.f32 0.044715, %v2226_v7  ;;  %1828 = vtanh.f32 %v899_v15  ;;  %v915_v29 = vmul.f32 0.7978846, %v883_v19 }
 0x125   : > { %v976_v17 = vadd.f32 1.0, %v1819_v12  ;;  %v1821_v21 = vpop.eup %1820  ;;  %v804_v23 = vmul.f32 %v772_v16, %v2217_v0  ;;  %v773_v31 = vmul.f32 0.044715, %v2240_v35  ;;  %v2255_v38 = vadd.f32 %v1554_v9, %v2132_v50 }
 0x126   : > { %v992_v22 = vmul.f32 %v960_v13, %v2188_v2  ;;  %v961_v27 = vadd.f32 1.0, %v1821_v21  ;;  %v820_v30 = vmul.f32 %v788_v20, %v2226_v7  ;;  %v2248_v2 = vadd.f32 %v1599_v8, %v2132_v50 }
 0x127   : > { %v1008_v24 = vmul.f32 %v976_v17, %v752_v37  ;;  %v836_v25 = vmul.f32 %v804_v23, %v2217_v0  ;;  %v1823_v34 = vpop.eup %1822  ;;  %1830 = vtanh.f32 %v915_v29  ;;  %v754_v41 = vmul.f32 0.5, %v2170_v62 }
 0x128   : > { %1024 = vst [vmem:[%s2203_s28 + $0x10] sm:$0xff] %v992_v22  ;;  %v1558_v32 = vpop.f32.mrb[20].mxu0  ;;  %v2250_v33 = vpop.f32.mrb[20].mxu1  ;;  %v993_v36 = vmul.f32 %v961_v27, %v737_v1  ;;  %v852_v37 = vmul.f32 %v820_v30, %v2226_v7  ;;  %v977_v40 = vadd.f32 1.0, %v1823_v34  ;;  %v805_v44 = vmul.f32 %v773_v31, %v2240_v35 }
 0x129   : > { %1040 = vst [vmem:[%s2203_s28 + $0x90] sm:$0xff] %v1008_v24  ;;  %v1559_v61 = vpop.f32.mrb[21].mxu0  ;;  %v2257_v39 = vpop.f32.mrb[21].mxu1  ;;  %v868_v42 = vadd.f32 %v836_v25, %v2217_v0  ;;  %v739_v26 = vmul.f32 0.5, %v2186_v14  ;;  %v789_v49 = vmul.f32 0.044715, %v2248_v2  ;;  %v1602_v9 = vadd.f32 %v2212_v59, %v2209_v54 }
 0x12a   : > { %v2262_v45 = vpop.f32.mrb[22].mxu0  ;;  %v2264_v47 = vpop.f32.mrb[22].mxu1  ;;  %1025 = vst [vmem:[%s2203_s28 + $0x18] sm:$0xff] %v993_v36  ;;  %v884_v48 = vadd.f32 %v852_v37, %v2226_v7  ;;  %v774_v51 = vmul.f32 0.044715, %v2255_v38  ;;  %v1009_v53 = vmul.f32 %v977_v40, %v753_v18  ;;  %v837_v57 = vmul.f32 %v805_v44, %v2240_v35 }
 0x12b   : > { %v1825_v43 = vpop.eup %1824  ;;  %v2271_v62 = vpop.f32.mrb[23].mxu0  ;;  %v900_v56 = vmul.f32 0.7978846, %v868_v42  ;;  %v821_v14 = vmul.f32 %v789_v49, %v2248_v2  ;;  %v2286_v17 = vadd.f32 %v1602_v9, %v2132_v50  ;;  %v1557_v18 = vadd.f32 %v2228_v10, %v2219_v3 }
 0x12c   : > { %v1827_v52 = vpop.eup %1826  ;;  %v962_v55 = vadd.f32 1.0, %v1825_v43  ;;  %v2274_v58 = vpop.f32.mrb[23].mxu1  ;;  %v916_v60 = vmul.f32 0.7978846, %v884_v48  ;;  %v806_v5 = vmul.f32 %v774_v51, %v2255_v38  ;;  %1041 = vst [vmem:[%s2203_s28 + $0x98] sm:$0xff] %v1009_v53  ;;  %v869_v8 = vadd.f32 %v837_v57, %v2240_v35 }
 0x12d   : > { %v978_v63 = vadd.f32 1.0, %v1827_v52  ;;  %1832 = vtanh.f32 %v900_v56  ;;  %v853_v13 = vmul.f32 %v821_v14, %v2248_v2  ;;  %v1605_v19 = vadd.f32 %v2230_v11, %v2221_v4 }
 0x12e   : > { %v994_v6 = vmul.f32 %v962_v55, %v738_v46  ;;  %1834 = vtanh.f32 %v916_v60  ;;  %v838_v1 = vmul.f32 %v806_v5, %v2255_v38  ;;  %v1829_v15 = vpop.eup %1828  ;;  %v901_v16 = vmul.f32 0.7978846, %v869_v8 }
 0x12f   : > { %v1010_v12 = vmul.f32 %v978_v63, %v754_v41  ;;  %v963_v59 = vadd.f32 1.0, %v1829_v15  ;;  %v885_v21 = vadd.f32 %v853_v13, %v2248_v2  ;;  %v1560_v23 = vadd.f32 %v1559_v61, %v1558_v32 }
 0x130   : > { %1026 = vst [vmem:[%s2203_s28 + $0x20] sm:$0xff] %v994_v6  ;;  %v2292_v20 = vpop.f32.mrb[24].mxu0  ;;  %v2294_v54 = vpop.f32.mrb[24].mxu1  ;;  %v870_v22 = vadd.f32 %v838_v1, %v2255_v38  ;;  %1836 = vtanh.f32 %v901_v16  ;;  %v790_v3 = vmul.f32 0.044715, %v2286_v17  ;;  %v2305_v4 = vadd.f32 %v1557_v18, %v2132_v50 }
 0x131   : > { %1042 = vst [vmem:[%s2203_s28 + $0xa0] sm:$0xff] %v1010_v12  ;;  %v2299_v24 = vpop.f32.mrb[25].mxu0  ;;  %v2301_v27 = vpop.f32.mrb[25].mxu1  ;;  %v995_v30 = vmul.f32 %v963_v59, %v739_v26  ;;  %v917_v46 = vmul.f32 0.7978846, %v885_v21  ;;  %v2312_v31 = vadd.f32 %v1605_v19, %v2132_v50  ;;  %v755_v36 = vmul.f32 0.5, %v2194_v28 }
 0x132   : > { %v2307_v10 = vpop.f32.mrb[26].mxu0  ;;  %v2309_v11 = vpop.f32.mrb[26].mxu1  ;;  %v902_v25 = vmul.f32 0.7978846, %v870_v22  ;;  %v822_v61 = vmul.f32 %v790_v3, %v2286_v17  ;;  %v775_v40 = vmul.f32 0.044715, %v2305_v4  ;;  %v2325_v44 = vadd.f32 %v1560_v23, %v2132_v50 }
 0x133   : > { %v1831_v29 = vpop.eup %1830  ;;  %v2314_v32 = vpop.f32.mrb[27].mxu0  ;;  %1027 = vst [vmem:[%s2203_s28 + $0x28] sm:$0xff] %v995_v30  ;;  %v740_v41 = vmul.f32 0.5, %v2217_v0  ;;  %1838 = vtanh.f32 %v917_v46  ;;  %v791_v42 = vmul.f32 0.044715, %v2312_v31  ;;  %v756_v48 = vmul.f32 0.5, %v2226_v7 }
 0x134   : > { %v2316_v34 = vpop.f32.mrb[27].mxu1  ;;  %v979_v37 = vadd.f32 1.0, %v1831_v29  ;;  %1840 = vtanh.f32 %v902_v25  ;;  %v854_v26 = vmul.f32 %v822_v61, %v2286_v17  ;;  %v807_v28 = vmul.f32 %v775_v40, %v2305_v4 }
 0x135   : > { %v823_v49 = vmul.f32 %v791_v42, %v2312_v31  ;;  %v776_v51 = vmul.f32 0.044715, %v2325_v44  ;;  %v1608_v0 = vadd.f32 %v2257_v39, %v2250_v33  ;;  %v1563_v56 = vadd.f32 %v2271_v62, %v2262_v45 }
 0x136   : > { %v1011_v43 = vmul.f32 %v979_v37, %v755_v36  ;;  %v886_v53 = vadd.f32 %v854_v26, %v2286_v17  ;;  %v839_v55 = vmul.f32 %v807_v28, %v2305_v4  ;;  %v1611_v57 = vadd.f32 %v2274_v58, %v2264_v47 }
 0x137   : > { %v1833_v52 = vpop.eup %1832  ;;  %v855_v33 = vmul.f32 %v823_v49, %v2312_v31  ;;  %v808_v39 = vmul.f32 %v776_v51, %v2325_v44  ;;  %v2348_v5 = vadd.f32 %v1608_v0, %v2132_v50  ;;  %v2354_v58 = vadd.f32 %v1563_v56, %v2132_v50 }
 0x138   : > { %1043 = vst [vmem:[%s2203_s28 + $0xa8] sm:$0xff] %v1011_v43  ;;  %v2341_v7 = vpop.f32.mrb[28].mxu0  ;;  %v2343_v63 = vpop.f32.mrb[28].mxu1  ;;  %v964_v14 = vadd.f32 1.0, %v1833_v52  ;;  %v918_v62 = vmul.f32 0.7978846, %v886_v53  ;;  %v871_v47 = vadd.f32 %v839_v55, %v2305_v4  ;;  %v2375_v36 = vadd.f32 %v1611_v57, %v2132_v50 }
 0x139   : > { %v1835_v60 = vpop.eup %1834  ;;  %v1571_v6 = vpop.f32.mrb[29].mxu0  ;;  %v741_v1 = vmul.f32 0.5, %v2240_v35  ;;  %v887_v15 = vadd.f32 %v855_v33, %v2312_v31  ;;  %v840_v16 = vmul.f32 %v808_v39, %v2325_v44  ;;  %v792_v23 = vmul.f32 0.044715, %v2348_v5 }
 0x13a   : > { %v2350_v8 = vpop.f32.mrb[29].mxu1  ;;  %v980_v45 = vadd.f32 1.0, %v1835_v60  ;;  %v2356_v9 = vpop.f32.mrb[30].mxu0  ;;  %v996_v13 = vmul.f32 %v964_v14, %v740_v41  ;;  %1842 = vtanh.f32 %v918_v62  ;;  %v903_v22 = vmul.f32 0.7978846, %v871_v47 }
 0x13b   : > { %v2358_v12 = vpop.f32.mrb[30].mxu1  ;;  %v2363_v18 = vpop.f32.mrb[31].mxu0  ;;  %v757_v29 = vmul.f32 0.5, %v2248_v2  ;;  %v919_v30 = vmul.f32 0.7978846, %v887_v15  ;;  %v872_v35 = vadd.f32 %v840_v16, %v2325_v44  ;;  %v824_v46 = vmul.f32 %v792_v23, %v2348_v5 }
 0x13c   : > { %v2365_v19 = vpop.f32.mrb[31].mxu1  ;;  %v1837_v59 = vpop.eup %1836  ;;  %v1012_v21 = vmul.f32 %v980_v45, %v756_v48  ;;  %1028 = vst [vmem:[%s2203_s28 + $0x30] sm:$0xff] %v996_v13  ;;  %1844 = vtanh.f32 %v903_v22  ;;  %v777_v25 = vmul.f32 0.044715, %v2354_v58  ;;  %v1566_v2 = vadd.f32 %v2299_v24, %v2292_v20 }
 0x13d   : > { %v965_v3 = vadd.f32 1.0, %v1837_v59  ;;  %v1839_v37 = vpop.eup %1838  ;;  %1846 = vtanh.f32 %v919_v30  ;;  %v904_v40 = vmul.f32 0.7978846, %v872_v35  ;;  %v742_v43 = vmul.f32 0.5, %v2255_v38 }
 0x13e   : > { %1044 = vst [vmem:[%s2203_s28 + $0xb0] sm:$0xff] %v1012_v21  ;;  %v1841_v41 = vpop.eup %1840  ;;  %v981_v42 = vadd.f32 1.0, %v1839_v37  ;;  %v856_v26 = vmul.f32 %v824_v46, %v2348_v5  ;;  %v809_v28 = vmul.f32 %v777_v25, %v2354_v58  ;;  %v793_v49 = vmul.f32 0.044715, %v2375_v36 }
 0x13f   : > { %v997_v61 = vmul.f32 %v965_v3, %v741_v1  ;;  %v966_v48 = vadd.f32 1.0, %v1841_v41  ;;  %1848 = vtanh.f32 %v904_v40  ;;  %v2385_v51 = vadd.f32 %v1566_v2, %v2132_v50 }
 0x140   : > { %v1013_v0 = vmul.f32 %v981_v42, %v757_v29  ;;  %v888_v20 = vadd.f32 %v856_v26, %v2348_v5  ;;  %v841_v24 = vmul.f32 %v809_v28, %v2354_v58  ;;  %v1614_v38 = vadd.f32 %v2301_v27, %v2294_v54 }
 0x141   : > { %1029 = vst [vmem:[%s2203_s28 + $0x38] sm:$0xff] %v997_v61  ;;  %v998_v52 = vmul.f32 %v966_v48, %v742_v43  ;;  %v758_v53 = vmul.f32 0.5, %v2286_v17  ;;  %v825_v55 = vmul.f32 %v793_v49, %v2375_v36  ;;  %v778_v56 = vmul.f32 0.044715, %v2385_v51 }
 0x142   : > { %1045 = vst [vmem:[%s2203_s28 + $0xb8] sm:$0xff] %v1013_v0  ;;  %v920_v57 = vmul.f32 0.7978846, %v888_v20  ;;  %v873_v60 = vadd.f32 %v841_v24, %v2354_v58  ;;  %v2397_v14 = vadd.f32 %v1614_v38, %v2132_v50  ;;  %v1569_v33 = vadd.f32 %v2314_v32, %v2307_v10 }
 0x143   : > { %1030 = vst [vmem:[%s2203_s28 + $0x40] sm:$0xff] %v998_v52  ;;  %v857_v54 = vmul.f32 %v825_v55, %v2375_v36  ;;  %v810_v27 = vmul.f32 %v778_v56, %v2385_v51  ;;  %v1617_v17 = vadd.f32 %v2316_v34, %v2309_v11  ;;  %v1572_v39 = vadd.f32 %v1571_v6, %v2341_v7 }
 0x144   : > { %v1843_v45 = vpop.eup %1842  ;;  %v743_v62 = vmul.f32 0.5, %v2305_v4  ;;  %1850 = vtanh.f32 %v920_v57  ;;  %v905_v47 = vmul.f32 0.7978846, %v873_v60  ;;  %v794_v13 = vmul.f32 0.044715, %v2397_v14 }
 0x145   : > { %v982_v1 = vadd.f32 1.0, %v1843_v45  ;;  %v889_v10 = vadd.f32 %v857_v54, %v2375_v36  ;;  %v842_v32 = vmul.f32 %v810_v27, %v2385_v51  ;;  %v2412_v15 = vadd.f32 %v1569_v33, %v2132_v50 }
 0x146   : > { %v1845_v16 = vpop.eup %1844  ;;  %1852 = vtanh.f32 %v905_v47  ;;  %v826_v11 = vmul.f32 %v794_v13, %v2397_v14  ;;  %v2416_v34 = vadd.f32 %v1617_v17, %v2132_v50  ;;  %v2419_v4 = vadd.f32 %v1572_v39, %v2132_v50 }
 0x147   : > { %v1847_v7 = vpop.eup %1846  ;;  %v1014_v6 = vmul.f32 %v982_v1, %v758_v53  ;;  %v967_v59 = vadd.f32 1.0, %v1845_v16  ;;  %v921_v21 = vmul.f32 0.7978846, %v889_v10  ;;  %v874_v22 = vadd.f32 %v842_v32, %v2385_v51 }
 0x148   : > { %v759_v23 = vmul.f32 0.5, %v2312_v31  ;;  %v983_v3 = vadd.f32 1.0, %v1847_v7  ;;  %v858_v29 = vmul.f32 %v826_v11, %v2397_v14  ;;  %v779_v30 = vmul.f32 0.044715, %v2412_v15 }
 0x149   : > { %v1849_v35 = vpop.eup %1848  ;;  %1046 = vst [vmem:[%s2203_s28 + $0xc0] sm:$0xff] %v1014_v6  ;;  %v999_v46 = vmul.f32 %v967_v59, %v743_v62  ;;  %v744_v25 = vmul.f32 0.5, %v2325_v44  ;;  %1854 = vtanh.f32 %v921_v21  ;;  %v906_v37 = vmul.f32 0.7978846, %v874_v22 }
 0x14a   : > { %v1015_v61 = vmul.f32 %v983_v3, %v759_v23  ;;  %v968_v40 = vadd.f32 1.0, %v1849_v35  ;;  %v890_v2 = vadd.f32 %v858_v29, %v2397_v14  ;;  %v811_v31 = vmul.f32 %v779_v30, %v2412_v15 }
 0x14b   : > { %1031 = vst [vmem:[%s2203_s28 + $0x48] sm:$0xff] %v999_v46  ;;  %1856 = vtanh.f32 %v906_v37  ;;  %v795_v41 = vmul.f32 0.044715, %v2416_v34  ;;  %v780_v42 = vmul.f32 0.044715, %v2419_v4  ;;  %v1620_v28 = vadd.f32 %v2350_v8, %v2343_v63 }
 0x14c   : > { %1047 = vst [vmem:[%s2203_s28 + $0xc8] sm:$0xff] %v1015_v61  ;;  %v1000_v43 = vmul.f32 %v968_v40, %v744_v25  ;;  %v922_v26 = vmul.f32 0.7978846, %v890_v2  ;;  %v843_v44 = vmul.f32 %v811_v31, %v2412_v15  ;;  %v1575_v0 = vadd.f32 %v2363_v18, %v2356_v9 }
 0x14d   : > { %v827_v48 = vmul.f32 %v795_v41, %v2416_v34  ;;  %v812_v49 = vmul.f32 %v780_v42, %v2419_v4  ;;  %v1623_v20 = vadd.f32 %v2365_v19, %v2358_v12  ;;  %v760_v38 = vmul.f32 0.5, %v2348_v5 }
 0x14e   : > { %v1851_v24 = vpop.eup %1850  ;;  %1032 = vst [vmem:[%s2203_s28 + $0x50] sm:$0xff] %v1000_v43  ;;  %1858 = vtanh.f32 %v922_v26  ;;  %v875_v52 = vadd.f32 %v843_v44, %v2412_v15  ;;  %v2446_v53 = vadd.f32 %v1620_v28, %v2132_v50  ;;  %v2451_v9 = vadd.f32 %v1575_v0, %v2132_v50 }
 0x14f   : > { %v984_v63 = vadd.f32 1.0, %v1851_v24  ;;  %v859_v8 = vmul.f32 %v827_v48, %v2416_v34  ;;  %v844_v55 = vmul.f32 %v812_v49, %v2419_v4  ;;  %v745_v18 = vmul.f32 0.5, %v2354_v58 }
 0x150   : > { %v1853_v12 = vpop.eup %1852  ;;  %v907_v19 = vmul.f32 0.7978846, %v875_v52  ;;  %v796_v5 = vmul.f32 0.044715, %v2446_v53  ;;  %v2456_v56 = vadd.f32 %v1623_v20, %v2132_v50  ;;  %v781_v17 = vmul.f32 0.044715, %v2451_v9 }
 0x151   : > { %v1016_v57 = vmul.f32 %v984_v63, %v760_v38  ;;  %v969_v60 = vadd.f32 1.0, %v1853_v12  ;;  %v891_v33 = vadd.f32 %v859_v8, %v2416_v34  ;;  %v876_v54 = vadd.f32 %v844_v55, %v2419_v4 }
 0x152   : > { %1860 = vtanh.f32 %v907_v19  ;;  %v828_v27 = vmul.f32 %v796_v5, %v2446_v53  ;;  %v761_v45 = vmul.f32 0.5, %v2375_v36  ;;  %v813_v1 = vmul.f32 %v781_v17, %v2451_v9 }
 0x153   : > { %v1855_v39 = vpop.eup %1854  ;;  %1048 = vst [vmem:[%s2203_s28 + $0xd0] sm:$0xff] %v1016_v57  ;;  %v1001_v58 = vmul.f32 %v969_v60, %v745_v18  ;;  %v923_v62 = vmul.f32 0.7978846, %v891_v33  ;;  %v908_v50 = vmul.f32 0.7978846, %v876_v54  ;;  %v746_v16 = vmul.f32 0.5, %v2385_v51 }
 0x154   : > { %v985_v47 = vadd.f32 1.0, %v1855_v39  ;;  %v860_v13 = vmul.f32 %v828_v27, %v2446_v53  ;;  %v797_v10 = vmul.f32 0.044715, %v2456_v56  ;;  %v845_v6 = vmul.f32 %v813_v1, %v2451_v9 }
 0x155   : > { %v1857_v32 = vpop.eup %1856  ;;  %1033 = vst [vmem:[%s2203_s28 + $0x58] sm:$0xff] %v1001_v58  ;;  %1862 = vtanh.f32 %v923_v62  ;;  %v762_v3 = vmul.f32 0.5, %v2397_v14  ;;  %v747_v61 = vmul.f32 0.5, %v2412_v15  ;;  %v763_v42 = vmul.f32 0.5, %v2416_v34 }
 0x156   : > { %v1017_v11 = vmul.f32 %v985_v47, %v761_v45  ;;  %v970_v7 = vadd.f32 1.0, %v1857_v32  ;;  %1864 = vtanh.f32 %v908_v50  ;;  %v892_v36 = vadd.f32 %v860_v13, %v2446_v53 }
 0x157   : > { %v829_v59 = vmul.f32 %v797_v10, %v2456_v56  ;;  %v877_v51 = vadd.f32 %v845_v6, %v2451_v9  ;;  %v748_v26 = vmul.f32 0.5, %v2419_v4  ;;  %v764_v49 = vmul.f32 0.5, %v2446_v53 }
 0x158   : > { %v1859_v21 = vpop.eup %1858  ;;  %1049 = vst [vmem:[%s2203_s28 + $0xd8] sm:$0xff] %v1017_v11  ;;  %v1002_v22 = vmul.f32 %v970_v7, %v746_v16  ;;  %v924_v23 = vmul.f32 0.7978846, %v892_v36  ;;  %v749_v34 = vmul.f32 0.5, %v2451_v9  ;;  %v765_v4 = vmul.f32 0.5, %v2456_v56 }
 0x159   : > { %v986_v29 = vadd.f32 1.0, %v1859_v21  ;;  %v861_v30 = vmul.f32 %v829_v59, %v2456_v56  ;;  %v909_v46 = vmul.f32 0.7978846, %v877_v51 }
 0x15a   : > { %1034 = vst [vmem:[%s2203_s28 + $0x60] sm:$0xff] %v1002_v22  ;;  %1866 = vtanh.f32 %v924_v23 }
 0x15b   : > { %v1018_v35 = vmul.f32 %v986_v29, %v762_v3  ;;  %v893_v25 = vadd.f32 %v861_v30, %v2456_v56  ;;  %1868 = vtanh.f32 %v909_v46 }
 0x15c   : > { %v1861_v37 = vpop.eup %1860 }
 0x15d   : > { %1050 = vst [vmem:[%s2203_s28 + $0xe0] sm:$0xff] %v1018_v35  ;;  %v971_v40 = vadd.f32 1.0, %v1861_v37  ;;  %v925_v14 = vmul.f32 0.7978846, %v893_v25 }
 0x15f   : > { %v1863_v2 = vpop.eup %1862  ;;  %v1003_v31 = vmul.f32 %v971_v40, %v747_v61  ;;  %1870 = vtanh.f32 %v925_v14 }
 0x160   : > { %v1865_v41 = vpop.eup %1864  ;;  %v987_v43 = vadd.f32 1.0, %v1863_v2 }
 0x161   : > { %1035 = vst [vmem:[%s2203_s28 + $0x68] sm:$0xff] %v1003_v31  ;;  %v972_v44 = vadd.f32 1.0, %v1865_v41 }
 0x162   : > { %v1019_v28 = vmul.f32 %v987_v43, %v763_v42 }
 0x163   : > { %v1004_v15 = vmul.f32 %v972_v44, %v748_v26 }
 0x164   : > { %v1867_v48 = vpop.eup %1866  ;;  %1051 = vst [vmem:[%s2203_s28 + $0xe8] sm:$0xff] %v1019_v28 }
 0x165   : > { %1036 = vst [vmem:[%s2203_s28 + $0x70] sm:$0xff] %v1004_v15  ;;  %v988_v0 = vadd.f32 1.0, %v1867_v48  ;;  %v1869_v20 = vpop.eup %1868 }
 0x166   : > { %v973_v38 = vadd.f32 1.0, %v1869_v20 }
 0x167   : > { %v1020_v24 = vmul.f32 %v988_v0, %v764_v49 }
 0x168   : > { %v1005_v63 = vmul.f32 %v973_v38, %v749_v34  ;;  %1060 = sbr.rel (!%p2028_p3) target bundleno = 423 (0x1a7), region = 36 }
 0x169   : > { %v1871_v52 = vpop.eup %1870  ;;  %1052 = vst [vmem:[%s2203_s28 + $0xf0] sm:$0xff] %v1020_v24 }
 0x16a   : > { %v989_v8 = vadd.f32 1.0, %v1871_v52  ;;  %1037 = vst [vmem:[%s2203_s28 + $0x78] sm:$0xff] %v1005_v63 }
 0x16c   : > { %v1021_v55 = vmul.f32 %v989_v8, %v765_v4 }
 0x16e   : > { %1053 = vst [vmem:[%s2203_s28 + $0xf8] sm:$0xff] %v1021_v55 }
 0x16f   : > { %s2652_s29 = smov (!%p1063_p9, %s1062_s29), 32 }
 0x170   : > { %s1493_s7 = sshll.u32 %s2652_s29, 7 }
 0x171   : > { %p1496_p10 = scmp.eq.s32.totalorder %s1493_s7, 0 }
 0x172   : > { %s2504_s8 = sshrl.u32 (!%p1496_p10), %s2652_s29, 5 }
 0x173   : > { %1072 = sbr.rel (%p1496_p10) target bundleno = 423 (0x1a7), region = 40  ;;  %p1497_p11 = scmp.le.s32.totalorder (!%p1496_p10), %s2504_s8, 0 }
 0x17a   : > { %1361 = sbr.rel (%p1497_p11) target bundleno = 402 (0x192), region = 122  ;;  %s2640_s14 = smov (!%p1497_p11), %s2498_s6 }
 0x17b   : > { %s2641_s20 = smov (!%p1497_p11), %s2203_s28  ;;  %s2513_s25 = smov (!%p1497_p11), 0  }
 0x17c   : > { %s2515_s9 = smov (!%p1497_p11), 0  }
 0x181 LB: >> { %v1196_v53 = vld [vmem:[%s1950_s20] sm:$0xff]  ;;  %v1198_v9 = vld [vmem:[%s1950_s20 + $0x8] sm:$0xff]  ;;  %v1200_v12 = vld [vmem:[%s1950_s20 + $0x10] sm:$0xff]  ;;  %s1260_s10 = sadd.s32 1, %s1954_s25  ;;  %s1190_s9 = sadd.s32 1, %s1958_s9   ;;  %s1958_s9 = sphi %s2515_s9, %s1190_s9   ;;  %s1954_s25 = sphi %s2513_s25, %s2644_s25   ;;  %s1950_s20 = sphi %s2641_s20, %s2643_s20   ;;  %s1946_s14 = sphi %s2640_s14, %s2642_s14  }
 0x182   : >> { %1197 = vst [vmem:[%s1946_s14] sm:$0xff] %v1196_v53  ;;  %1199 = vst [vmem:[%s1946_s14 + $0x8] sm:$0xff] %v1198_v9  ;;  %v1202_v18 = vld [vmem:[%s1950_s20 + $0x18] sm:$0xff]  ;;  %v1204_v19 = vld [vmem:[%s1950_s20 + $0x20] sm:$0xff]  ;;  %p1261_p12 = scmp.ge.s32.totalorder %s1260_s10, %s2504_s8  ;;  %p1189_p13 = scmp.ge.s32.totalorder %s1190_s9, %s2504_s8 }
 0x183   : >> { %1201 = vst [vmem:[%s1946_s14 + $0x10] sm:$0xff] %v1200_v12  ;;  %v1206_v5 = vld [vmem:[%s1950_s20 + $0x28] sm:$0xff]  ;;  %1203 = vst [vmem:[%s1946_s14 + $0x18] sm:$0xff] %v1202_v18  ;;  %v1208_v56 = vld [vmem:[%s1950_s20 + $0x30] sm:$0xff] }
 0x184   : >> { %1205 = vst [vmem:[%s1946_s14 + $0x20] sm:$0xff] %v1204_v19  ;;  %1207 = vst [vmem:[%s1946_s14 + $0x28] sm:$0xff] %v1206_v5  ;;  %v1210_v57 = vld [vmem:[%s1950_s20 + $0x38] sm:$0xff]  ;;  %v1212_v60 = vld [vmem:[%s1950_s20 + $0x40] sm:$0xff]  ;;  %s2654_s10 = smov (%p1261_p12, %s1260_s10), 0 }
 0x185   : >> { %1209 = vst [vmem:[%s1946_s14 + $0x30] sm:$0xff] %v1208_v56  ;;  %1211 = vst [vmem:[%s1946_s14 + $0x38] sm:$0xff] %v1210_v57  ;;  %v1214_v33 = vld [vmem:[%s1950_s20 + $0x48] sm:$0xff]  ;;  %v1216_v54 = vld [vmem:[%s1950_s20 + $0x50] sm:$0xff]  ;;  %s1498_s11 = sshll.u32 %s2654_s10, 8  ;;  %s2644_s25 = smov %s2654_s10 }
 0x186   : >> { %1213 = vst [vmem:[%s1946_s14 + $0x40] sm:$0xff] %v1212_v60  ;;  %v1218_v27 = vld [vmem:[%s1950_s20 + $0x58] sm:$0xff]  ;;  %1215 = vst [vmem:[%s1946_s14 + $0x48] sm:$0xff] %v1214_v33  ;;  %v1220_v17 = vld [vmem:[%s1950_s20 + $0x60] sm:$0xff]  ;;  %s2571_s17 = scalar_lea.vmem %s2203_s28, %s1498_s11 [#allocation2]   ;;  %s1266_s19 = scalar_lea.vmem %s2498_s6, %s1498_s11  }
 0x187   : >> { %1217 = vst [vmem:[%s1946_s14 + $0x50] sm:$0xff] %v1216_v54  ;;  %1219 = vst [vmem:[%s1946_s14 + $0x58] sm:$0xff] %v1218_v27  ;;  %v1222_v39 = vld [vmem:[%s1950_s20 + $0x68] sm:$0xff]  ;;  %v1224_v58 = vld [vmem:[%s1950_s20 + $0x70] sm:$0xff] }
 0x188   : >> { %1221 = vst [vmem:[%s1946_s14 + $0x60] sm:$0xff] %v1220_v17  ;;  %1223 = vst [vmem:[%s1946_s14 + $0x68] sm:$0xff] %v1222_v39  ;;  %v1226_v45 = vld [vmem:[%s1950_s20 + $0x78] sm:$0xff]  ;;  %v1228_v62 = vld [vmem:[%s1950_s20 + $0x80] sm:$0xff] }
 0x189   : >> { %1225 = vst [vmem:[%s1946_s14 + $0x70] sm:$0xff] %v1224_v58  ;;  %v1230_v50 = vld [vmem:[%s1950_s20 + $0x88] sm:$0xff]  ;;  %1227 = vst [vmem:[%s1946_s14 + $0x78] sm:$0xff] %v1226_v45  ;;  %v1232_v47 = vld [vmem:[%s1950_s20 + $0x90] sm:$0xff] }
 0x18a   : >> { %1229 = vst [vmem:[%s1946_s14 + $0x80] sm:$0xff] %v1228_v62  ;;  %1231 = vst [vmem:[%s1946_s14 + $0x88] sm:$0xff] %v1230_v50  ;;  %v1234_v13 = vld [vmem:[%s1950_s20 + $0x98] sm:$0xff]  ;;  %v1236_v1 = vld [vmem:[%s1950_s20 + $0xa0] sm:$0xff] }
 0x18b   : >> { %1233 = vst [vmem:[%s1946_s14 + $0x90] sm:$0xff] %v1232_v47  ;;  %1235 = vst [vmem:[%s1946_s14 + $0x98] sm:$0xff] %v1234_v13  ;;  %v1238_v10 = vld [vmem:[%s1950_s20 + $0xa8] sm:$0xff]  ;;  %v1240_v32 = vld [vmem:[%s1950_s20 + $0xb0] sm:$0xff]  ;;  %1192 = sbr.rel (!%p1189_p13) target bundleno = 385 (0x181), region = 128 }
 0x18c   : >> { %1237 = vst [vmem:[%s1946_s14 + $0xa0] sm:$0xff] %v1236_v1  ;;  %v1242_v16 = vld [vmem:[%s1950_s20 + $0xb8] sm:$0xff]  ;;  %1239 = vst [vmem:[%s1946_s14 + $0xa8] sm:$0xff] %v1238_v10  ;;  %v1244_v11 = vld [vmem:[%s1950_s20 + $0xc0] sm:$0xff] }
 0x18d   : >> { %1241 = vst [vmem:[%s1946_s14 + $0xb0] sm:$0xff] %v1240_v32  ;;  %1243 = vst [vmem:[%s1946_s14 + $0xb8] sm:$0xff] %v1242_v16  ;;  %v1246_v7 = vld [vmem:[%s1950_s20 + $0xc8] sm:$0xff]  ;;  %v1248_v36 = vld [vmem:[%s1950_s20 + $0xd0] sm:$0xff] }
 0x18e   : >> { %1245 = vst [vmem:[%s1946_s14 + $0xc0] sm:$0xff] %v1244_v11  ;;  %1247 = vst [vmem:[%s1946_s14 + $0xc8] sm:$0xff] %v1246_v7  ;;  %v1250_v6 = vld [vmem:[%s1950_s20 + $0xd8] sm:$0xff]  ;;  %v1252_v59 = vld [vmem:[%s1950_s20 + $0xe0] sm:$0xff] }
 0x18f   : >> { %1249 = vst [vmem:[%s1946_s14 + $0xd0] sm:$0xff] %v1248_v36  ;;  %v1254_v21 = vld [vmem:[%s1950_s20 + $0xe8] sm:$0xff]  ;;  %1251 = vst [vmem:[%s1946_s14 + $0xd8] sm:$0xff] %v1250_v6  ;;  %v1256_v22 = vld [vmem:[%s1950_s20 + $0xf0] sm:$0xff] }
 0x190   : >> { %1253 = vst [vmem:[%s1946_s14 + $0xe0] sm:$0xff] %v1252_v59  ;;  %1255 = vst [vmem:[%s1946_s14 + $0xe8] sm:$0xff] %v1254_v21  ;;  %v1258_v23 = vld [vmem:[%s1950_s20 + $0xf8] sm:$0xff]  ;;  %s2643_s20 = smov %s2571_s17 }
 0x191   : >> { %1257 = vst [vmem:[%s1946_s14 + $0xf0] sm:$0xff] %v1256_v22  ;;  %1259 = vst [vmem:[%s1946_s14 + $0xf8] sm:$0xff] %v1258_v23  ;;  %s2642_s14 = smov %s1266_s19 }
 0x192 PF: > { %s2612_s21 = sand.u32 31, %s2652_s29   ;;  %s1510_s23 = sshll.u32 %s2504_s8, 8 }
 0x193   : > { %s1271_s24 = scalar_lea.vmem %s2203_s28, %s1510_s23 [#allocation2]   ;;  %s1273_s26 = scalar_lea.vmem %s2498_s6, %s1510_s23  }
 0x194   : > { %p1503_p0 = scmp.le.s32.totalorder %s2612_s21, 0 }
 0x195   : > { %s1960_s27 = smov (!%p1503_p0), %s1273_s26   ;;  %s1964_s12 = smov (!%p1503_p0), %s1271_s24  }
 0x196   : > { %1375 = sbr.rel (%p1503_p0) target bundleno = 423 (0x1a7), region = 133  ;;  %s1968_s30 = smov (!%p1503_p0), 0  }
 0x197   : > { %s1972_s4 = smov (!%p1503_p0), 0  }
 0x19d LB: >> { %v1283_v3 = vld [vmem:[%s1966_s12] sm:$0xff]  ;;  %s1285_s29 = sadd.s32 1, %s1970_s30  ;;  %s1277_s4 = sadd.s32 1, %s1974_s4   ;;  %s1974_s4 = sphi %s1972_s4, %s1277_s4   ;;  %s1970_s30 = sphi %s1968_s30, %s1969_s30   ;;  %s1966_s12 = sphi %s1964_s12, %s1290_s12   ;;  %s1962_s27 = sphi %s1960_s27, %s1291_s27  }
 0x19e   : >> { %1284 = vst [vmem:[%s1962_s27] sm:$0xff] %v1283_v3  ;;  %p1286_p1 = scmp.ge.s32.totalorder %s1285_s29, %s2612_s21  ;;  %p1276_p2 = scmp.ge.s32.totalorder %s1277_s4, %s2612_s21 }
 0x1a0   : >> { %s2656_s29 = smov (%p1286_p1, %s1285_s29), 0  ;;  %1279 = sbr.rel (!%p1276_p2) target bundleno = 413 (0x19d), region = 139 }
 0x1a1   : >> { %s1504_s28 = sshll.u32 %s2656_s29, 3  ;;  %s1969_s30 = smov %s2656_s29  }
 0x1a2   : >> { %s1290_s12 = scalar_lea.vmem %s1271_s24, %s1504_s28 [#allocation2]   ;;  %s1291_s27 = scalar_lea.vmem %s1273_s26, %s1504_s28  }
 0x1a7 PF: > { %s13_s16 = sadd.s32 1, %s1942_s16   ;;  %s2645_s12 = smov %s1930_s13 }
 0x1a8   : > { %p10_p3 = scmp.ge.s32.totalorder %s13_s16, 4   ;;  %s2646_s13 = smov %s2037_s22 }
 0x1a9   : > { %s2647_s14 = smov %s1938_s15  ;;  %s2648_s15 = smov %s2650_s18 }
 0x1aa   :  { %12 = sbr.rel (!%p10_p3) target bundleno = 3 (0x3), region = 150 }

</bundles_post_ra>
